<compile_context>
chip_gen: v7x
topology: tpu7x:2x2x1
jax: 0.10.0
libtpu: 0.0.40
codegen_flags: <defaults>
</compile_context>

<pallas_src>
import functools
import math

import jax
import jax.numpy as jnp
from jax import lax
from jax.experimental import pallas as pl
from jax.experimental.pallas import tpu as pltpu


def _round_up(x, m):
    return ((x + m - 1) // m) * m


# ----------------------------------------------------------------------------
# Fused forward kernel
# ----------------------------------------------------------------------------
def _decoder_gru_kernel(
    x_ref,                                        # (B, Dp)  lane-padded input
    wih0_ref, whh0_ref, bih0_ref, bhh0_ref,       # rnn1 layer 0
    wih1_ref, whh1_ref, bih1_ref, bhh1_ref,       # rnn1 layer 1
    wih2_ref, whh2_ref, bih2_ref, bhh2_ref,       # rnn2 layer 0
    wih3_ref, whh3_ref, bih3_ref, bhh3_ref,       # rnn2 layer 1
    n1g_ref, n1b_ref, n2g_ref, n2b_ref,           # LayerNorm gamma/beta (1, Hp)
    wout_ref, bout_ref,                           # (Hp, NF), (1, NF)
    out_ref,                                      # (T*B, NF) time-major output
    seq_a, seq_b,                                 # VMEM (T*B, Hp) ping-pong
    *, T, B, H, Hp):
    f32 = jnp.float32
    # Lane mask selecting the H real features out of the Hp padded lanes.
    feat_mask = lax.broadcasted_iota(jnp.int32, (1, Hp), 1) < H

    def gru_step(gx, h, whh_t, bhh):
        # gx / gh layout: [r | z | n], each block Hp lanes wide (lane aligned).
        gh = jnp.dot(h, whh_t, preferred_element_type=f32) + bhh
        r = jax.nn.sigmoid(gx[:, 0:Hp] + gh[:, 0:Hp])
        z = jax.nn.sigmoid(gx[:, Hp:2 * Hp] + gh[:, Hp:2 * Hp])
        n = jnp.tanh(gx[:, 2 * Hp:3 * Hp] + r * gh[:, 2 * Hp:3 * Hp])
        return (1.0 - z) * n + z * h

    def run_layer(get_gx, whh_t, bhh, seq_out_ref):
        # Serial recurrence, unrolled (T small & static).  Only h @ W_hh^T is
        # on the critical path; the input projection comes in precomputed.
        h = jnp.zeros((B, Hp), f32)
        for t in range(T):
            h = gru_step(get_gx(t), h, whh_t, bhh)
            seq_out_ref[t * B:(t + 1) * B, :] = h

    def input_proj(seq, wih_t_ref, bih_ref):
        # Whole-sequence input projection: one (T*B, K) @ (K, 3Hp) matmul.
        return jnp.dot(seq, wih_t_ref[...],
                       preferred_element_type=f32) + bih_ref[...]

    def layer_norm(seq, g, b):
        # LayerNorm over the H real features.  Padded lanes are zero; they are
        # masked out of the variance, and gamma/beta are zero-padded so padded
        # lanes stay zero on output (clean input for the next GRU layer).
        mean = jnp.sum(seq, axis=-1, keepdims=True) * (1.0 / H)
        cent = jnp.where(feat_mask, seq - mean, 0.0)
        var = jnp.sum(cent * cent, axis=-1, keepdims=True) * (1.0 / H)
        return cent * lax.rsqrt(var + 1e-5) * g + b

    # ---- rnn1, layer 0: input identical at every timestep -> single gx ----
    gx0 = jnp.dot(x_ref[...], wih0_ref[...],
                  preferred_element_type=f32) + bih0_ref[...]
    run_layer(lambda t: gx0, whh0_ref[...], bhh0_ref[...], seq_a)

    # ---- rnn1, layer 1 ----
    gx1 = input_proj(seq_a[...], wih1_ref, bih1_ref)
    run_layer(lambda t: gx1[t * B:(t + 1) * B, :],
              whh1_ref[...], bhh1_ref[...], seq_b)

    # ---- norm1 ----
    seq = layer_norm(seq_b[...], n1g_ref[...], n1b_ref[...])

    # ---- rnn2, layer 0 ----
    gx2 = input_proj(seq, wih2_ref, bih2_ref)
    run_layer(lambda t: gx2[t * B:(t + 1) * B, :],
              whh2_ref[...], bhh2_ref[...], seq_a)

    # ---- rnn2, layer 1 ----
    gx3 = input_proj(seq_a[...], wih3_ref, bih3_ref)
    run_layer(lambda t: gx3[t * B:(t + 1) * B, :],
              whh3_ref[...], bhh3_ref[...], seq_b)

    # ---- norm2 + output linear ----
    seq = layer_norm(seq_b[...], n2g_ref[...], n2b_ref[...])
    out_ref[...] = jnp.dot(seq, wout_ref[...],
                           preferred_element_type=f32) + bout_ref[...]


# ----------------------------------------------------------------------------
# One-time parameter preparation (transpose + lane padding, hoisted out of the
# forward pass)
# ----------------------------------------------------------------------------
def _pad_gru_layer(w_ih, w_hh, b_ih, b_hh, H, Hp, din, dp):
    """PyTorch (3H, in)/(3H, H) GRU weights -> transposed, lane-aligned
    [r | z | n] blocks of width Hp each, zero padded."""
    wih_t = jnp.zeros((dp, 3 * Hp), jnp.float32)
    whh_t = jnp.zeros((Hp, 3 * Hp), jnp.float32)
    bih = jnp.zeros((1, 3 * Hp), jnp.float32)
    bhh = jnp.zeros((1, 3 * Hp), jnp.float32)
    for g in range(3):
        wih_t = wih_t.at[:din, g * Hp:g * Hp + H].set(
            jnp.transpose(w_ih[g * H:(g + 1) * H, :]))
        whh_t = whh_t.at[:H, g * Hp:g * Hp + H].set(
            jnp.transpose(w_hh[g * H:(g + 1) * H, :]))
        bih = bih.at[0, g * Hp:g * Hp + H].set(b_ih[g * H:(g + 1) * H])
        bhh = bhh.at[0, g * Hp:g * Hp + H].set(b_hh[g * H:(g + 1) * H])
    return wih_t, whh_t, bih, bhh


def prepare_params(params, input_dim, n_features):
    H = input_dim                       # module sets self.hidden_dim = input_dim
    Hp = _round_up(H, 128)
    d0 = input_dim * n_features
    dp0 = _round_up(d0, 128)

    raw_layers = list(params["rnn1"]) + list(params["rnn2"])
    in_dims = [(d0, dp0), (H, Hp), (H, Hp), (H, Hp)]
    layers = [_pad_gru_layer(*lyr, H, Hp, din, dp)
              for lyr, (din, dp) in zip(raw_layers, in_dims)]

    def pad_vec(v):
        return jnp.zeros((1, Hp), jnp.float32).at[0, :H].set(v)

    w_out_t = jnp.zeros((Hp, n_features), jnp.float32).at[:H, :].set(
        jnp.transpose(params["out_w"]))

    return {
        "H": H, "Hp": Hp, "Dp": dp0, "D0": d0,
        "layers": layers,
        "n1g": pad_vec(params["norm1_g"]), "n1b": pad_vec(params["norm1_b"]),
        "n2g": pad_vec(params["norm2_g"]), "n2b": pad_vec(params["norm2_b"]),
        "w_out_t": w_out_t,
        "b_out": params["out_b"].reshape(1, n_features),
    }


# ----------------------------------------------------------------------------
# Forward pass wrapper (mirrors DecoderGRU.forward)
# ----------------------------------------------------------------------------
def decoder_gru_forward(x, prep, seq_len, n_features):
    """x: (B, 1, input_dim) -> (B, seq_len, n_features)."""
    B = x.shape[0]
    input_dim = x.shape[-1]
    T = seq_len
    H, Hp, Dp, D0 = prep["H"], prep["Hp"], prep["Dp"], prep["D0"]

    # PyTorch: x.repeat(1, seq_len, n_features).  The seq_len replication is
    # folded into the kernel (layer-0 gx is reused every step); only the tiny
    # time-invariant n_features tiling + lane padding happens here.
    x_rep = jnp.tile(x.reshape(B, input_dim), (1, n_features))       # (B, D0)
    x_pad = jnp.zeros((B, Dp), jnp.float32).at[:, :D0].set(x_rep)

    args = [x_pad]
    for lyr in prep["layers"]:
        args.extend(lyr)
    args += [prep["n1g"], prep["n1b"], prep["n2g"], prep["n2b"],
             prep["w_out_t"], prep["b_out"]]

    kernel = functools.partial(_decoder_gru_kernel, T=T, B=B, H=H, Hp=Hp)
    out_flat = pl.pallas_call(
        kernel,
        out_shape=jax.ShapeDtypeStruct((T * B, n_features), jnp.float32),
        scratch_shapes=[pltpu.VMEM((T * B, Hp), jnp.float32),
                        pltpu.VMEM((T * B, Hp), jnp.float32)],
    )(*args)
    # time-major (T, B, NF) -> batch_first (B, T, NF), matching PyTorch.
    return out_flat.reshape(T, B, n_features).transpose(1, 0, 2)


# ----------------------------------------------------------------------------
# Parameter init (deterministic, PyTorch-like uniform(-1/sqrt(H), 1/sqrt(H)))
# in raw PyTorch layout.
# ----------------------------------------------------------------------------
def init_params(key, input_dim, n_features):
    hidden = input_dim  # module sets self.hidden_dim = input_dim
    keys = iter(jax.random.split(key, 64))

    def u(shape, bound):
        return jax.random.uniform(next(keys), shape, jnp.float32, -bound, bound)

    def gru_layer_params(in_dim):
        k = 1.0 / math.sqrt(hidden)
        return (u((3 * hidden, in_dim), k),   # weight_ih (3H, in)
                u((3 * hidden, hidden), k),   # weight_hh (3H, H)
                u((3 * hidden,), k),          # bias_ih
                u((3 * hidden,), k))          # bias_hh

    return {
        "rnn1": [gru_layer_params(input_dim * n_features),
                 gru_layer_params(hidden)],
        "rnn2": [gru_layer_params(hidden),
                 gru_layer_params(hidden)],
        "norm1_g": jnp.ones((hidden,), jnp.float32),
        "norm1_b": jnp.zeros((hidden,), jnp.float32),
        "norm2_g": jnp.ones((hidden,), jnp.float32),
        "norm2_b": jnp.zeros((hidden,), jnp.float32),
        "out_w": u((n_features, hidden), 1.0 / math.sqrt(hidden)),
        "out_b": u((n_features,), 1.0 / math.sqrt(hidden)),
    }


# ----------------------------------------------------------------------------
# Pure-JAX reference (PyTorch semantics) for a sanity check
# ----------------------------------------------------------------------------
def _gru_layer_ref(x_tbh, w_ih, w_hh, b_ih, b_hh):
    H = w_hh.shape[1]
    hp = lax.Precision.HIGHEST

    def step(h, x_t):
        gx = jnp.dot(x_t, w_ih.T, precision=hp) + b_ih
        gh = jnp.dot(h, w_hh.T, precision=hp) + b_hh
        r = jax.nn.sigmoid(gx[:, :H] + gh[:, :H])
        z = jax.nn.sigmoid(gx[:, H:2 * H] + gh[:, H:2 * H])
        n = jnp.tanh(gx[:, 2 * H:] + r * gh[:, 2 * H:])
        h_new = (1.0 - z) * n + z * h
        return h_new, h_new

    h0 = jnp.zeros((x_tbh.shape[1], H), jnp.float32)
    _, ys = lax.scan(step, h0, x_tbh)
    return ys


def _layernorm_ref(x, g, b):
    mean = jnp.mean(x, axis=-1, keepdims=True)
    var = jnp.mean((x - mean) ** 2, axis=-1, keepdims=True)
    return (x - mean) * lax.rsqrt(var + 1e-5) * g + b


def decoder_gru_forward_ref(x, params, seq_len, n_features):
    xr = jnp.tile(x, (1, seq_len, n_features))
    h = jnp.transpose(xr, (1, 0, 2))              # (T, B, D)
    for lyr in params["rnn1"]:
        h = _gru_layer_ref(h, *lyr)
    h = _layernorm_ref(h, params["norm1_g"], params["norm1_b"])
    for lyr in params["rnn2"]:
        h = _gru_layer_ref(h, *lyr)
    h = _layernorm_ref(h, params["norm2_g"], params["norm2_b"])
    out = jnp.dot(h, params["out_w"].T,
                  precision=lax.Precision.HIGHEST) + params["out_b"]
    return jnp.transpose(out, (1, 0, 2))          # (B, T, NF)


if __name__ == "__main__":
    seq_len = 8
    input_dim = 64
    n_features = 1
    batch = 2

    x = jax.random.normal(jax.random.PRNGKey(0),
                          (batch, 1, input_dim), dtype=jnp.float32)
    params = init_params(jax.random.PRNGKey(1), input_dim, n_features)
    prep = prepare_params(params, input_dim, n_features)   # one-time re-layout

    out = decoder_gru_forward(x, prep, seq_len, n_features)
    out = jax.block_until_ready(out)

    assert out.shape == (batch, seq_len, n_features), out.shape
    assert bool(jnp.all(jnp.isfinite(out)))

    # Sanity check against a pure-JAX reference of the PyTorch module.
    ref = decoder_gru_forward_ref(x, params, seq_len, n_features)
    assert float(jnp.max(jnp.abs(out - ref))) < 5e-2

    print("KERNEL_OK")
</pallas_src>

<mosaic_0001>
module attributes {stable_mosaic.version = 11 : i64} {
  func.func @_decoder_gru_kernel(%arg0: memref<2x128xf32, #tpu.memory_space<vmem>>, %arg1: memref<128x384xf32, #tpu.memory_space<vmem>>, %arg2: memref<128x384xf32, #tpu.memory_space<vmem>>, %arg3: memref<1x384xf32, #tpu.memory_space<vmem>>, %arg4: memref<1x384xf32, #tpu.memory_space<vmem>>, %arg5: memref<128x384xf32, #tpu.memory_space<vmem>>, %arg6: memref<128x384xf32, #tpu.memory_space<vmem>>, %arg7: memref<1x384xf32, #tpu.memory_space<vmem>>, %arg8: memref<1x384xf32, #tpu.memory_space<vmem>>, %arg9: memref<128x384xf32, #tpu.memory_space<vmem>>, %arg10: memref<128x384xf32, #tpu.memory_space<vmem>>, %arg11: memref<1x384xf32, #tpu.memory_space<vmem>>, %arg12: memref<1x384xf32, #tpu.memory_space<vmem>>, %arg13: memref<128x384xf32, #tpu.memory_space<vmem>>, %arg14: memref<128x384xf32, #tpu.memory_space<vmem>>, %arg15: memref<1x384xf32, #tpu.memory_space<vmem>>, %arg16: memref<1x384xf32, #tpu.memory_space<vmem>>, %arg17: memref<1x128xf32, #tpu.memory_space<vmem>>, %arg18: memref<1x128xf32, #tpu.memory_space<vmem>>, %arg19: memref<1x128xf32, #tpu.memory_space<vmem>>, %arg20: memref<1x128xf32, #tpu.memory_space<vmem>>, %arg21: memref<128x1xf32, #tpu.memory_space<vmem>>, %arg22: memref<1x1xf32, #tpu.memory_space<vmem>>, %arg23: memref<16x1xf32, #tpu.memory_space<vmem>>, %arg24: memref<16x128xf32, #tpu.memory_space<vmem>>, %arg25: memref<16x128xf32, #tpu.memory_space<vmem>>) attributes {dimension_semantics = [], scalar_prefetch = 0 : i64, scratch_operands = 2 : i64, tpu.core_type = #tpu.core_type<tc>} {
    %0 = tpu.iota {dimensions = array<i32: 1>} : vector<1x128xi32>
    %c64_i32 = arith.constant 64 : i32
    %1 = vector.broadcast %c64_i32 : i32 to vector<1x128xi32>
    %2 = arith.cmpi slt, %0, %1 : vector<1x128xi32>
    %c0 = arith.constant 0 : index
    %c0_0 = arith.constant 0 : index
    %3 = vector.load %arg0[%c0, %c0_0] : memref<2x128xf32, #tpu.memory_space<vmem>>, vector<2x128xf32>
    %c0_1 = arith.constant 0 : index
    %c0_2 = arith.constant 0 : index
    %4 = vector.load %arg1[%c0_1, %c0_2] : memref<128x384xf32, #tpu.memory_space<vmem>>, vector<128x384xf32>
    %cst = arith.constant dense<0.000000e+00> : vector<2x384xf32>
    %5 = tpu.matmul %3, %4, %cst {dimension_numbers = #tpu.dot_dimension_numbers<[1], [0], [0], [1], [0, 0, 1, 1], [], []>} : vector<2x128xf32>, vector<128x384xf32>, vector<2x384xf32> -> vector<2x384xf32>
    %c0_3 = arith.constant 0 : index
    %c0_4 = arith.constant 0 : index
    %6 = vector.load %arg3[%c0_3, %c0_4] : memref<1x384xf32, #tpu.memory_space<vmem>>, vector<1x384xf32>
    %7 = vector.broadcast %6 : vector<1x384xf32> to vector<2x384xf32>
    %8 = arith.addf %5, %7 : vector<2x384xf32>
    %c0_5 = arith.constant 0 : index
    %c0_6 = arith.constant 0 : index
    %9 = vector.load %arg2[%c0_5, %c0_6] : memref<128x384xf32, #tpu.memory_space<vmem>>, vector<128x384xf32>
    %c0_7 = arith.constant 0 : index
    %c0_8 = arith.constant 0 : index
    %10 = vector.load %arg4[%c0_7, %c0_8] : memref<1x384xf32, #tpu.memory_space<vmem>>, vector<1x384xf32>
    %cst_9 = arith.constant 0.000000e+00 : f32
    %11 = vector.broadcast %cst_9 : f32 to vector<2x128xf32>
    %cst_10 = arith.constant dense<0.000000e+00> : vector<2x384xf32>
    %12 = tpu.matmul %11, %9, %cst_10 {dimension_numbers = #tpu.dot_dimension_numbers<[1], [0], [0], [1], [0, 0, 1, 1], [], []>} : vector<2x128xf32>, vector<128x384xf32>, vector<2x384xf32> -> vector<2x384xf32>
    %13 = vector.broadcast %10 : vector<1x384xf32> to vector<2x384xf32>
    %14 = arith.addf %12, %13 : vector<2x384xf32>
    %15 = vector.extract_strided_slice %8 {offsets = [0, 0], sizes = [2, 128], strides = [1, 1]} : vector<2x384xf32> to vector<2x128xf32>
    %16 = vector.extract_strided_slice %14 {offsets = [0, 0], sizes = [2, 128], strides = [1, 1]} : vector<2x384xf32> to vector<2x128xf32>
    %17 = arith.addf %15, %16 : vector<2x128xf32>
    %18 = arith.negf %17 : vector<2x128xf32>
    %19 = math.exp %18 : vector<2x128xf32>
    %cst_11 = arith.constant 1.000000e+00 : f32
    %20 = vector.broadcast %cst_11 : f32 to vector<2x128xf32>
    %21 = arith.addf %20, %19 : vector<2x128xf32>
    %22 = arith.divf %20, %21 : vector<2x128xf32>
    %23 = vector.extract_strided_slice %8 {offsets = [0, 128], sizes = [2, 128], strides = [1, 1]} : vector<2x384xf32> to vector<2x128xf32>
    %24 = vector.extract_strided_slice %14 {offsets = [0, 128], sizes = [2, 128], strides = [1, 1]} : vector<2x384xf32> to vector<2x128xf32>
    %25 = arith.addf %23, %24 : vector<2x128xf32>
    %26 = arith.negf %25 : vector<2x128xf32>
    %27 = math.exp %26 : vector<2x128xf32>
    %cst_12 = arith.constant 1.000000e+00 : f32
    %28 = vector.broadcast %cst_12 : f32 to vector<2x128xf32>
    %29 = arith.addf %28, %27 : vector<2x128xf32>
    %30 = arith.divf %28, %29 : vector<2x128xf32>
    %31 = vector.extract_strided_slice %8 {offsets = [0, 256], sizes = [2, 128], strides = [1, 1]} : vector<2x384xf32> to vector<2x128xf32>
    %32 = vector.extract_strided_slice %14 {offsets = [0, 256], sizes = [2, 128], strides = [1, 1]} : vector<2x384xf32> to vector<2x128xf32>
    %33 = arith.mulf %22, %32 : vector<2x128xf32>
    %34 = arith.addf %31, %33 : vector<2x128xf32>
    %35 = math.tanh %34 : vector<2x128xf32>
    %cst_13 = arith.constant 1.000000e+00 : f32
    %36 = vector.broadcast %cst_13 : f32 to vector<2x128xf32>
    %37 = arith.subf %36, %30 : vector<2x128xf32>
    %38 = arith.mulf %37, %35 : vector<2x128xf32>
    %39 = arith.mulf %30, %11 : vector<2x128xf32>
    %40 = arith.addf %38, %39 : vector<2x128xf32>
    %c0_14 = arith.constant 0 : index
    %c0_15 = arith.constant 0 : index
    %41 = vector.load %arg24[%c0_14, %c0_15] : memref<16x128xf32, #tpu.memory_space<vmem>>, vector<2x128xf32>
    tpu.vector_store %arg24[%c0_14, %c0_15], %40 {strides = array<i32>} : memref<16x128xf32, #tpu.memory_space<vmem>>, vector<2x128xf32>,
    %cst_16 = arith.constant dense<0.000000e+00> : vector<2x384xf32>
    %42 = tpu.matmul %40, %9, %cst_16 {dimension_numbers = #tpu.dot_dimension_numbers<[1], [0], [0], [1], [0, 0, 1, 1], [], []>} : vector<2x128xf32>, vector<128x384xf32>, vector<2x384xf32> -> vector<2x384xf32>
    %43 = vector.broadcast %10 : vector<1x384xf32> to vector<2x384xf32>
    %44 = arith.addf %42, %43 : vector<2x384xf32>
    %45 = vector.extract_strided_slice %8 {offsets = [0, 0], sizes = [2, 128], strides = [1, 1]} : vector<2x384xf32> to vector<2x128xf32>
    %46 = vector.extract_strided_slice %44 {offsets = [0, 0], sizes = [2, 128], strides = [1, 1]} : vector<2x384xf32> to vector<2x128xf32>
    %47 = arith.addf %45, %46 : vector<2x128xf32>
    %48 = arith.negf %47 : vector<2x128xf32>
    %49 = math.exp %48 : vector<2x128xf32>
    %cst_17 = arith.constant 1.000000e+00 : f32
    %50 = vector.broadcast %cst_17 : f32 to vector<2x128xf32>
    %51 = arith.addf %50, %49 : vector<2x128xf32>
    %52 = arith.divf %50, %51 : vector<2x128xf32>
    %53 = vector.extract_strided_slice %8 {offsets = [0, 128], sizes = [2, 128], strides = [1, 1]} : vector<2x384xf32> to vector<2x128xf32>
    %54 = vector.extract_strided_slice %44 {offsets = [0, 128], sizes = [2, 128], strides = [1, 1]} : vector<2x384xf32> to vector<2x128xf32>
    %55 = arith.addf %53, %54 : vector<2x128xf32>
    %56 = arith.negf %55 : vector<2x128xf32>
    %57 = math.exp %56 : vector<2x128xf32>
    %cst_18 = arith.constant 1.000000e+00 : f32
    %58 = vector.broadcast %cst_18 : f32 to vector<2x128xf32>
    %59 = arith.addf %58, %57 : vector<2x128xf32>
    %60 = arith.divf %58, %59 : vector<2x128xf32>
    %61 = vector.extract_strided_slice %8 {offsets = [0, 256], sizes = [2, 128], strides = [1, 1]} : vector<2x384xf32> to vector<2x128xf32>
    %62 = vector.extract_strided_slice %44 {offsets = [0, 256], sizes = [2, 128], strides = [1, 1]} : vector<2x384xf32> to vector<2x128xf32>
    %63 = arith.mulf %52, %62 : vector<2x128xf32>
    %64 = arith.addf %61, %63 : vector<2x128xf32>
    %65 = math.tanh %64 : vector<2x128xf32>
    %cst_19 = arith.constant 1.000000e+00 : f32
    %66 = vector.broadcast %cst_19 : f32 to vector<2x128xf32>
    %67 = arith.subf %66, %60 : vector<2x128xf32>
    %68 = arith.mulf %67, %65 : vector<2x128xf32>
    %69 = arith.mulf %60, %40 : vector<2x128xf32>
    %70 = arith.addf %68, %69 : vector<2x128xf32>
    %c2 = arith.constant 2 : index
    %c0_20 = arith.constant 0 : index
    %71 = vector.load %arg24[%c2, %c0_20] : memref<16x128xf32, #tpu.memory_space<vmem>>, vector<2x128xf32>
    tpu.vector_store %arg24[%c2, %c0_20], %70 {strides = array<i32>} : memref<16x128xf32, #tpu.memory_space<vmem>>, vector<2x128xf32>,
    %cst_21 = arith.constant dense<0.000000e+00> : vector<2x384xf32>
    %72 = tpu.matmul %70, %9, %cst_21 {dimension_numbers = #tpu.dot_dimension_numbers<[1], [0], [0], [1], [0, 0, 1, 1], [], []>} : vector<2x128xf32>, vector<128x384xf32>, vector<2x384xf32> -> vector<2x384xf32>
    %73 = vector.broadcast %10 : vector<1x384xf32> to vector<2x384xf32>
    %74 = arith.addf %72, %73 : vector<2x384xf32>
    %75 = vector.extract_strided_slice %8 {offsets = [0, 0], sizes = [2, 128], strides = [1, 1]} : vector<2x384xf32> to vector<2x128xf32>
    %76 = vector.extract_strided_slice %74 {offsets = [0, 0], sizes = [2, 128], strides = [1, 1]} : vector<2x384xf32> to vector<2x128xf32>
    %77 = arith.addf %75, %76 : vector<2x128xf32>
    %78 = arith.negf %77 : vector<2x128xf32>
    %79 = math.exp %78 : vector<2x128xf32>
    %cst_22 = arith.constant 1.000000e+00 : f32
    %80 = vector.broadcast %cst_22 : f32 to vector<2x128xf32>
    %81 = arith.addf %80, %79 : vector<2x128xf32>
    %82 = arith.divf %80, %81 : vector<2x128xf32>
    %83 = vector.extract_strided_slice %8 {offsets = [0, 128], sizes = [2, 128], strides = [1, 1]} : vector<2x384xf32> to vector<2x128xf32>
    %84 = vector.extract_strided_slice %74 {offsets = [0, 128], sizes = [2, 128], strides = [1, 1]} : vector<2x384xf32> to vector<2x128xf32>
    %85 = arith.addf %83, %84 : vector<2x128xf32>
    %86 = arith.negf %85 : vector<2x128xf32>
    %87 = math.exp %86 : vector<2x128xf32>
    %cst_23 = arith.constant 1.000000e+00 : f32
    %88 = vector.broadcast %cst_23 : f32 to vector<2x128xf32>
    %89 = arith.addf %88, %87 : vector<2x128xf32>
    %90 = arith.divf %88, %89 : vector<2x128xf32>
    %91 = vector.extract_strided_slice %8 {offsets = [0, 256], sizes = [2, 128], strides = [1, 1]} : vector<2x384xf32> to vector<2x128xf32>
    %92 = vector.extract_strided_slice %74 {offsets = [0, 256], sizes = [2, 128], strides = [1, 1]} : vector<2x384xf32> to vector<2x128xf32>
    %93 = arith.mulf %82, %92 : vector<2x128xf32>
    %94 = arith.addf %91, %93 : vector<2x128xf32>
    %95 = math.tanh %94 : vector<2x128xf32>
    %cst_24 = arith.constant 1.000000e+00 : f32
    %96 = vector.broadcast %cst_24 : f32 to vector<2x128xf32>
    %97 = arith.subf %96, %90 : vector<2x128xf32>
    %98 = arith.mulf %97, %95 : vector<2x128xf32>
    %99 = arith.mulf %90, %70 : vector<2x128xf32>
    %100 = arith.addf %98, %99 : vector<2x128xf32>
    %c4 = arith.constant 4 : index
    %c0_25 = arith.constant 0 : index
    %101 = vector.load %arg24[%c4, %c0_25] : memref<16x128xf32, #tpu.memory_space<vmem>>, vector<2x128xf32>
    tpu.vector_store %arg24[%c4, %c0_25], %100 {strides = array<i32>} : memref<16x128xf32, #tpu.memory_space<vmem>>, vector<2x128xf32>,
    %cst_26 = arith.constant dense<0.000000e+00> : vector<2x384xf32>
    %102 = tpu.matmul %100, %9, %cst_26 {dimension_numbers = #tpu.dot_dimension_numbers<[1], [0], [0], [1], [0, 0, 1, 1], [], []>} : vector<2x128xf32>, vector<128x384xf32>, vector<2x384xf32> -> vector<2x384xf32>
    %103 = vector.broadcast %10 : vector<1x384xf32> to vector<2x384xf32>
    %104 = arith.addf %102, %103 : vector<2x384xf32>
    %105 = vector.extract_strided_slice %8 {offsets = [0, 0], sizes = [2, 128], strides = [1, 1]} : vector<2x384xf32> to vector<2x128xf32>
    %106 = vector.extract_strided_slice %104 {offsets = [0, 0], sizes = [2, 128], strides = [1, 1]} : vector<2x384xf32> to vector<2x128xf32>
    %107 = arith.addf %105, %106 : vector<2x128xf32>
    %108 = arith.negf %107 : vector<2x128xf32>
    %109 = math.exp %108 : vector<2x128xf32>
    %cst_27 = arith.constant 1.000000e+00 : f32
    %110 = vector.broadcast %cst_27 : f32 to vector<2x128xf32>
    %111 = arith.addf %110, %109 : vector<2x128xf32>
    %112 = arith.divf %110, %111 : vector<2x128xf32>
    %113 = vector.extract_strided_slice %8 {offsets = [0, 128], sizes = [2, 128], strides = [1, 1]} : vector<2x384xf32> to vector<2x128xf32>
    %114 = vector.extract_strided_slice %104 {offsets = [0, 128], sizes = [2, 128], strides = [1, 1]} : vector<2x384xf32> to vector<2x128xf32>
    %115 = arith.addf %113, %114 : vector<2x128xf32>
    %116 = arith.negf %115 : vector<2x128xf32>
    %117 = math.exp %116 : vector<2x128xf32>
    %cst_28 = arith.constant 1.000000e+00 : f32
    %118 = vector.broadcast %cst_28 : f32 to vector<2x128xf32>
    %119 = arith.addf %118, %117 : vector<2x128xf32>
    %120 = arith.divf %118, %119 : vector<2x128xf32>
    %121 = vector.extract_strided_slice %8 {offsets = [0, 256], sizes = [2, 128], strides = [1, 1]} : vector<2x384xf32> to vector<2x128xf32>
    %122 = vector.extract_strided_slice %104 {offsets = [0, 256], sizes = [2, 128], strides = [1, 1]} : vector<2x384xf32> to vector<2x128xf32>
    %123 = arith.mulf %112, %122 : vector<2x128xf32>
    %124 = arith.addf %121, %123 : vector<2x128xf32>
    %125 = math.tanh %124 : vector<2x128xf32>
    %cst_29 = arith.constant 1.000000e+00 : f32
    %126 = vector.broadcast %cst_29 : f32 to vector<2x128xf32>
    %127 = arith.subf %126, %120 : vector<2x128xf32>
    %128 = arith.mulf %127, %125 : vector<2x128xf32>
    %129 = arith.mulf %120, %100 : vector<2x128xf32>
    %130 = arith.addf %128, %129 : vector<2x128xf32>
    %c6 = arith.constant 6 : index
    %c0_30 = arith.constant 0 : index
    %131 = vector.load %arg24[%c6, %c0_30] : memref<16x128xf32, #tpu.memory_space<vmem>>, vector<2x128xf32>
    tpu.vector_store %arg24[%c6, %c0_30], %130 {strides = array<i32>} : memref<16x128xf32, #tpu.memory_space<vmem>>, vector<2x128xf32>,
    %cst_31 = arith.constant dense<0.000000e+00> : vector<2x384xf32>
    %132 = tpu.matmul %130, %9, %cst_31 {dimension_numbers = #tpu.dot_dimension_numbers<[1], [0], [0], [1], [0, 0, 1, 1], [], []>} : vector<2x128xf32>, vector<128x384xf32>, vector<2x384xf32> -> vector<2x384xf32>
    %133 = vector.broadcast %10 : vector<1x384xf32> to vector<2x384xf32>
    %134 = arith.addf %132, %133 : vector<2x384xf32>
    %135 = vector.extract_strided_slice %8 {offsets = [0, 0], sizes = [2, 128], strides = [1, 1]} : vector<2x384xf32> to vector<2x128xf32>
    %136 = vector.extract_strided_slice %134 {offsets = [0, 0], sizes = [2, 128], strides = [1, 1]} : vector<2x384xf32> to vector<2x128xf32>
    %137 = arith.addf %135, %136 : vector<2x128xf32>
    %138 = arith.negf %137 : vector<2x128xf32>
    %139 = math.exp %138 : vector<2x128xf32>
    %cst_32 = arith.constant 1.000000e+00 : f32
    %140 = vector.broadcast %cst_32 : f32 to vector<2x128xf32>
    %141 = arith.addf %140, %139 : vector<2x128xf32>
    %142 = arith.divf %140, %141 : vector<2x128xf32>
    %143 = vector.extract_strided_slice %8 {offsets = [0, 128], sizes = [2, 128], strides = [1, 1]} : vector<2x384xf32> to vector<2x128xf32>
    %144 = vector.extract_strided_slice %134 {offsets = [0, 128], sizes = [2, 128], strides = [1, 1]} : vector<2x384xf32> to vector<2x128xf32>
    %145 = arith.addf %143, %144 : vector<2x128xf32>
    %146 = arith.negf %145 : vector<2x128xf32>
    %147 = math.exp %146 : vector<2x128xf32>
    %cst_33 = arith.constant 1.000000e+00 : f32
    %148 = vector.broadcast %cst_33 : f32 to vector<2x128xf32>
    %149 = arith.addf %148, %147 : vector<2x128xf32>
    %150 = arith.divf %148, %149 : vector<2x128xf32>
    %151 = vector.extract_strided_slice %8 {offsets = [0, 256], sizes = [2, 128], strides = [1, 1]} : vector<2x384xf32> to vector<2x128xf32>
    %152 = vector.extract_strided_slice %134 {offsets = [0, 256], sizes = [2, 128], strides = [1, 1]} : vector<2x384xf32> to vector<2x128xf32>
    %153 = arith.mulf %142, %152 : vector<2x128xf32>
    %154 = arith.addf %151, %153 : vector<2x128xf32>
    %155 = math.tanh %154 : vector<2x128xf32>
    %cst_34 = arith.constant 1.000000e+00 : f32
    %156 = vector.broadcast %cst_34 : f32 to vector<2x128xf32>
    %157 = arith.subf %156, %150 : vector<2x128xf32>
    %158 = arith.mulf %157, %155 : vector<2x128xf32>
    %159 = arith.mulf %150, %130 : vector<2x128xf32>
    %160 = arith.addf %158, %159 : vector<2x128xf32>
    %c8 = arith.constant 8 : index
    %c0_35 = arith.constant 0 : index
    %161 = vector.load %arg24[%c8, %c0_35] : memref<16x128xf32, #tpu.memory_space<vmem>>, vector<2x128xf32>
    tpu.vector_store %arg24[%c8, %c0_35], %160 {strides = array<i32>} : memref<16x128xf32, #tpu.memory_space<vmem>>, vector<2x128xf32>,
    %cst_36 = arith.constant dense<0.000000e+00> : vector<2x384xf32>
    %162 = tpu.matmul %160, %9, %cst_36 {dimension_numbers = #tpu.dot_dimension_numbers<[1], [0], [0], [1], [0, 0, 1, 1], [], []>} : vector<2x128xf32>, vector<128x384xf32>, vector<2x384xf32> -> vector<2x384xf32>
    %163 = vector.broadcast %10 : vector<1x384xf32> to vector<2x384xf32>
    %164 = arith.addf %162, %163 : vector<2x384xf32>
    %165 = vector.extract_strided_slice %8 {offsets = [0, 0], sizes = [2, 128], strides = [1, 1]} : vector<2x384xf32> to vector<2x128xf32>
    %166 = vector.extract_strided_slice %164 {offsets = [0, 0], sizes = [2, 128], strides = [1, 1]} : vector<2x384xf32> to vector<2x128xf32>
    %167 = arith.addf %165, %166 : vector<2x128xf32>
    %168 = arith.negf %167 : vector<2x128xf32>
    %169 = math.exp %168 : vector<2x128xf32>
    %cst_37 = arith.constant 1.000000e+00 : f32
    %170 = vector.broadcast %cst_37 : f32 to vector<2x128xf32>
    %171 = arith.addf %170, %169 : vector<2x128xf32>
    %172 = arith.divf %170, %171 : vector<2x128xf32>
    %173 = vector.extract_strided_slice %8 {offsets = [0, 128], sizes = [2, 128], strides = [1, 1]} : vector<2x384xf32> to vector<2x128xf32>
    %174 = vector.extract_strided_slice %164 {offsets = [0, 128], sizes = [2, 128], strides = [1, 1]} : vector<2x384xf32> to vector<2x128xf32>
    %175 = arith.addf %173, %174 : vector<2x128xf32>
    %176 = arith.negf %175 : vector<2x128xf32>
    %177 = math.exp %176 : vector<2x128xf32>
    %cst_38 = arith.constant 1.000000e+00 : f32
    %178 = vector.broadcast %cst_38 : f32 to vector<2x128xf32>
    %179 = arith.addf %178, %177 : vector<2x128xf32>
    %180 = arith.divf %178, %179 : vector<2x128xf32>
    %181 = vector.extract_strided_slice %8 {offsets = [0, 256], sizes = [2, 128], strides = [1, 1]} : vector<2x384xf32> to vector<2x128xf32>
    %182 = vector.extract_strided_slice %164 {offsets = [0, 256], sizes = [2, 128], strides = [1, 1]} : vector<2x384xf32> to vector<2x128xf32>
    %183 = arith.mulf %172, %182 : vector<2x128xf32>
    %184 = arith.addf %181, %183 : vector<2x128xf32>
    %185 = math.tanh %184 : vector<2x128xf32>
    %cst_39 = arith.constant 1.000000e+00 : f32
    %186 = vector.broadcast %cst_39 : f32 to vector<2x128xf32>
    %187 = arith.subf %186, %180 : vector<2x128xf32>
    %188 = arith.mulf %187, %185 : vector<2x128xf32>
    %189 = arith.mulf %180, %160 : vector<2x128xf32>
    %190 = arith.addf %188, %189 : vector<2x128xf32>
    %c10 = arith.constant 10 : index
    %c0_40 = arith.constant 0 : index
    %191 = vector.load %arg24[%c10, %c0_40] : memref<16x128xf32, #tpu.memory_space<vmem>>, vector<2x128xf32>
    tpu.vector_store %arg24[%c10, %c0_40], %190 {strides = array<i32>} : memref<16x128xf32, #tpu.memory_space<vmem>>, vector<2x128xf32>,
    %cst_41 = arith.constant dense<0.000000e+00> : vector<2x384xf32>
    %192 = tpu.matmul %190, %9, %cst_41 {dimension_numbers = #tpu.dot_dimension_numbers<[1], [0], [0], [1], [0, 0, 1, 1], [], []>} : vector<2x128xf32>, vector<128x384xf32>, vector<2x384xf32> -> vector<2x384xf32>
    %193 = vector.broadcast %10 : vector<1x384xf32> to vector<2x384xf32>
    %194 = arith.addf %192, %193 : vector<2x384xf32>
    %195 = vector.extract_strided_slice %8 {offsets = [0, 0], sizes = [2, 128], strides = [1, 1]} : vector<2x384xf32> to vector<2x128xf32>
    %196 = vector.extract_strided_slice %194 {offsets = [0, 0], sizes = [2, 128], strides = [1, 1]} : vector<2x384xf32> to vector<2x128xf32>
    %197 = arith.addf %195, %196 : vector<2x128xf32>
    %198 = arith.negf %197 : vector<2x128xf32>
    %199 = math.exp %198 : vector<2x128xf32>
    %cst_42 = arith.constant 1.000000e+00 : f32
    %200 = vector.broadcast %cst_42 : f32 to vector<2x128xf32>
    %201 = arith.addf %200, %199 : vector<2x128xf32>
    %202 = arith.divf %200, %201 : vector<2x128xf32>
    %203 = vector.extract_strided_slice %8 {offsets = [0, 128], sizes = [2, 128], strides = [1, 1]} : vector<2x384xf32> to vector<2x128xf32>
    %204 = vector.extract_strided_slice %194 {offsets = [0, 128], sizes = [2, 128], strides = [1, 1]} : vector<2x384xf32> to vector<2x128xf32>
    %205 = arith.addf %203, %204 : vector<2x128xf32>
    %206 = arith.negf %205 : vector<2x128xf32>
    %207 = math.exp %206 : vector<2x128xf32>
    %cst_43 = arith.constant 1.000000e+00 : f32
    %208 = vector.broadcast %cst_43 : f32 to vector<2x128xf32>
    %209 = arith.addf %208, %207 : vector<2x128xf32>
    %210 = arith.divf %208, %209 : vector<2x128xf32>
    %211 = vector.extract_strided_slice %8 {offsets = [0, 256], sizes = [2, 128], strides = [1, 1]} : vector<2x384xf32> to vector<2x128xf32>
    %212 = vector.extract_strided_slice %194 {offsets = [0, 256], sizes = [2, 128], strides = [1, 1]} : vector<2x384xf32> to vector<2x128xf32>
    %213 = arith.mulf %202, %212 : vector<2x128xf32>
    %214 = arith.addf %211, %213 : vector<2x128xf32>
    %215 = math.tanh %214 : vector<2x128xf32>
    %cst_44 = arith.constant 1.000000e+00 : f32
    %216 = vector.broadcast %cst_44 : f32 to vector<2x128xf32>
    %217 = arith.subf %216, %210 : vector<2x128xf32>
    %218 = arith.mulf %217, %215 : vector<2x128xf32>
    %219 = arith.mulf %210, %190 : vector<2x128xf32>
    %220 = arith.addf %218, %219 : vector<2x128xf32>
    %c12 = arith.constant 12 : index
    %c0_45 = arith.constant 0 : index
    %221 = vector.load %arg24[%c12, %c0_45] : memref<16x128xf32, #tpu.memory_space<vmem>>, vector<2x128xf32>
    tpu.vector_store %arg24[%c12, %c0_45], %220 {strides = array<i32>} : memref<16x128xf32, #tpu.memory_space<vmem>>, vector<2x128xf32>,
    %cst_46 = arith.constant dense<0.000000e+00> : vector<2x384xf32>
    %222 = tpu.matmul %220, %9, %cst_46 {dimension_numbers = #tpu.dot_dimension_numbers<[1], [0], [0], [1], [0, 0, 1, 1], [], []>} : vector<2x128xf32>, vector<128x384xf32>, vector<2x384xf32> -> vector<2x384xf32>
    %223 = vector.broadcast %10 : vector<1x384xf32> to vector<2x384xf32>
    %224 = arith.addf %222, %223 : vector<2x384xf32>
    %225 = vector.extract_strided_slice %8 {offsets = [0, 0], sizes = [2, 128], strides = [1, 1]} : vector<2x384xf32> to vector<2x128xf32>
    %226 = vector.extract_strided_slice %224 {offsets = [0, 0], sizes = [2, 128], strides = [1, 1]} : vector<2x384xf32> to vector<2x128xf32>
    %227 = arith.addf %225, %226 : vector<2x128xf32>
    %228 = arith.negf %227 : vector<2x128xf32>
    %229 = math.exp %228 : vector<2x128xf32>
    %cst_47 = arith.constant 1.000000e+00 : f32
    %230 = vector.broadcast %cst_47 : f32 to vector<2x128xf32>
    %231 = arith.addf %230, %229 : vector<2x128xf32>
    %232 = arith.divf %230, %231 : vector<2x128xf32>
    %233 = vector.extract_strided_slice %8 {offsets = [0, 128], sizes = [2, 128], strides = [1, 1]} : vector<2x384xf32> to vector<2x128xf32>
    %234 = vector.extract_strided_slice %224 {offsets = [0, 128], sizes = [2, 128], strides = [1, 1]} : vector<2x384xf32> to vector<2x128xf32>
    %235 = arith.addf %233, %234 : vector<2x128xf32>
    %236 = arith.negf %235 : vector<2x128xf32>
    %237 = math.exp %236 : vector<2x128xf32>
    %cst_48 = arith.constant 1.000000e+00 : f32
    %238 = vector.broadcast %cst_48 : f32 to vector<2x128xf32>
    %239 = arith.addf %238, %237 : vector<2x128xf32>
    %240 = arith.divf %238, %239 : vector<2x128xf32>
    %241 = vector.extract_strided_slice %8 {offsets = [0, 256], sizes = [2, 128], strides = [1, 1]} : vector<2x384xf32> to vector<2x128xf32>
    %242 = vector.extract_strided_slice %224 {offsets = [0, 256], sizes = [2, 128], strides = [1, 1]} : vector<2x384xf32> to vector<2x128xf32>
    %243 = arith.mulf %232, %242 : vector<2x128xf32>
    %244 = arith.addf %241, %243 : vector<2x128xf32>
    %245 = math.tanh %244 : vector<2x128xf32>
    %cst_49 = arith.constant 1.000000e+00 : f32
    %246 = vector.broadcast %cst_49 : f32 to vector<2x128xf32>
    %247 = arith.subf %246, %240 : vector<2x128xf32>
    %248 = arith.mulf %247, %245 : vector<2x128xf32>
    %249 = arith.mulf %240, %220 : vector<2x128xf32>
    %250 = arith.addf %248, %249 : vector<2x128xf32>
    %c14 = arith.constant 14 : index
    %c0_50 = arith.constant 0 : index
    %251 = vector.load %arg24[%c14, %c0_50] : memref<16x128xf32, #tpu.memory_space<vmem>>, vector<2x128xf32>
    tpu.vector_store %arg24[%c14, %c0_50], %250 {strides = array<i32>} : memref<16x128xf32, #tpu.memory_space<vmem>>, vector<2x128xf32>,
    %c0_51 = arith.constant 0 : index
    %c0_52 = arith.constant 0 : index
    %252 = vector.load %arg24[%c0_51, %c0_52] : memref<16x128xf32, #tpu.memory_space<vmem>>, vector<16x128xf32>
    %c0_53 = arith.constant 0 : index
    %c0_54 = arith.constant 0 : index
    %253 = vector.load %arg5[%c0_53, %c0_54] : memref<128x384xf32, #tpu.memory_space<vmem>>, vector<128x384xf32>
    %cst_55 = arith.constant dense<0.000000e+00> : vector<16x384xf32>
    %254 = tpu.matmul %252, %253, %cst_55 {dimension_numbers = #tpu.dot_dimension_numbers<[1], [0], [0], [1], [0, 0, 1, 1], [], []>} : vector<16x128xf32>, vector<128x384xf32>, vector<16x384xf32> -> vector<16x384xf32>
    %c0_56 = arith.constant 0 : index
    %c0_57 = arith.constant 0 : index
    %255 = vector.load %arg7[%c0_56, %c0_57] : memref<1x384xf32, #tpu.memory_space<vmem>>, vector<1x384xf32>
    %256 = vector.broadcast %255 : vector<1x384xf32> to vector<16x384xf32>
    %257 = arith.addf %254, %256 : vector<16x384xf32>
    %c0_58 = arith.constant 0 : index
    %c0_59 = arith.constant 0 : index
    %258 = vector.load %arg6[%c0_58, %c0_59] : memref<128x384xf32, #tpu.memory_space<vmem>>, vector<128x384xf32>
    %c0_60 = arith.constant 0 : index
    %c0_61 = arith.constant 0 : index
    %259 = vector.load %arg8[%c0_60, %c0_61] : memref<1x384xf32, #tpu.memory_space<vmem>>, vector<1x384xf32>
    %cst_62 = arith.constant 0.000000e+00 : f32
    %260 = vector.broadcast %cst_62 : f32 to vector<2x128xf32>
    %261 = vector.extract_strided_slice %257 {offsets = [0, 0], sizes = [2, 384], strides = [1, 1]} : vector<16x384xf32> to vector<2x384xf32>
    %cst_63 = arith.constant dense<0.000000e+00> : vector<2x384xf32>
    %262 = tpu.matmul %260, %258, %cst_63 {dimension_numbers = #tpu.dot_dimension_numbers<[1], [0], [0], [1], [0, 0, 1, 1], [], []>} : vector<2x128xf32>, vector<128x384xf32>, vector<2x384xf32> -> vector<2x384xf32>
    %263 = vector.broadcast %259 : vector<1x384xf32> to vector<2x384xf32>
    %264 = arith.addf %262, %263 : vector<2x384xf32>
    %265 = vector.extract_strided_slice %261 {offsets = [0, 0], sizes = [2, 128], strides = [1, 1]} : vector<2x384xf32> to vector<2x128xf32>
    %266 = vector.extract_strided_slice %264 {offsets = [0, 0], sizes = [2, 128], strides = [1, 1]} : vector<2x384xf32> to vector<2x128xf32>
    %267 = arith.addf %265, %266 : vector<2x128xf32>
    %268 = arith.negf %267 : vector<2x128xf32>
    %269 = math.exp %268 : vector<2x128xf32>
    %cst_64 = arith.constant 1.000000e+00 : f32
    %270 = vector.broadcast %cst_64 : f32 to vector<2x128xf32>
    %271 = arith.addf %270, %269 : vector<2x128xf32>
    %272 = arith.divf %270, %271 : vector<2x128xf32>
    %273 = vector.extract_strided_slice %261 {offsets = [0, 128], sizes = [2, 128], strides = [1, 1]} : vector<2x384xf32> to vector<2x128xf32>
    %274 = vector.extract_strided_slice %264 {offsets = [0, 128], sizes = [2, 128], strides = [1, 1]} : vector<2x384xf32> to vector<2x128xf32>
    %275 = arith.addf %273, %274 : vector<2x128xf32>
    %276 = arith.negf %275 : vector<2x128xf32>
    %277 = math.exp %276 : vector<2x128xf32>
    %cst_65 = arith.constant 1.000000e+00 : f32
    %278 = vector.broadcast %cst_65 : f32 to vector<2x128xf32>
    %279 = arith.addf %278, %277 : vector<2x128xf32>
    %280 = arith.divf %278, %279 : vector<2x128xf32>
    %281 = vector.extract_strided_slice %261 {offsets = [0, 256], sizes = [2, 128], strides = [1, 1]} : vector<2x384xf32> to vector<2x128xf32>
    %282 = vector.extract_strided_slice %264 {offsets = [0, 256], sizes = [2, 128], strides = [1, 1]} : vector<2x384xf32> to vector<2x128xf32>
    %283 = arith.mulf %272, %282 : vector<2x128xf32>
    %284 = arith.addf %281, %283 : vector<2x128xf32>
    %285 = math.tanh %284 : vector<2x128xf32>
    %cst_66 = arith.constant 1.000000e+00 : f32
    %286 = vector.broadcast %cst_66 : f32 to vector<2x128xf32>
    %287 = arith.subf %286, %280 : vector<2x128xf32>
    %288 = arith.mulf %287, %285 : vector<2x128xf32>
    %289 = arith.mulf %280, %260 : vector<2x128xf32>
    %290 = arith.addf %288, %289 : vector<2x128xf32>
    %c0_67 = arith.constant 0 : index
    %c0_68 = arith.constant 0 : index
    %291 = vector.load %arg25[%c0_67, %c0_68] : memref<16x128xf32, #tpu.memory_space<vmem>>, vector<2x128xf32>
    tpu.vector_store %arg25[%c0_67, %c0_68], %290 {strides = array<i32>} : memref<16x128xf32, #tpu.memory_space<vmem>>, vector<2x128xf32>,
    %292 = vector.extract_strided_slice %257 {offsets = [2, 0], sizes = [2, 384], strides = [1, 1]} : vector<16x384xf32> to vector<2x384xf32>
    %cst_69 = arith.constant dense<0.000000e+00> : vector<2x384xf32>
    %293 = tpu.matmul %290, %258, %cst_69 {dimension_numbers = #tpu.dot_dimension_numbers<[1], [0], [0], [1], [0, 0, 1, 1], [], []>} : vector<2x128xf32>, vector<128x384xf32>, vector<2x384xf32> -> vector<2x384xf32>
    %294 = vector.broadcast %259 : vector<1x384xf32> to vector<2x384xf32>
    %295 = arith.addf %293, %294 : vector<2x384xf32>
    %296 = vector.extract_strided_slice %292 {offsets = [0, 0], sizes = [2, 128], strides = [1, 1]} : vector<2x384xf32> to vector<2x128xf32>
    %297 = vector.extract_strided_slice %295 {offsets = [0, 0], sizes = [2, 128], strides = [1, 1]} : vector<2x384xf32> to vector<2x128xf32>
    %298 = arith.addf %296, %297 : vector<2x128xf32>
    %299 = arith.negf %298 : vector<2x128xf32>
    %300 = math.exp %299 : vector<2x128xf32>
    %cst_70 = arith.constant 1.000000e+00 : f32
    %301 = vector.broadcast %cst_70 : f32 to vector<2x128xf32>
    %302 = arith.addf %301, %300 : vector<2x128xf32>
    %303 = arith.divf %301, %302 : vector<2x128xf32>
    %304 = vector.extract_strided_slice %292 {offsets = [0, 128], sizes = [2, 128], strides = [1, 1]} : vector<2x384xf32> to vector<2x128xf32>
    %305 = vector.extract_strided_slice %295 {offsets = [0, 128], sizes = [2, 128], strides = [1, 1]} : vector<2x384xf32> to vector<2x128xf32>
    %306 = arith.addf %304, %305 : vector<2x128xf32>
    %307 = arith.negf %306 : vector<2x128xf32>
    %308 = math.exp %307 : vector<2x128xf32>
    %cst_71 = arith.constant 1.000000e+00 : f32
    %309 = vector.broadcast %cst_71 : f32 to vector<2x128xf32>
    %310 = arith.addf %309, %308 : vector<2x128xf32>
    %311 = arith.divf %309, %310 : vector<2x128xf32>
    %312 = vector.extract_strided_slice %292 {offsets = [0, 256], sizes = [2, 128], strides = [1, 1]} : vector<2x384xf32> to vector<2x128xf32>
    %313 = vector.extract_strided_slice %295 {offsets = [0, 256], sizes = [2, 128], strides = [1, 1]} : vector<2x384xf32> to vector<2x128xf32>
    %314 = arith.mulf %303, %313 : vector<2x128xf32>
    %315 = arith.addf %312, %314 : vector<2x128xf32>
    %316 = math.tanh %315 : vector<2x128xf32>
    %cst_72 = arith.constant 1.000000e+00 : f32
    %317 = vector.broadcast %cst_72 : f32 to vector<2x128xf32>
    %318 = arith.subf %317, %311 : vector<2x128xf32>
    %319 = arith.mulf %318, %316 : vector<2x128xf32>
    %320 = arith.mulf %311, %290 : vector<2x128xf32>
    %321 = arith.addf %319, %320 : vector<2x128xf32>
    %c2_73 = arith.constant 2 : index
    %c0_74 = arith.constant 0 : index
    %322 = vector.load %arg25[%c2_73, %c0_74] : memref<16x128xf32, #tpu.memory_space<vmem>>, vector<2x128xf32>
    tpu.vector_store %arg25[%c2_73, %c0_74], %321 {strides = array<i32>} : memref<16x128xf32, #tpu.memory_space<vmem>>, vector<2x128xf32>,
    %323 = vector.extract_strided_slice %257 {offsets = [4, 0], sizes = [2, 384], strides = [1, 1]} : vector<16x384xf32> to vector<2x384xf32>
    %cst_75 = arith.constant dense<0.000000e+00> : vector<2x384xf32>
    %324 = tpu.matmul %321, %258, %cst_75 {dimension_numbers = #tpu.dot_dimension_numbers<[1], [0], [0], [1], [0, 0, 1, 1], [], []>} : vector<2x128xf32>, vector<128x384xf32>, vector<2x384xf32> -> vector<2x384xf32>
    %325 = vector.broadcast %259 : vector<1x384xf32> to vector<2x384xf32>
    %326 = arith.addf %324, %325 : vector<2x384xf32>
    %327 = vector.extract_strided_slice %323 {offsets = [0, 0], sizes = [2, 128], strides = [1, 1]} : vector<2x384xf32> to vector<2x128xf32>
    %328 = vector.extract_strided_slice %326 {offsets = [0, 0], sizes = [2, 128], strides = [1, 1]} : vector<2x384xf32> to vector<2x128xf32>
    %329 = arith.addf %327, %328 : vector<2x128xf32>
    %330 = arith.negf %329 : vector<2x128xf32>
    %331 = math.exp %330 : vector<2x128xf32>
    %cst_76 = arith.constant 1.000000e+00 : f32
    %332 = vector.broadcast %cst_76 : f32 to vector<2x128xf32>
    %333 = arith.addf %332, %331 : vector<2x128xf32>
    %334 = arith.divf %332, %333 : vector<2x128xf32>
    %335 = vector.extract_strided_slice %323 {offsets = [0, 128], sizes = [2, 128], strides = [1, 1]} : vector<2x384xf32> to vector<2x128xf32>
    %336 = vector.extract_strided_slice %326 {offsets = [0, 128], sizes = [2, 128], strides = [1, 1]} : vector<2x384xf32> to vector<2x128xf32>
    %337 = arith.addf %335, %336 : vector<2x128xf32>
    %338 = arith.negf %337 : vector<2x128xf32>
    %339 = math.exp %338 : vector<2x128xf32>
    %cst_77 = arith.constant 1.000000e+00 : f32
    %340 = vector.broadcast %cst_77 : f32 to vector<2x128xf32>
    %341 = arith.addf %340, %339 : vector<2x128xf32>
    %342 = arith.divf %340, %341 : vector<2x128xf32>
    %343 = vector.extract_strided_slice %323 {offsets = [0, 256], sizes = [2, 128], strides = [1, 1]} : vector<2x384xf32> to vector<2x128xf32>
    %344 = vector.extract_strided_slice %326 {offsets = [0, 256], sizes = [2, 128], strides = [1, 1]} : vector<2x384xf32> to vector<2x128xf32>
    %345 = arith.mulf %334, %344 : vector<2x128xf32>
    %346 = arith.addf %343, %345 : vector<2x128xf32>
    %347 = math.tanh %346 : vector<2x128xf32>
    %cst_78 = arith.constant 1.000000e+00 : f32
    %348 = vector.broadcast %cst_78 : f32 to vector<2x128xf32>
    %349 = arith.subf %348, %342 : vector<2x128xf32>
    %350 = arith.mulf %349, %347 : vector<2x128xf32>
    %351 = arith.mulf %342, %321 : vector<2x128xf32>
    %352 = arith.addf %350, %351 : vector<2x128xf32>
    %c4_79 = arith.constant 4 : index
    %c0_80 = arith.constant 0 : index
    %353 = vector.load %arg25[%c4_79, %c0_80] : memref<16x128xf32, #tpu.memory_space<vmem>>, vector<2x128xf32>
    tpu.vector_store %arg25[%c4_79, %c0_80], %352 {strides = array<i32>} : memref<16x128xf32, #tpu.memory_space<vmem>>, vector<2x128xf32>,
    %354 = vector.extract_strided_slice %257 {offsets = [6, 0], sizes = [2, 384], strides = [1, 1]} : vector<16x384xf32> to vector<2x384xf32>
    %cst_81 = arith.constant dense<0.000000e+00> : vector<2x384xf32>
    %355 = tpu.matmul %352, %258, %cst_81 {dimension_numbers = #tpu.dot_dimension_numbers<[1], [0], [0], [1], [0, 0, 1, 1], [], []>} : vector<2x128xf32>, vector<128x384xf32>, vector<2x384xf32> -> vector<2x384xf32>
    %356 = vector.broadcast %259 : vector<1x384xf32> to vector<2x384xf32>
    %357 = arith.addf %355, %356 : vector<2x384xf32>
    %358 = vector.extract_strided_slice %354 {offsets = [0, 0], sizes = [2, 128], strides = [1, 1]} : vector<2x384xf32> to vector<2x128xf32>
    %359 = vector.extract_strided_slice %357 {offsets = [0, 0], sizes = [2, 128], strides = [1, 1]} : vector<2x384xf32> to vector<2x128xf32>
    %360 = arith.addf %358, %359 : vector<2x128xf32>
    %361 = arith.negf %360 : vector<2x128xf32>
    %362 = math.exp %361 : vector<2x128xf32>
    %cst_82 = arith.constant 1.000000e+00 : f32
    %363 = vector.broadcast %cst_82 : f32 to vector<2x128xf32>
    %364 = arith.addf %363, %362 : vector<2x128xf32>
    %365 = arith.divf %363, %364 : vector<2x128xf32>
    %366 = vector.extract_strided_slice %354 {offsets = [0, 128], sizes = [2, 128], strides = [1, 1]} : vector<2x384xf32> to vector<2x128xf32>
    %367 = vector.extract_strided_slice %357 {offsets = [0, 128], sizes = [2, 128], strides = [1, 1]} : vector<2x384xf32> to vector<2x128xf32>
    %368 = arith.addf %366, %367 : vector<2x128xf32>
    %369 = arith.negf %368 : vector<2x128xf32>
    %370 = math.exp %369 : vector<2x128xf32>
    %cst_83 = arith.constant 1.000000e+00 : f32
    %371 = vector.broadcast %cst_83 : f32 to vector<2x128xf32>
    %372 = arith.addf %371, %370 : vector<2x128xf32>
    %373 = arith.divf %371, %372 : vector<2x128xf32>
    %374 = vector.extract_strided_slice %354 {offsets = [0, 256], sizes = [2, 128], strides = [1, 1]} : vector<2x384xf32> to vector<2x128xf32>
    %375 = vector.extract_strided_slice %357 {offsets = [0, 256], sizes = [2, 128], strides = [1, 1]} : vector<2x384xf32> to vector<2x128xf32>
    %376 = arith.mulf %365, %375 : vector<2x128xf32>
    %377 = arith.addf %374, %376 : vector<2x128xf32>
    %378 = math.tanh %377 : vector<2x128xf32>
    %cst_84 = arith.constant 1.000000e+00 : f32
    %379 = vector.broadcast %cst_84 : f32 to vector<2x128xf32>
    %380 = arith.subf %379, %373 : vector<2x128xf32>
    %381 = arith.mulf %380, %378 : vector<2x128xf32>
    %382 = arith.mulf %373, %352 : vector<2x128xf32>
    %383 = arith.addf %381, %382 : vector<2x128xf32>
    %c6_85 = arith.constant 6 : index
    %c0_86 = arith.constant 0 : index
    %384 = vector.load %arg25[%c6_85, %c0_86] : memref<16x128xf32, #tpu.memory_space<vmem>>, vector<2x128xf32>
    tpu.vector_store %arg25[%c6_85, %c0_86], %383 {strides = array<i32>} : memref<16x128xf32, #tpu.memory_space<vmem>>, vector<2x128xf32>,
    %385 = vector.extract_strided_slice %257 {offsets = [8, 0], sizes = [2, 384], strides = [1, 1]} : vector<16x384xf32> to vector<2x384xf32>
    %cst_87 = arith.constant dense<0.000000e+00> : vector<2x384xf32>
    %386 = tpu.matmul %383, %258, %cst_87 {dimension_numbers = #tpu.dot_dimension_numbers<[1], [0], [0], [1], [0, 0, 1, 1], [], []>} : vector<2x128xf32>, vector<128x384xf32>, vector<2x384xf32> -> vector<2x384xf32>
    %387 = vector.broadcast %259 : vector<1x384xf32> to vector<2x384xf32>
    %388 = arith.addf %386, %387 : vector<2x384xf32>
    %389 = vector.extract_strided_slice %385 {offsets = [0, 0], sizes = [2, 128], strides = [1, 1]} : vector<2x384xf32> to vector<2x128xf32>
    %390 = vector.extract_strided_slice %388 {offsets = [0, 0], sizes = [2, 128], strides = [1, 1]} : vector<2x384xf32> to vector<2x128xf32>
    %391 = arith.addf %389, %390 : vector<2x128xf32>
    %392 = arith.negf %391 : vector<2x128xf32>
    %393 = math.exp %392 : vector<2x128xf32>
    %cst_88 = arith.constant 1.000000e+00 : f32
    %394 = vector.broadcast %cst_88 : f32 to vector<2x128xf32>
    %395 = arith.addf %394, %393 : vector<2x128xf32>
    %396 = arith.divf %394, %395 : vector<2x128xf32>
    %397 = vector.extract_strided_slice %385 {offsets = [0, 128], sizes = [2, 128], strides = [1, 1]} : vector<2x384xf32> to vector<2x128xf32>
    %398 = vector.extract_strided_slice %388 {offsets = [0, 128], sizes = [2, 128], strides = [1, 1]} : vector<2x384xf32> to vector<2x128xf32>
    %399 = arith.addf %397, %398 : vector<2x128xf32>
    %400 = arith.negf %399 : vector<2x128xf32>
    %401 = math.exp %400 : vector<2x128xf32>
    %cst_89 = arith.constant 1.000000e+00 : f32
    %402 = vector.broadcast %cst_89 : f32 to vector<2x128xf32>
    %403 = arith.addf %402, %401 : vector<2x128xf32>
    %404 = arith.divf %402, %403 : vector<2x128xf32>
    %405 = vector.extract_strided_slice %385 {offsets = [0, 256], sizes = [2, 128], strides = [1, 1]} : vector<2x384xf32> to vector<2x128xf32>
    %406 = vector.extract_strided_slice %388 {offsets = [0, 256], sizes = [2, 128], strides = [1, 1]} : vector<2x384xf32> to vector<2x128xf32>
    %407 = arith.mulf %396, %406 : vector<2x128xf32>
    %408 = arith.addf %405, %407 : vector<2x128xf32>
    %409 = math.tanh %408 : vector<2x128xf32>
    %cst_90 = arith.constant 1.000000e+00 : f32
    %410 = vector.broadcast %cst_90 : f32 to vector<2x128xf32>
    %411 = arith.subf %410, %404 : vector<2x128xf32>
    %412 = arith.mulf %411, %409 : vector<2x128xf32>
    %413 = arith.mulf %404, %383 : vector<2x128xf32>
    %414 = arith.addf %412, %413 : vector<2x128xf32>
    %c8_91 = arith.constant 8 : index
    %c0_92 = arith.constant 0 : index
    %415 = vector.load %arg25[%c8_91, %c0_92] : memref<16x128xf32, #tpu.memory_space<vmem>>, vector<2x128xf32>
    tpu.vector_store %arg25[%c8_91, %c0_92], %414 {strides = array<i32>} : memref<16x128xf32, #tpu.memory_space<vmem>>, vector<2x128xf32>,
    %416 = vector.extract_strided_slice %257 {offsets = [10, 0], sizes = [2, 384], strides = [1, 1]} : vector<16x384xf32> to vector<2x384xf32>
    %cst_93 = arith.constant dense<0.000000e+00> : vector<2x384xf32>
    %417 = tpu.matmul %414, %258, %cst_93 {dimension_numbers = #tpu.dot_dimension_numbers<[1], [0], [0], [1], [0, 0, 1, 1], [], []>} : vector<2x128xf32>, vector<128x384xf32>, vector<2x384xf32> -> vector<2x384xf32>
    %418 = vector.broadcast %259 : vector<1x384xf32> to vector<2x384xf32>
    %419 = arith.addf %417, %418 : vector<2x384xf32>
    %420 = vector.extract_strided_slice %416 {offsets = [0, 0], sizes = [2, 128], strides = [1, 1]} : vector<2x384xf32> to vector<2x128xf32>
    %421 = vector.extract_strided_slice %419 {offsets = [0, 0], sizes = [2, 128], strides = [1, 1]} : vector<2x384xf32> to vector<2x128xf32>
    %422 = arith.addf %420, %421 : vector<2x128xf32>
    %423 = arith.negf %422 : vector<2x128xf32>
    %424 = math.exp %423 : vector<2x128xf32>
    %cst_94 = arith.constant 1.000000e+00 : f32
    %425 = vector.broadcast %cst_94 : f32 to vector<2x128xf32>
    %426 = arith.addf %425, %424 : vector<2x128xf32>
    %427 = arith.divf %425, %426 : vector<2x128xf32>
    %428 = vector.extract_strided_slice %416 {offsets = [0, 128], sizes = [2, 128], strides = [1, 1]} : vector<2x384xf32> to vector<2x128xf32>
    %429 = vector.extract_strided_slice %419 {offsets = [0, 128], sizes = [2, 128], strides = [1, 1]} : vector<2x384xf32> to vector<2x128xf32>
    %430 = arith.addf %428, %429 : vector<2x128xf32>
    %431 = arith.negf %430 : vector<2x128xf32>
    %432 = math.exp %431 : vector<2x128xf32>
    %cst_95 = arith.constant 1.000000e+00 : f32
    %433 = vector.broadcast %cst_95 : f32 to vector<2x128xf32>
    %434 = arith.addf %433, %432 : vector<2x128xf32>
    %435 = arith.divf %433, %434 : vector<2x128xf32>
    %436 = vector.extract_strided_slice %416 {offsets = [0, 256], sizes = [2, 128], strides = [1, 1]} : vector<2x384xf32> to vector<2x128xf32>
    %437 = vector.extract_strided_slice %419 {offsets = [0, 256], sizes = [2, 128], strides = [1, 1]} : vector<2x384xf32> to vector<2x128xf32>
    %438 = arith.mulf %427, %437 : vector<2x128xf32>
    %439 = arith.addf %436, %438 : vector<2x128xf32>
    %440 = math.tanh %439 : vector<2x128xf32>
    %cst_96 = arith.constant 1.000000e+00 : f32
    %441 = vector.broadcast %cst_96 : f32 to vector<2x128xf32>
    %442 = arith.subf %441, %435 : vector<2x128xf32>
    %443 = arith.mulf %442, %440 : vector<2x128xf32>
    %444 = arith.mulf %435, %414 : vector<2x128xf32>
    %445 = arith.addf %443, %444 : vector<2x128xf32>
    %c10_97 = arith.constant 10 : index
    %c0_98 = arith.constant 0 : index
    %446 = vector.load %arg25[%c10_97, %c0_98] : memref<16x128xf32, #tpu.memory_space<vmem>>, vector<2x128xf32>
    tpu.vector_store %arg25[%c10_97, %c0_98], %445 {strides = array<i32>} : memref<16x128xf32, #tpu.memory_space<vmem>>, vector<2x128xf32>,
    %447 = vector.extract_strided_slice %257 {offsets = [12, 0], sizes = [2, 384], strides = [1, 1]} : vector<16x384xf32> to vector<2x384xf32>
    %cst_99 = arith.constant dense<0.000000e+00> : vector<2x384xf32>
    %448 = tpu.matmul %445, %258, %cst_99 {dimension_numbers = #tpu.dot_dimension_numbers<[1], [0], [0], [1], [0, 0, 1, 1], [], []>} : vector<2x128xf32>, vector<128x384xf32>, vector<2x384xf32> -> vector<2x384xf32>
    %449 = vector.broadcast %259 : vector<1x384xf32> to vector<2x384xf32>
    %450 = arith.addf %448, %449 : vector<2x384xf32>
    %451 = vector.extract_strided_slice %447 {offsets = [0, 0], sizes = [2, 128], strides = [1, 1]} : vector<2x384xf32> to vector<2x128xf32>
    %452 = vector.extract_strided_slice %450 {offsets = [0, 0], sizes = [2, 128], strides = [1, 1]} : vector<2x384xf32> to vector<2x128xf32>
    %453 = arith.addf %451, %452 : vector<2x128xf32>
    %454 = arith.negf %453 : vector<2x128xf32>
    %455 = math.exp %454 : vector<2x128xf32>
    %cst_100 = arith.constant 1.000000e+00 : f32
    %456 = vector.broadcast %cst_100 : f32 to vector<2x128xf32>
    %457 = arith.addf %456, %455 : vector<2x128xf32>
    %458 = arith.divf %456, %457 : vector<2x128xf32>
    %459 = vector.extract_strided_slice %447 {offsets = [0, 128], sizes = [2, 128], strides = [1, 1]} : vector<2x384xf32> to vector<2x128xf32>
    %460 = vector.extract_strided_slice %450 {offsets = [0, 128], sizes = [2, 128], strides = [1, 1]} : vector<2x384xf32> to vector<2x128xf32>
    %461 = arith.addf %459, %460 : vector<2x128xf32>
    %462 = arith.negf %461 : vector<2x128xf32>
    %463 = math.exp %462 : vector<2x128xf32>
    %cst_101 = arith.constant 1.000000e+00 : f32
    %464 = vector.broadcast %cst_101 : f32 to vector<2x128xf32>
    %465 = arith.addf %464, %463 : vector<2x128xf32>
    %466 = arith.divf %464, %465 : vector<2x128xf32>
    %467 = vector.extract_strided_slice %447 {offsets = [0, 256], sizes = [2, 128], strides = [1, 1]} : vector<2x384xf32> to vector<2x128xf32>
    %468 = vector.extract_strided_slice %450 {offsets = [0, 256], sizes = [2, 128], strides = [1, 1]} : vector<2x384xf32> to vector<2x128xf32>
    %469 = arith.mulf %458, %468 : vector<2x128xf32>
    %470 = arith.addf %467, %469 : vector<2x128xf32>
    %471 = math.tanh %470 : vector<2x128xf32>
    %cst_102 = arith.constant 1.000000e+00 : f32
    %472 = vector.broadcast %cst_102 : f32 to vector<2x128xf32>
    %473 = arith.subf %472, %466 : vector<2x128xf32>
    %474 = arith.mulf %473, %471 : vector<2x128xf32>
    %475 = arith.mulf %466, %445 : vector<2x128xf32>
    %476 = arith.addf %474, %475 : vector<2x128xf32>
    %c12_103 = arith.constant 12 : index
    %c0_104 = arith.constant 0 : index
    %477 = vector.load %arg25[%c12_103, %c0_104] : memref<16x128xf32, #tpu.memory_space<vmem>>, vector<2x128xf32>
    tpu.vector_store %arg25[%c12_103, %c0_104], %476 {strides = array<i32>} : memref<16x128xf32, #tpu.memory_space<vmem>>, vector<2x128xf32>,
    %478 = vector.extract_strided_slice %257 {offsets = [14, 0], sizes = [2, 384], strides = [1, 1]} : vector<16x384xf32> to vector<2x384xf32>
    %cst_105 = arith.constant dense<0.000000e+00> : vector<2x384xf32>
    %479 = tpu.matmul %476, %258, %cst_105 {dimension_numbers = #tpu.dot_dimension_numbers<[1], [0], [0], [1], [0, 0, 1, 1], [], []>} : vector<2x128xf32>, vector<128x384xf32>, vector<2x384xf32> -> vector<2x384xf32>
    %480 = vector.broadcast %259 : vector<1x384xf32> to vector<2x384xf32>
    %481 = arith.addf %479, %480 : vector<2x384xf32>
    %482 = vector.extract_strided_slice %478 {offsets = [0, 0], sizes = [2, 128], strides = [1, 1]} : vector<2x384xf32> to vector<2x128xf32>
    %483 = vector.extract_strided_slice %481 {offsets = [0, 0], sizes = [2, 128], strides = [1, 1]} : vector<2x384xf32> to vector<2x128xf32>
    %484 = arith.addf %482, %483 : vector<2x128xf32>
    %485 = arith.negf %484 : vector<2x128xf32>
    %486 = math.exp %485 : vector<2x128xf32>
    %cst_106 = arith.constant 1.000000e+00 : f32
    %487 = vector.broadcast %cst_106 : f32 to vector<2x128xf32>
    %488 = arith.addf %487, %486 : vector<2x128xf32>
    %489 = arith.divf %487, %488 : vector<2x128xf32>
    %490 = vector.extract_strided_slice %478 {offsets = [0, 128], sizes = [2, 128], strides = [1, 1]} : vector<2x384xf32> to vector<2x128xf32>
    %491 = vector.extract_strided_slice %481 {offsets = [0, 128], sizes = [2, 128], strides = [1, 1]} : vector<2x384xf32> to vector<2x128xf32>
    %492 = arith.addf %490, %491 : vector<2x128xf32>
    %493 = arith.negf %492 : vector<2x128xf32>
    %494 = math.exp %493 : vector<2x128xf32>
    %cst_107 = arith.constant 1.000000e+00 : f32
    %495 = vector.broadcast %cst_107 : f32 to vector<2x128xf32>
    %496 = arith.addf %495, %494 : vector<2x128xf32>
    %497 = arith.divf %495, %496 : vector<2x128xf32>
    %498 = vector.extract_strided_slice %478 {offsets = [0, 256], sizes = [2, 128], strides = [1, 1]} : vector<2x384xf32> to vector<2x128xf32>
    %499 = vector.extract_strided_slice %481 {offsets = [0, 256], sizes = [2, 128], strides = [1, 1]} : vector<2x384xf32> to vector<2x128xf32>
    %500 = arith.mulf %489, %499 : vector<2x128xf32>
    %501 = arith.addf %498, %500 : vector<2x128xf32>
    %502 = math.tanh %501 : vector<2x128xf32>
    %cst_108 = arith.constant 1.000000e+00 : f32
    %503 = vector.broadcast %cst_108 : f32 to vector<2x128xf32>
    %504 = arith.subf %503, %497 : vector<2x128xf32>
    %505 = arith.mulf %504, %502 : vector<2x128xf32>
    %506 = arith.mulf %497, %476 : vector<2x128xf32>
    %507 = arith.addf %505, %506 : vector<2x128xf32>
    %c14_109 = arith.constant 14 : index
    %c0_110 = arith.constant 0 : index
    %508 = vector.load %arg25[%c14_109, %c0_110] : memref<16x128xf32, #tpu.memory_space<vmem>>, vector<2x128xf32>
    tpu.vector_store %arg25[%c14_109, %c0_110], %507 {strides = array<i32>} : memref<16x128xf32, #tpu.memory_space<vmem>>, vector<2x128xf32>,
    %c0_111 = arith.constant 0 : index
    %c0_112 = arith.constant 0 : index
    %509 = vector.load %arg25[%c0_111, %c0_112] : memref<16x128xf32, #tpu.memory_space<vmem>>, vector<16x128xf32>
    %c0_113 = arith.constant 0 : index
    %c0_114 = arith.constant 0 : index
    %510 = vector.load %arg17[%c0_113, %c0_114] : memref<1x128xf32, #tpu.memory_space<vmem>>, vector<1x128xf32>
    %c0_115 = arith.constant 0 : index
    %c0_116 = arith.constant 0 : index
    %511 = vector.load %arg18[%c0_115, %c0_116] : memref<1x128xf32, #tpu.memory_space<vmem>>, vector<1x128xf32>
    %cst_117 = arith.constant dense<0.000000e+00> : vector<16xf32>
    %512 = vector.multi_reduction <add>, %509, %cst_117 [1] : vector<16x128xf32> to vector<16xf32>
    %513 = vector.shape_cast %512 : vector<16xf32> to vector<16x1xf32>
    %cst_118 = arith.constant 1.562500e-02 : f32
    %514 = vector.broadcast %cst_118 : f32 to vector<16x1xf32>
    %515 = arith.mulf %513, %514 : vector<16x1xf32>
    %516 = vector.broadcast %515 : vector<16x1xf32> to vector<16x128xf32>
    %517 = arith.subf %509, %516 : vector<16x128xf32>
    %cst_119 = arith.constant 0.000000e+00 : f32
    %518 = vector.shape_cast %2 : vector<1x128xi1> to vector<1x128xi1>
    %519 = vector.broadcast %518 : vector<1x128xi1> to vector<16x128xi1>
    %520 = vector.broadcast %cst_119 : f32 to vector<16x128xf32>
    %521 = arith.select %519, %517, %520 : vector<16x128xi1>, vector<16x128xf32>
    %522 = arith.mulf %521, %521 : vector<16x128xf32>
    %cst_120 = arith.constant dense<0.000000e+00> : vector<16xf32>
    %523 = vector.multi_reduction <add>, %522, %cst_120 [1] : vector<16x128xf32> to vector<16xf32>
    %524 = vector.shape_cast %523 : vector<16xf32> to vector<16x1xf32>
    %cst_121 = arith.constant 1.562500e-02 : f32
    %525 = vector.broadcast %cst_121 : f32 to vector<16x1xf32>
    %526 = arith.mulf %524, %525 : vector<16x1xf32>
    %cst_122 = arith.constant 9.99999974E-6 : f32
    %527 = vector.broadcast %cst_122 : f32 to vector<16x1xf32>
    %528 = arith.addf %526, %527 : vector<16x1xf32>
    %529 = math.rsqrt %528 : vector<16x1xf32>
    %530 = vector.broadcast %529 : vector<16x1xf32> to vector<16x128xf32>
    %531 = arith.mulf %521, %530 : vector<16x128xf32>
    %532 = vector.broadcast %510 : vector<1x128xf32> to vector<16x128xf32>
    %533 = arith.mulf %531, %532 : vector<16x128xf32>
    %534 = vector.broadcast %511 : vector<1x128xf32> to vector<16x128xf32>
    %535 = arith.addf %533, %534 : vector<16x128xf32>
    %c0_123 = arith.constant 0 : index
    %c0_124 = arith.constant 0 : index
    %536 = vector.load %arg9[%c0_123, %c0_124] : memref<128x384xf32, #tpu.memory_space<vmem>>, vector<128x384xf32>
    %cst_125 = arith.constant dense<0.000000e+00> : vector<16x384xf32>
    %537 = tpu.matmul %535, %536, %cst_125 {dimension_numbers = #tpu.dot_dimension_numbers<[1], [0], [0], [1], [0, 0, 1, 1], [], []>} : vector<16x128xf32>, vector<128x384xf32>, vector<16x384xf32> -> vector<16x384xf32>
    %c0_126 = arith.constant 0 : index
    %c0_127 = arith.constant 0 : index
    %538 = vector.load %arg11[%c0_126, %c0_127] : memref<1x384xf32, #tpu.memory_space<vmem>>, vector<1x384xf32>
    %539 = vector.broadcast %538 : vector<1x384xf32> to vector<16x384xf32>
    %540 = arith.addf %537, %539 : vector<16x384xf32>
    %c0_128 = arith.constant 0 : index
    %c0_129 = arith.constant 0 : index
    %541 = vector.load %arg10[%c0_128, %c0_129] : memref<128x384xf32, #tpu.memory_space<vmem>>, vector<128x384xf32>
    %c0_130 = arith.constant 0 : index
    %c0_131 = arith.constant 0 : index
    %542 = vector.load %arg12[%c0_130, %c0_131] : memref<1x384xf32, #tpu.memory_space<vmem>>, vector<1x384xf32>
    %cst_132 = arith.constant 0.000000e+00 : f32
    %543 = vector.broadcast %cst_132 : f32 to vector<2x128xf32>
    %544 = vector.extract_strided_slice %540 {offsets = [0, 0], sizes = [2, 384], strides = [1, 1]} : vector<16x384xf32> to vector<2x384xf32>
    %cst_133 = arith.constant dense<0.000000e+00> : vector<2x384xf32>
    %545 = tpu.matmul %543, %541, %cst_133 {dimension_numbers = #tpu.dot_dimension_numbers<[1], [0], [0], [1], [0, 0, 1, 1], [], []>} : vector<2x128xf32>, vector<128x384xf32>, vector<2x384xf32> -> vector<2x384xf32>
    %546 = vector.broadcast %542 : vector<1x384xf32> to vector<2x384xf32>
    %547 = arith.addf %545, %546 : vector<2x384xf32>
    %548 = vector.extract_strided_slice %544 {offsets = [0, 0], sizes = [2, 128], strides = [1, 1]} : vector<2x384xf32> to vector<2x128xf32>
    %549 = vector.extract_strided_slice %547 {offsets = [0, 0], sizes = [2, 128], strides = [1, 1]} : vector<2x384xf32> to vector<2x128xf32>
    %550 = arith.addf %548, %549 : vector<2x128xf32>
    %551 = arith.negf %550 : vector<2x128xf32>
    %552 = math.exp %551 : vector<2x128xf32>
    %cst_134 = arith.constant 1.000000e+00 : f32
    %553 = vector.broadcast %cst_134 : f32 to vector<2x128xf32>
    %554 = arith.addf %553, %552 : vector<2x128xf32>
    %555 = arith.divf %553, %554 : vector<2x128xf32>
    %556 = vector.extract_strided_slice %544 {offsets = [0, 128], sizes = [2, 128], strides = [1, 1]} : vector<2x384xf32> to vector<2x128xf32>
    %557 = vector.extract_strided_slice %547 {offsets = [0, 128], sizes = [2, 128], strides = [1, 1]} : vector<2x384xf32> to vector<2x128xf32>
    %558 = arith.addf %556, %557 : vector<2x128xf32>
    %559 = arith.negf %558 : vector<2x128xf32>
    %560 = math.exp %559 : vector<2x128xf32>
    %cst_135 = arith.constant 1.000000e+00 : f32
    %561 = vector.broadcast %cst_135 : f32 to vector<2x128xf32>
    %562 = arith.addf %561, %560 : vector<2x128xf32>
    %563 = arith.divf %561, %562 : vector<2x128xf32>
    %564 = vector.extract_strided_slice %544 {offsets = [0, 256], sizes = [2, 128], strides = [1, 1]} : vector<2x384xf32> to vector<2x128xf32>
    %565 = vector.extract_strided_slice %547 {offsets = [0, 256], sizes = [2, 128], strides = [1, 1]} : vector<2x384xf32> to vector<2x128xf32>
    %566 = arith.mulf %555, %565 : vector<2x128xf32>
    %567 = arith.addf %564, %566 : vector<2x128xf32>
    %568 = math.tanh %567 : vector<2x128xf32>
    %cst_136 = arith.constant 1.000000e+00 : f32
    %569 = vector.broadcast %cst_136 : f32 to vector<2x128xf32>
    %570 = arith.subf %569, %563 : vector<2x128xf32>
    %571 = arith.mulf %570, %568 : vector<2x128xf32>
    %572 = arith.mulf %563, %543 : vector<2x128xf32>
    %573 = arith.addf %571, %572 : vector<2x128xf32>
    %c0_137 = arith.constant 0 : index
    %c0_138 = arith.constant 0 : index
    %574 = vector.load %arg24[%c0_137, %c0_138] : memref<16x128xf32, #tpu.memory_space<vmem>>, vector<2x128xf32>
    tpu.vector_store %arg24[%c0_137, %c0_138], %573 {strides = array<i32>} : memref<16x128xf32, #tpu.memory_space<vmem>>, vector<2x128xf32>,
    %575 = vector.extract_strided_slice %540 {offsets = [2, 0], sizes = [2, 384], strides = [1, 1]} : vector<16x384xf32> to vector<2x384xf32>
    %cst_139 = arith.constant dense<0.000000e+00> : vector<2x384xf32>
    %576 = tpu.matmul %573, %541, %cst_139 {dimension_numbers = #tpu.dot_dimension_numbers<[1], [0], [0], [1], [0, 0, 1, 1], [], []>} : vector<2x128xf32>, vector<128x384xf32>, vector<2x384xf32> -> vector<2x384xf32>
    %577 = vector.broadcast %542 : vector<1x384xf32> to vector<2x384xf32>
    %578 = arith.addf %576, %577 : vector<2x384xf32>
    %579 = vector.extract_strided_slice %575 {offsets = [0, 0], sizes = [2, 128], strides = [1, 1]} : vector<2x384xf32> to vector<2x128xf32>
    %580 = vector.extract_strided_slice %578 {offsets = [0, 0], sizes = [2, 128], strides = [1, 1]} : vector<2x384xf32> to vector<2x128xf32>
    %581 = arith.addf %579, %580 : vector<2x128xf32>
    %582 = arith.negf %581 : vector<2x128xf32>
    %583 = math.exp %582 : vector<2x128xf32>
    %cst_140 = arith.constant 1.000000e+00 : f32
    %584 = vector.broadcast %cst_140 : f32 to vector<2x128xf32>
    %585 = arith.addf %584, %583 : vector<2x128xf32>
    %586 = arith.divf %584, %585 : vector<2x128xf32>
    %587 = vector.extract_strided_slice %575 {offsets = [0, 128], sizes = [2, 128], strides = [1, 1]} : vector<2x384xf32> to vector<2x128xf32>
    %588 = vector.extract_strided_slice %578 {offsets = [0, 128], sizes = [2, 128], strides = [1, 1]} : vector<2x384xf32> to vector<2x128xf32>
    %589 = arith.addf %587, %588 : vector<2x128xf32>
    %590 = arith.negf %589 : vector<2x128xf32>
    %591 = math.exp %590 : vector<2x128xf32>
    %cst_141 = arith.constant 1.000000e+00 : f32
    %592 = vector.broadcast %cst_141 : f32 to vector<2x128xf32>
    %593 = arith.addf %592, %591 : vector<2x128xf32>
    %594 = arith.divf %592, %593 : vector<2x128xf32>
    %595 = vector.extract_strided_slice %575 {offsets = [0, 256], sizes = [2, 128], strides = [1, 1]} : vector<2x384xf32> to vector<2x128xf32>
    %596 = vector.extract_strided_slice %578 {offsets = [0, 256], sizes = [2, 128], strides = [1, 1]} : vector<2x384xf32> to vector<2x128xf32>
    %597 = arith.mulf %586, %596 : vector<2x128xf32>
    %598 = arith.addf %595, %597 : vector<2x128xf32>
    %599 = math.tanh %598 : vector<2x128xf32>
    %cst_142 = arith.constant 1.000000e+00 : f32
    %600 = vector.broadcast %cst_142 : f32 to vector<2x128xf32>
    %601 = arith.subf %600, %594 : vector<2x128xf32>
    %602 = arith.mulf %601, %599 : vector<2x128xf32>
    %603 = arith.mulf %594, %573 : vector<2x128xf32>
    %604 = arith.addf %602, %603 : vector<2x128xf32>
    %c2_143 = arith.constant 2 : index
    %c0_144 = arith.constant 0 : index
    %605 = vector.load %arg24[%c2_143, %c0_144] : memref<16x128xf32, #tpu.memory_space<vmem>>, vector<2x128xf32>
    tpu.vector_store %arg24[%c2_143, %c0_144], %604 {strides = array<i32>} : memref<16x128xf32, #tpu.memory_space<vmem>>, vector<2x128xf32>,
    %606 = vector.extract_strided_slice %540 {offsets = [4, 0], sizes = [2, 384], strides = [1, 1]} : vector<16x384xf32> to vector<2x384xf32>
    %cst_145 = arith.constant dense<0.000000e+00> : vector<2x384xf32>
    %607 = tpu.matmul %604, %541, %cst_145 {dimension_numbers = #tpu.dot_dimension_numbers<[1], [0], [0], [1], [0, 0, 1, 1], [], []>} : vector<2x128xf32>, vector<128x384xf32>, vector<2x384xf32> -> vector<2x384xf32>
    %608 = vector.broadcast %542 : vector<1x384xf32> to vector<2x384xf32>
    %609 = arith.addf %607, %608 : vector<2x384xf32>
    %610 = vector.extract_strided_slice %606 {offsets = [0, 0], sizes = [2, 128], strides = [1, 1]} : vector<2x384xf32> to vector<2x128xf32>
    %611 = vector.extract_strided_slice %609 {offsets = [0, 0], sizes = [2, 128], strides = [1, 1]} : vector<2x384xf32> to vector<2x128xf32>
    %612 = arith.addf %610, %611 : vector<2x128xf32>
    %613 = arith.negf %612 : vector<2x128xf32>
    %614 = math.exp %613 : vector<2x128xf32>
    %cst_146 = arith.constant 1.000000e+00 : f32
    %615 = vector.broadcast %cst_146 : f32 to vector<2x128xf32>
    %616 = arith.addf %615, %614 : vector<2x128xf32>
    %617 = arith.divf %615, %616 : vector<2x128xf32>
    %618 = vector.extract_strided_slice %606 {offsets = [0, 128], sizes = [2, 128], strides = [1, 1]} : vector<2x384xf32> to vector<2x128xf32>
    %619 = vector.extract_strided_slice %609 {offsets = [0, 128], sizes = [2, 128], strides = [1, 1]} : vector<2x384xf32> to vector<2x128xf32>
    %620 = arith.addf %618, %619 : vector<2x128xf32>
    %621 = arith.negf %620 : vector<2x128xf32>
    %622 = math.exp %621 : vector<2x128xf32>
    %cst_147 = arith.constant 1.000000e+00 : f32
    %623 = vector.broadcast %cst_147 : f32 to vector<2x128xf32>
    %624 = arith.addf %623, %622 : vector<2x128xf32>
    %625 = arith.divf %623, %624 : vector<2x128xf32>
    %626 = vector.extract_strided_slice %606 {offsets = [0, 256], sizes = [2, 128], strides = [1, 1]} : vector<2x384xf32> to vector<2x128xf32>
    %627 = vector.extract_strided_slice %609 {offsets = [0, 256], sizes = [2, 128], strides = [1, 1]} : vector<2x384xf32> to vector<2x128xf32>
    %628 = arith.mulf %617, %627 : vector<2x128xf32>
    %629 = arith.addf %626, %628 : vector<2x128xf32>
    %630 = math.tanh %629 : vector<2x128xf32>
    %cst_148 = arith.constant 1.000000e+00 : f32
    %631 = vector.broadcast %cst_148 : f32 to vector<2x128xf32>
    %632 = arith.subf %631, %625 : vector<2x128xf32>
    %633 = arith.mulf %632, %630 : vector<2x128xf32>
    %634 = arith.mulf %625, %604 : vector<2x128xf32>
    %635 = arith.addf %633, %634 : vector<2x128xf32>
    %c4_149 = arith.constant 4 : index
    %c0_150 = arith.constant 0 : index
    %636 = vector.load %arg24[%c4_149, %c0_150] : memref<16x128xf32, #tpu.memory_space<vmem>>, vector<2x128xf32>
    tpu.vector_store %arg24[%c4_149, %c0_150], %635 {strides = array<i32>} : memref<16x128xf32, #tpu.memory_space<vmem>>, vector<2x128xf32>,
    %637 = vector.extract_strided_slice %540 {offsets = [6, 0], sizes = [2, 384], strides = [1, 1]} : vector<16x384xf32> to vector<2x384xf32>
    %cst_151 = arith.constant dense<0.000000e+00> : vector<2x384xf32>
    %638 = tpu.matmul %635, %541, %cst_151 {dimension_numbers = #tpu.dot_dimension_numbers<[1], [0], [0], [1], [0, 0, 1, 1], [], []>} : vector<2x128xf32>, vector<128x384xf32>, vector<2x384xf32> -> vector<2x384xf32>
    %639 = vector.broadcast %542 : vector<1x384xf32> to vector<2x384xf32>
    %640 = arith.addf %638, %639 : vector<2x384xf32>
    %641 = vector.extract_strided_slice %637 {offsets = [0, 0], sizes = [2, 128], strides = [1, 1]} : vector<2x384xf32> to vector<2x128xf32>
    %642 = vector.extract_strided_slice %640 {offsets = [0, 0], sizes = [2, 128], strides = [1, 1]} : vector<2x384xf32> to vector<2x128xf32>
    %643 = arith.addf %641, %642 : vector<2x128xf32>
    %644 = arith.negf %643 : vector<2x128xf32>
    %645 = math.exp %644 : vector<2x128xf32>
    %cst_152 = arith.constant 1.000000e+00 : f32
    %646 = vector.broadcast %cst_152 : f32 to vector<2x128xf32>
    %647 = arith.addf %646, %645 : vector<2x128xf32>
    %648 = arith.divf %646, %647 : vector<2x128xf32>
    %649 = vector.extract_strided_slice %637 {offsets = [0, 128], sizes = [2, 128], strides = [1, 1]} : vector<2x384xf32> to vector<2x128xf32>
    %650 = vector.extract_strided_slice %640 {offsets = [0, 128], sizes = [2, 128], strides = [1, 1]} : vector<2x384xf32> to vector<2x128xf32>
    %651 = arith.addf %649, %650 : vector<2x128xf32>
    %652 = arith.negf %651 : vector<2x128xf32>
    %653 = math.exp %652 : vector<2x128xf32>
    %cst_153 = arith.constant 1.000000e+00 : f32
    %654 = vector.broadcast %cst_153 : f32 to vector<2x128xf32>
    %655 = arith.addf %654, %653 : vector<2x128xf32>
    %656 = arith.divf %654, %655 : vector<2x128xf32>
    %657 = vector.extract_strided_slice %637 {offsets = [0, 256], sizes = [2, 128], strides = [1, 1]} : vector<2x384xf32> to vector<2x128xf32>
    %658 = vector.extract_strided_slice %640 {offsets = [0, 256], sizes = [2, 128], strides = [1, 1]} : vector<2x384xf32> to vector<2x128xf32>
    %659 = arith.mulf %648, %658 : vector<2x128xf32>
    %660 = arith.addf %657, %659 : vector<2x128xf32>
    %661 = math.tanh %660 : vector<2x128xf32>
    %cst_154 = arith.constant 1.000000e+00 : f32
    %662 = vector.broadcast %cst_154 : f32 to vector<2x128xf32>
    %663 = arith.subf %662, %656 : vector<2x128xf32>
    %664 = arith.mulf %663, %661 : vector<2x128xf32>
    %665 = arith.mulf %656, %635 : vector<2x128xf32>
    %666 = arith.addf %664, %665 : vector<2x128xf32>
    %c6_155 = arith.constant 6 : index
    %c0_156 = arith.constant 0 : index
    %667 = vector.load %arg24[%c6_155, %c0_156] : memref<16x128xf32, #tpu.memory_space<vmem>>, vector<2x128xf32>
    tpu.vector_store %arg24[%c6_155, %c0_156], %666 {strides = array<i32>} : memref<16x128xf32, #tpu.memory_space<vmem>>, vector<2x128xf32>,
    %668 = vector.extract_strided_slice %540 {offsets = [8, 0], sizes = [2, 384], strides = [1, 1]} : vector<16x384xf32> to vector<2x384xf32>
    %cst_157 = arith.constant dense<0.000000e+00> : vector<2x384xf32>
    %669 = tpu.matmul %666, %541, %cst_157 {dimension_numbers = #tpu.dot_dimension_numbers<[1], [0], [0], [1], [0, 0, 1, 1], [], []>} : vector<2x128xf32>, vector<128x384xf32>, vector<2x384xf32> -> vector<2x384xf32>
    %670 = vector.broadcast %542 : vector<1x384xf32> to vector<2x384xf32>
    %671 = arith.addf %669, %670 : vector<2x384xf32>
    %672 = vector.extract_strided_slice %668 {offsets = [0, 0], sizes = [2, 128], strides = [1, 1]} : vector<2x384xf32> to vector<2x128xf32>
    %673 = vector.extract_strided_slice %671 {offsets = [0, 0], sizes = [2, 128], strides = [1, 1]} : vector<2x384xf32> to vector<2x128xf32>
    %674 = arith.addf %672, %673 : vector<2x128xf32>
    %675 = arith.negf %674 : vector<2x128xf32>
    %676 = math.exp %675 : vector<2x128xf32>
    %cst_158 = arith.constant 1.000000e+00 : f32
    %677 = vector.broadcast %cst_158 : f32 to vector<2x128xf32>
    %678 = arith.addf %677, %676 : vector<2x128xf32>
    %679 = arith.divf %677, %678 : vector<2x128xf32>
    %680 = vector.extract_strided_slice %668 {offsets = [0, 128], sizes = [2, 128], strides = [1, 1]} : vector<2x384xf32> to vector<2x128xf32>
    %681 = vector.extract_strided_slice %671 {offsets = [0, 128], sizes = [2, 128], strides = [1, 1]} : vector<2x384xf32> to vector<2x128xf32>
    %682 = arith.addf %680, %681 : vector<2x128xf32>
    %683 = arith.negf %682 : vector<2x128xf32>
    %684 = math.exp %683 : vector<2x128xf32>
    %cst_159 = arith.constant 1.000000e+00 : f32
    %685 = vector.broadcast %cst_159 : f32 to vector<2x128xf32>
    %686 = arith.addf %685, %684 : vector<2x128xf32>
    %687 = arith.divf %685, %686 : vector<2x128xf32>
    %688 = vector.extract_strided_slice %668 {offsets = [0, 256], sizes = [2, 128], strides = [1, 1]} : vector<2x384xf32> to vector<2x128xf32>
    %689 = vector.extract_strided_slice %671 {offsets = [0, 256], sizes = [2, 128], strides = [1, 1]} : vector<2x384xf32> to vector<2x128xf32>
    %690 = arith.mulf %679, %689 : vector<2x128xf32>
    %691 = arith.addf %688, %690 : vector<2x128xf32>
    %692 = math.tanh %691 : vector<2x128xf32>
    %cst_160 = arith.constant 1.000000e+00 : f32
    %693 = vector.broadcast %cst_160 : f32 to vector<2x128xf32>
    %694 = arith.subf %693, %687 : vector<2x128xf32>
    %695 = arith.mulf %694, %692 : vector<2x128xf32>
    %696 = arith.mulf %687, %666 : vector<2x128xf32>
    %697 = arith.addf %695, %696 : vector<2x128xf32>
    %c8_161 = arith.constant 8 : index
    %c0_162 = arith.constant 0 : index
    %698 = vector.load %arg24[%c8_161, %c0_162] : memref<16x128xf32, #tpu.memory_space<vmem>>, vector<2x128xf32>
    tpu.vector_store %arg24[%c8_161, %c0_162], %697 {strides = array<i32>} : memref<16x128xf32, #tpu.memory_space<vmem>>, vector<2x128xf32>,
    %699 = vector.extract_strided_slice %540 {offsets = [10, 0], sizes = [2, 384], strides = [1, 1]} : vector<16x384xf32> to vector<2x384xf32>
    %cst_163 = arith.constant dense<0.000000e+00> : vector<2x384xf32>
    %700 = tpu.matmul %697, %541, %cst_163 {dimension_numbers = #tpu.dot_dimension_numbers<[1], [0], [0], [1], [0, 0, 1, 1], [], []>} : vector<2x128xf32>, vector<128x384xf32>, vector<2x384xf32> -> vector<2x384xf32>
    %701 = vector.broadcast %542 : vector<1x384xf32> to vector<2x384xf32>
    %702 = arith.addf %700, %701 : vector<2x384xf32>
    %703 = vector.extract_strided_slice %699 {offsets = [0, 0], sizes = [2, 128], strides = [1, 1]} : vector<2x384xf32> to vector<2x128xf32>
    %704 = vector.extract_strided_slice %702 {offsets = [0, 0], sizes = [2, 128], strides = [1, 1]} : vector<2x384xf32> to vector<2x128xf32>
    %705 = arith.addf %703, %704 : vector<2x128xf32>
    %706 = arith.negf %705 : vector<2x128xf32>
    %707 = math.exp %706 : vector<2x128xf32>
    %cst_164 = arith.constant 1.000000e+00 : f32
    %708 = vector.broadcast %cst_164 : f32 to vector<2x128xf32>
    %709 = arith.addf %708, %707 : vector<2x128xf32>
    %710 = arith.divf %708, %709 : vector<2x128xf32>
    %711 = vector.extract_strided_slice %699 {offsets = [0, 128], sizes = [2, 128], strides = [1, 1]} : vector<2x384xf32> to vector<2x128xf32>
    %712 = vector.extract_strided_slice %702 {offsets = [0, 128], sizes = [2, 128], strides = [1, 1]} : vector<2x384xf32> to vector<2x128xf32>
    %713 = arith.addf %711, %712 : vector<2x128xf32>
    %714 = arith.negf %713 : vector<2x128xf32>
    %715 = math.exp %714 : vector<2x128xf32>
    %cst_165 = arith.constant 1.000000e+00 : f32
    %716 = vector.broadcast %cst_165 : f32 to vector<2x128xf32>
    %717 = arith.addf %716, %715 : vector<2x128xf32>
    %718 = arith.divf %716, %717 : vector<2x128xf32>
    %719 = vector.extract_strided_slice %699 {offsets = [0, 256], sizes = [2, 128], strides = [1, 1]} : vector<2x384xf32> to vector<2x128xf32>
    %720 = vector.extract_strided_slice %702 {offsets = [0, 256], sizes = [2, 128], strides = [1, 1]} : vector<2x384xf32> to vector<2x128xf32>
    %721 = arith.mulf %710, %720 : vector<2x128xf32>
    %722 = arith.addf %719, %721 : vector<2x128xf32>
    %723 = math.tanh %722 : vector<2x128xf32>
    %cst_166 = arith.constant 1.000000e+00 : f32
    %724 = vector.broadcast %cst_166 : f32 to vector<2x128xf32>
    %725 = arith.subf %724, %718 : vector<2x128xf32>
    %726 = arith.mulf %725, %723 : vector<2x128xf32>
    %727 = arith.mulf %718, %697 : vector<2x128xf32>
    %728 = arith.addf %726, %727 : vector<2x128xf32>
    %c10_167 = arith.constant 10 : index
    %c0_168 = arith.constant 0 : index
    %729 = vector.load %arg24[%c10_167, %c0_168] : memref<16x128xf32, #tpu.memory_space<vmem>>, vector<2x128xf32>
    tpu.vector_store %arg24[%c10_167, %c0_168], %728 {strides = array<i32>} : memref<16x128xf32, #tpu.memory_space<vmem>>, vector<2x128xf32>,
    %730 = vector.extract_strided_slice %540 {offsets = [12, 0], sizes = [2, 384], strides = [1, 1]} : vector<16x384xf32> to vector<2x384xf32>
    %cst_169 = arith.constant dense<0.000000e+00> : vector<2x384xf32>
    %731 = tpu.matmul %728, %541, %cst_169 {dimension_numbers = #tpu.dot_dimension_numbers<[1], [0], [0], [1], [0, 0, 1, 1], [], []>} : vector<2x128xf32>, vector<128x384xf32>, vector<2x384xf32> -> vector<2x384xf32>
    %732 = vector.broadcast %542 : vector<1x384xf32> to vector<2x384xf32>
    %733 = arith.addf %731, %732 : vector<2x384xf32>
    %734 = vector.extract_strided_slice %730 {offsets = [0, 0], sizes = [2, 128], strides = [1, 1]} : vector<2x384xf32> to vector<2x128xf32>
    %735 = vector.extract_strided_slice %733 {offsets = [0, 0], sizes = [2, 128], strides = [1, 1]} : vector<2x384xf32> to vector<2x128xf32>
    %736 = arith.addf %734, %735 : vector<2x128xf32>
    %737 = arith.negf %736 : vector<2x128xf32>
    %738 = math.exp %737 : vector<2x128xf32>
    %cst_170 = arith.constant 1.000000e+00 : f32
    %739 = vector.broadcast %cst_170 : f32 to vector<2x128xf32>
    %740 = arith.addf %739, %738 : vector<2x128xf32>
    %741 = arith.divf %739, %740 : vector<2x128xf32>
    %742 = vector.extract_strided_slice %730 {offsets = [0, 128], sizes = [2, 128], strides = [1, 1]} : vector<2x384xf32> to vector<2x128xf32>
    %743 = vector.extract_strided_slice %733 {offsets = [0, 128], sizes = [2, 128], strides = [1, 1]} : vector<2x384xf32> to vector<2x128xf32>
    %744 = arith.addf %742, %743 : vector<2x128xf32>
    %745 = arith.negf %744 : vector<2x128xf32>
    %746 = math.exp %745 : vector<2x128xf32>
    %cst_171 = arith.constant 1.000000e+00 : f32
    %747 = vector.broadcast %cst_171 : f32 to vector<2x128xf32>
    %748 = arith.addf %747, %746 : vector<2x128xf32>
    %749 = arith.divf %747, %748 : vector<2x128xf32>
    %750 = vector.extract_strided_slice %730 {offsets = [0, 256], sizes = [2, 128], strides = [1, 1]} : vector<2x384xf32> to vector<2x128xf32>
    %751 = vector.extract_strided_slice %733 {offsets = [0, 256], sizes = [2, 128], strides = [1, 1]} : vector<2x384xf32> to vector<2x128xf32>
    %752 = arith.mulf %741, %751 : vector<2x128xf32>
    %753 = arith.addf %750, %752 : vector<2x128xf32>
    %754 = math.tanh %753 : vector<2x128xf32>
    %cst_172 = arith.constant 1.000000e+00 : f32
    %755 = vector.broadcast %cst_172 : f32 to vector<2x128xf32>
    %756 = arith.subf %755, %749 : vector<2x128xf32>
    %757 = arith.mulf %756, %754 : vector<2x128xf32>
    %758 = arith.mulf %749, %728 : vector<2x128xf32>
    %759 = arith.addf %757, %758 : vector<2x128xf32>
    %c12_173 = arith.constant 12 : index
    %c0_174 = arith.constant 0 : index
    %760 = vector.load %arg24[%c12_173, %c0_174] : memref<16x128xf32, #tpu.memory_space<vmem>>, vector<2x128xf32>
    tpu.vector_store %arg24[%c12_173, %c0_174], %759 {strides = array<i32>} : memref<16x128xf32, #tpu.memory_space<vmem>>, vector<2x128xf32>,
    %761 = vector.extract_strided_slice %540 {offsets = [14, 0], sizes = [2, 384], strides = [1, 1]} : vector<16x384xf32> to vector<2x384xf32>
    %cst_175 = arith.constant dense<0.000000e+00> : vector<2x384xf32>
    %762 = tpu.matmul %759, %541, %cst_175 {dimension_numbers = #tpu.dot_dimension_numbers<[1], [0], [0], [1], [0, 0, 1, 1], [], []>} : vector<2x128xf32>, vector<128x384xf32>, vector<2x384xf32> -> vector<2x384xf32>
    %763 = vector.broadcast %542 : vector<1x384xf32> to vector<2x384xf32>
    %764 = arith.addf %762, %763 : vector<2x384xf32>
    %765 = vector.extract_strided_slice %761 {offsets = [0, 0], sizes = [2, 128], strides = [1, 1]} : vector<2x384xf32> to vector<2x128xf32>
    %766 = vector.extract_strided_slice %764 {offsets = [0, 0], sizes = [2, 128], strides = [1, 1]} : vector<2x384xf32> to vector<2x128xf32>
    %767 = arith.addf %765, %766 : vector<2x128xf32>
    %768 = arith.negf %767 : vector<2x128xf32>
    %769 = math.exp %768 : vector<2x128xf32>
    %cst_176 = arith.constant 1.000000e+00 : f32
    %770 = vector.broadcast %cst_176 : f32 to vector<2x128xf32>
    %771 = arith.addf %770, %769 : vector<2x128xf32>
    %772 = arith.divf %770, %771 : vector<2x128xf32>
    %773 = vector.extract_strided_slice %761 {offsets = [0, 128], sizes = [2, 128], strides = [1, 1]} : vector<2x384xf32> to vector<2x128xf32>
    %774 = vector.extract_strided_slice %764 {offsets = [0, 128], sizes = [2, 128], strides = [1, 1]} : vector<2x384xf32> to vector<2x128xf32>
    %775 = arith.addf %773, %774 : vector<2x128xf32>
    %776 = arith.negf %775 : vector<2x128xf32>
    %777 = math.exp %776 : vector<2x128xf32>
    %cst_177 = arith.constant 1.000000e+00 : f32
    %778 = vector.broadcast %cst_177 : f32 to vector<2x128xf32>
    %779 = arith.addf %778, %777 : vector<2x128xf32>
    %780 = arith.divf %778, %779 : vector<2x128xf32>
    %781 = vector.extract_strided_slice %761 {offsets = [0, 256], sizes = [2, 128], strides = [1, 1]} : vector<2x384xf32> to vector<2x128xf32>
    %782 = vector.extract_strided_slice %764 {offsets = [0, 256], sizes = [2, 128], strides = [1, 1]} : vector<2x384xf32> to vector<2x128xf32>
    %783 = arith.mulf %772, %782 : vector<2x128xf32>
    %784 = arith.addf %781, %783 : vector<2x128xf32>
    %785 = math.tanh %784 : vector<2x128xf32>
    %cst_178 = arith.constant 1.000000e+00 : f32
    %786 = vector.broadcast %cst_178 : f32 to vector<2x128xf32>
    %787 = arith.subf %786, %780 : vector<2x128xf32>
    %788 = arith.mulf %787, %785 : vector<2x128xf32>
    %789 = arith.mulf %780, %759 : vector<2x128xf32>
    %790 = arith.addf %788, %789 : vector<2x128xf32>
    %c14_179 = arith.constant 14 : index
    %c0_180 = arith.constant 0 : index
    %791 = vector.load %arg24[%c14_179, %c0_180] : memref<16x128xf32, #tpu.memory_space<vmem>>, vector<2x128xf32>
    tpu.vector_store %arg24[%c14_179, %c0_180], %790 {strides = array<i32>} : memref<16x128xf32, #tpu.memory_space<vmem>>, vector<2x128xf32>,
    %c0_181 = arith.constant 0 : index
    %c0_182 = arith.constant 0 : index
    %792 = vector.load %arg24[%c0_181, %c0_182] : memref<16x128xf32, #tpu.memory_space<vmem>>, vector<16x128xf32>
    %c0_183 = arith.constant 0 : index
    %c0_184 = arith.constant 0 : index
    %793 = vector.load %arg13[%c0_183, %c0_184] : memref<128x384xf32, #tpu.memory_space<vmem>>, vector<128x384xf32>
    %cst_185 = arith.constant dense<0.000000e+00> : vector<16x384xf32>
    %794 = tpu.matmul %792, %793, %cst_185 {dimension_numbers = #tpu.dot_dimension_numbers<[1], [0], [0], [1], [0, 0, 1, 1], [], []>} : vector<16x128xf32>, vector<128x384xf32>, vector<16x384xf32> -> vector<16x384xf32>
    %c0_186 = arith.constant 0 : index
    %c0_187 = arith.constant 0 : index
    %795 = vector.load %arg15[%c0_186, %c0_187] : memref<1x384xf32, #tpu.memory_space<vmem>>, vector<1x384xf32>
    %796 = vector.broadcast %795 : vector<1x384xf32> to vector<16x384xf32>
    %797 = arith.addf %794, %796 : vector<16x384xf32>
    %c0_188 = arith.constant 0 : index
    %c0_189 = arith.constant 0 : index
    %798 = vector.load %arg14[%c0_188, %c0_189] : memref<128x384xf32, #tpu.memory_space<vmem>>, vector<128x384xf32>
    %c0_190 = arith.constant 0 : index
    %c0_191 = arith.constant 0 : index
    %799 = vector.load %arg16[%c0_190, %c0_191] : memref<1x384xf32, #tpu.memory_space<vmem>>, vector<1x384xf32>
    %cst_192 = arith.constant 0.000000e+00 : f32
    %800 = vector.broadcast %cst_192 : f32 to vector<2x128xf32>
    %801 = vector.extract_strided_slice %797 {offsets = [0, 0], sizes = [2, 384], strides = [1, 1]} : vector<16x384xf32> to vector<2x384xf32>
    %cst_193 = arith.constant dense<0.000000e+00> : vector<2x384xf32>
    %802 = tpu.matmul %800, %798, %cst_193 {dimension_numbers = #tpu.dot_dimension_numbers<[1], [0], [0], [1], [0, 0, 1, 1], [], []>} : vector<2x128xf32>, vector<128x384xf32>, vector<2x384xf32> -> vector<2x384xf32>
    %803 = vector.broadcast %799 : vector<1x384xf32> to vector<2x384xf32>
    %804 = arith.addf %802, %803 : vector<2x384xf32>
    %805 = vector.extract_strided_slice %801 {offsets = [0, 0], sizes = [2, 128], strides = [1, 1]} : vector<2x384xf32> to vector<2x128xf32>
    %806 = vector.extract_strided_slice %804 {offsets = [0, 0], sizes = [2, 128], strides = [1, 1]} : vector<2x384xf32> to vector<2x128xf32>
    %807 = arith.addf %805, %806 : vector<2x128xf32>
    %808 = arith.negf %807 : vector<2x128xf32>
    %809 = math.exp %808 : vector<2x128xf32>
    %cst_194 = arith.constant 1.000000e+00 : f32
    %810 = vector.broadcast %cst_194 : f32 to vector<2x128xf32>
    %811 = arith.addf %810, %809 : vector<2x128xf32>
    %812 = arith.divf %810, %811 : vector<2x128xf32>
    %813 = vector.extract_strided_slice %801 {offsets = [0, 128], sizes = [2, 128], strides = [1, 1]} : vector<2x384xf32> to vector<2x128xf32>
    %814 = vector.extract_strided_slice %804 {offsets = [0, 128], sizes = [2, 128], strides = [1, 1]} : vector<2x384xf32> to vector<2x128xf32>
    %815 = arith.addf %813, %814 : vector<2x128xf32>
    %816 = arith.negf %815 : vector<2x128xf32>
    %817 = math.exp %816 : vector<2x128xf32>
    %cst_195 = arith.constant 1.000000e+00 : f32
    %818 = vector.broadcast %cst_195 : f32 to vector<2x128xf32>
    %819 = arith.addf %818, %817 : vector<2x128xf32>
    %820 = arith.divf %818, %819 : vector<2x128xf32>
    %821 = vector.extract_strided_slice %801 {offsets = [0, 256], sizes = [2, 128], strides = [1, 1]} : vector<2x384xf32> to vector<2x128xf32>
    %822 = vector.extract_strided_slice %804 {offsets = [0, 256], sizes = [2, 128], strides = [1, 1]} : vector<2x384xf32> to vector<2x128xf32>
    %823 = arith.mulf %812, %822 : vector<2x128xf32>
    %824 = arith.addf %821, %823 : vector<2x128xf32>
    %825 = math.tanh %824 : vector<2x128xf32>
    %cst_196 = arith.constant 1.000000e+00 : f32
    %826 = vector.broadcast %cst_196 : f32 to vector<2x128xf32>
    %827 = arith.subf %826, %820 : vector<2x128xf32>
    %828 = arith.mulf %827, %825 : vector<2x128xf32>
    %829 = arith.mulf %820, %800 : vector<2x128xf32>
    %830 = arith.addf %828, %829 : vector<2x128xf32>
    %c0_197 = arith.constant 0 : index
    %c0_198 = arith.constant 0 : index
    %831 = vector.load %arg25[%c0_197, %c0_198] : memref<16x128xf32, #tpu.memory_space<vmem>>, vector<2x128xf32>
    tpu.vector_store %arg25[%c0_197, %c0_198], %830 {strides = array<i32>} : memref<16x128xf32, #tpu.memory_space<vmem>>, vector<2x128xf32>,
    %832 = vector.extract_strided_slice %797 {offsets = [2, 0], sizes = [2, 384], strides = [1, 1]} : vector<16x384xf32> to vector<2x384xf32>
    %cst_199 = arith.constant dense<0.000000e+00> : vector<2x384xf32>
    %833 = tpu.matmul %830, %798, %cst_199 {dimension_numbers = #tpu.dot_dimension_numbers<[1], [0], [0], [1], [0, 0, 1, 1], [], []>} : vector<2x128xf32>, vector<128x384xf32>, vector<2x384xf32> -> vector<2x384xf32>
    %834 = vector.broadcast %799 : vector<1x384xf32> to vector<2x384xf32>
    %835 = arith.addf %833, %834 : vector<2x384xf32>
    %836 = vector.extract_strided_slice %832 {offsets = [0, 0], sizes = [2, 128], strides = [1, 1]} : vector<2x384xf32> to vector<2x128xf32>
    %837 = vector.extract_strided_slice %835 {offsets = [0, 0], sizes = [2, 128], strides = [1, 1]} : vector<2x384xf32> to vector<2x128xf32>
    %838 = arith.addf %836, %837 : vector<2x128xf32>
    %839 = arith.negf %838 : vector<2x128xf32>
    %840 = math.exp %839 : vector<2x128xf32>
    %cst_200 = arith.constant 1.000000e+00 : f32
    %841 = vector.broadcast %cst_200 : f32 to vector<2x128xf32>
    %842 = arith.addf %841, %840 : vector<2x128xf32>
    %843 = arith.divf %841, %842 : vector<2x128xf32>
    %844 = vector.extract_strided_slice %832 {offsets = [0, 128], sizes = [2, 128], strides = [1, 1]} : vector<2x384xf32> to vector<2x128xf32>
    %845 = vector.extract_strided_slice %835 {offsets = [0, 128], sizes = [2, 128], strides = [1, 1]} : vector<2x384xf32> to vector<2x128xf32>
    %846 = arith.addf %844, %845 : vector<2x128xf32>
    %847 = arith.negf %846 : vector<2x128xf32>
    %848 = math.exp %847 : vector<2x128xf32>
    %cst_201 = arith.constant 1.000000e+00 : f32
    %849 = vector.broadcast %cst_201 : f32 to vector<2x128xf32>
    %850 = arith.addf %849, %848 : vector<2x128xf32>
    %851 = arith.divf %849, %850 : vector<2x128xf32>
    %852 = vector.extract_strided_slice %832 {offsets = [0, 256], sizes = [2, 128], strides = [1, 1]} : vector<2x384xf32> to vector<2x128xf32>
    %853 = vector.extract_strided_slice %835 {offsets = [0, 256], sizes = [2, 128], strides = [1, 1]} : vector<2x384xf32> to vector<2x128xf32>
    %854 = arith.mulf %843, %853 : vector<2x128xf32>
    %855 = arith.addf %852, %854 : vector<2x128xf32>
    %856 = math.tanh %855 : vector<2x128xf32>
    %cst_202 = arith.constant 1.000000e+00 : f32
    %857 = vector.broadcast %cst_202 : f32 to vector<2x128xf32>
    %858 = arith.subf %857, %851 : vector<2x128xf32>
    %859 = arith.mulf %858, %856 : vector<2x128xf32>
    %860 = arith.mulf %851, %830 : vector<2x128xf32>
    %861 = arith.addf %859, %860 : vector<2x128xf32>
    %c2_203 = arith.constant 2 : index
    %c0_204 = arith.constant 0 : index
    %862 = vector.load %arg25[%c2_203, %c0_204] : memref<16x128xf32, #tpu.memory_space<vmem>>, vector<2x128xf32>
    tpu.vector_store %arg25[%c2_203, %c0_204], %861 {strides = array<i32>} : memref<16x128xf32, #tpu.memory_space<vmem>>, vector<2x128xf32>,
    %863 = vector.extract_strided_slice %797 {offsets = [4, 0], sizes = [2, 384], strides = [1, 1]} : vector<16x384xf32> to vector<2x384xf32>
    %cst_205 = arith.constant dense<0.000000e+00> : vector<2x384xf32>
    %864 = tpu.matmul %861, %798, %cst_205 {dimension_numbers = #tpu.dot_dimension_numbers<[1], [0], [0], [1], [0, 0, 1, 1], [], []>} : vector<2x128xf32>, vector<128x384xf32>, vector<2x384xf32> -> vector<2x384xf32>
    %865 = vector.broadcast %799 : vector<1x384xf32> to vector<2x384xf32>
    %866 = arith.addf %864, %865 : vector<2x384xf32>
    %867 = vector.extract_strided_slice %863 {offsets = [0, 0], sizes = [2, 128], strides = [1, 1]} : vector<2x384xf32> to vector<2x128xf32>
    %868 = vector.extract_strided_slice %866 {offsets = [0, 0], sizes = [2, 128], strides = [1, 1]} : vector<2x384xf32> to vector<2x128xf32>
    %869 = arith.addf %867, %868 : vector<2x128xf32>
    %870 = arith.negf %869 : vector<2x128xf32>
    %871 = math.exp %870 : vector<2x128xf32>
    %cst_206 = arith.constant 1.000000e+00 : f32
    %872 = vector.broadcast %cst_206 : f32 to vector<2x128xf32>
    %873 = arith.addf %872, %871 : vector<2x128xf32>
    %874 = arith.divf %872, %873 : vector<2x128xf32>
    %875 = vector.extract_strided_slice %863 {offsets = [0, 128], sizes = [2, 128], strides = [1, 1]} : vector<2x384xf32> to vector<2x128xf32>
    %876 = vector.extract_strided_slice %866 {offsets = [0, 128], sizes = [2, 128], strides = [1, 1]} : vector<2x384xf32> to vector<2x128xf32>
    %877 = arith.addf %875, %876 : vector<2x128xf32>
    %878 = arith.negf %877 : vector<2x128xf32>
    %879 = math.exp %878 : vector<2x128xf32>
    %cst_207 = arith.constant 1.000000e+00 : f32
    %880 = vector.broadcast %cst_207 : f32 to vector<2x128xf32>
    %881 = arith.addf %880, %879 : vector<2x128xf32>
    %882 = arith.divf %880, %881 : vector<2x128xf32>
    %883 = vector.extract_strided_slice %863 {offsets = [0, 256], sizes = [2, 128], strides = [1, 1]} : vector<2x384xf32> to vector<2x128xf32>
    %884 = vector.extract_strided_slice %866 {offsets = [0, 256], sizes = [2, 128], strides = [1, 1]} : vector<2x384xf32> to vector<2x128xf32>
    %885 = arith.mulf %874, %884 : vector<2x128xf32>
    %886 = arith.addf %883, %885 : vector<2x128xf32>
    %887 = math.tanh %886 : vector<2x128xf32>
    %cst_208 = arith.constant 1.000000e+00 : f32
    %888 = vector.broadcast %cst_208 : f32 to vector<2x128xf32>
    %889 = arith.subf %888, %882 : vector<2x128xf32>
    %890 = arith.mulf %889, %887 : vector<2x128xf32>
    %891 = arith.mulf %882, %861 : vector<2x128xf32>
    %892 = arith.addf %890, %891 : vector<2x128xf32>
    %c4_209 = arith.constant 4 : index
    %c0_210 = arith.constant 0 : index
    %893 = vector.load %arg25[%c4_209, %c0_210] : memref<16x128xf32, #tpu.memory_space<vmem>>, vector<2x128xf32>
    tpu.vector_store %arg25[%c4_209, %c0_210], %892 {strides = array<i32>} : memref<16x128xf32, #tpu.memory_space<vmem>>, vector<2x128xf32>,
    %894 = vector.extract_strided_slice %797 {offsets = [6, 0], sizes = [2, 384], strides = [1, 1]} : vector<16x384xf32> to vector<2x384xf32>
    %cst_211 = arith.constant dense<0.000000e+00> : vector<2x384xf32>
    %895 = tpu.matmul %892, %798, %cst_211 {dimension_numbers = #tpu.dot_dimension_numbers<[1], [0], [0], [1], [0, 0, 1, 1], [], []>} : vector<2x128xf32>, vector<128x384xf32>, vector<2x384xf32> -> vector<2x384xf32>
    %896 = vector.broadcast %799 : vector<1x384xf32> to vector<2x384xf32>
    %897 = arith.addf %895, %896 : vector<2x384xf32>
    %898 = vector.extract_strided_slice %894 {offsets = [0, 0], sizes = [2, 128], strides = [1, 1]} : vector<2x384xf32> to vector<2x128xf32>
    %899 = vector.extract_strided_slice %897 {offsets = [0, 0], sizes = [2, 128], strides = [1, 1]} : vector<2x384xf32> to vector<2x128xf32>
    %900 = arith.addf %898, %899 : vector<2x128xf32>
    %901 = arith.negf %900 : vector<2x128xf32>
    %902 = math.exp %901 : vector<2x128xf32>
    %cst_212 = arith.constant 1.000000e+00 : f32
    %903 = vector.broadcast %cst_212 : f32 to vector<2x128xf32>
    %904 = arith.addf %903, %902 : vector<2x128xf32>
    %905 = arith.divf %903, %904 : vector<2x128xf32>
    %906 = vector.extract_strided_slice %894 {offsets = [0, 128], sizes = [2, 128], strides = [1, 1]} : vector<2x384xf32> to vector<2x128xf32>
    %907 = vector.extract_strided_slice %897 {offsets = [0, 128], sizes = [2, 128], strides = [1, 1]} : vector<2x384xf32> to vector<2x128xf32>
    %908 = arith.addf %906, %907 : vector<2x128xf32>
    %909 = arith.negf %908 : vector<2x128xf32>
    %910 = math.exp %909 : vector<2x128xf32>
    %cst_213 = arith.constant 1.000000e+00 : f32
    %911 = vector.broadcast %cst_213 : f32 to vector<2x128xf32>
    %912 = arith.addf %911, %910 : vector<2x128xf32>
    %913 = arith.divf %911, %912 : vector<2x128xf32>
    %914 = vector.extract_strided_slice %894 {offsets = [0, 256], sizes = [2, 128], strides = [1, 1]} : vector<2x384xf32> to vector<2x128xf32>
    %915 = vector.extract_strided_slice %897 {offsets = [0, 256], sizes = [2, 128], strides = [1, 1]} : vector<2x384xf32> to vector<2x128xf32>
    %916 = arith.mulf %905, %915 : vector<2x128xf32>
    %917 = arith.addf %914, %916 : vector<2x128xf32>
    %918 = math.tanh %917 : vector<2x128xf32>
    %cst_214 = arith.constant 1.000000e+00 : f32
    %919 = vector.broadcast %cst_214 : f32 to vector<2x128xf32>
    %920 = arith.subf %919, %913 : vector<2x128xf32>
    %921 = arith.mulf %920, %918 : vector<2x128xf32>
    %922 = arith.mulf %913, %892 : vector<2x128xf32>
    %923 = arith.addf %921, %922 : vector<2x128xf32>
    %c6_215 = arith.constant 6 : index
    %c0_216 = arith.constant 0 : index
    %924 = vector.load %arg25[%c6_215, %c0_216] : memref<16x128xf32, #tpu.memory_space<vmem>>, vector<2x128xf32>
    tpu.vector_store %arg25[%c6_215, %c0_216], %923 {strides = array<i32>} : memref<16x128xf32, #tpu.memory_space<vmem>>, vector<2x128xf32>,
    %925 = vector.extract_strided_slice %797 {offsets = [8, 0], sizes = [2, 384], strides = [1, 1]} : vector<16x384xf32> to vector<2x384xf32>
    %cst_217 = arith.constant dense<0.000000e+00> : vector<2x384xf32>
    %926 = tpu.matmul %923, %798, %cst_217 {dimension_numbers = #tpu.dot_dimension_numbers<[1], [0], [0], [1], [0, 0, 1, 1], [], []>} : vector<2x128xf32>, vector<128x384xf32>, vector<2x384xf32> -> vector<2x384xf32>
    %927 = vector.broadcast %799 : vector<1x384xf32> to vector<2x384xf32>
    %928 = arith.addf %926, %927 : vector<2x384xf32>
    %929 = vector.extract_strided_slice %925 {offsets = [0, 0], sizes = [2, 128], strides = [1, 1]} : vector<2x384xf32> to vector<2x128xf32>
    %930 = vector.extract_strided_slice %928 {offsets = [0, 0], sizes = [2, 128], strides = [1, 1]} : vector<2x384xf32> to vector<2x128xf32>
    %931 = arith.addf %929, %930 : vector<2x128xf32>
    %932 = arith.negf %931 : vector<2x128xf32>
    %933 = math.exp %932 : vector<2x128xf32>
    %cst_218 = arith.constant 1.000000e+00 : f32
    %934 = vector.broadcast %cst_218 : f32 to vector<2x128xf32>
    %935 = arith.addf %934, %933 : vector<2x128xf32>
    %936 = arith.divf %934, %935 : vector<2x128xf32>
    %937 = vector.extract_strided_slice %925 {offsets = [0, 128], sizes = [2, 128], strides = [1, 1]} : vector<2x384xf32> to vector<2x128xf32>
    %938 = vector.extract_strided_slice %928 {offsets = [0, 128], sizes = [2, 128], strides = [1, 1]} : vector<2x384xf32> to vector<2x128xf32>
    %939 = arith.addf %937, %938 : vector<2x128xf32>
    %940 = arith.negf %939 : vector<2x128xf32>
    %941 = math.exp %940 : vector<2x128xf32>
    %cst_219 = arith.constant 1.000000e+00 : f32
    %942 = vector.broadcast %cst_219 : f32 to vector<2x128xf32>
    %943 = arith.addf %942, %941 : vector<2x128xf32>
    %944 = arith.divf %942, %943 : vector<2x128xf32>
    %945 = vector.extract_strided_slice %925 {offsets = [0, 256], sizes = [2, 128], strides = [1, 1]} : vector<2x384xf32> to vector<2x128xf32>
    %946 = vector.extract_strided_slice %928 {offsets = [0, 256], sizes = [2, 128], strides = [1, 1]} : vector<2x384xf32> to vector<2x128xf32>
    %947 = arith.mulf %936, %946 : vector<2x128xf32>
    %948 = arith.addf %945, %947 : vector<2x128xf32>
    %949 = math.tanh %948 : vector<2x128xf32>
    %cst_220 = arith.constant 1.000000e+00 : f32
    %950 = vector.broadcast %cst_220 : f32 to vector<2x128xf32>
    %951 = arith.subf %950, %944 : vector<2x128xf32>
    %952 = arith.mulf %951, %949 : vector<2x128xf32>
    %953 = arith.mulf %944, %923 : vector<2x128xf32>
    %954 = arith.addf %952, %953 : vector<2x128xf32>
    %c8_221 = arith.constant 8 : index
    %c0_222 = arith.constant 0 : index
    %955 = vector.load %arg25[%c8_221, %c0_222] : memref<16x128xf32, #tpu.memory_space<vmem>>, vector<2x128xf32>
    tpu.vector_store %arg25[%c8_221, %c0_222], %954 {strides = array<i32>} : memref<16x128xf32, #tpu.memory_space<vmem>>, vector<2x128xf32>,
    %956 = vector.extract_strided_slice %797 {offsets = [10, 0], sizes = [2, 384], strides = [1, 1]} : vector<16x384xf32> to vector<2x384xf32>
    %cst_223 = arith.constant dense<0.000000e+00> : vector<2x384xf32>
    %957 = tpu.matmul %954, %798, %cst_223 {dimension_numbers = #tpu.dot_dimension_numbers<[1], [0], [0], [1], [0, 0, 1, 1], [], []>} : vector<2x128xf32>, vector<128x384xf32>, vector<2x384xf32> -> vector<2x384xf32>
    %958 = vector.broadcast %799 : vector<1x384xf32> to vector<2x384xf32>
    %959 = arith.addf %957, %958 : vector<2x384xf32>
    %960 = vector.extract_strided_slice %956 {offsets = [0, 0], sizes = [2, 128], strides = [1, 1]} : vector<2x384xf32> to vector<2x128xf32>
    %961 = vector.extract_strided_slice %959 {offsets = [0, 0], sizes = [2, 128], strides = [1, 1]} : vector<2x384xf32> to vector<2x128xf32>
    %962 = arith.addf %960, %961 : vector<2x128xf32>
    %963 = arith.negf %962 : vector<2x128xf32>
    %964 = math.exp %963 : vector<2x128xf32>
    %cst_224 = arith.constant 1.000000e+00 : f32
    %965 = vector.broadcast %cst_224 : f32 to vector<2x128xf32>
    %966 = arith.addf %965, %964 : vector<2x128xf32>
    %967 = arith.divf %965, %966 : vector<2x128xf32>
    %968 = vector.extract_strided_slice %956 {offsets = [0, 128], sizes = [2, 128], strides = [1, 1]} : vector<2x384xf32> to vector<2x128xf32>
    %969 = vector.extract_strided_slice %959 {offsets = [0, 128], sizes = [2, 128], strides = [1, 1]} : vector<2x384xf32> to vector<2x128xf32>
    %970 = arith.addf %968, %969 : vector<2x128xf32>
    %971 = arith.negf %970 : vector<2x128xf32>
    %972 = math.exp %971 : vector<2x128xf32>
    %cst_225 = arith.constant 1.000000e+00 : f32
    %973 = vector.broadcast %cst_225 : f32 to vector<2x128xf32>
    %974 = arith.addf %973, %972 : vector<2x128xf32>
    %975 = arith.divf %973, %974 : vector<2x128xf32>
    %976 = vector.extract_strided_slice %956 {offsets = [0, 256], sizes = [2, 128], strides = [1, 1]} : vector<2x384xf32> to vector<2x128xf32>
    %977 = vector.extract_strided_slice %959 {offsets = [0, 256], sizes = [2, 128], strides = [1, 1]} : vector<2x384xf32> to vector<2x128xf32>
    %978 = arith.mulf %967, %977 : vector<2x128xf32>
    %979 = arith.addf %976, %978 : vector<2x128xf32>
    %980 = math.tanh %979 : vector<2x128xf32>
    %cst_226 = arith.constant 1.000000e+00 : f32
    %981 = vector.broadcast %cst_226 : f32 to vector<2x128xf32>
    %982 = arith.subf %981, %975 : vector<2x128xf32>
    %983 = arith.mulf %982, %980 : vector<2x128xf32>
    %984 = arith.mulf %975, %954 : vector<2x128xf32>
    %985 = arith.addf %983, %984 : vector<2x128xf32>
    %c10_227 = arith.constant 10 : index
    %c0_228 = arith.constant 0 : index
    %986 = vector.load %arg25[%c10_227, %c0_228] : memref<16x128xf32, #tpu.memory_space<vmem>>, vector<2x128xf32>
    tpu.vector_store %arg25[%c10_227, %c0_228], %985 {strides = array<i32>} : memref<16x128xf32, #tpu.memory_space<vmem>>, vector<2x128xf32>,
    %987 = vector.extract_strided_slice %797 {offsets = [12, 0], sizes = [2, 384], strides = [1, 1]} : vector<16x384xf32> to vector<2x384xf32>
    %cst_229 = arith.constant dense<0.000000e+00> : vector<2x384xf32>
    %988 = tpu.matmul %985, %798, %cst_229 {dimension_numbers = #tpu.dot_dimension_numbers<[1], [0], [0], [1], [0, 0, 1, 1], [], []>} : vector<2x128xf32>, vector<128x384xf32>, vector<2x384xf32> -> vector<2x384xf32>
    %989 = vector.broadcast %799 : vector<1x384xf32> to vector<2x384xf32>
    %990 = arith.addf %988, %989 : vector<2x384xf32>
    %991 = vector.extract_strided_slice %987 {offsets = [0, 0], sizes = [2, 128], strides = [1, 1]} : vector<2x384xf32> to vector<2x128xf32>
    %992 = vector.extract_strided_slice %990 {offsets = [0, 0], sizes = [2, 128], strides = [1, 1]} : vector<2x384xf32> to vector<2x128xf32>
    %993 = arith.addf %991, %992 : vector<2x128xf32>
    %994 = arith.negf %993 : vector<2x128xf32>
    %995 = math.exp %994 : vector<2x128xf32>
    %cst_230 = arith.constant 1.000000e+00 : f32
    %996 = vector.broadcast %cst_230 : f32 to vector<2x128xf32>
    %997 = arith.addf %996, %995 : vector<2x128xf32>
    %998 = arith.divf %996, %997 : vector<2x128xf32>
    %999 = vector.extract_strided_slice %987 {offsets = [0, 128], sizes = [2, 128], strides = [1, 1]} : vector<2x384xf32> to vector<2x128xf32>
    %1000 = vector.extract_strided_slice %990 {offsets = [0, 128], sizes = [2, 128], strides = [1, 1]} : vector<2x384xf32> to vector<2x128xf32>
    %1001 = arith.addf %999, %1000 : vector<2x128xf32>
    %1002 = arith.negf %1001 : vector<2x128xf32>
    %1003 = math.exp %1002 : vector<2x128xf32>
    %cst_231 = arith.constant 1.000000e+00 : f32
    %1004 = vector.broadcast %cst_231 : f32 to vector<2x128xf32>
    %1005 = arith.addf %1004, %1003 : vector<2x128xf32>
    %1006 = arith.divf %1004, %1005 : vector<2x128xf32>
    %1007 = vector.extract_strided_slice %987 {offsets = [0, 256], sizes = [2, 128], strides = [1, 1]} : vector<2x384xf32> to vector<2x128xf32>
    %1008 = vector.extract_strided_slice %990 {offsets = [0, 256], sizes = [2, 128], strides = [1, 1]} : vector<2x384xf32> to vector<2x128xf32>
    %1009 = arith.mulf %998, %1008 : vector<2x128xf32>
    %1010 = arith.addf %1007, %1009 : vector<2x128xf32>
    %1011 = math.tanh %1010 : vector<2x128xf32>
    %cst_232 = arith.constant 1.000000e+00 : f32
    %1012 = vector.broadcast %cst_232 : f32 to vector<2x128xf32>
    %1013 = arith.subf %1012, %1006 : vector<2x128xf32>
    %1014 = arith.mulf %1013, %1011 : vector<2x128xf32>
    %1015 = arith.mulf %1006, %985 : vector<2x128xf32>
    %1016 = arith.addf %1014, %1015 : vector<2x128xf32>
    %c12_233 = arith.constant 12 : index
    %c0_234 = arith.constant 0 : index
    %1017 = vector.load %arg25[%c12_233, %c0_234] : memref<16x128xf32, #tpu.memory_space<vmem>>, vector<2x128xf32>
    tpu.vector_store %arg25[%c12_233, %c0_234], %1016 {strides = array<i32>} : memref<16x128xf32, #tpu.memory_space<vmem>>, vector<2x128xf32>,
    %1018 = vector.extract_strided_slice %797 {offsets = [14, 0], sizes = [2, 384], strides = [1, 1]} : vector<16x384xf32> to vector<2x384xf32>
    %cst_235 = arith.constant dense<0.000000e+00> : vector<2x384xf32>
    %1019 = tpu.matmul %1016, %798, %cst_235 {dimension_numbers = #tpu.dot_dimension_numbers<[1], [0], [0], [1], [0, 0, 1, 1], [], []>} : vector<2x128xf32>, vector<128x384xf32>, vector<2x384xf32> -> vector<2x384xf32>
    %1020 = vector.broadcast %799 : vector<1x384xf32> to vector<2x384xf32>
    %1021 = arith.addf %1019, %1020 : vector<2x384xf32>
    %1022 = vector.extract_strided_slice %1018 {offsets = [0, 0], sizes = [2, 128], strides = [1, 1]} : vector<2x384xf32> to vector<2x128xf32>
    %1023 = vector.extract_strided_slice %1021 {offsets = [0, 0], sizes = [2, 128], strides = [1, 1]} : vector<2x384xf32> to vector<2x128xf32>
    %1024 = arith.addf %1022, %1023 : vector<2x128xf32>
    %1025 = arith.negf %1024 : vector<2x128xf32>
    %1026 = math.exp %1025 : vector<2x128xf32>
    %cst_236 = arith.constant 1.000000e+00 : f32
    %1027 = vector.broadcast %cst_236 : f32 to vector<2x128xf32>
    %1028 = arith.addf %1027, %1026 : vector<2x128xf32>
    %1029 = arith.divf %1027, %1028 : vector<2x128xf32>
    %1030 = vector.extract_strided_slice %1018 {offsets = [0, 128], sizes = [2, 128], strides = [1, 1]} : vector<2x384xf32> to vector<2x128xf32>
    %1031 = vector.extract_strided_slice %1021 {offsets = [0, 128], sizes = [2, 128], strides = [1, 1]} : vector<2x384xf32> to vector<2x128xf32>
    %1032 = arith.addf %1030, %1031 : vector<2x128xf32>
    %1033 = arith.negf %1032 : vector<2x128xf32>
    %1034 = math.exp %1033 : vector<2x128xf32>
    %cst_237 = arith.constant 1.000000e+00 : f32
    %1035 = vector.broadcast %cst_237 : f32 to vector<2x128xf32>
    %1036 = arith.addf %1035, %1034 : vector<2x128xf32>
    %1037 = arith.divf %1035, %1036 : vector<2x128xf32>
    %1038 = vector.extract_strided_slice %1018 {offsets = [0, 256], sizes = [2, 128], strides = [1, 1]} : vector<2x384xf32> to vector<2x128xf32>
    %1039 = vector.extract_strided_slice %1021 {offsets = [0, 256], sizes = [2, 128], strides = [1, 1]} : vector<2x384xf32> to vector<2x128xf32>
    %1040 = arith.mulf %1029, %1039 : vector<2x128xf32>
    %1041 = arith.addf %1038, %1040 : vector<2x128xf32>
    %1042 = math.tanh %1041 : vector<2x128xf32>
    %cst_238 = arith.constant 1.000000e+00 : f32
    %1043 = vector.broadcast %cst_238 : f32 to vector<2x128xf32>
    %1044 = arith.subf %1043, %1037 : vector<2x128xf32>
    %1045 = arith.mulf %1044, %1042 : vector<2x128xf32>
    %1046 = arith.mulf %1037, %1016 : vector<2x128xf32>
    %1047 = arith.addf %1045, %1046 : vector<2x128xf32>
    %c14_239 = arith.constant 14 : index
    %c0_240 = arith.constant 0 : index
    %1048 = vector.load %arg25[%c14_239, %c0_240] : memref<16x128xf32, #tpu.memory_space<vmem>>, vector<2x128xf32>
    tpu.vector_store %arg25[%c14_239, %c0_240], %1047 {strides = array<i32>} : memref<16x128xf32, #tpu.memory_space<vmem>>, vector<2x128xf32>,
    %c0_241 = arith.constant 0 : index
    %c0_242 = arith.constant 0 : index
    %1049 = vector.load %arg25[%c0_241, %c0_242] : memref<16x128xf32, #tpu.memory_space<vmem>>, vector<16x128xf32>
    %c0_243 = arith.constant 0 : index
    %c0_244 = arith.constant 0 : index
    %1050 = vector.load %arg19[%c0_243, %c0_244] : memref<1x128xf32, #tpu.memory_space<vmem>>, vector<1x128xf32>
    %c0_245 = arith.constant 0 : index
    %c0_246 = arith.constant 0 : index
    %1051 = vector.load %arg20[%c0_245, %c0_246] : memref<1x128xf32, #tpu.memory_space<vmem>>, vector<1x128xf32>
    %cst_247 = arith.constant dense<0.000000e+00> : vector<16xf32>
    %1052 = vector.multi_reduction <add>, %1049, %cst_247 [1] : vector<16x128xf32> to vector<16xf32>
    %1053 = vector.shape_cast %1052 : vector<16xf32> to vector<16x1xf32>
    %cst_248 = arith.constant 1.562500e-02 : f32
    %1054 = vector.broadcast %cst_248 : f32 to vector<16x1xf32>
    %1055 = arith.mulf %1053, %1054 : vector<16x1xf32>
    %1056 = vector.broadcast %1055 : vector<16x1xf32> to vector<16x128xf32>
    %1057 = arith.subf %1049, %1056 : vector<16x128xf32>
    %cst_249 = arith.constant 0.000000e+00 : f32
    %1058 = vector.shape_cast %2 : vector<1x128xi1> to vector<1x128xi1>
    %1059 = vector.broadcast %1058 : vector<1x128xi1> to vector<16x128xi1>
    %1060 = vector.broadcast %cst_249 : f32 to vector<16x128xf32>
    %1061 = arith.select %1059, %1057, %1060 : vector<16x128xi1>, vector<16x128xf32>
    %1062 = arith.mulf %1061, %1061 : vector<16x128xf32>
    %cst_250 = arith.constant dense<0.000000e+00> : vector<16xf32>
    %1063 = vector.multi_reduction <add>, %1062, %cst_250 [1] : vector<16x128xf32> to vector<16xf32>
    %1064 = vector.shape_cast %1063 : vector<16xf32> to vector<16x1xf32>
    %cst_251 = arith.constant 1.562500e-02 : f32
    %1065 = vector.broadcast %cst_251 : f32 to vector<16x1xf32>
    %1066 = arith.mulf %1064, %1065 : vector<16x1xf32>
    %cst_252 = arith.constant 9.99999974E-6 : f32
    %1067 = vector.broadcast %cst_252 : f32 to vector<16x1xf32>
    %1068 = arith.addf %1066, %1067 : vector<16x1xf32>
    %1069 = math.rsqrt %1068 : vector<16x1xf32>
    %1070 = vector.broadcast %1069 : vector<16x1xf32> to vector<16x128xf32>
    %1071 = arith.mulf %1061, %1070 : vector<16x128xf32>
    %1072 = vector.broadcast %1050 : vector<1x128xf32> to vector<16x128xf32>
    %1073 = arith.mulf %1071, %1072 : vector<16x128xf32>
    %1074 = vector.broadcast %1051 : vector<1x128xf32> to vector<16x128xf32>
    %1075 = arith.addf %1073, %1074 : vector<16x128xf32>
    %c0_253 = arith.constant 0 : index
    %c0_254 = arith.constant 0 : index
    %1076 = vector.load %arg21[%c0_253, %c0_254] : memref<128x1xf32, #tpu.memory_space<vmem>>, vector<128x1xf32>
    %cst_255 = arith.constant dense<0.000000e+00> : vector<16x1xf32>
    %1077 = tpu.matmul %1075, %1076, %cst_255 {dimension_numbers = #tpu.dot_dimension_numbers<[1], [0], [0], [1], [0, 0, 1, 1], [], []>} : vector<16x128xf32>, vector<128x1xf32>, vector<16x1xf32> -> vector<16x1xf32>
    %c0_256 = arith.constant 0 : index
    %c0_257 = arith.constant 0 : index
    %1078 = vector.load %arg22[%c0_256, %c0_257] : memref<1x1xf32, #tpu.memory_space<vmem>>, vector<1x1xf32>
    %1079 = vector.broadcast %1078 : vector<1x1xf32> to vector<16x1xf32>
    %1080 = arith.addf %1077, %1079 : vector<16x1xf32>
    %c0_258 = arith.constant 0 : index
    %c0_259 = arith.constant 0 : index
    %1081 = vector.load %arg23[%c0_258, %c0_259] : memref<16x1xf32, #tpu.memory_space<vmem>>, vector<16x1xf32>
    tpu.vector_store %arg23[%c0_258, %c0_259], %1080 {strides = array<i32>} : memref<16x1xf32, #tpu.memory_space<vmem>>, vector<16x1xf32>,
    return
  }
}

</mosaic_0001>

<bundles_post_ra>
// kernel: tpu_custom_call.1
= control target key start
LH: loop header
LB: loop body
LE: loop exit
PB: predicated region body
PF: predicated region fallthrough
CT: control target
= control target key end

     0   :  { %s13825_s0 = inlined_call_operand.vmem [shape: f32[2,128], index: 0, kind: input, shape index: {}]   ;;  %s13826_s1 = inlined_call_operand.hbm [shape: f32[128,384], index: 1, kind: input, shape index: {}]   ;;  %s13827_s2 = inlined_call_operand.hbm [shape: f32[128,384], index: 2, kind: input, shape index: {}]   ;;  %s13828_s3 = inlined_call_operand.vmem [shape: f32[1,384], index: 3, kind: input, shape index: {}]   ;;  %s13829_s4 = inlined_call_operand.vmem [shape: f32[1,384], index: 4, kind: input, shape index: {}]   ;;  %s13830_s5 = inlined_call_operand.hbm [shape: f32[128,384], index: 5, kind: input, shape index: {}]   ;;  %s13831_s6 = inlined_call_operand.hbm [shape: f32[128,384], index: 6, kind: input, shape index: {}]   ;;  %s13832_s7 = inlined_call_operand.vmem [shape: f32[1,384], index: 7, kind: input, shape index: {}]   ;;  %s13833_s8 = inlined_call_operand.vmem [shape: f32[1,384], index: 8, kind: input, shape index: {}]   ;;  %s13834_s9 = inlined_call_operand.hbm [shape: f32[128,384], index: 9, kind: input, shape index: {}]   ;;  %s13835_s10 = inlined_call_operand.hbm [shape: f32[128,384], index: 10, kind: input, shape index: {}]   ;;  %s13836_s11 = inlined_call_operand.vmem [shape: f32[1,384], index: 11, kind: input, shape index: {}]   ;;  %s13837_s12 = inlined_call_operand.vmem [shape: f32[1,384], index: 12, kind: input, shape index: {}]   ;;  %s13838_s13 = inlined_call_operand.hbm [shape: f32[128,384], index: 13, kind: input, shape index: {}]   ;;  %s13839_s14 = inlined_call_operand.hbm [shape: f32[128,384], index: 14, kind: input, shape index: {}]   ;;  %s13840_s15 = inlined_call_operand.vmem [shape: f32[1,384], index: 15, kind: input, shape index: {}]   ;;  %s13841_s16 = inlined_call_operand.vmem [shape: f32[1,384], index: 16, kind: input, shape index: {}]   ;;  %s13842_s17 = inlined_call_operand.vmem [shape: f32[1,128], index: 17, kind: input, shape index: {}]   ;;  %s13843_s18 = inlined_call_operand.vmem [shape: f32[1,128], index: 18, kind: input, shape index: {}]   ;;  %s13844_s19 = inlined_call_operand.vmem [shape: f32[1,128], index: 19, kind: input, shape index: {}]   ;;  %s13845_s20 = inlined_call_operand.vmem [shape: f32[1,128], index: 20, kind: input, shape index: {}]   ;;  %s13846_s21 = inlined_call_operand.vmem [shape: f32[128,1], index: 21, kind: input, shape index: {}]   ;;  %s13847_s22 = inlined_call_operand.<no memory space> [shape: f32[1,1], index: 22, kind: input, shape index: {}]   ;;  %s13848_s23 = inlined_call_operand.vmem [shape: f32[16,1], index: 23, kind: output, shape index: {}]  }
   0x1   :  { %13854 = sst [smem:[#allocation23_spill]] %s13825_s0  ;;  %v28_v0 = vstv %s13847_s22 }
   0x2   :  { %13855 = sst [smem:[#allocation24_spill]] %s13826_s1  ;;  %29 = vst [vmem:[#allocation4] sm:$0x1] %v28_v0 }
   0x3   :  { %13856 = sst [smem:[#allocation25_spill]] %s13827_s2 }
   0x4   :  { %13857 = sst [smem:[#allocation26_spill]] %s13828_s3 }
   0x5   :  { %13858 = sst [smem:[#allocation27_spill]] %s13829_s4 }
   0x6   :  { %13859 = sst [smem:[#allocation28_spill]] %s13830_s5 }
   0x7   :  { %13860 = sst [smem:[#allocation29_spill]] %s13831_s6 }
   0x8   :  { %13861 = sst [smem:[#allocation30_spill]] %s13832_s7 }
   0x9   :  { %13862 = sst [smem:[#allocation31_spill]] %s13848_s23 }
   0xa   :  { %30 = vsyncpa [#allocation6], 0 }
   0xb   :  { %31 = vsyncpa [#allocation8], 0 }
   0xc   :  { %32 = vsyncpa [#allocation11], 0 }
   0xd   :  { %33 = vsyncpa [#allocation14], 0 }
   0xe   :  { %34 = vsyncpa [#allocation17], 0  ;;  %s11571_s24 = smov [#allocation7]   ;;  %s11572_s5 = smov [#allocation10]  }
   0xf   :  { %s54_s25 = sshll.u32 %s11571_s24, 4  ;;  %s82_s1 = sshll.u32 %s11572_s5, 4  ;;  %s55_s25 = int_to_ptr.vmem [resolvable:$true] %s54_s25  ;;  %s11707_s1 = int_to_ptr.vmem [resolvable:$true] %s82_s1 }
  0x10   :  { %s13863_s6 = sld [smem:[#allocation25_spill]] }
  0x16   :  { %s11385_s27 = scalar_lea.hbm %s13863_s6, 6144 }
  0x17   :  { %p11386_p0 = scmp.ne.s32.totalorder %s13863_s6, %s11385_s27  ;;  %p11389_p1 = scmp.lt.u32.totalorder %s11385_s27, %s13863_s6 }
  0x19   :  { %p11391_p2 = pnand %p11389_p1, %p11386_p0 }
  0x1b   :  { %11394 = shalt.err (!%p11391_p2)
}
  0x1c   :  { %s11395_s3 = scalar_lea.vmem %s55_s25, 6144  ;;  %p11400_p4 = scmp.lt.s32.totalorder %s55_s25, %s55_s25 }
  0x1d   :  { %p11396_p3 = scmp.ne.s32.totalorder %s55_s25, %s11395_s3  ;;  %p11401_p5 = scmp.lt.s32.totalorder %s11395_s3, %s11395_s3 }
  0x1f   :  { %p11402_p6 = por %p11401_p5, %p11400_p4 }
  0x21   :  { %p11403_p7 = pnand %p11402_p6, %p11396_p3 }
  0x23   :  { %11406 = shalt.err (!%p11403_p7)
}
  0x24   :  { %s11573_s0 = smov 384   ;;  %s11574_s4 = smov 24  }
  0x25   :  { %60 = dma.hbm_to_vmem [thread:$0]  %s13863_s6, 6144, %s55_s25, [#allocation8], %s11573_s0, %s11573_s0, %s11574_s4  }
  0x26   :  { %s13864_s2 = sld [smem:[#allocation29_spill]] }
  0x2c   :  { %s11407_s27 = scalar_lea.hbm %s13864_s2, 6144 }
  0x2d   :  { %p11408_p8 = scmp.ne.s32.totalorder %s13864_s2, %s11407_s27  ;;  %p11411_p9 = scmp.lt.u32.totalorder %s11407_s27, %s13864_s2 }
  0x2f   :  { %p11413_p10 = pnand %p11411_p9, %p11408_p8 }
  0x31   :  { %11416 = shalt.err (!%p11413_p10)
}
  0x32   :  { %s11417_s3 = scalar_lea.vmem %s11707_s1, 6144  ;;  %p11422_p12 = scmp.lt.s32.totalorder %s11707_s1, %s11707_s1 }
  0x33   :  { %p11418_p11 = scmp.ne.s32.totalorder %s11707_s1, %s11417_s3  ;;  %p11423_p13 = scmp.lt.s32.totalorder %s11417_s3, %s11417_s3 }
  0x35   :  { %p11424_p0 = por %p11423_p13, %p11422_p12 }
  0x37   :  { %p11425_p1 = pnand %p11424_p0, %p11418_p11 }
  0x39   :  { %11428 = shalt.err (!%p11425_p1)
}
  0x3a   :  { %88 = dma.hbm_to_vmem [thread:$0]  %s13864_s2, 6144, %s11707_s1, [#allocation11], %s11573_s0, %s11573_s0, %s11574_s4  }
  0x3b   :  { %s11575_s30 = smov [#allocation13]   ;;  %s11576_s5 = smov [#allocation5]  }
  0x3c   :  { %s110_s24 = sshll.u32 %s11575_s30, 4  ;;  %s42_s26 = sshll.u32 %s11576_s5, 4  ;;  %s111_s24 = int_to_ptr.vmem [resolvable:$true] %s110_s24  ;;  %s11744_s26 = int_to_ptr.vmem [resolvable:$true] %s42_s26 }
  0x3d   :  { %s11429_s28 = scalar_lea.hbm %s13835_s10, 6144 }
  0x3e   :  { %p11430_p2 = scmp.ne.s32.totalorder %s13835_s10, %s11429_s28  ;;  %p11433_p3 = scmp.lt.u32.totalorder %s11429_s28, %s13835_s10 }
  0x40   :  { %p11435_p4 = pnand %p11433_p3, %p11430_p2 }
  0x42   :  { %11438 = shalt.err (!%p11435_p4)
}
  0x43   :  { %s11439_s1 = scalar_lea.vmem %s111_s24, 6144  ;;  %p11444_p6 = scmp.lt.s32.totalorder %s111_s24, %s111_s24 }
  0x44   :  { %p11440_p5 = scmp.ne.s32.totalorder %s111_s24, %s11439_s1  ;;  %p11445_p7 = scmp.lt.s32.totalorder %s11439_s1, %s11439_s1 }
  0x46   :  { %p11446_p8 = por %p11445_p7, %p11444_p6 }
  0x48   :  { %p11447_p9 = pnand %p11446_p8, %p11440_p5 }
  0x4a   :  { %11450 = shalt.err (!%p11447_p9)
}
  0x4b   :  { %116 = dma.hbm_to_vmem [thread:$0]  %s13835_s10, 6144, %s111_s24, [#allocation14], %s11573_s0, %s11573_s0, %s11574_s4  }
  0x4c   :  { %s13865_s23 = sld [smem:[#allocation24_spill]] }
  0x52   :  { %s11451_s5 = scalar_lea.hbm %s13865_s23, 6144 }
  0x53   :  { %p11452_p10 = scmp.ne.s32.totalorder %s13865_s23, %s11451_s5  ;;  %p11455_p11 = scmp.lt.u32.totalorder %s11451_s5, %s13865_s23 }
  0x55   :  { %p11457_p12 = pnand %p11455_p11, %p11452_p10 }
  0x57   :  { %11460 = shalt.err (!%p11457_p12)
}
  0x58   :  { %s11461_s29 = scalar_lea.vmem %s11744_s26, 6144  ;;  %p11466_p0 = scmp.lt.s32.totalorder %s11744_s26, %s11744_s26 }
  0x59   :  { %p11462_p13 = scmp.ne.s32.totalorder %s11744_s26, %s11461_s29  ;;  %p11467_p1 = scmp.lt.s32.totalorder %s11461_s29, %s11461_s29 }
  0x5b   :  { %p11468_p2 = por %p11467_p1, %p11466_p0 }
  0x5d   :  { %p11469_p3 = pnand %p11468_p2, %p11462_p13 }
  0x5f   :  { %11472 = shalt.err (!%p11469_p3)
}
  0x60   :  { %48 = dma.hbm_to_vmem [thread:$0]  %s13865_s23, 6144, %s11744_s26, [#allocation6], %s11573_s0, %s11573_s0, %s11574_s4  }
  0x61   :  { %s11577_s3 = smov [#allocation9]   ;;  %s11578_s2 = smov [#allocation12]  }
  0x62   :  { %s70_s1 = sshll.u32 %s11577_s3, 4  ;;  %s98_s25 = sshll.u32 %s11578_s2, 4  ;;  %s71_s1 = int_to_ptr.vmem [resolvable:$true] %s70_s1  ;;  %s11781_s25 = int_to_ptr.vmem [resolvable:$true] %s98_s25 }
  0x63   :  { %s13866_s5 = sld [smem:[#allocation28_spill]] }
  0x69   :  { %s11473_s27 = scalar_lea.hbm %s13866_s5, 6144 }
  0x6a   :  { %p11474_p4 = scmp.ne.s32.totalorder %s13866_s5, %s11473_s27  ;;  %p11477_p5 = scmp.lt.u32.totalorder %s11473_s27, %s13866_s5 }
  0x6c   :  { %p11479_p6 = pnand %p11477_p5, %p11474_p4 }
  0x6e   :  { %11482 = shalt.err (!%p11479_p6)
}
  0x6f   :  { %s11483_s26 = scalar_lea.vmem %s71_s1, 6144  ;;  %p11488_p8 = scmp.lt.s32.totalorder %s71_s1, %s71_s1 }
  0x70   :  { %p11484_p7 = scmp.ne.s32.totalorder %s71_s1, %s11483_s26  ;;  %p11489_p9 = scmp.lt.s32.totalorder %s11483_s26, %s11483_s26 }
  0x72   :  { %p11490_p10 = por %p11489_p9, %p11488_p8 }
  0x74   :  { %p11491_p11 = pnand %p11490_p10, %p11484_p7 }
  0x76   :  { %11494 = shalt.err (!%p11491_p11)
}
  0x77   :  { %76 = dma.hbm_to_vmem [thread:$0]  %s13866_s5, 6144, %s71_s1, [#allocation8], %s11573_s0, %s11573_s0, %s11574_s4  }
  0x78   :  { %s11495_s2 = scalar_lea.hbm %s13834_s9, 6144 }
  0x79   :  { %p11496_p12 = scmp.ne.s32.totalorder %s13834_s9, %s11495_s2  ;;  %p11499_p13 = scmp.lt.u32.totalorder %s11495_s2, %s13834_s9 }
  0x7b   :  { %p11501_p0 = pnand %p11499_p13, %p11496_p12 }
  0x7d   :  { %11504 = shalt.err (!%p11501_p0)
}
  0x7e   :  { %s11505_s28 = scalar_lea.vmem %s11781_s25, 6144  ;;  %p11510_p2 = scmp.lt.s32.totalorder %s11781_s25, %s11781_s25 }
  0x7f   :  { %p11506_p1 = scmp.ne.s32.totalorder %s11781_s25, %s11505_s28  ;;  %p11511_p3 = scmp.lt.s32.totalorder %s11505_s28, %s11505_s28 }
  0x81   :  { %p11512_p4 = por %p11511_p3, %p11510_p2 }
  0x83   :  { %p11513_p5 = pnand %p11512_p4, %p11506_p1 }
  0x85   :  { %11516 = shalt.err (!%p11513_p5)
}
  0x86   :  { %104 = dma.hbm_to_vmem [thread:$0]  %s13834_s9, 6144, %s11781_s25, [#allocation11], %s11573_s0, %s11573_s0, %s11574_s4  }
  0x87   :  { %s11579_s22 = smov [#allocation15]   ;;  %s11580_s26 = smov [#allocation16]  }
  0x88   :  { %s126_s29 = sshll.u32 %s11579_s22, 4  ;;  %s138_s23 = sshll.u32 %s11580_s26, 4  ;;  %s127_s29 = int_to_ptr.vmem [resolvable:$true] %s126_s29  ;;  %s11818_s23 = int_to_ptr.vmem [resolvable:$true] %s138_s23 }
  0x89   :  { %s11517_s3 = scalar_lea.hbm %s13838_s13, 6144 }
  0x8a   :  { %p11518_p6 = scmp.ne.s32.totalorder %s13838_s13, %s11517_s3  ;;  %p11521_p7 = scmp.lt.u32.totalorder %s11517_s3, %s13838_s13 }
  0x8c   :  { %p11523_p8 = pnand %p11521_p7, %p11518_p6 }
  0x8e   :  { %11526 = shalt.err (!%p11523_p8)
}
  0x8f   :  { %s11527_s9 = scalar_lea.vmem %s127_s29, 6144  ;;  %p11532_p10 = scmp.lt.s32.totalorder %s127_s29, %s127_s29 }
  0x90   :  { %p11528_p9 = scmp.ne.s32.totalorder %s127_s29, %s11527_s9  ;;  %p11533_p11 = scmp.lt.s32.totalorder %s11527_s9, %s11527_s9 }
  0x92   :  { %p11534_p12 = por %p11533_p11, %p11532_p10 }
  0x94   :  { %p11535_p13 = pnand %p11534_p12, %p11528_p9 }
  0x96   :  { %11538 = shalt.err (!%p11535_p13)
}
  0x97   :  { %132 = dma.hbm_to_vmem [thread:$0]  %s13838_s13, 6144, %s127_s29, [#allocation14], %s11573_s0, %s11573_s0, %s11574_s4  }
  0x98   :  { %s11539_s5 = scalar_lea.hbm %s13839_s14, 6144 }
  0x99   :  { %p11540_p0 = scmp.ne.s32.totalorder %s13839_s14, %s11539_s5  ;;  %p11543_p1 = scmp.lt.u32.totalorder %s11539_s5, %s13839_s14 }
  0x9b   :  { %p11545_p2 = pnand %p11543_p1, %p11540_p0 }
  0x9d   :  { %11548 = shalt.err (!%p11545_p2)
}
  0x9e   :  { %s11549_s3 = scalar_lea.vmem %s11818_s23, 6144  ;;  %p11554_p4 = scmp.lt.s32.totalorder %s11818_s23, %s11818_s23 }
  0x9f   :  { %p11550_p3 = scmp.ne.s32.totalorder %s11818_s23, %s11549_s3  ;;  %p11555_p5 = scmp.lt.s32.totalorder %s11549_s3, %s11549_s3 }
  0xa1   :  { %p11556_p6 = por %p11555_p5, %p11554_p4 }
  0xa3   :  { %p11557_p7 = pnand %p11556_p6, %p11550_p3 }
  0xa5   :  { %11560 = shalt.err (!%p11557_p7)
}
  0xa6   :  { %144 = dma.hbm_to_vmem [thread:$0]  %s13839_s14, 6144, %s11818_s23, [#allocation17], %s11573_s0, %s11573_s0, %s11574_s4  }
  0xa7   :  { %11561 = dma.done.wait [#allocation6], 6144  }
  0xa8   :  { %11562 = vsyncadd [#allocation6], 4294961152 }
  0xa9   :  { %11563 = dma.done.wait [#allocation8], 12288  }
  0xaa   :  { %11564 = vsyncadd [#allocation8], 4294955008 }
  0xab   :  { %11565 = dma.done.wait [#allocation11], 12288  }
  0xac   :  { %11566 = vsyncadd [#allocation11], 4294955008 }
  0xad   :  { %11567 = dma.done.wait [#allocation14], 12288  }
  0xae   :  { %11568 = vsyncadd [#allocation14], 4294955008 }
  0xaf   :  { %11569 = dma.done.wait [#allocation17], 6144  }
  0xb0   :  { %11570 = vsyncadd [#allocation17], 4294961152  ;;  %v11581_v1 = vmov 0.0|0.0   ;;  %v11582_v2 = vmov 0.0   ;;  %vm11583_vm0 = vmmov 0   ;;  %v190_v3 = vld [vmem:[#allocation5 + $0x8] sm:$0xff] }
  0xb1   :  { %9004 = vmatprep.subr.bf16.mxu1 %v11581_v1  ;;  %318 = vmatprep.mubr.f32.mxu0 %v11582_v2  ;;  %v193_v4 = vld [vmem:[#allocation5 + $0x20] sm:$0xff]  ;;  %v192_v7 = vld [vmem:[#allocation5 + $0x18] sm:$0xff]  ;;  %v199_v9 = vld [vmem:[#allocation5 + $0x50] sm:$0xff]  ;;  %s13867_s4 = sld [smem:[#allocation23_spill]]  ;;  %s13868_s6 = sld [smem:[#allocation26_spill]]  ;;  %vm6963_vm2 = vcmask 7168  }
  0xb2   :  { %7709 = vmatprep.mubr.msk.f32.mxu1 %vm11583_vm0, %v11582_v2  ;;  %v189_v5 = vld [vmem:[#allocation5] sm:$0xff]  ;;  %v8972_v6 = vpack.c.bf16 %v193_v4, %v190_v3  ;;  %v196_v8 = vld [vmem:[#allocation5 + $0x38] sm:$0xff]  ;;  %v195_v12 = vld [vmem:[#allocation5 + $0x30] sm:$0xff]  ;;  %s13869_s9 = sld [smem:[#allocation27_spill]]  ;;  %s13870_s28 = sld [smem:[#allocation30_spill]] }
  0xb3   :  { %v8974_v10 = vpack.c.bf16 %v192_v7, %v189_v5  ;;  %v8976_v11 = vpack.c.bf16 %v199_v9, %v196_v8  ;;  %v198_v13 = vld [vmem:[#allocation5 + $0x48] sm:$0xff]  ;;  %v205_v15 = vld [vmem:[#allocation5 + $0x80] sm:$0xff]  ;;  %v204_v19 = vld [vmem:[#allocation5 + $0x78] sm:$0xff]  ;;  %s13871_s23 = sld [smem:[#allocation31_spill]] }
  0xb4   :  { %v202_v14 = vld [vmem:[#allocation5 + $0x68] sm:$0xff]  ;;  %8973 = vmatprep.subr.bf16.mxu0 %v8972_v6  ;;  %v8978_v16 = vpack.c.bf16 %v198_v13, %v195_v12  ;;  %v201_v18 = vld [vmem:[#allocation5 + $0x60] sm:$0xff]  ;;  %v208_v20 = vld [vmem:[#allocation5 + $0x98] sm:$0xff] }
  0xb5   :  { %8975 = vmatpush1.bf16.msra.mxu0 %v8974_v10  ;;  %v8980_v17 = vpack.c.bf16 %v205_v15, %v202_v14  ;;  %v211_v21 = vld [vmem:[#allocation5 + $0xb0] sm:$0xff]  ;;  %v8982_v22 = vpack.c.bf16 %v204_v19, %v201_v18  ;;  %v210_v25 = vld [vmem:[#allocation5 + $0xa8] sm:$0xff]  ;;  %v217_v27 = vld [vmem:[#allocation5 + $0xe0] sm:$0xff] }
  0xb6   :  { %8977 = vmatprep.subr.bf16.mxu0 %v8976_v11  ;;  %v8984_v23 = vpack.c.bf16 %v211_v21, %v208_v20  ;;  %v207_v24 = vld [vmem:[#allocation5 + $0x90] sm:$0xff]  ;;  %v214_v26 = vld [vmem:[#allocation5 + $0xc8] sm:$0xff]  ;;  %v197_v31 = vld [vmem:[#allocation5 + $0x40] sm:$0xff] }
  0xb7   :  { %v191_v28 = vld [vmem:[#allocation5 + $0x10] sm:$0xff]  ;;  %v194_v29 = vld [vmem:[#allocation5 + $0x28] sm:$0xff]  ;;  %v8986_v32 = vpack.c.bf16 %v210_v25, %v207_v24  ;;  %v200_v33 = vld [vmem:[#allocation5 + $0x58] sm:$0xff]  ;;  %v8988_v34 = vpack.c.bf16 %v217_v27, %v214_v26 }
  0xb8   :  { %v9005_v30 = vpack.c.bf16 %v194_v29, %v191_v28  ;;  %v213_v35 = vld [vmem:[#allocation5 + $0xc0] sm:$0xff]  ;;  %v216_v36 = vld [vmem:[#allocation5 + $0xd8] sm:$0xff]  ;;  %v9008_v38 = vpack.c.bf16 %v200_v33, %v197_v31  ;;  %v223_v39 = vld [vmem:[#allocation5 + $0x110] sm:$0xff] }
  0xb9   :  { %8979 = vmatpush1.bf16.msra.mxu0 %v8978_v16  ;;  %v220_v37 = vld [vmem:[#allocation5 + $0xf8] sm:$0xff]  ;;  %v203_v40 = vld [vmem:[#allocation5 + $0x70] sm:$0xff]  ;;  %v206_v41 = vld [vmem:[#allocation5 + $0x88] sm:$0xff]  ;;  %v8990_v42 = vpack.c.bf16 %v216_v36, %v213_v35 }
  0xba   :  { %8981 = vmatprep.subr.bf16.mxu0 %v8980_v17  ;;  %9006 = vmatpush3.bf16.msra.mxu1 %v9005_v30  ;;  %v8992_v43 = vpack.c.bf16 %v223_v39, %v220_v37  ;;  %v219_v44 = vld [vmem:[#allocation5 + $0xf0] sm:$0xff]  ;;  %v222_v45 = vld [vmem:[#allocation5 + $0x108] sm:$0xff]  ;;  %v9011_v47 = vpack.c.bf16 %v206_v41, %v203_v40  ;;  %v229_v48 = vld [vmem:[#allocation5 + $0x140] sm:$0xff] }
  0xbb   :  { %9007 = vmatprep.subr.bf16.mxu1 %v11581_v1  ;;  %v226_v46 = vld [vmem:[#allocation5 + $0x128] sm:$0xff]  ;;  %v209_v49 = vld [vmem:[#allocation5 + $0xa0] sm:$0xff]  ;;  %v212_v50 = vld [vmem:[#allocation5 + $0xb8] sm:$0xff]  ;;  %v8994_v51 = vpack.c.bf16 %v222_v45, %v219_v44 }
  0xbc   :  { %v8996_v52 = vpack.c.bf16 %v229_v48, %v226_v46  ;;  %v225_v53 = vld [vmem:[#allocation5 + $0x120] sm:$0xff]  ;;  %v228_v54 = vld [vmem:[#allocation5 + $0x138] sm:$0xff]  ;;  %v9014_v56 = vpack.c.bf16 %v212_v50, %v209_v49  ;;  %v235_v57 = vld [vmem:[#allocation5 + $0x170] sm:$0xff] }
  0xbd   :  { %8983 = vmatpush1.bf16.msra.mxu0 %v8982_v22  ;;  %v232_v55 = vld [vmem:[#allocation5 + $0x158] sm:$0xff]  ;;  %v215_v58 = vld [vmem:[#allocation5 + $0xd0] sm:$0xff]  ;;  %v218_v59 = vld [vmem:[#allocation5 + $0xe8] sm:$0xff]  ;;  %v8998_v60 = vpack.c.bf16 %v228_v54, %v225_v53 }
  0xbe   :  { %8985 = vmatprep.subr.bf16.mxu0 %v8984_v23  ;;  %9009 = vmatpush3.bf16.msra.mxu1 %v9008_v38  ;;  %v9000_v61 = vpack.c.bf16 %v235_v57, %v232_v55  ;;  %v231_v62 = vld [vmem:[#allocation5 + $0x150] sm:$0xff]  ;;  %v234_v63 = vld [vmem:[#allocation5 + $0x168] sm:$0xff]  ;;  %v9017_v3 = vpack.c.bf16 %v218_v59, %v215_v58  ;;  %v399_v4 = vld [vmem:[#allocation7 + $0x20] sm:$0xff] }
  0xbf   :  { %9010 = vmatprep.subr.bf16.mxu1 %v11581_v1  ;;  %v396_v0 = vld [vmem:[#allocation7 + $0x8] sm:$0xff]  ;;  %v221_v5 = vld [vmem:[#allocation5 + $0x100] sm:$0xff]  ;;  %v224_v6 = vld [vmem:[#allocation5 + $0x118] sm:$0xff]  ;;  %v9002_v7 = vpack.c.bf16 %v234_v63, %v231_v62 }
  0xc0   :  { %v11863_v8 = vpack.c.bf16 %v399_v4, %v396_v0  ;;  %v395_v9 = vld [vmem:[#allocation7] sm:$0xff]  ;;  %v398_v10 = vld [vmem:[#allocation7 + $0x18] sm:$0xff]  ;;  %v9020_v12 = vpack.c.bf16 %v224_v6, %v221_v5  ;;  %v405_v13 = vld [vmem:[#allocation7 + $0x50] sm:$0xff] }
  0xc1   :  { %8987 = vmatpush1.bf16.msra.mxu0 %v8986_v32  ;;  %v402_v11 = vld [vmem:[#allocation7 + $0x38] sm:$0xff]  ;;  %v227_v14 = vld [vmem:[#allocation5 + $0x130] sm:$0xff]  ;;  %v230_v15 = vld [vmem:[#allocation5 + $0x148] sm:$0xff]  ;;  %v11869_v17 = vpack.c.bf16 %v398_v10, %v395_v9 }
  0xc2   :  { %8989 = vmatprep.subr.bf16.mxu0 %v8988_v34  ;;  %9012 = vmatpush3.bf16.msra.mxu1 %v9011_v47  ;;  %v188_v16 = vld [vmem:[%s13867_s4] sm:$0x3]  ;;  %v11872_v18 = vpack.c.bf16 %v405_v13, %v402_v11  ;;  %v401_v19 = vld [vmem:[#allocation7 + $0x30] sm:$0xff]  ;;  %v404_v20 = vld [vmem:[#allocation7 + $0x48] sm:$0xff]  ;;  %v9023_v22 = vpack.c.bf16 %v230_v15, %v227_v14 }
  0xc3   :  { %9013 = vmatprep.subr.bf16.mxu1 %v11581_v1  ;;  %v408_v21 = vld [vmem:[#allocation7 + $0x68] sm:$0xff]  ;;  %v411_v23 = vld [vmem:[#allocation7 + $0x80] sm:$0xff]  ;;  %v236_v25 = vld [vmem:[#allocation5 + $0x178] sm:$0xff]  ;;  %v11876_v26 = vpack.c.bf16 %v404_v20, %v401_v19 }
  0xc4   :  { %v233_v24 = vld [vmem:[#allocation5 + $0x160] sm:$0xff]  ;;  %v11880_v27 = vpack.c.bf16 %v411_v23, %v408_v21  ;;  %v410_v29 = vld [vmem:[#allocation7 + $0x78] sm:$0xff]  ;;  %v417_v32 = vld [vmem:[#allocation7 + $0xb0] sm:$0xff] }
  0xc5   :  { %8991 = vmatpush1.bf16.msra.mxu0 %v8990_v42  ;;  %v407_v28 = vld [vmem:[#allocation7 + $0x60] sm:$0xff]  ;;  %v414_v30 = vld [vmem:[#allocation7 + $0x98] sm:$0xff]  ;;  %v9026_v31 = vpack.c.bf16 %v236_v25, %v233_v24  ;;  %v397_v33 = vld [vmem:[#allocation7 + $0x10] sm:$0xff] }
  0xc6   :  { %8993 = vmatprep.subr.bf16.mxu0 %v8992_v43  ;;  %9015 = vmatpush3.bf16.msra.mxu1 %v9014_v56  ;;  %v400_v34 = vld [vmem:[#allocation7 + $0x28] sm:$0xff]  ;;  %v11884_v35 = vpack.c.bf16 %v410_v29, %v407_v28  ;;  %v11887_v36 = vpack.c.bf16 %v417_v32, %v414_v30  ;;  %v413_v37 = vld [vmem:[#allocation7 + $0x90] sm:$0xff]  ;;  %v423_v41 = vld [vmem:[#allocation7 + $0xe0] sm:$0xff] }
  0xc7   :  { %9016 = vmatprep.subr.bf16.mxu1 %v11581_v1  ;;  %v416_v38 = vld [vmem:[#allocation7 + $0xa8] sm:$0xff]  ;;  %v11889_v40 = vpack.c.bf16 %v400_v34, %v397_v33  ;;  %v403_v42 = vld [vmem:[#allocation7 + $0x40] sm:$0xff]  ;;  %v406_v43 = vld [vmem:[#allocation7 + $0x58] sm:$0xff]  ;;  %v185_v33 = vlaneseq }
  0xc8   :  { %v420_v39 = vld [vmem:[#allocation7 + $0xc8] sm:$0xff]  ;;  %v11893_v44 = vpack.c.bf16 %v416_v38, %v413_v37  ;;  %v419_v46 = vld [vmem:[#allocation7 + $0xc0] sm:$0xff]  ;;  %v422_v47 = vld [vmem:[#allocation7 + $0xd8] sm:$0xff]  ;;  %v11899_v49 = vpack.c.bf16 %v406_v43, %v403_v42 }
  0xc9   :  { %8995 = vmatpush1.bf16.msra.mxu0 %v8994_v51  ;;  %v11896_v45 = vpack.c.bf16 %v423_v41, %v420_v39  ;;  %v426_v48 = vld [vmem:[#allocation7 + $0xf8] sm:$0xff]  ;;  %v429_v50 = vld [vmem:[#allocation7 + $0x110] sm:$0xff]  ;;  %v11905_v53 = vpack.c.bf16 %v422_v47, %v419_v46  ;;  %v428_v56 = vld [vmem:[#allocation7 + $0x108] sm:$0xff]  ;;  %v240_v34 = vshrl.u32 %v185_v33, 7 }
  0xca   :  { %8997 = vmatprep.subr.bf16.mxu0 %v8996_v52  ;;  %9018 = vmatpush3.bf16.msra.mxu1 %v9017_v3  ;;  %v409_v51 = vld [vmem:[#allocation7 + $0x70] sm:$0xff]  ;;  %v412_v52 = vld [vmem:[#allocation7 + $0x88] sm:$0xff]  ;;  %v11908_v54 = vpack.c.bf16 %v429_v50, %v426_v48  ;;  %v435_v59 = vld [vmem:[#allocation7 + $0x140] sm:$0xff] }
  0xcb   :  { %9019 = vmatprep.subr.bf16.mxu1 %v11581_v1  ;;  %v425_v55 = vld [vmem:[#allocation7 + $0xf0] sm:$0xff]  ;;  %v432_v57 = vld [vmem:[#allocation7 + $0x128] sm:$0xff]  ;;  %v11911_v58 = vpack.c.bf16 %v412_v52, %v409_v51  ;;  %v431_v0 = vld [vmem:[#allocation7 + $0x120] sm:$0xff]  ;;  %v11992_v37 = vsub.s32 0, %v240_v34  ;;  %v12000_v41 = vsub.s32 1, %v240_v34 }
  0xcc   :  { %v11915_v62 = vpack.c.bf16 %v428_v56, %v425_v55  ;;  %v11918_v63 = vpack.c.bf16 %v435_v59, %v432_v57  ;;  %v434_v3 = vld [vmem:[#allocation7 + $0x138] sm:$0xff]  ;;  %v441_v6 = vld [vmem:[#allocation7 + $0x170] sm:$0xff]  ;;  %v424_v9 = vld [vmem:[#allocation7 + $0xe8] sm:$0xff] }
  0xcd   :  { %8999 = vmatpush1.bf16.msra.mxu0 %v8998_v60  ;;  %v415_v60 = vld [vmem:[#allocation7 + $0xa0] sm:$0xff]  ;;  %v438_v4 = vld [vmem:[#allocation7 + $0x158] sm:$0xff]  ;;  %v11925_v10 = vpack.c.bf16 %v434_v3, %v431_v0  ;;  %v440_v13 = vld [vmem:[#allocation7 + $0x168] sm:$0xff] }
  0xce   :  { %9001 = vmatprep.subr.bf16.mxu0 %v9000_v61  ;;  %9021 = vmatpush3.bf16.msra.mxu1 %v9020_v12  ;;  %v418_v61 = vld [vmem:[#allocation7 + $0xb8] sm:$0xff]  ;;  %v11928_v11 = vpack.c.bf16 %v441_v6, %v438_v4  ;;  %v437_v12 = vld [vmem:[#allocation7 + $0x150] sm:$0xff]  ;;  %v427_v15 = vld [vmem:[#allocation7 + $0x100] sm:$0xff] }
  0xcf   :  { %9022 = vmatprep.subr.bf16.mxu1 %v11581_v1  ;;  %v11921_v5 = vpack.c.bf16 %v418_v61, %v415_v60  ;;  %v11935_v19 = vpack.c.bf16 %v440_v13, %v437_v12  ;;  %v433_v21 = vld [vmem:[#allocation7 + $0x130] sm:$0xff]  ;;  %v439_v24 = vld [vmem:[#allocation7 + $0x160] sm:$0xff]  ;;  %v442_v25 = vld [vmem:[#allocation7 + $0x178] sm:$0xff] }
  0xd0   :  { %v11952_v28 = vpack.c.bf16 %v442_v25, %v439_v24  ;;  %v237_v38 = vld [vmem:[%s13868_s6] sm:$0x7] }
  0xd1   :  { %9003 = vmatpush1.bf16.msra.mxu0 %v9002_v7  ;;  %v421_v7 = vld [vmem:[#allocation7 + $0xd0] sm:$0xff]  ;;  %v443_v39 = vld [vmem:[%s13869_s9] sm:$0x7]  ;;  %v242_v42 = vrot.slane %v237_v38, %v11992_v37  ;;  %v246_v47 = vrot.slane %v237_v38, %v12000_v41 }
  0xd2   :  { %9029 = vmatprep.subr.bf16.mxu0 %v11863_v8  ;;  %9024 = vmatpush3.bf16.msra.mxu1 %v9023_v22  ;;  %v11931_v14 = vpack.c.bf16 %v424_v9, %v421_v7  ;;  %v436_v22 = vld [vmem:[#allocation7 + $0x148] sm:$0xff]  ;;  %v12004_v43 = vrot.slane %v443_v39, %v11992_v37  ;;  %v12007_v46 = vrot.slane %v443_v39, %v12000_v41  ;;  %v12018_v7 = vsub.s32 2, %v240_v34 }
  0xd3   :  { %9025 = vmatprep.subr.bf16.mxu1 %v11581_v1  ;;  %v11944_v23 = vpack.c.bf16 %v436_v22, %v433_v21 }
  0xd4   :  { %319 = vmatmul.mubr.f32.vlgmr.msra.gmra.mrb[0].mxu0 %v188_v16  ;;  %v12021_v9 = vrot.slane %v443_v39, %v12018_v7  ;;  %v250_v13 = vrot.slane %v237_v38, %v12018_v7 }
  0xd5   :  { %9031 = vmatpush1.bf16.msra.mxu0 %v11869_v17  ;;  %524 = vmatprep.mubr.f32.mxu0 %v11582_v2 }
  0xd6   :  { %9033 = vmatprep.subr.bf16.mxu0 %v11872_v18  ;;  %9027 = vmatpush3.bf16.msra.mxu1 %v9026_v31 }
  0xd7   :  { %9060 = vmatprep.subr.bf16.mxu1 %v11581_v1 }
  0xd9   :  { %9035 = vmatpush1.bf16.msra.mxu0 %v11876_v26  ;;  %7710 = vmatmul.mubr.f32.vlgmr.msra.gmra.mrb[0].mxu1 %v188_v16  ;;  %v430_v16 = vld [vmem:[#allocation7 + $0x118] sm:$0xff] }
  0xda   :  { %9037 = vmatprep.subr.bf16.mxu0 %v11880_v27  ;;  %9062 = vmatpush3.bf16.msra.mxu1 %v11889_v40  ;;  %v11939_v20 = vpack.c.bf16 %v430_v16, %v427_v15 }
  0xdb   :  { %9063 = vmatprep.subr.bf16.mxu1 %v11581_v1  ;;  %7744 = vmatprep.mubr.msk.f32.mxu1 %vm11583_vm0, %v11582_v2 }
  0xdd   :  { %9039 = vmatpush1.bf16.msra.mxu0 %v11884_v35 }
  0xde   :  { %9041 = vmatprep.subr.bf16.mxu0 %v11887_v36  ;;  %9065 = vmatpush3.bf16.msra.mxu1 %v11899_v49 }
  0xdf   :  { %9066 = vmatprep.subr.bf16.mxu1 %v11581_v1 }
  0xe1   :  { %9043 = vmatpush1.bf16.msra.mxu0 %v11893_v44 }
  0xe2   :  { %9045 = vmatprep.subr.bf16.mxu0 %v11896_v45  ;;  %9068 = vmatpush3.bf16.msra.mxu1 %v11911_v58 }
  0xe3   :  { %9069 = vmatprep.subr.bf16.mxu1 %v11581_v1 }
  0xe5   :  { %9047 = vmatpush1.bf16.msra.mxu0 %v11905_v53 }
  0xe6   :  { %9049 = vmatprep.subr.bf16.mxu0 %v11908_v54  ;;  %9071 = vmatpush3.bf16.msra.mxu1 %v11921_v5 }
  0xe7   :  { %9072 = vmatprep.subr.bf16.mxu1 %v11581_v1 }
  0xe9   :  { %9051 = vmatpush1.bf16.msra.mxu0 %v11915_v62 }
  0xea   :  { %9053 = vmatprep.subr.bf16.mxu0 %v11918_v63  ;;  %9074 = vmatpush3.bf16.msra.mxu1 %v11931_v14 }
  0xeb   :  { %9075 = vmatprep.subr.bf16.mxu1 %v11581_v1 }
  0xed   :  { %9055 = vmatpush1.bf16.msra.mxu0 %v11925_v10 }
  0xee   :  { %9057 = vmatprep.subr.bf16.mxu0 %v11928_v11  ;;  %9077 = vmatpush3.bf16.msra.mxu1 %v11939_v20 }
  0xef   :  { %9078 = vmatprep.subr.bf16.mxu1 %v11581_v1 }
  0xf1   :  { %9059 = vmatpush1.bf16.msra.mxu0 %v11935_v19 }
  0xf2   :  { %9085 = vmatprep.subr.bf16.mxu0 %v11863_v8  ;;  %9080 = vmatpush3.bf16.msra.mxu1 %v11944_v23 }
  0xf3   :  { %9081 = vmatprep.subr.bf16.mxu1 %v11581_v1 }
  0xf4   :  { %525 = vmatmul.mubr.f32.vlgmr.msra.gmra.mrb[2].mxu0 %v11582_v2 }
  0xf5   :  { %9087 = vmatpush1.bf16.msra.mxu0 %v11869_v17  ;;  %687 = vmatprep.mubr.f32.mxu0 %v11582_v2 }
  0xf6   :  { %9089 = vmatprep.subr.bf16.mxu0 %v11872_v18  ;;  %9083 = vmatpush3.bf16.msra.mxu1 %v11952_v28 }
  0xf7   :  { %9116 = vmatprep.subr.bf16.mxu1 %v11581_v1 }
  0xf9   :  { %9091 = vmatpush1.bf16.msra.mxu0 %v11876_v26  ;;  %7745 = vmatmul.mubr.f32.vlgmr.msra.gmra.mrb[2].mxu1 %v11582_v2 }
  0xfa   :  { %9093 = vmatprep.subr.bf16.mxu0 %v11880_v27  ;;  %9118 = vmatpush3.bf16.msra.mxu1 %v11889_v40 }
  0xfb   :  { %9119 = vmatprep.subr.bf16.mxu1 %v11581_v1  ;;  %7779 = vmatprep.mubr.msk.f32.mxu1 %vm11583_vm0, %v11582_v2 }
  0xfd   :  { %9095 = vmatpush1.bf16.msra.mxu0 %v11884_v35 }
  0xfe   :  { %9097 = vmatprep.subr.bf16.mxu0 %v11887_v36  ;;  %9121 = vmatpush3.bf16.msra.mxu1 %v11899_v49 }
  0xff   :  { %9122 = vmatprep.subr.bf16.mxu1 %v11581_v1 }
 0x101   :  { %9099 = vmatpush1.bf16.msra.mxu0 %v11893_v44 }
 0x102   :  { %9101 = vmatprep.subr.bf16.mxu0 %v11896_v45  ;;  %9124 = vmatpush3.bf16.msra.mxu1 %v11911_v58 }
 0x103   :  { %9125 = vmatprep.subr.bf16.mxu1 %v11581_v1 }
 0x105   :  { %9103 = vmatpush1.bf16.msra.mxu0 %v11905_v53 }
 0x106   :  { %9105 = vmatprep.subr.bf16.mxu0 %v11908_v54  ;;  %9127 = vmatpush3.bf16.msra.mxu1 %v11921_v5 }
 0x107   :  { %9128 = vmatprep.subr.bf16.mxu1 %v11581_v1 }
 0x109   :  { %9107 = vmatpush1.bf16.msra.mxu0 %v11915_v62 }
 0x10a   :  { %9109 = vmatprep.subr.bf16.mxu0 %v11918_v63  ;;  %9130 = vmatpush3.bf16.msra.mxu1 %v11931_v14 }
 0x10b   :  { %9131 = vmatprep.subr.bf16.mxu1 %v11581_v1 }
 0x10d   :  { %9111 = vmatpush1.bf16.msra.mxu0 %v11925_v10 }
 0x10e   :  { %9113 = vmatprep.subr.bf16.mxu0 %v11928_v11  ;;  %9133 = vmatpush3.bf16.msra.mxu1 %v11939_v20 }
 0x10f   :  { %9134 = vmatprep.subr.bf16.mxu1 %v11581_v1 }
 0x111   :  { %9115 = vmatpush1.bf16.msra.mxu0 %v11935_v19 }
 0x112   :  { %9141 = vmatprep.subr.bf16.mxu0 %v11863_v8  ;;  %9136 = vmatpush3.bf16.msra.mxu1 %v11944_v23 }
 0x113   :  { %9137 = vmatprep.subr.bf16.mxu1 %v11581_v1 }
 0x116   :  { %9139 = vmatpush3.bf16.msra.mxu1 %v11952_v28 }
 0x117   :  { %9172 = vmatprep.subr.bf16.mxu1 %v11581_v1 }
 0x1a7   :  { %v320_v29 = vpop.f32.mrb[0].mxu0 }
 0x1a8   :  { %v322_v30 = vpop.f32.mrb[1].mxu0  ;;  %v12010_v50 = vadd.f32 %v320_v29, %v242_v42 }
 0x1a9   :  { %v12015_v57 = vadd.f32 %v322_v30, %v246_v47 }
 0x1ac   :  { %v391_v31 = vpop.f32.mrb[0].mxu1 }
 0x1ad   :  { %v7711_v32 = vpop.f32.mrb[1].mxu1  ;;  %v12025_v22 = vadd.f32 %v391_v31, %v250_v13 }
 0x1c7   :  { %v526_v48 = vpop.f32.mrb[2].mxu0 }
 0x1c8   :  { %v527_v51 = vadd.f32 %v526_v48, %v12004_v43  ;;  %v528_v52 = vpop.f32.mrb[3].mxu0 }
 0x1c9   :  { %v529_v55 = vadd.f32 %v528_v52, %v12007_v46 }
 0x1ca   :  { %v601_v56 = vadd.f32 %v527_v51, %v12010_v50 }
 0x1cb   :  { %v608_v60 = vadd.f32 %v529_v55, %v12015_v57 }
 0x1cc   :  { %v6975_v59 = vmul.f32 -1.442695, %v601_v56  ;;  %v597_v61 = vpop.f32.mrb[2].mxu1 }
 0x1cd   :  { %v6976_v0 = vmul.f32 -1.442695, %v608_v60  ;;  %v7746_v3 = vpop.f32.mrb[3].mxu1  ;;  %v598_v16 = vadd.f32 %v597_v61, %v12021_v9 }
 0x1ce   :  { %11057 = vpow2.f32 %v6975_v59 }
 0x1cf   :  { %11059 = vpow2.f32 %v6976_v0 }
 0x1d8   :  { %v11058_v4 = vpop.eup %11057 }
 0x1d9   :  { %v605_v6 = vadd.f32 1.0, %v11058_v4  ;;  %v11060_v12 = vpop.eup %11059 }
 0x1da   :  { %v612_v15 = vadd.f32 1.0, %v11060_v12 }
 0x1db   :  { %11061 = vrcp.f32 %v605_v6 }
 0x1dc   :  { %11063 = vrcp.f32 %v612_v15 }
 0x1e5   :  { %v11062_v21 = vpop.eup %11061 }
 0x1e6   :  { %v615_v24 = vmul.f32 %v11062_v21, %v598_v16  ;;  %v11064_v29 = vpop.eup %11063 }
 0x1e7   :  { %v618_v30 = vsub.f32 1.0, %v11064_v29  ;;  %v620_v39 = vmul.f32 0.0, %v11064_v29 }
 0x1e8   :  { %v616_v25 = vadd.f32 %v615_v24, %v12025_v22 }
 0x1ea   :  { %11065 = vtanh.f32 %v616_v25 }
 0x1f4   :  { %v11066_v32 = vpop.eup %11065 }
 0x1f5   :  { %v619_v34 = vmul.f32 %v11066_v32, %v618_v30 }
 0x1f7   :  { %v12028_v42 = vadd.f32 %v620_v39, %v619_v34 }
 0x1f9   :  { %622 = vst [vmem:[#allocation2] sm:$0x3] %v12028_v42  ;;  %688 = vmatmul.mubr.f32.vlgmr.msra.gmra.mrb[4].mxu0 %v12028_v42  ;;  %7780 = vmatmul.mubr.f32.vlgmr.msra.gmra.mrb[4].mxu1 %v12028_v42 }
 0x1fa   :  { %9143 = vmatpush1.bf16.msra.mxu0 %v11869_v17  ;;  %9174 = vmatpush3.bf16.msra.mxu1 %v11889_v40 }
 0x1fb   :  { %9145 = vmatprep.subr.bf16.mxu0 %v11872_v18  ;;  %9175 = vmatprep.subr.bf16.mxu1 %v11581_v1 }
 0x1fc   :  { %850 = vmatprep.mubr.f32.mxu0 %v11582_v2  ;;  %7814 = vmatprep.mubr.msk.f32.mxu1 %vm11583_vm0, %v11582_v2 }
 0x1fe   :  { %9147 = vmatpush1.bf16.msra.mxu0 %v11876_v26  ;;  %9177 = vmatpush3.bf16.msra.mxu1 %v11899_v49 }
 0x1ff   :  { %9149 = vmatprep.subr.bf16.mxu0 %v11880_v27  ;;  %9178 = vmatprep.subr.bf16.mxu1 %v11581_v1 }
 0x202   :  { %9151 = vmatpush1.bf16.msra.mxu0 %v11884_v35  ;;  %9180 = vmatpush3.bf16.msra.mxu1 %v11911_v58 }
 0x203   :  { %9153 = vmatprep.subr.bf16.mxu0 %v11887_v36  ;;  %9181 = vmatprep.subr.bf16.mxu1 %v11581_v1 }
 0x206   :  { %9155 = vmatpush1.bf16.msra.mxu0 %v11893_v44  ;;  %9183 = vmatpush3.bf16.msra.mxu1 %v11921_v5 }
 0x207   :  { %9157 = vmatprep.subr.bf16.mxu0 %v11896_v45  ;;  %9184 = vmatprep.subr.bf16.mxu1 %v11581_v1 }
 0x20a   :  { %9159 = vmatpush1.bf16.msra.mxu0 %v11905_v53  ;;  %9186 = vmatpush3.bf16.msra.mxu1 %v11931_v14 }
 0x20b   :  { %9161 = vmatprep.subr.bf16.mxu0 %v11908_v54  ;;  %9187 = vmatprep.subr.bf16.mxu1 %v11581_v1 }
 0x20e   :  { %9163 = vmatpush1.bf16.msra.mxu0 %v11915_v62  ;;  %9189 = vmatpush3.bf16.msra.mxu1 %v11939_v20 }
 0x20f   :  { %9165 = vmatprep.subr.bf16.mxu0 %v11918_v63  ;;  %9190 = vmatprep.subr.bf16.mxu1 %v11581_v1 }
 0x212   :  { %9167 = vmatpush1.bf16.msra.mxu0 %v11925_v10  ;;  %9192 = vmatpush3.bf16.msra.mxu1 %v11944_v23 }
 0x213   :  { %9169 = vmatprep.subr.bf16.mxu0 %v11928_v11  ;;  %9193 = vmatprep.subr.bf16.mxu1 %v11581_v1 }
 0x216   :  { %9171 = vmatpush1.bf16.msra.mxu0 %v11935_v19  ;;  %9195 = vmatpush3.bf16.msra.mxu1 %v11952_v28 }
 0x217   :  { %9197 = vmatprep.subr.bf16.mxu0 %v11863_v8  ;;  %9228 = vmatprep.subr.bf16.mxu1 %v11581_v1 }
 0x2cc   :  { %v689_v31 = vpop.f32.mrb[4].mxu0  ;;  %v760_v38 = vpop.f32.mrb[4].mxu1 }
 0x2cd   :  { %v690_v47 = vadd.f32 %v689_v31, %v12004_v43  ;;  %v691_v48 = vpop.f32.mrb[5].mxu0  ;;  %v7781_v51 = vpop.f32.mrb[5].mxu1  ;;  %v761_v6 = vadd.f32 %v760_v38, %v12021_v9 }
 0x2ce   :  { %v692_v52 = vadd.f32 %v691_v48, %v12007_v46 }
 0x2cf   :  { %v764_v55 = vadd.f32 %v690_v47, %v12010_v50 }
 0x2d0   :  { %v771_v59 = vadd.f32 %v692_v52, %v12015_v57 }
 0x2d1   :  { %v6977_v56 = vmul.f32 -1.442695, %v764_v55 }
 0x2d2   :  { %v6978_v60 = vmul.f32 -1.442695, %v771_v59 }
 0x2d3   :  { %11067 = vpow2.f32 %v6977_v56 }
 0x2d4   :  { %11069 = vpow2.f32 %v6978_v60 }
 0x2dd   :  { %v11068_v61 = vpop.eup %11067 }
 0x2de   :  { %v768_v0 = vadd.f32 1.0, %v11068_v61  ;;  %v11070_v3 = vpop.eup %11069 }
 0x2df   :  { %v775_v4 = vadd.f32 1.0, %v11070_v3 }
 0x2e0   :  { %11071 = vrcp.f32 %v768_v0 }
 0x2e1   :  { %11073 = vrcp.f32 %v775_v4 }
 0x2ea   :  { %v11072_v12 = vpop.eup %11071 }
 0x2eb   :  { %v778_v13 = vmul.f32 %v11072_v12, %v761_v6  ;;  %v11074_v16 = vpop.eup %11073 }
 0x2ec   :  { %v781_v21 = vsub.f32 1.0, %v11074_v16  ;;  %v783_v29 = vmul.f32 %v11074_v16, %v12028_v42 }
 0x2ed   :  { %v779_v15 = vadd.f32 %v778_v13, %v12025_v22 }
 0x2ef   :  { %11075 = vtanh.f32 %v779_v15 }
 0x2f9   :  { %v11076_v24 = vpop.eup %11075 }
 0x2fa   :  { %v782_v25 = vmul.f32 %v11076_v24, %v781_v21 }
 0x2fc   :  { %v12075_v30 = vadd.f32 %v783_v29, %v782_v25 }
 0x2fe   :  { %785 = vst [vmem:[#allocation2 + $0x2] sm:$0x3] %v12075_v30  ;;  %851 = vmatmul.mubr.f32.vlgmr.msra.gmra.mrb[6].mxu0 %v12075_v30  ;;  %7815 = vmatmul.mubr.f32.vlgmr.msra.gmra.mrb[6].mxu1 %v12075_v30 }
 0x2ff   :  { %9199 = vmatpush1.bf16.msra.mxu0 %v11869_v17  ;;  %9230 = vmatpush3.bf16.msra.mxu1 %v11889_v40 }
 0x300   :  { %9201 = vmatprep.subr.bf16.mxu0 %v11872_v18  ;;  %9231 = vmatprep.subr.bf16.mxu1 %v11581_v1 }
 0x301   :  { %1013 = vmatprep.mubr.f32.mxu0 %v11582_v2  ;;  %7849 = vmatprep.mubr.msk.f32.mxu1 %vm11583_vm0, %v11582_v2 }
 0x303   :  { %9203 = vmatpush1.bf16.msra.mxu0 %v11876_v26  ;;  %9233 = vmatpush3.bf16.msra.mxu1 %v11899_v49 }
 0x304   :  { %9205 = vmatprep.subr.bf16.mxu0 %v11880_v27  ;;  %9234 = vmatprep.subr.bf16.mxu1 %v11581_v1 }
 0x307   :  { %9207 = vmatpush1.bf16.msra.mxu0 %v11884_v35  ;;  %9236 = vmatpush3.bf16.msra.mxu1 %v11911_v58 }
 0x308   :  { %9209 = vmatprep.subr.bf16.mxu0 %v11887_v36  ;;  %9237 = vmatprep.subr.bf16.mxu1 %v11581_v1 }
 0x30b   :  { %9211 = vmatpush1.bf16.msra.mxu0 %v11893_v44  ;;  %9239 = vmatpush3.bf16.msra.mxu1 %v11921_v5 }
 0x30c   :  { %9213 = vmatprep.subr.bf16.mxu0 %v11896_v45  ;;  %9240 = vmatprep.subr.bf16.mxu1 %v11581_v1 }
 0x30f   :  { %9215 = vmatpush1.bf16.msra.mxu0 %v11905_v53  ;;  %9242 = vmatpush3.bf16.msra.mxu1 %v11931_v14 }
 0x310   :  { %9217 = vmatprep.subr.bf16.mxu0 %v11908_v54  ;;  %9243 = vmatprep.subr.bf16.mxu1 %v11581_v1 }
 0x313   :  { %9219 = vmatpush1.bf16.msra.mxu0 %v11915_v62  ;;  %9245 = vmatpush3.bf16.msra.mxu1 %v11939_v20 }
 0x314   :  { %9221 = vmatprep.subr.bf16.mxu0 %v11918_v63  ;;  %9246 = vmatprep.subr.bf16.mxu1 %v11581_v1 }
 0x317   :  { %9223 = vmatpush1.bf16.msra.mxu0 %v11925_v10  ;;  %9248 = vmatpush3.bf16.msra.mxu1 %v11944_v23 }
 0x318   :  { %9225 = vmatprep.subr.bf16.mxu0 %v11928_v11  ;;  %9249 = vmatprep.subr.bf16.mxu1 %v11581_v1 }
 0x31b   :  { %9227 = vmatpush1.bf16.msra.mxu0 %v11935_v19  ;;  %9251 = vmatpush3.bf16.msra.mxu1 %v11952_v28 }
 0x31c   :  { %9253 = vmatprep.subr.bf16.mxu0 %v11863_v8  ;;  %9284 = vmatprep.subr.bf16.mxu1 %v11581_v1 }
 0x3d1   :  { %v852_v32 = vpop.f32.mrb[6].mxu0  ;;  %v923_v34 = vpop.f32.mrb[6].mxu1 }
 0x3d2   :  { %v853_v39 = vadd.f32 %v852_v32, %v12004_v43  ;;  %v854_v42 = vpop.f32.mrb[7].mxu0  ;;  %v7816_v31 = vpop.f32.mrb[7].mxu1  ;;  %v924_v61 = vadd.f32 %v923_v34, %v12021_v9 }
 0x3d3   :  { %v855_v38 = vadd.f32 %v854_v42, %v12007_v46 }
 0x3d4   :  { %v927_v47 = vadd.f32 %v853_v39, %v12010_v50 }
 0x3d5   :  { %v934_v51 = vadd.f32 %v855_v38, %v12015_v57 }
 0x3d6   :  { %v6979_v48 = vmul.f32 -1.442695, %v927_v47 }
 0x3d7   :  { %v6980_v52 = vmul.f32 -1.442695, %v934_v51 }
 0x3d8   :  { %11077 = vpow2.f32 %v6979_v48 }
 0x3d9   :  { %11079 = vpow2.f32 %v6980_v52 }
 0x3e2   :  { %v11078_v55 = vpop.eup %11077 }
 0x3e3   :  { %v931_v56 = vadd.f32 1.0, %v11078_v55  ;;  %v11080_v59 = vpop.eup %11079 }
 0x3e4   :  { %v938_v60 = vadd.f32 1.0, %v11080_v59 }
 0x3e5   :  { %11081 = vrcp.f32 %v931_v56 }
 0x3e6   :  { %11083 = vrcp.f32 %v938_v60 }
 0x3ef   :  { %v11082_v0 = vpop.eup %11081 }
 0x3f0   :  { %v941_v3 = vmul.f32 %v11082_v0, %v924_v61  ;;  %v11084_v6 = vpop.eup %11083 }
 0x3f1   :  { %v944_v12 = vsub.f32 1.0, %v11084_v6  ;;  %v946_v16 = vmul.f32 %v11084_v6, %v12075_v30 }
 0x3f2   :  { %v942_v4 = vadd.f32 %v941_v3, %v12025_v22 }
 0x3f4   :  { %11085 = vtanh.f32 %v942_v4 }
 0x3fe   :  { %v11086_v13 = vpop.eup %11085 }
 0x3ff   :  { %v945_v15 = vmul.f32 %v11086_v13, %v944_v12 }
 0x401   :  { %v12122_v21 = vadd.f32 %v946_v16, %v945_v15 }
 0x403   :  { %948 = vst [vmem:[#allocation2 + $0x4] sm:$0x3] %v12122_v21  ;;  %1014 = vmatmul.mubr.f32.vlgmr.msra.gmra.mrb[8].mxu0 %v12122_v21  ;;  %7850 = vmatmul.mubr.f32.vlgmr.msra.gmra.mrb[8].mxu1 %v12122_v21 }
 0x404   :  { %9255 = vmatpush1.bf16.msra.mxu0 %v11869_v17  ;;  %9286 = vmatpush3.bf16.msra.mxu1 %v11889_v40 }
 0x405   :  { %9257 = vmatprep.subr.bf16.mxu0 %v11872_v18  ;;  %9287 = vmatprep.subr.bf16.mxu1 %v11581_v1 }
 0x406   :  { %1176 = vmatprep.mubr.f32.mxu0 %v11582_v2  ;;  %7884 = vmatprep.mubr.msk.f32.mxu1 %vm11583_vm0, %v11582_v2 }
 0x408   :  { %9259 = vmatpush1.bf16.msra.mxu0 %v11876_v26  ;;  %9289 = vmatpush3.bf16.msra.mxu1 %v11899_v49 }
 0x409   :  { %9261 = vmatprep.subr.bf16.mxu0 %v11880_v27  ;;  %9290 = vmatprep.subr.bf16.mxu1 %v11581_v1 }
 0x40c   :  { %9263 = vmatpush1.bf16.msra.mxu0 %v11884_v35  ;;  %9292 = vmatpush3.bf16.msra.mxu1 %v11911_v58 }
 0x40d   :  { %9265 = vmatprep.subr.bf16.mxu0 %v11887_v36  ;;  %9293 = vmatprep.subr.bf16.mxu1 %v11581_v1 }
 0x410   :  { %9267 = vmatpush1.bf16.msra.mxu0 %v11893_v44  ;;  %9295 = vmatpush3.bf16.msra.mxu1 %v11921_v5 }
 0x411   :  { %9269 = vmatprep.subr.bf16.mxu0 %v11896_v45  ;;  %9296 = vmatprep.subr.bf16.mxu1 %v11581_v1 }
 0x414   :  { %9271 = vmatpush1.bf16.msra.mxu0 %v11905_v53  ;;  %9298 = vmatpush3.bf16.msra.mxu1 %v11931_v14 }
 0x415   :  { %9273 = vmatprep.subr.bf16.mxu0 %v11908_v54  ;;  %9299 = vmatprep.subr.bf16.mxu1 %v11581_v1 }
 0x418   :  { %9275 = vmatpush1.bf16.msra.mxu0 %v11915_v62  ;;  %9301 = vmatpush3.bf16.msra.mxu1 %v11939_v20 }
 0x419   :  { %9277 = vmatprep.subr.bf16.mxu0 %v11918_v63  ;;  %9302 = vmatprep.subr.bf16.mxu1 %v11581_v1 }
 0x41c   :  { %9279 = vmatpush1.bf16.msra.mxu0 %v11925_v10  ;;  %9304 = vmatpush3.bf16.msra.mxu1 %v11944_v23 }
 0x41d   :  { %9281 = vmatprep.subr.bf16.mxu0 %v11928_v11  ;;  %9305 = vmatprep.subr.bf16.mxu1 %v11581_v1 }
 0x420   :  { %9283 = vmatpush1.bf16.msra.mxu0 %v11935_v19  ;;  %9307 = vmatpush3.bf16.msra.mxu1 %v11952_v28 }
 0x421   :  { %9309 = vmatprep.subr.bf16.mxu0 %v11863_v8  ;;  %9340 = vmatprep.subr.bf16.mxu1 %v11581_v1 }
 0x4d6   :  { %v1015_v24 = vpop.f32.mrb[8].mxu0  ;;  %v1086_v25 = vpop.f32.mrb[8].mxu1 }
 0x4d7   :  { %v1016_v29 = vadd.f32 %v1015_v24, %v12004_v43  ;;  %v1017_v30 = vpop.f32.mrb[9].mxu0  ;;  %v7851_v32 = vpop.f32.mrb[9].mxu1  ;;  %v1087_v55 = vadd.f32 %v1086_v25, %v12021_v9 }
 0x4d8   :  { %v1018_v34 = vadd.f32 %v1017_v30, %v12007_v46 }
 0x4d9   :  { %v1090_v39 = vadd.f32 %v1016_v29, %v12010_v50 }
 0x4da   :  { %v1097_v31 = vadd.f32 %v1018_v34, %v12015_v57 }
 0x4db   :  { %v6981_v42 = vmul.f32 -1.442695, %v1090_v39 }
 0x4dc   :  { %v6982_v38 = vmul.f32 -1.442695, %v1097_v31 }
 0x4dd   :  { %11087 = vpow2.f32 %v6981_v42 }
 0x4de   :  { %11089 = vpow2.f32 %v6982_v38 }
 0x4e7   :  { %v11088_v47 = vpop.eup %11087 }
 0x4e8   :  { %v1094_v48 = vadd.f32 1.0, %v11088_v47  ;;  %v11090_v51 = vpop.eup %11089 }
 0x4e9   :  { %v1101_v52 = vadd.f32 1.0, %v11090_v51 }
 0x4ea   :  { %11091 = vrcp.f32 %v1094_v48 }
 0x4eb   :  { %11093 = vrcp.f32 %v1101_v52 }
 0x4f4   :  { %v11092_v56 = vpop.eup %11091 }
 0x4f5   :  { %v1104_v59 = vmul.f32 %v11092_v56, %v1087_v55  ;;  %v11094_v61 = vpop.eup %11093 }
 0x4f6   :  { %v1107_v0 = vsub.f32 1.0, %v11094_v61  ;;  %v1109_v6 = vmul.f32 %v11094_v61, %v12122_v21 }
 0x4f7   :  { %v1105_v60 = vadd.f32 %v1104_v59, %v12025_v22 }
 0x4f9   :  { %11095 = vtanh.f32 %v1105_v60 }
 0x503   :  { %v11096_v3 = vpop.eup %11095 }
 0x504   :  { %v1108_v4 = vmul.f32 %v11096_v3, %v1107_v0 }
 0x506   :  { %v12169_v12 = vadd.f32 %v1109_v6, %v1108_v4 }
 0x508   :  { %1111 = vst [vmem:[#allocation2 + $0x6] sm:$0x3] %v12169_v12  ;;  %1177 = vmatmul.mubr.f32.vlgmr.msra.gmra.mrb[10].mxu0 %v12169_v12  ;;  %7885 = vmatmul.mubr.f32.vlgmr.msra.gmra.mrb[10].mxu1 %v12169_v12 }
 0x509   :  { %9311 = vmatpush1.bf16.msra.mxu0 %v11869_v17  ;;  %9342 = vmatpush3.bf16.msra.mxu1 %v11889_v40 }
 0x50a   :  { %9313 = vmatprep.subr.bf16.mxu0 %v11872_v18  ;;  %9343 = vmatprep.subr.bf16.mxu1 %v11581_v1 }
 0x50b   :  { %1339 = vmatprep.mubr.f32.mxu0 %v11582_v2  ;;  %7919 = vmatprep.mubr.msk.f32.mxu1 %vm11583_vm0, %v11582_v2 }
 0x50d   :  { %9315 = vmatpush1.bf16.msra.mxu0 %v11876_v26  ;;  %9345 = vmatpush3.bf16.msra.mxu1 %v11899_v49 }
 0x50e   :  { %9317 = vmatprep.subr.bf16.mxu0 %v11880_v27  ;;  %9346 = vmatprep.subr.bf16.mxu1 %v11581_v1 }
 0x511   :  { %9319 = vmatpush1.bf16.msra.mxu0 %v11884_v35  ;;  %9348 = vmatpush3.bf16.msra.mxu1 %v11911_v58 }
 0x512   :  { %9321 = vmatprep.subr.bf16.mxu0 %v11887_v36  ;;  %9349 = vmatprep.subr.bf16.mxu1 %v11581_v1 }
 0x515   :  { %9323 = vmatpush1.bf16.msra.mxu0 %v11893_v44  ;;  %9351 = vmatpush3.bf16.msra.mxu1 %v11921_v5 }
 0x516   :  { %9325 = vmatprep.subr.bf16.mxu0 %v11896_v45  ;;  %9352 = vmatprep.subr.bf16.mxu1 %v11581_v1 }
 0x519   :  { %9327 = vmatpush1.bf16.msra.mxu0 %v11905_v53  ;;  %9354 = vmatpush3.bf16.msra.mxu1 %v11931_v14 }
 0x51a   :  { %9329 = vmatprep.subr.bf16.mxu0 %v11908_v54  ;;  %9355 = vmatprep.subr.bf16.mxu1 %v11581_v1 }
 0x51d   :  { %9331 = vmatpush1.bf16.msra.mxu0 %v11915_v62  ;;  %9357 = vmatpush3.bf16.msra.mxu1 %v11939_v20 }
 0x51e   :  { %9333 = vmatprep.subr.bf16.mxu0 %v11918_v63  ;;  %9358 = vmatprep.subr.bf16.mxu1 %v11581_v1 }
 0x521   :  { %9335 = vmatpush1.bf16.msra.mxu0 %v11925_v10  ;;  %9360 = vmatpush3.bf16.msra.mxu1 %v11944_v23 }
 0x522   :  { %9337 = vmatprep.subr.bf16.mxu0 %v11928_v11  ;;  %9361 = vmatprep.subr.bf16.mxu1 %v11581_v1 }
 0x525   :  { %9339 = vmatpush1.bf16.msra.mxu0 %v11935_v19  ;;  %9363 = vmatpush3.bf16.msra.mxu1 %v11952_v28 }
 0x526   :  { %9365 = vmatprep.subr.bf16.mxu0 %v11863_v8  ;;  %9396 = vmatprep.subr.bf16.mxu1 %v11581_v1 }
 0x5db   :  { %v1178_v13 = vpop.f32.mrb[10].mxu0  ;;  %v1249_v15 = vpop.f32.mrb[10].mxu1 }
 0x5dc   :  { %v1179_v16 = vadd.f32 %v1178_v13, %v12004_v43  ;;  %v1180_v21 = vpop.f32.mrb[11].mxu0  ;;  %v7886_v24 = vpop.f32.mrb[11].mxu1  ;;  %v1250_v47 = vadd.f32 %v1249_v15, %v12021_v9 }
 0x5dd   :  { %v1181_v25 = vadd.f32 %v1180_v21, %v12007_v46 }
 0x5de   :  { %v1253_v29 = vadd.f32 %v1179_v16, %v12010_v50 }
 0x5df   :  { %v1260_v32 = vadd.f32 %v1181_v25, %v12015_v57 }
 0x5e0   :  { %v6983_v30 = vmul.f32 -1.442695, %v1253_v29 }
 0x5e1   :  { %v6984_v34 = vmul.f32 -1.442695, %v1260_v32 }
 0x5e2   :  { %11097 = vpow2.f32 %v6983_v30 }
 0x5e3   :  { %11099 = vpow2.f32 %v6984_v34 }
 0x5ec   :  { %v11098_v39 = vpop.eup %11097 }
 0x5ed   :  { %v1257_v42 = vadd.f32 1.0, %v11098_v39  ;;  %v11100_v31 = vpop.eup %11099 }
 0x5ee   :  { %v1264_v38 = vadd.f32 1.0, %v11100_v31 }
 0x5ef   :  { %11101 = vrcp.f32 %v1257_v42 }
 0x5f0   :  { %11103 = vrcp.f32 %v1264_v38 }
 0x5f9   :  { %v11102_v48 = vpop.eup %11101 }
 0x5fa   :  { %v1267_v51 = vmul.f32 %v11102_v48, %v1250_v47  ;;  %v11104_v55 = vpop.eup %11103 }
 0x5fb   :  { %v1270_v56 = vsub.f32 1.0, %v11104_v55  ;;  %v1272_v61 = vmul.f32 %v11104_v55, %v12169_v12 }
 0x5fc   :  { %v1268_v52 = vadd.f32 %v1267_v51, %v12025_v22 }
 0x5fe   :  { %11105 = vtanh.f32 %v1268_v52 }
 0x608   :  { %v11106_v59 = vpop.eup %11105 }
 0x609   :  { %v1271_v60 = vmul.f32 %v11106_v59, %v1270_v56  ;;  %v1766_v56 = vld [vmem:[#allocation9] sm:$0xff]  ;;  %v1769_v59 = vld [vmem:[#allocation9 + $0x18] sm:$0xff] }
 0x60b   :  { %v12216_v0 = vadd.f32 %v1272_v61, %v1271_v60  ;;  %v1773_v61 = vld [vmem:[#allocation9 + $0x38] sm:$0xff] }
 0x60d   :  { %1274 = vst [vmem:[#allocation2 + $0x8] sm:$0x3] %v12216_v0  ;;  %1340 = vmatmul.mubr.f32.vlgmr.msra.gmra.mrb[12].mxu0 %v12216_v0  ;;  %7920 = vmatmul.mubr.f32.vlgmr.msra.gmra.mrb[12].mxu1 %v12216_v0 }
 0x60e   :  { %9367 = vmatpush1.bf16.msra.mxu0 %v11869_v17  ;;  %9398 = vmatpush3.bf16.msra.mxu1 %v11889_v40 }
 0x60f   :  { %9369 = vmatprep.subr.bf16.mxu0 %v11872_v18  ;;  %9399 = vmatprep.subr.bf16.mxu1 %v11581_v1 }
 0x610   :  { %1502 = vmatprep.mubr.f32.mxu0 %v11582_v2  ;;  %7954 = vmatprep.mubr.msk.f32.mxu1 %vm11583_vm0, %v11582_v2 }
 0x612   :  { %9371 = vmatpush1.bf16.msra.mxu0 %v11876_v26  ;;  %9401 = vmatpush3.bf16.msra.mxu1 %v11899_v49 }
 0x613   :  { %9373 = vmatprep.subr.bf16.mxu0 %v11880_v27  ;;  %9402 = vmatprep.subr.bf16.mxu1 %v11581_v1 }
 0x616   :  { %9375 = vmatpush1.bf16.msra.mxu0 %v11884_v35  ;;  %9404 = vmatpush3.bf16.msra.mxu1 %v11911_v58 }
 0x617   :  { %9377 = vmatprep.subr.bf16.mxu0 %v11887_v36  ;;  %9405 = vmatprep.subr.bf16.mxu1 %v11581_v1 }
 0x61a   :  { %9379 = vmatpush1.bf16.msra.mxu0 %v11893_v44  ;;  %9407 = vmatpush3.bf16.msra.mxu1 %v11921_v5 }
 0x61b   :  { %9381 = vmatprep.subr.bf16.mxu0 %v11896_v45  ;;  %9408 = vmatprep.subr.bf16.mxu1 %v11581_v1 }
 0x61e   :  { %9383 = vmatpush1.bf16.msra.mxu0 %v11905_v53  ;;  %9410 = vmatpush3.bf16.msra.mxu1 %v11931_v14 }
 0x61f   :  { %9385 = vmatprep.subr.bf16.mxu0 %v11908_v54  ;;  %9411 = vmatprep.subr.bf16.mxu1 %v11581_v1 }
 0x622   :  { %9387 = vmatpush1.bf16.msra.mxu0 %v11915_v62  ;;  %9413 = vmatpush3.bf16.msra.mxu1 %v11939_v20 }
 0x623   :  { %9389 = vmatprep.subr.bf16.mxu0 %v11918_v63  ;;  %9414 = vmatprep.subr.bf16.mxu1 %v11581_v1 }
 0x626   :  { %9391 = vmatpush1.bf16.msra.mxu0 %v11925_v10  ;;  %9416 = vmatpush3.bf16.msra.mxu1 %v11944_v23 }
 0x627   :  { %9393 = vmatprep.subr.bf16.mxu0 %v11928_v11  ;;  %9417 = vmatprep.subr.bf16.mxu1 %v11581_v1 }
 0x62a   :  { %9395 = vmatpush1.bf16.msra.mxu0 %v11935_v19  ;;  %9419 = vmatpush3.bf16.msra.mxu1 %v11952_v28 }
 0x62b   :  { %9421 = vmatprep.subr.bf16.mxu0 %v11863_v8  ;;  %9452 = vmatprep.subr.bf16.mxu1 %v11581_v1 }
 0x6e0   :  { %v1341_v3 = vpop.f32.mrb[12].mxu0  ;;  %v1412_v4 = vpop.f32.mrb[12].mxu1 }
 0x6e1   :  { %v1342_v6 = vadd.f32 %v1341_v3, %v12004_v43  ;;  %v1343_v12 = vpop.f32.mrb[13].mxu0  ;;  %v7921_v13 = vpop.f32.mrb[13].mxu1  ;;  %v1413_v34 = vadd.f32 %v1412_v4, %v12021_v9 }
 0x6e2   :  { %v1344_v15 = vadd.f32 %v1343_v12, %v12007_v46 }
 0x6e3   :  { %v1416_v16 = vadd.f32 %v1342_v6, %v12010_v50  ;;  %v9478_v6 = vpack.c.bf16 %v1769_v59, %v1766_v56  ;;  %v1774_v59 = vld [vmem:[#allocation9 + $0x40] sm:$0xff] }
 0x6e4   :  { %v1423_v24 = vadd.f32 %v1344_v15, %v12015_v57  ;;  %v1772_v15 = vld [vmem:[#allocation9 + $0x30] sm:$0xff] }
 0x6e5   :  { %v6985_v21 = vmul.f32 -1.442695, %v1416_v16  ;;  %v1775_v16 = vld [vmem:[#allocation9 + $0x48] sm:$0xff] }
 0x6e6   :  { %v6986_v25 = vmul.f32 -1.442695, %v1423_v24  ;;  %v1782_v24 = vld [vmem:[#allocation9 + $0x80] sm:$0xff] }
 0x6e7   :  { %11107 = vpow2.f32 %v6985_v21  ;;  %v1779_v21 = vld [vmem:[#allocation9 + $0x68] sm:$0xff] }
 0x6e8   :  { %11109 = vpow2.f32 %v6986_v25  ;;  %v1764_v25 = vld [vmem:[#allocation2] sm:$0xff] }
 0x6f1   :  { %v11108_v29 = vpop.eup %11107 }
 0x6f2   :  { %v1420_v8 = vadd.f32 1.0, %v11108_v29  ;;  %v11110_v30 = vpop.eup %11109  ;;  %v9482_v29 = vpack.c.bf16 %v1775_v16, %v1772_v15  ;;  %v1780_v16 = vld [vmem:[#allocation9 + $0x70] sm:$0xff] }
 0x6f3   :  { %v1427_v32 = vadd.f32 1.0, %v11110_v30  ;;  %v1778_v30 = vld [vmem:[#allocation9 + $0x60] sm:$0xff] }
 0x6f4   :  { %11111 = vrcp.f32 %v1420_v8  ;;  %v9484_v8 = vpack.c.bf16 %v1782_v24, %v1779_v21  ;;  %v1783_v21 = vld [vmem:[#allocation9 + $0x88] sm:$0xff] }
 0x6f5   :  { %11113 = vrcp.f32 %v1427_v32  ;;  %v1781_v32 = vld [vmem:[#allocation9 + $0x78] sm:$0xff]  ;;  %v9516_v24 = vpack.c.bf16 %v1783_v21, %v1780_v16  ;;  %v2023_v16 = vld [vmem:[#allocation10 + $0x140] sm:$0xff] }
 0x6f6   :  { %v2019_v21 = vld [vmem:[#allocation10 + $0x120] sm:$0xff] }
 0x6fe   :  { %v11112_v39 = vpop.eup %11111 }
 0x6ff   :  { %v1430_v42 = vmul.f32 %v11112_v39, %v1413_v34  ;;  %v11114_v38 = vpop.eup %11113  ;;  %v1785_v34 = vld [vmem:[#allocation9 + $0x98] sm:$0xff]  ;;  %v1788_v39 = vld [vmem:[#allocation9 + $0xb0] sm:$0xff] }
 0x700   :  { %v1433_v47 = vsub.f32 1.0, %v11114_v38  ;;  %v1435_v52 = vmul.f32 %v11114_v38, %v12216_v0  ;;  %v1776_v0 = vld [vmem:[#allocation9 + $0x50] sm:$0xff] }
 0x701   :  { %v1431_v31 = vadd.f32 %v1430_v42, %v12025_v22  ;;  %v9480_v13 = vpack.c.bf16 %v1776_v0, %v1773_v61  ;;  %v9486_v42 = vpack.c.bf16 %v1781_v32, %v1778_v30  ;;  %v1784_v38 = vld [vmem:[#allocation9 + $0x90] sm:$0xff]  ;;  %v1984_v0 = vld [vmem:[#allocation10 + $0x8] sm:$0xff] }
 0x702   :  { %v1989_v30 = vld [vmem:[#allocation10 + $0x30] sm:$0xff]  ;;  %v1992_v32 = vld [vmem:[#allocation10 + $0x48] sm:$0xff] }
 0x703   :  { %11115 = vtanh.f32 %v1431_v31  ;;  %v9488_v31 = vpack.c.bf16 %v1788_v39, %v1785_v34  ;;  %v12323_v34 = vpack.c.bf16 %v1992_v32, %v1989_v30  ;;  %v1786_v39 = vld [vmem:[#allocation9 + $0xa0] sm:$0xff]  ;;  %v2026_v30 = vld [vmem:[#allocation10 + $0x158] sm:$0xff]  ;;  %v2029_v32 = vld [vmem:[#allocation10 + $0x170] sm:$0xff] }
 0x70d   :  { %v11116_v48 = vpop.eup %11115 }
 0x70e   :  { %v1434_v51 = vmul.f32 %v11116_v48, %v1433_v47  ;;  %v1787_v47 = vld [vmem:[#allocation9 + $0xa8] sm:$0xff] }
 0x70f   :  { %v1791_v48 = vld [vmem:[#allocation9 + $0xc8] sm:$0xff] }
 0x710   :  { %v12263_v55 = vadd.f32 %v1435_v52, %v1434_v51  ;;  %v1794_v51 = vld [vmem:[#allocation9 + $0xe0] sm:$0xff]  ;;  %v9490_v52 = vpack.c.bf16 %v1787_v47, %v1784_v38  ;;  %v1996_v38 = vld [vmem:[#allocation10 + $0x68] sm:$0xff] }
 0x711   :  { %v1999_v47 = vld [vmem:[#allocation10 + $0x80] sm:$0xff] }
 0x712   :  { %1437 = vst [vmem:[#allocation2 + $0xa] sm:$0x3] %v12263_v55  ;;  %1503 = vmatmul.mubr.f32.vlgmr.msra.gmra.mrb[14].mxu0 %v12263_v55  ;;  %7955 = vmatmul.mubr.f32.vlgmr.msra.gmra.mrb[14].mxu1 %v12263_v55 }
 0x713   :  { %9423 = vmatpush1.bf16.msra.mxu0 %v11869_v17  ;;  %9454 = vmatpush3.bf16.msra.mxu1 %v11889_v40  ;;  %v1767_v17 = vld [vmem:[#allocation9 + $0x8] sm:$0xff] }
 0x714   :  { %9425 = vmatprep.subr.bf16.mxu0 %v11872_v18  ;;  %9455 = vmatprep.subr.bf16.mxu1 %v11581_v1  ;;  %v1770_v18 = vld [vmem:[#allocation9 + $0x20] sm:$0xff] }
 0x715   :  { %1665 = vmatprep.mubr.f32.mxu0 %v11582_v2  ;;  %7989 = vmatprep.mubr.msk.f32.mxu1 %vm11583_vm0, %v11582_v2 }
 0x717   :  { %9427 = vmatpush1.bf16.msra.mxu0 %v11876_v26  ;;  %9457 = vmatpush3.bf16.msra.mxu1 %v11899_v49  ;;  %v9476_v26 = vpack.c.bf16 %v1770_v18, %v1767_v17  ;;  %v1790_v17 = vld [vmem:[#allocation9 + $0xc0] sm:$0xff]  ;;  %v1793_v18 = vld [vmem:[#allocation9 + $0xd8] sm:$0xff] }
 0x718   :  { %9429 = vmatprep.subr.bf16.mxu0 %v11880_v27  ;;  %9458 = vmatprep.subr.bf16.mxu1 %v11581_v1 }
 0x71b   :  { %9431 = vmatpush1.bf16.msra.mxu0 %v11884_v35  ;;  %9460 = vmatpush3.bf16.msra.mxu1 %v11911_v58 }
 0x71c   :  { %9433 = vmatprep.subr.bf16.mxu0 %v11887_v36  ;;  %9461 = vmatprep.subr.bf16.mxu1 %v11581_v1 }
 0x71f   :  { %9435 = vmatpush1.bf16.msra.mxu0 %v11893_v44  ;;  %9463 = vmatpush3.bf16.msra.mxu1 %v11921_v5 }
 0x720   :  { %9437 = vmatprep.subr.bf16.mxu0 %v11896_v45  ;;  %9464 = vmatprep.subr.bf16.mxu1 %v11581_v1 }
 0x723   :  { %9439 = vmatpush1.bf16.msra.mxu0 %v11905_v53  ;;  %9466 = vmatpush3.bf16.msra.mxu1 %v11931_v14 }
 0x724   :  { %9441 = vmatprep.subr.bf16.mxu0 %v11908_v54  ;;  %9467 = vmatprep.subr.bf16.mxu1 %v11581_v1 }
 0x727   :  { %9443 = vmatpush1.bf16.msra.mxu0 %v11915_v62  ;;  %9469 = vmatpush3.bf16.msra.mxu1 %v11939_v20 }
 0x728   :  { %9445 = vmatprep.subr.bf16.mxu0 %v11918_v63  ;;  %9470 = vmatprep.subr.bf16.mxu1 %v11581_v1 }
 0x72b   :  { %9447 = vmatpush1.bf16.msra.mxu0 %v11925_v10  ;;  %9472 = vmatpush3.bf16.msra.mxu1 %v11944_v23 }
 0x72c   :  { %9449 = vmatprep.subr.bf16.mxu0 %v11928_v11  ;;  %9473 = vmatprep.subr.bf16.mxu1 %v11581_v1 }
 0x72f   :  { %9451 = vmatpush1.bf16.msra.mxu0 %v11935_v19  ;;  %9475 = vmatpush3.bf16.msra.mxu1 %v11952_v28 }
 0x730   :  { %9477 = vmatprep.subr.bf16.mxu0 %v9476_v26  ;;  %v1797_v26 = vld [vmem:[#allocation9 + $0xf8] sm:$0xff] }
 0x7e5   :  { %v1504_v27 = vpop.f32.mrb[14].mxu0  ;;  %v1575_v35 = vpop.f32.mrb[14].mxu1 }
 0x7e6   :  { %v1505_v36 = vadd.f32 %v1504_v27, %v12004_v43  ;;  %v1506_v40 = vpop.f32.mrb[15].mxu0  ;;  %v7956_v44 = vpop.f32.mrb[15].mxu1  ;;  %v1576_v11 = vadd.f32 %v1575_v35, %v12021_v9  ;;  %v1800_v27 = vld [vmem:[#allocation9 + $0x110] sm:$0xff]  ;;  %v9494_v35 = vpack.c.bf16 %v1793_v18, %v1790_v17  ;;  %v1795_v18 = vld [vmem:[#allocation9 + $0xe8] sm:$0xff] }
 0x7e7   :  { %v1507_v45 = vadd.f32 %v1506_v40, %v12007_v46  ;;  %v1796_v40 = vld [vmem:[#allocation9 + $0xf0] sm:$0xff]  ;;  %v1799_v44 = vld [vmem:[#allocation9 + $0x108] sm:$0xff] }
 0x7e8   :  { %v1579_v49 = vadd.f32 %v1505_v36, %v12010_v50  ;;  %v9496_v36 = vpack.c.bf16 %v1800_v27, %v1797_v26  ;;  %v1792_v17 = vld [vmem:[#allocation9 + $0xd0] sm:$0xff]  ;;  %v2002_v27 = vld [vmem:[#allocation10 + $0x98] sm:$0xff] }
 0x7e9   :  { %v1586_v54 = vadd.f32 %v1507_v45, %v12015_v57  ;;  %v1803_v45 = vld [vmem:[#allocation9 + $0x128] sm:$0xff]  ;;  %v9524_v26 = vpack.c.bf16 %v1795_v18, %v1792_v17 }
 0x7ea   :  { %v6987_v53 = vmul.f32 -1.442695, %v1579_v49  ;;  %v1806_v49 = vld [vmem:[#allocation9 + $0x140] sm:$0xff] }
 0x7eb   :  { %v6988_v58 = vmul.f32 -1.442695, %v1586_v54  ;;  %v9500_v54 = vpack.c.bf16 %v1806_v49, %v1803_v45  ;;  %v1798_v49 = vld [vmem:[#allocation9 + $0x100] sm:$0xff] }
 0x7ec   :  { %11117 = vpow2.f32 %v6987_v53  ;;  %v9498_v53 = vpack.c.bf16 %v1799_v44, %v1796_v40  ;;  %v2001_v40 = vld [vmem:[#allocation10 + $0x90] sm:$0xff]  ;;  %v2004_v44 = vld [vmem:[#allocation10 + $0xa8] sm:$0xff] }
 0x7ed   :  { %11119 = vpow2.f32 %v6988_v58  ;;  %v1802_v58 = vld [vmem:[#allocation9 + $0x120] sm:$0xff]  ;;  %v12335_v45 = vpack.c.bf16 %v2004_v44, %v2001_v40 }
 0x7f6   :  { %v11118_v62 = vpop.eup %11117 }
 0x7f7   :  { %v1583_v63 = vadd.f32 1.0, %v11118_v62  ;;  %v11120_v5 = vpop.eup %11119  ;;  %v1805_v62 = vld [vmem:[#allocation9 + $0x138] sm:$0xff] }
 0x7f8   :  { %v1590_v10 = vadd.f32 1.0, %v11120_v5  ;;  %v1812_v5 = vld [vmem:[#allocation9 + $0x170] sm:$0xff] }
 0x7f9   :  { %11121 = vrcp.f32 %v1583_v63  ;;  %v1809_v63 = vld [vmem:[#allocation9 + $0x158] sm:$0xff] }
 0x7fa   :  { %11123 = vrcp.f32 %v1590_v10  ;;  %v9502_v10 = vpack.c.bf16 %v1805_v62, %v1802_v58  ;;  %v2008_v58 = vld [vmem:[#allocation10 + $0xc8] sm:$0xff]  ;;  %v2011_v62 = vld [vmem:[#allocation10 + $0xe0] sm:$0xff] }
 0x803   :  { %v11122_v14 = vpop.eup %11121 }
 0x804   :  { %v1593_v19 = vmul.f32 %v11122_v14, %v1576_v11  ;;  %v11124_v23 = vpop.eup %11123  ;;  %v9504_v11 = vpack.c.bf16 %v1812_v5, %v1809_v63  ;;  %v1808_v14 = vld [vmem:[#allocation9 + $0x150] sm:$0xff]  ;;  %v12339_v63 = vpack.c.bf16 %v2011_v62, %v2008_v58  ;;  %v2007_v5 = vld [vmem:[#allocation10 + $0xc0] sm:$0xff] }
 0x805   :  { %v1596_v28 = vsub.f32 1.0, %v11124_v23  ;;  %v1598_v4 = vmul.f32 %v11124_v23, %v12263_v55  ;;  %v9492_v55 = vpack.c.bf16 %v1794_v51, %v1791_v48  ;;  %v1768_v23 = vld [vmem:[#allocation9 + $0x10] sm:$0xff]  ;;  %v12327_v48 = vpack.c.bf16 %v1999_v47, %v1996_v38  ;;  %v1995_v51 = vld [vmem:[#allocation10 + $0x60] sm:$0xff] }
 0x806   :  { %v1594_v20 = vadd.f32 %v1593_v19, %v12025_v22  ;;  %v1811_v19 = vld [vmem:[#allocation9 + $0x168] sm:$0xff] }
 0x808   :  { %11125 = vtanh.f32 %v1594_v20  ;;  %v9506_v20 = vpack.c.bf16 %v1811_v19, %v1808_v14  ;;  %v1804_v14 = vld [vmem:[#allocation9 + $0x130] sm:$0xff]  ;;  %v1807_v19 = vld [vmem:[#allocation9 + $0x148] sm:$0xff] }
 0x812   :  { %v11126_v60 = vpop.eup %11125 }
 0x813   :  { %v1597_v3 = vmul.f32 %v11126_v60, %v1596_v28  ;;  %v1771_v28 = vld [vmem:[#allocation9 + $0x28] sm:$0xff]  ;;  %v1777_v60 = vld [vmem:[#allocation9 + $0x58] sm:$0xff] }
 0x814   :  { %v9508_v56 = vpack.c.bf16 %v1771_v28, %v1768_v23  ;;  %v9512_v61 = vpack.c.bf16 %v1777_v60, %v1774_v59  ;;  %v2014_v23 = vld [vmem:[#allocation10 + $0xf8] sm:$0xff]  ;;  %v2017_v28 = vld [vmem:[#allocation10 + $0x110] sm:$0xff]  ;;  %v2016_v60 = vld [vmem:[#allocation10 + $0x108] sm:$0xff] }
 0x815   :  { %v12308_v12 = vadd.f32 %v1598_v4, %v1597_v3  ;;  %v1987_v3 = vld [vmem:[#allocation10 + $0x20] sm:$0xff]  ;;  %v2013_v59 = vld [vmem:[#allocation10 + $0xf0] sm:$0xff] }
 0x816   :  { %9509 = vmatprep.subr.bf16.mxu1 %v9508_v56  ;;  %v12315_v4 = vpack.c.bf16 %v1987_v3, %v1984_v0  ;;  %v1810_v0 = vld [vmem:[#allocation9 + $0x160] sm:$0xff]  ;;  %v1813_v3 = vld [vmem:[#allocation9 + $0x178] sm:$0xff] }
 0x817   :  { %1600 = vst [vmem:[#allocation2 + $0xc] sm:$0x3] %v12308_v12  ;;  %1666 = vmatmul.mubr.f32.vlgmr.msra.gmra.mrb[16].mxu0 %v12308_v12  ;;  %7990 = vmatmul.mubr.f32.vlgmr.msra.gmra.mrb[16].mxu1 %v12308_v12 }
 0x818   :  { %9479 = vmatpush1.bf16.msra.mxu0 %v9478_v6  ;;  %8024 = vmatprep.mubr.f32.mxu1 %v1764_v25  ;;  %v1983_v6 = vld [vmem:[#allocation10] sm:$0xff] }
 0x819   :  { %9481 = vmatprep.subr.bf16.mxu0 %v9480_v13  ;;  %1895 = vmatprep.mubr.f32.mxu0 %v11582_v2  ;;  %v1986_v13 = vld [vmem:[#allocation10 + $0x18] sm:$0xff] }
 0x81a   :  { %9511 = vmatpush3.bf16.msra.mxu1 %v9508_v56  ;;  %v12317_v15 = vpack.c.bf16 %v1986_v13, %v1983_v6  ;;  %v12345_v56 = vpack.c.bf16 %v2017_v28, %v2014_v23  ;;  %v2020_v6 = vld [vmem:[#allocation10 + $0x128] sm:$0xff]  ;;  %v9536_v13 = vpack.c.bf16 %v1813_v3, %v1810_v0  ;;  %v1991_v0 = vld [vmem:[#allocation10 + $0x40] sm:$0xff]  ;;  %v1994_v3 = vld [vmem:[#allocation10 + $0x58] sm:$0xff] }
 0x81b   :  { %9513 = vmatprep.subr.bf16.mxu1 %v9512_v61 }
 0x81c   :  { %9483 = vmatpush1.bf16.msra.mxu0 %v9482_v29  ;;  %v1993_v29 = vld [vmem:[#allocation10 + $0x50] sm:$0xff] }
 0x81d   :  { %9485 = vmatprep.subr.bf16.mxu0 %v9484_v8 }
 0x81e   :  { %9515 = vmatpush3.bf16.msra.mxu1 %v9512_v61  ;;  %v12347_v61 = vpack.c.bf16 %v2016_v60, %v2013_v59  ;;  %v1985_v59 = vld [vmem:[#allocation10 + $0x10] sm:$0xff] }
 0x81f   :  { %9517 = vmatprep.subr.bf16.mxu1 %v9516_v24 }
 0x820   :  { %9487 = vmatpush1.bf16.msra.mxu0 %v9486_v42  ;;  %v1789_v42 = vld [vmem:[#allocation9 + $0xb8] sm:$0xff] }
 0x821   :  { %9489 = vmatprep.subr.bf16.mxu0 %v9488_v31  ;;  %v9520_v31 = vpack.c.bf16 %v1789_v42, %v1786_v39  ;;  %v12358_v39 = vpack.c.bf16 %v2029_v32, %v2026_v30  ;;  %v2025_v42 = vld [vmem:[#allocation10 + $0x150] sm:$0xff] }
 0x822   :  { %9519 = vmatpush3.bf16.msra.mxu1 %v9516_v24  ;;  %v2022_v24 = vld [vmem:[#allocation10 + $0x138] sm:$0xff]  ;;  %v2009_v32 = vld [vmem:[#allocation10 + $0xd0] sm:$0xff] }
 0x823   :  { %9521 = vmatprep.subr.bf16.mxu1 %v9520_v31 }
 0x824   :  { %9491 = vmatpush1.bf16.msra.mxu0 %v9490_v52  ;;  %v1998_v52 = vld [vmem:[#allocation10 + $0x78] sm:$0xff] }
 0x825   :  { %9493 = vmatprep.subr.bf16.mxu0 %v9492_v55  ;;  %v12329_v55 = vpack.c.bf16 %v1998_v52, %v1995_v51 }
 0x826   :  { %9523 = vmatpush3.bf16.msra.mxu1 %v9520_v31  ;;  %v2028_v31 = vld [vmem:[#allocation10 + $0x168] sm:$0xff] }
 0x827   :  { %9525 = vmatprep.subr.bf16.mxu1 %v9524_v26  ;;  %v12360_v38 = vpack.c.bf16 %v2028_v31, %v2025_v42  ;;  %v2012_v42 = vld [vmem:[#allocation10 + $0xe8] sm:$0xff] }
 0x828   :  { %9495 = vmatpush1.bf16.msra.mxu0 %v9494_v35  ;;  %v2005_v35 = vld [vmem:[#allocation10 + $0xb0] sm:$0xff]  ;;  %v12400_v31 = vpack.c.bf16 %v2012_v42, %v2009_v32 }
 0x829   :  { %9497 = vmatprep.subr.bf16.mxu0 %v9496_v36  ;;  %v12333_v36 = vpack.c.bf16 %v2005_v35, %v2002_v27 }
 0x82a   :  { %9527 = vmatpush3.bf16.msra.mxu1 %v9524_v26 }
 0x82c   :  { %9499 = vmatpush1.bf16.msra.mxu0 %v9498_v53  ;;  %v1801_v53 = vld [vmem:[#allocation9 + $0x118] sm:$0xff] }
 0x82d   :  { %9501 = vmatprep.subr.bf16.mxu0 %v9500_v54  ;;  %v9528_v54 = vpack.c.bf16 %v1801_v53, %v1798_v49 }
 0x82f   :  { %9529 = vmatprep.subr.bf16.mxu1 %v9528_v54 }
 0x830   :  { %9503 = vmatpush1.bf16.msra.mxu0 %v9502_v10  ;;  %v2010_v10 = vld [vmem:[#allocation10 + $0xd8] sm:$0xff]  ;;  %9531 = vmatpush3.bf16.msra.mxu1 %v9528_v54 }
 0x831   :  { %9505 = vmatprep.subr.bf16.mxu0 %v9504_v11  ;;  %v12341_v11 = vpack.c.bf16 %v2010_v10, %v2007_v5 }
 0x834   :  { %9507 = vmatpush1.bf16.msra.mxu0 %v9506_v20  ;;  %v9532_v20 = vpack.c.bf16 %v1807_v19, %v1804_v14 }
 0x835   :  { %9541 = vmatprep.subr.bf16.mxu0 %v12315_v4 }
 0x836   :  { %9533 = vmatprep.subr.bf16.mxu1 %v9532_v20 }
 0x837   :  { %1896 = vmatmul.mubr.f32.vlgmr.msra.gmra.mrb[18].mxu0 %v1764_v25  ;;  %v1990_v25 = vld [vmem:[#allocation10 + $0x38] sm:$0xff]  ;;  %9535 = vmatpush3.bf16.msra.mxu1 %v9532_v20 }
 0x838   :  { %1901 = vmatprep.mubr.f32.mxu0 %v11582_v2  ;;  %9543 = vmatpush1.bf16.msra.mxu0 %v12317_v15  ;;  %v12321_v8 = vpack.c.bf16 %v1993_v29, %v1990_v25  ;;  %v12351_v25 = vpack.c.bf16 %v2023_v16, %v2020_v6  ;;  %v12353_v29 = vpack.c.bf16 %v2022_v24, %v2019_v21  ;;  %v2003_v21 = vld [vmem:[#allocation10 + $0xa0] sm:$0xff]  ;;  %v2006_v24 = vld [vmem:[#allocation10 + $0xb8] sm:$0xff] }
 0x839   :  { %9537 = vmatprep.subr.bf16.mxu1 %v9536_v13  ;;  %v12394_v30 = vpack.c.bf16 %v2006_v24, %v2003_v21 }
 0x83a   :  { %9545 = vmatprep.subr.bf16.mxu0 %v12321_v8 }
 0x83b   :  { %9539 = vmatpush3.bf16.msra.mxu1 %v9536_v13  ;;  %v2000_v13 = vld [vmem:[#allocation10 + $0x88] sm:$0xff] }
 0x83c   :  { %9547 = vmatpush1.bf16.msra.mxu0 %v12323_v34  ;;  %9572 = vmatprep.subr.bf16.mxu1 %v11581_v1 }
 0x83d   :  { %9549 = vmatprep.subr.bf16.mxu0 %v12327_v48 }
 0x840   :  { %9551 = vmatpush1.bf16.msra.mxu0 %v12329_v55 }
 0x841   :  { %9553 = vmatprep.subr.bf16.mxu0 %v12333_v36 }
 0x844   :  { %9555 = vmatpush1.bf16.msra.mxu0 %v12335_v45 }
 0x845   :  { %9557 = vmatprep.subr.bf16.mxu0 %v12339_v63 }
 0x848   :  { %9559 = vmatpush1.bf16.msra.mxu0 %v12341_v11 }
 0x849   :  { %9561 = vmatprep.subr.bf16.mxu0 %v12345_v56 }
 0x84c   :  { %9563 = vmatpush1.bf16.msra.mxu0 %v12347_v61 }
 0x84d   :  { %9565 = vmatprep.subr.bf16.mxu0 %v12351_v25 }
 0x850   :  { %9567 = vmatpush1.bf16.msra.mxu0 %v12353_v29 }
 0x851   :  { %9569 = vmatprep.subr.bf16.mxu0 %v12358_v39 }
 0x854   :  { %9571 = vmatpush1.bf16.msra.mxu0 %v12360_v38 }
 0x855   :  { %9597 = vmatprep.subr.bf16.mxu0 %v12315_v4 }
 0x8ea   :  { %v1667_v47 = vpop.f32.mrb[16].mxu0  ;;  %v1738_v51 = vpop.f32.mrb[16].mxu1 }
 0x8eb   :  { %v1668_v52 = vadd.f32 %v1667_v47, %v12004_v43  ;;  %v1669_v17 = vpop.f32.mrb[17].mxu0  ;;  %v7991_v18 = vpop.f32.mrb[17].mxu1  ;;  %v1739_v62 = vadd.f32 %v1738_v51, %v12021_v9  ;;  %v1988_v9 = vld [vmem:[#allocation10 + $0x28] sm:$0xff]  ;;  %v2015_v47 = vld [vmem:[#allocation10 + $0x100] sm:$0xff]  ;;  %v2018_v51 = vld [vmem:[#allocation10 + $0x118] sm:$0xff] }
 0x8ec   :  { %v1670_v26 = vadd.f32 %v1669_v17, %v12007_v46  ;;  %v12376_v60 = vpack.c.bf16 %v1988_v9, %v1985_v59  ;;  %v2021_v17 = vld [vmem:[#allocation10 + $0x130] sm:$0xff]  ;;  %v2024_v18 = vld [vmem:[#allocation10 + $0x148] sm:$0xff] }
 0x8ed   :  { %v1742_v27 = vadd.f32 %v1668_v52, %v12010_v50  ;;  %v12406_v52 = vpack.c.bf16 %v2018_v51, %v2015_v47 }
 0x8ee   :  { %v1749_v40 = vadd.f32 %v1670_v26, %v12015_v57  ;;  %v12412_v26 = vpack.c.bf16 %v2024_v18, %v2021_v17 }
 0x8ef   :  { %v6989_v35 = vmul.f32 -1.442695, %v1742_v27  ;;  %v2027_v27 = vld [vmem:[#allocation10 + $0x160] sm:$0xff] }
 0x8f0   :  { %v6990_v44 = vmul.f32 -1.442695, %v1749_v40 }
 0x8f1   :  { %11127 = vpow2.f32 %v6989_v35  ;;  %v2030_v35 = vld [vmem:[#allocation10 + $0x178] sm:$0xff] }
 0x8f2   :  { %11129 = vpow2.f32 %v6990_v44  ;;  %v12418_v40 = vpack.c.bf16 %v2030_v35, %v2027_v27  ;;  %v1814_v44 = vld [vmem:[%s13870_s28] sm:$0x7] }
 0x8fb   :  { %v11128_v49 = vpop.eup %11127 }
 0x8fc   :  { %v1746_v53 = vadd.f32 1.0, %v11128_v49  ;;  %v11130_v54 = vpop.eup %11129  ;;  %v1827_v49 = vrot.slane %v1814_v44, %v12018_v7 }
 0x8fd   :  { %v1753_v58 = vadd.f32 1.0, %v11130_v54 }
 0x8fe   :  { %11131 = vrcp.f32 %v1746_v53  ;;  %v2031_v53 = vld [vmem:[%s13833_s8] sm:$0x7] }
 0x8ff   :  { %11133 = vrcp.f32 %v1753_v58  ;;  %v12486_v32 = vrot.slane %v2031_v53, %v12018_v7 }
 0x908   :  { %v11132_v43 = vpop.eup %11131 }
 0x909   :  { %v1756_v5 = vmul.f32 %v11132_v43, %v1739_v62  ;;  %v11134_v57 = vpop.eup %11133  ;;  %v12458_v62 = vrot.slane %v1814_v44, %v11992_v37 }
 0x90a   :  { %v12370_v10 = vpop.f32.mrb[18].mxu0  ;;  %v1759_v14 = vsub.f32 1.0, %v11134_v57  ;;  %v1761_v23 = vmul.f32 %v11134_v57, %v12308_v12  ;;  %v1997_v12 = vld [vmem:[#allocation10 + $0x70] sm:$0xff]  ;;  %v12465_v57 = vrot.slane %v2031_v53, %v11992_v37 }
 0x90b   :  { %v1757_v46 = vadd.f32 %v1756_v5, %v12025_v22  ;;  %v12373_v50 = vpop.f32.mrb[19].mxu0  ;;  %v12380_v22 = vpack.c.bf16 %v1994_v3, %v1991_v0  ;;  %v12387_v16 = vpack.c.bf16 %v2000_v13, %v1997_v12 }
 0x90d   :  { %11135 = vtanh.f32 %v1757_v46 }
 0x917   :  { %v11136_v19 = vpop.eup %11135 }
 0x918   :  { %v1760_v20 = vmul.f32 %v11136_v19, %v1759_v14  ;;  %v12468_v14 = vrot.slane %v2031_v53, %v12000_v41  ;;  %v12471_v19 = vrot.slane %v1814_v44, %v12000_v41 }
 0x91a   :  { %v1762_v28 = vadd.f32 %v1761_v23, %v1760_v20  ;;  %v12475_v23 = vadd.f32 %v12370_v10, %v12458_v62  ;;  %v12482_v3 = vadd.f32 %v12373_v50, %v12471_v19 }
 0x91c   :  { %1763 = vst [vmem:[#allocation2 + $0xe] sm:$0x3] %v1762_v28 }
 0x923   :  { %v1765_v6 = vld [vmem:[#allocation2 + $0x8] sm:$0xff] }
 0x924   :  { %1902 = vmatmul.mubr.f32.gmra.mrb[20].mxu0 %v1765_v6  ;;  %8025 = vmatmul.mubr.f32.vlgmr.msra.gmra.mrb[18].mxu1 %v1765_v6 }
 0x925   :  { %9574 = vmatpush3.bf16.msra.mxu1 %v12376_v60  ;;  %2112 = vmatprep.mubr.f32.mxu0 %v11582_v2 }
 0x926   :  { %9575 = vmatprep.subr.bf16.mxu1 %v11581_v1  ;;  %8059 = vmatprep.mubr.msk.f32.mxu1 %vm11583_vm0, %v11582_v2 }
 0x928   :  { %2113 = vmatmul.mubr.f32.vlgmr.msra.gmra.mrb[22].mxu0 %v11582_v2 }
 0x929   :  { %9577 = vmatpush3.bf16.msra.mxu1 %v12380_v22  ;;  %9599 = vmatpush1.bf16.msra.mxu0 %v12317_v15 }
 0x92a   :  { %9578 = vmatprep.subr.bf16.mxu1 %v11581_v1  ;;  %9601 = vmatprep.subr.bf16.mxu0 %v12321_v8 }
 0x92b   :  { %2275 = vmatprep.mubr.f32.mxu0 %v11582_v2 }
 0x92d   :  { %9580 = vmatpush3.bf16.msra.mxu1 %v12387_v16  ;;  %9603 = vmatpush1.bf16.msra.mxu0 %v12323_v34 }
 0x92e   :  { %9581 = vmatprep.subr.bf16.mxu1 %v11581_v1  ;;  %9605 = vmatprep.subr.bf16.mxu0 %v12327_v48 }
 0x931   :  { %9583 = vmatpush3.bf16.msra.mxu1 %v12394_v30  ;;  %9607 = vmatpush1.bf16.msra.mxu0 %v12329_v55 }
 0x932   :  { %9584 = vmatprep.subr.bf16.mxu1 %v11581_v1  ;;  %9609 = vmatprep.subr.bf16.mxu0 %v12333_v36 }
 0x935   :  { %9586 = vmatpush3.bf16.msra.mxu1 %v12400_v31  ;;  %9611 = vmatpush1.bf16.msra.mxu0 %v12335_v45 }
 0x936   :  { %9587 = vmatprep.subr.bf16.mxu1 %v11581_v1  ;;  %9613 = vmatprep.subr.bf16.mxu0 %v12339_v63 }
 0x939   :  { %9589 = vmatpush3.bf16.msra.mxu1 %v12406_v52  ;;  %9615 = vmatpush1.bf16.msra.mxu0 %v12341_v11 }
 0x93a   :  { %9590 = vmatprep.subr.bf16.mxu1 %v11581_v1  ;;  %9617 = vmatprep.subr.bf16.mxu0 %v12345_v56 }
 0x93d   :  { %9592 = vmatpush3.bf16.msra.mxu1 %v12412_v26  ;;  %9619 = vmatpush1.bf16.msra.mxu0 %v12347_v61 }
 0x93e   :  { %9593 = vmatprep.subr.bf16.mxu1 %v11581_v1  ;;  %9621 = vmatprep.subr.bf16.mxu0 %v12351_v25 }
 0x941   :  { %9595 = vmatpush3.bf16.msra.mxu1 %v12418_v40  ;;  %9623 = vmatpush1.bf16.msra.mxu0 %v12353_v29 }
 0x942   :  { %9628 = vmatprep.subr.bf16.mxu1 %v11581_v1  ;;  %9625 = vmatprep.subr.bf16.mxu0 %v12358_v39 }
 0x944   :  { %8060 = vmatmul.mubr.f32.vlgmr.msra.gmra.mrb[20].mxu1 %v11582_v2 }
 0x945   :  { %9630 = vmatpush3.bf16.msra.mxu1 %v12376_v60  ;;  %9627 = vmatpush1.bf16.msra.mxu0 %v12360_v38 }
 0x946   :  { %9631 = vmatprep.subr.bf16.mxu1 %v11581_v1  ;;  %8094 = vmatprep.mubr.msk.f32.mxu1 %vm11583_vm0, %v11582_v2 }
 0x947   :  { %9653 = vmatprep.subr.bf16.mxu0 %v12315_v4 }
 0x949   :  { %9633 = vmatpush3.bf16.msra.mxu1 %v12380_v22 }
 0x94a   :  { %9634 = vmatprep.subr.bf16.mxu1 %v11581_v1 }
 0x94d   :  { %9636 = vmatpush3.bf16.msra.mxu1 %v12387_v16 }
 0x94e   :  { %9637 = vmatprep.subr.bf16.mxu1 %v11581_v1 }
 0x951   :  { %9639 = vmatpush3.bf16.msra.mxu1 %v12394_v30 }
 0x952   :  { %9640 = vmatprep.subr.bf16.mxu1 %v11581_v1 }
 0x955   :  { %9642 = vmatpush3.bf16.msra.mxu1 %v12400_v31 }
 0x956   :  { %9643 = vmatprep.subr.bf16.mxu1 %v11581_v1 }
 0x959   :  { %9645 = vmatpush3.bf16.msra.mxu1 %v12406_v52 }
 0x95a   :  { %9646 = vmatprep.subr.bf16.mxu1 %v11581_v1 }
 0x95d   :  { %9648 = vmatpush3.bf16.msra.mxu1 %v12412_v26 }
 0x95e   :  { %9649 = vmatprep.subr.bf16.mxu1 %v11581_v1 }
 0x961   :  { %9651 = vmatpush3.bf16.msra.mxu1 %v12418_v40 }
 0x962   :  { %9684 = vmatprep.subr.bf16.mxu1 %v11581_v1 }
 0x9f7   :  { %v12455_v54 = vpop.f32.mrb[20].mxu0  ;;  %v8026_v58 = vpop.f32.mrb[18].mxu1 }
 0x9f8   :  { %v12460_v43 = vadd.f32 %v8026_v58, %v1827_v49  ;;  %v12462_v5 = vpop.f32.mrb[21].mxu0  ;;  %v1974_v46 = vpop.f32.mrb[19].mxu1 }
 0x9f9   :  { %v12489_v18 = vadd.f32 %v1974_v46, %v1827_v49 }
 0x9fb   :  { %v2114_v20 = vpop.f32.mrb[22].mxu0 }
 0x9fc   :  { %v2115_v28 = vadd.f32 %v2114_v20, %v12465_v57  ;;  %v2116_v59 = vpop.f32.mrb[23].mxu0 }
 0x9fd   :  { %v2117_v9 = vadd.f32 %v2116_v59, %v12468_v14 }
 0x9fe   :  { %v2189_v0 = vadd.f32 %v2115_v28, %v12475_v23 }
 0x9ff   :  { %v2196_v12 = vadd.f32 %v2117_v9, %v12482_v3 }
 0xa00   :  { %v6991_v6 = vmul.f32 -1.442695, %v2189_v0 }
 0xa01   :  { %v6992_v13 = vmul.f32 -1.442695, %v2196_v12 }
 0xa02   :  { %11137 = vpow2.f32 %v6991_v6 }
 0xa03   :  { %11139 = vpow2.f32 %v6992_v13 }
 0xa0c   :  { %v11138_v21 = vpop.eup %11137 }
 0xa0d   :  { %v2193_v10 = vadd.f32 1.0, %v11138_v21  ;;  %v11140_v24 = vpop.eup %11139 }
 0xa0e   :  { %v2200_v42 = vadd.f32 1.0, %v11140_v24 }
 0xa0f   :  { %11141 = vrcp.f32 %v2193_v10 }
 0xa10   :  { %11143 = vrcp.f32 %v2200_v42 }
 0xa17   :  { %v2185_v47 = vpop.f32.mrb[20].mxu1 }
 0xa18   :  { %v2186_v51 = vadd.f32 %v2185_v47, %v12486_v32  ;;  %v8061_v17 = vpop.f32.mrb[21].mxu1 }
 0xa19   :  { %v11142_v50 = vpop.eup %11141 }
 0xa1a   :  { %v2203_v27 = vmul.f32 %v11142_v50, %v2186_v51  ;;  %v11144_v44 = vpop.eup %11143 }
 0xa1b   :  { %v2206_v58 = vsub.f32 1.0, %v11144_v44  ;;  %v2208_v59 = vmul.f32 0.0, %v11144_v44 }
 0xa1c   :  { %v2204_v35 = vadd.f32 %v2203_v27, %v12489_v18 }
 0xa1e   :  { %11145 = vtanh.f32 %v2204_v35 }
 0xa28   :  { %v11146_v20 = vpop.eup %11145 }
 0xa29   :  { %v2207_v28 = vmul.f32 %v11146_v20, %v2206_v58 }
 0xa2b   :  { %v12492_v53 = vadd.f32 %v2208_v59, %v2207_v28 }
 0xa2d   :  { %2210 = vst [vmem:[#allocation3] sm:$0x3] %v12492_v53  ;;  %2276 = vmatmul.mubr.f32.vlgmr.msra.gmra.mrb[24].mxu0 %v12492_v53  ;;  %8095 = vmatmul.mubr.f32.vlgmr.msra.gmra.mrb[22].mxu1 %v12492_v53  ;;  %v2381_v20 = vrot.slane %v12492_v53, 6 }
 0xa2e   :  { %9655 = vmatpush1.bf16.msra.mxu0 %v12317_v15  ;;  %9686 = vmatpush3.bf16.msra.mxu1 %v12376_v60 }
 0xa2f   :  { %9657 = vmatprep.subr.bf16.mxu0 %v12321_v8  ;;  %9687 = vmatprep.subr.bf16.mxu1 %v11581_v1 }
 0xa30   :  { %2453 = vmatprep.mubr.f32.mxu0 %v11582_v2  ;;  %8129 = vmatprep.mubr.msk.f32.mxu1 %vm11583_vm0, %v11582_v2 }
 0xa32   :  { %9659 = vmatpush1.bf16.msra.mxu0 %v12323_v34  ;;  %9689 = vmatpush3.bf16.msra.mxu1 %v12380_v22 }
 0xa33   :  { %9661 = vmatprep.subr.bf16.mxu0 %v12327_v48  ;;  %9690 = vmatprep.subr.bf16.mxu1 %v11581_v1 }
 0xa36   :  { %9663 = vmatpush1.bf16.msra.mxu0 %v12329_v55  ;;  %9692 = vmatpush3.bf16.msra.mxu1 %v12387_v16 }
 0xa37   :  { %9665 = vmatprep.subr.bf16.mxu0 %v12333_v36  ;;  %9693 = vmatprep.subr.bf16.mxu1 %v11581_v1 }
 0xa3a   :  { %9667 = vmatpush1.bf16.msra.mxu0 %v12335_v45  ;;  %9695 = vmatpush3.bf16.msra.mxu1 %v12394_v30 }
 0xa3b   :  { %9669 = vmatprep.subr.bf16.mxu0 %v12339_v63  ;;  %9696 = vmatprep.subr.bf16.mxu1 %v11581_v1 }
 0xa3e   :  { %9671 = vmatpush1.bf16.msra.mxu0 %v12341_v11  ;;  %9698 = vmatpush3.bf16.msra.mxu1 %v12400_v31 }
 0xa3f   :  { %9673 = vmatprep.subr.bf16.mxu0 %v12345_v56  ;;  %9699 = vmatprep.subr.bf16.mxu1 %v11581_v1 }
 0xa42   :  { %9675 = vmatpush1.bf16.msra.mxu0 %v12347_v61  ;;  %9701 = vmatpush3.bf16.msra.mxu1 %v12406_v52 }
 0xa43   :  { %9677 = vmatprep.subr.bf16.mxu0 %v12351_v25  ;;  %9702 = vmatprep.subr.bf16.mxu1 %v11581_v1 }
 0xa46   :  { %9679 = vmatpush1.bf16.msra.mxu0 %v12353_v29  ;;  %9704 = vmatpush3.bf16.msra.mxu1 %v12412_v26 }
 0xa47   :  { %9681 = vmatprep.subr.bf16.mxu0 %v12358_v39  ;;  %9705 = vmatprep.subr.bf16.mxu1 %v11581_v1 }
 0xa4a   :  { %9683 = vmatpush1.bf16.msra.mxu0 %v12360_v38  ;;  %9707 = vmatpush3.bf16.msra.mxu1 %v12418_v40 }
 0xa4b   :  { %9709 = vmatprep.subr.bf16.mxu0 %v12315_v4  ;;  %9740 = vmatprep.subr.bf16.mxu1 %v11581_v1 }
 0xb00   :  { %v2277_v49 = vpop.f32.mrb[24].mxu0  ;;  %v2348_v46 = vpop.f32.mrb[22].mxu1 }
 0xb01   :  { %v2278_v9 = vadd.f32 %v2277_v49, %v12465_v57  ;;  %v2279_v0 = vpop.f32.mrb[25].mxu0  ;;  %v8096_v6 = vpop.f32.mrb[23].mxu1  ;;  %v2349_v35 = vadd.f32 %v2348_v46, %v12486_v32 }
 0xb02   :  { %v2280_v12 = vadd.f32 %v2279_v0, %v12468_v14 }
 0xb03   :  { %v2353_v13 = vrot.slane %v2278_v9, 6  ;;  %v2373_v44 = vrot.slane %v2349_v35, 6 }
 0xb04   :  { %v2363_v21 = vrot.slane %v2280_v12, 6 }
 0xb05   :  { %v2355_v10 = vadd.f32 %v2353_v13, %v12475_v23 }
 0xb06   :  { %v2365_v24 = vadd.f32 %v2363_v21, %v12482_v3 }
 0xb07   :  { %v6993_v42 = vmul.f32 -1.442695, %v2355_v10 }
 0xb08   :  { %v6994_v47 = vmul.f32 -1.442695, %v2365_v24 }
 0xb09   :  { %11147 = vpow2.f32 %v6993_v42 }
 0xb0a   :  { %11149 = vpow2.f32 %v6994_v47 }
 0xb13   :  { %v11148_v51 = vpop.eup %11147 }
 0xb14   :  { %v11150_v17 = vpop.eup %11149  ;;  %v2359_v50 = vadd.f32 1.0, %v11148_v51 }
 0xb15   :  { %v2369_v27 = vadd.f32 1.0, %v11150_v17 }
 0xb16   :  { %11151 = vrcp.f32 %v2359_v50 }
 0xb17   :  { %11153 = vrcp.f32 %v2369_v27 }
 0xb20   :  { %v11152_v58 = vpop.eup %11151 }
 0xb21   :  { %v11154_v28 = vpop.eup %11153  ;;  %v2375_v59 = vmul.f32 %v11152_v58, %v2373_v44 }
 0xb22   :  { %v2383_v49 = vmul.f32 %v11154_v28, %v2381_v20  ;;  %v2378_v0 = vsub.f32 1.0, %v11154_v28 }
 0xb23   :  { %v2376_v9 = vadd.f32 %v2375_v59, %v12489_v18 }
 0xb25   :  { %11155 = vtanh.f32 %v2376_v9 }
 0xb2f   :  { %v11156_v6 = vpop.eup %11155 }
 0xb30   :  { %v2379_v12 = vmul.f32 %v11156_v6, %v2378_v0 }
 0xb32   :  { %v12539_v13 = vadd.f32 %v2383_v49, %v2379_v12 }
 0xb34   :  { %2385 = vst [vmem:[#allocation3] sm:$0xc] %v12539_v13  ;;  %v2387_v21 = vrot.slane %v12539_v13, 2  ;;  %v2558_v6 = vrot.slane %v12539_v13, 6 }
 0xb36   :  { %2454 = vmatmul.mubr.f32.vlgmr.msra.gmra.mrb[26].mxu0 %v2387_v21  ;;  %8130 = vmatmul.mubr.f32.vlgmr.msra.gmra.mrb[24].mxu1 %v2387_v21 }
 0xb37   :  { %9711 = vmatpush1.bf16.msra.mxu0 %v12317_v15  ;;  %9742 = vmatpush3.bf16.msra.mxu1 %v12376_v60 }
 0xb38   :  { %9713 = vmatprep.subr.bf16.mxu0 %v12321_v8  ;;  %9743 = vmatprep.subr.bf16.mxu1 %v11581_v1 }
 0xb39   :  { %2630 = vmatprep.mubr.f32.mxu0 %v11582_v2  ;;  %8164 = vmatprep.mubr.msk.f32.mxu1 %vm11583_vm0, %v11582_v2 }
 0xb3b   :  { %9715 = vmatpush1.bf16.msra.mxu0 %v12323_v34  ;;  %9745 = vmatpush3.bf16.msra.mxu1 %v12380_v22 }
 0xb3c   :  { %9717 = vmatprep.subr.bf16.mxu0 %v12327_v48  ;;  %9746 = vmatprep.subr.bf16.mxu1 %v11581_v1 }
 0xb3f   :  { %9719 = vmatpush1.bf16.msra.mxu0 %v12329_v55  ;;  %9748 = vmatpush3.bf16.msra.mxu1 %v12387_v16 }
 0xb40   :  { %9721 = vmatprep.subr.bf16.mxu0 %v12333_v36  ;;  %9749 = vmatprep.subr.bf16.mxu1 %v11581_v1 }
 0xb43   :  { %9723 = vmatpush1.bf16.msra.mxu0 %v12335_v45  ;;  %9751 = vmatpush3.bf16.msra.mxu1 %v12394_v30 }
 0xb44   :  { %9725 = vmatprep.subr.bf16.mxu0 %v12339_v63  ;;  %9752 = vmatprep.subr.bf16.mxu1 %v11581_v1 }
 0xb47   :  { %9727 = vmatpush1.bf16.msra.mxu0 %v12341_v11  ;;  %9754 = vmatpush3.bf16.msra.mxu1 %v12400_v31 }
 0xb48   :  { %9729 = vmatprep.subr.bf16.mxu0 %v12345_v56  ;;  %9755 = vmatprep.subr.bf16.mxu1 %v11581_v1 }
 0xb4b   :  { %9731 = vmatpush1.bf16.msra.mxu0 %v12347_v61  ;;  %9757 = vmatpush3.bf16.msra.mxu1 %v12406_v52 }
 0xb4c   :  { %9733 = vmatprep.subr.bf16.mxu0 %v12351_v25  ;;  %9758 = vmatprep.subr.bf16.mxu1 %v11581_v1 }
 0xb4f   :  { %9735 = vmatpush1.bf16.msra.mxu0 %v12353_v29  ;;  %9760 = vmatpush3.bf16.msra.mxu1 %v12412_v26 }
 0xb50   :  { %9737 = vmatprep.subr.bf16.mxu0 %v12358_v39  ;;  %9761 = vmatprep.subr.bf16.mxu1 %v11581_v1 }
 0xb53   :  { %9739 = vmatpush1.bf16.msra.mxu0 %v12360_v38  ;;  %9763 = vmatpush3.bf16.msra.mxu1 %v12418_v40 }
 0xb54   :  { %9765 = vmatprep.subr.bf16.mxu0 %v12315_v4  ;;  %9796 = vmatprep.subr.bf16.mxu1 %v11581_v1 }
 0xc09   :  { %v2455_v53 = vpop.f32.mrb[26].mxu0  ;;  %v2526_v46 = vpop.f32.mrb[24].mxu1 }
 0xc0a   :  { %v2456_v10 = vadd.f32 %v2455_v53, %v12465_v57  ;;  %v2457_v24 = vpop.f32.mrb[27].mxu0  ;;  %v8131_v42 = vpop.f32.mrb[25].mxu1  ;;  %v2527_v49 = vadd.f32 %v2526_v46, %v12486_v32 }
 0xc0b   :  { %v2458_v47 = vadd.f32 %v2457_v24, %v12468_v14 }
 0xc0c   :  { %v2531_v51 = vrot.slane %v2456_v10, 4  ;;  %v2551_v9 = vrot.slane %v2527_v49, 4 }
 0xc0d   :  { %v2541_v17 = vrot.slane %v2458_v47, 4 }
 0xc0e   :  { %v2533_v50 = vadd.f32 %v2531_v51, %v12475_v23 }
 0xc0f   :  { %v2543_v27 = vadd.f32 %v2541_v17, %v12482_v3 }
 0xc10   :  { %v6995_v35 = vmul.f32 -1.442695, %v2533_v50 }
 0xc11   :  { %v6996_v44 = vmul.f32 -1.442695, %v2543_v27 }
 0xc12   :  { %11157 = vpow2.f32 %v6995_v35 }
 0xc13   :  { %11159 = vpow2.f32 %v6996_v44 }
 0xc1c   :  { %v11158_v58 = vpop.eup %11157 }
 0xc1d   :  { %v11160_v20 = vpop.eup %11159  ;;  %v2537_v28 = vadd.f32 1.0, %v11158_v58 }
 0xc1e   :  { %v2547_v59 = vadd.f32 1.0, %v11160_v20 }
 0xc1f   :  { %11161 = vrcp.f32 %v2537_v28 }
 0xc20   :  { %11163 = vrcp.f32 %v2547_v59 }
 0xc29   :  { %v11162_v0 = vpop.eup %11161 }
 0xc2a   :  { %v11164_v12 = vpop.eup %11163  ;;  %v2553_v21 = vmul.f32 %v11162_v0, %v2551_v9 }
 0xc2b   :  { %v2560_v53 = vmul.f32 %v11164_v12, %v2558_v6  ;;  %v2556_v24 = vsub.f32 1.0, %v11164_v12 }
 0xc2c   :  { %v2554_v10 = vadd.f32 %v2553_v21, %v12489_v18 }
 0xc2e   :  { %11165 = vtanh.f32 %v2554_v10 }
 0xc38   :  { %v11166_v42 = vpop.eup %11165 }
 0xc39   :  { %v2557_v47 = vmul.f32 %v11166_v42, %v2556_v24 }
 0xc3b   :  { %v12585_v51 = vadd.f32 %v2560_v53, %v2557_v47 }
 0xc3d   :  { %2562 = vst [vmem:[#allocation3] sm:$0x30] %v12585_v51  ;;  %v2564_v17 = vrot.slane %v12585_v51, 4  ;;  %v2735_v42 = vrot.slane %v12585_v51, 6  ;;  %v12671_v51 = vand.u32 127, %v185_v33 }
 0xc3f   :  { %2631 = vmatmul.mubr.f32.vlgmr.msra.gmra.mrb[28].mxu0 %v2564_v17  ;;  %8165 = vmatmul.mubr.f32.vlgmr.msra.gmra.mrb[26].mxu1 %v2564_v17  ;;  %vm187_vm1 = vcmp.lt.s32.totalorder %v12671_v51, 64  ;;  %v6874_v51 = vld [vmem:[%s13846_s21 + $0x48] sm:$0xff] }
 0xc40   :  { %9767 = vmatpush1.bf16.msra.mxu0 %v12317_v15  ;;  %9798 = vmatpush3.bf16.msra.mxu1 %v12376_v60 }
 0xc41   :  { %9769 = vmatprep.subr.bf16.mxu0 %v12321_v8  ;;  %9799 = vmatprep.subr.bf16.mxu1 %v11581_v1 }
 0xc42   :  { %2807 = vmatprep.mubr.f32.mxu0 %v11582_v2  ;;  %8199 = vmatprep.mubr.msk.f32.mxu1 %vm11583_vm0, %v11582_v2 }
 0xc44   :  { %9771 = vmatpush1.bf16.msra.mxu0 %v12323_v34  ;;  %9801 = vmatpush3.bf16.msra.mxu1 %v12380_v22 }
 0xc45   :  { %9773 = vmatprep.subr.bf16.mxu0 %v12327_v48  ;;  %9802 = vmatprep.subr.bf16.mxu1 %v11581_v1 }
 0xc48   :  { %9775 = vmatpush1.bf16.msra.mxu0 %v12329_v55  ;;  %9804 = vmatpush3.bf16.msra.mxu1 %v12387_v16 }
 0xc49   :  { %9777 = vmatprep.subr.bf16.mxu0 %v12333_v36  ;;  %9805 = vmatprep.subr.bf16.mxu1 %v11581_v1 }
 0xc4c   :  { %9779 = vmatpush1.bf16.msra.mxu0 %v12335_v45  ;;  %9807 = vmatpush3.bf16.msra.mxu1 %v12394_v30 }
 0xc4d   :  { %9781 = vmatprep.subr.bf16.mxu0 %v12339_v63  ;;  %9808 = vmatprep.subr.bf16.mxu1 %v11581_v1 }
 0xc50   :  { %9783 = vmatpush1.bf16.msra.mxu0 %v12341_v11  ;;  %9810 = vmatpush3.bf16.msra.mxu1 %v12400_v31 }
 0xc51   :  { %9785 = vmatprep.subr.bf16.mxu0 %v12345_v56  ;;  %9811 = vmatprep.subr.bf16.mxu1 %v11581_v1 }
 0xc54   :  { %9787 = vmatpush1.bf16.msra.mxu0 %v12347_v61  ;;  %9813 = vmatpush3.bf16.msra.mxu1 %v12406_v52 }
 0xc55   :  { %9789 = vmatprep.subr.bf16.mxu0 %v12351_v25  ;;  %9814 = vmatprep.subr.bf16.mxu1 %v11581_v1 }
 0xc58   :  { %9791 = vmatpush1.bf16.msra.mxu0 %v12353_v29  ;;  %9816 = vmatpush3.bf16.msra.mxu1 %v12412_v26 }
 0xc59   :  { %9793 = vmatprep.subr.bf16.mxu0 %v12358_v39  ;;  %9817 = vmatprep.subr.bf16.mxu1 %v11581_v1 }
 0xc5c   :  { %9795 = vmatpush1.bf16.msra.mxu0 %v12360_v38  ;;  %9819 = vmatpush3.bf16.msra.mxu1 %v12418_v40 }
 0xc5d   :  { %9821 = vmatprep.subr.bf16.mxu0 %v12315_v4  ;;  %9852 = vmatprep.subr.bf16.mxu1 %v11581_v1 }
 0xd12   :  { %v2632_v13 = vpop.f32.mrb[28].mxu0  ;;  %v2703_v46 = vpop.f32.mrb[26].mxu1 }
 0xd13   :  { %v2633_v50 = vadd.f32 %v2632_v13, %v12465_v57  ;;  %v2634_v27 = vpop.f32.mrb[29].mxu0  ;;  %v8166_v35 = vpop.f32.mrb[27].mxu1  ;;  %v2704_v53 = vadd.f32 %v2703_v46, %v12486_v32 }
 0xd14   :  { %v2635_v44 = vadd.f32 %v2634_v27, %v12468_v14 }
 0xd15   :  { %v2708_v58 = vrot.slane %v2633_v50, 2  ;;  %v2728_v10 = vrot.slane %v2704_v53, 2 }
 0xd16   :  { %v2718_v20 = vrot.slane %v2635_v44, 2 }
 0xd17   :  { %v2710_v28 = vadd.f32 %v2708_v58, %v12475_v23 }
 0xd18   :  { %v2720_v59 = vadd.f32 %v2718_v20, %v12482_v3 }
 0xd19   :  { %v6997_v49 = vmul.f32 -1.442695, %v2710_v28 }
 0xd1a   :  { %v6998_v9 = vmul.f32 -1.442695, %v2720_v59 }
 0xd1b   :  { %11167 = vpow2.f32 %v6997_v49 }
 0xd1c   :  { %11169 = vpow2.f32 %v6998_v9 }
 0xd25   :  { %v11168_v0 = vpop.eup %11167 }
 0xd26   :  { %v11170_v6 = vpop.eup %11169  ;;  %v2714_v12 = vadd.f32 1.0, %v11168_v0  ;;  %v12682_v0 = vadd.f32 %v12455_v54, %v12458_v62 }
 0xd27   :  { %v2724_v21 = vadd.f32 1.0, %v11170_v6 }
 0xd28   :  { %11171 = vrcp.f32 %v2714_v12 }
 0xd29   :  { %11173 = vrcp.f32 %v2724_v21 }
 0xd32   :  { %v11172_v24 = vpop.eup %11171 }
 0xd33   :  { %v11174_v47 = vpop.eup %11173  ;;  %v2730_v23 = vmul.f32 %v11172_v24, %v2728_v10  ;;  %v12689_v10 = vadd.f32 %v12462_v5, %v12471_v19 }
 0xd34   :  { %v2737_v17 = vmul.f32 %v11174_v47, %v2735_v42  ;;  %v2733_v13 = vsub.f32 1.0, %v11174_v47 }
 0xd35   :  { %v2731_v3 = vadd.f32 %v2730_v23, %v12489_v18 }
 0xd37   :  { %11175 = vtanh.f32 %v2731_v3 }
 0xd41   :  { %v11176_v50 = vpop.eup %11175 }
 0xd42   :  { %v2734_v27 = vmul.f32 %v11176_v50, %v2733_v13 }
 0xd44   :  { %v2738_v35 = vadd.f32 %v2737_v17, %v2734_v27 }
 0xd46   :  { %2739 = vst [vmem:[#allocation3] sm:$0xc0] %v2738_v35  ;;  %v12631_v44 = vrot.slane %v2738_v35, 6 }
 0xd48   :  { %2808 = vmatmul.mubr.f32.vlgmr.msra.gmra.mrb[30].mxu0 %v12631_v44  ;;  %8200 = vmatmul.mubr.f32.vlgmr.msra.gmra.mrb[28].mxu1 %v12631_v44 }
 0xd49   :  { %9823 = vmatpush1.bf16.msra.mxu0 %v12317_v15  ;;  %9854 = vmatpush3.bf16.msra.mxu1 %v12376_v60 }
 0xd4a   :  { %9825 = vmatprep.subr.bf16.mxu0 %v12321_v8  ;;  %9855 = vmatprep.subr.bf16.mxu1 %v11581_v1 }
 0xd4b   :  { %2970 = vmatprep.mubr.f32.mxu0 %v11582_v2  ;;  %8234 = vmatprep.mubr.msk.f32.mxu1 %vm11583_vm0, %v11582_v2 }
 0xd4d   :  { %v3435_v18 = vld [vmem:[#allocation3] sm:$0xff]  ;;  %9827 = vmatpush1.bf16.msra.mxu0 %v12323_v34  ;;  %9857 = vmatpush3.bf16.msra.mxu1 %v12380_v22 }
 0xd4e   :  { %3439 = vadd.xlane.f32.xlu0 %v3435_v18  ;;  %9829 = vmatprep.subr.bf16.mxu0 %v12327_v48 }
 0xd4f   :  { %9858 = vmatprep.subr.bf16.mxu1 %v11581_v1 }
 0xd51   :  { %9831 = vmatpush1.bf16.msra.mxu0 %v12329_v55  ;;  %9860 = vmatpush3.bf16.msra.mxu1 %v12387_v16 }
 0xd52   :  { %9833 = vmatprep.subr.bf16.mxu0 %v12333_v36  ;;  %9861 = vmatprep.subr.bf16.mxu1 %v11581_v1 }
 0xd55   :  { %9835 = vmatpush1.bf16.msra.mxu0 %v12335_v45  ;;  %9863 = vmatpush3.bf16.msra.mxu1 %v12394_v30 }
 0xd56   :  { %9837 = vmatprep.subr.bf16.mxu0 %v12339_v63  ;;  %9864 = vmatprep.subr.bf16.mxu1 %v11581_v1 }
 0xd59   :  { %9839 = vmatpush1.bf16.msra.mxu0 %v12341_v11  ;;  %9866 = vmatpush3.bf16.msra.mxu1 %v12400_v31 }
 0xd5a   :  { %9841 = vmatprep.subr.bf16.mxu0 %v12345_v56  ;;  %9867 = vmatprep.subr.bf16.mxu1 %v11581_v1 }
 0xd5d   :  { %9843 = vmatpush1.bf16.msra.mxu0 %v12347_v61  ;;  %9869 = vmatpush3.bf16.msra.mxu1 %v12406_v52 }
 0xd5e   :  { %9845 = vmatprep.subr.bf16.mxu0 %v12351_v25  ;;  %9870 = vmatprep.subr.bf16.mxu1 %v11581_v1 }
 0xd61   :  { %9847 = vmatpush1.bf16.msra.mxu0 %v12353_v29  ;;  %9872 = vmatpush3.bf16.msra.mxu1 %v12412_v26 }
 0xd62   :  { %9849 = vmatprep.subr.bf16.mxu0 %v12358_v39  ;;  %9873 = vmatprep.subr.bf16.mxu1 %v11581_v1 }
 0xd65   :  { %9851 = vmatpush1.bf16.msra.mxu0 %v12360_v38  ;;  %9875 = vmatpush3.bf16.msra.mxu1 %v12418_v40 }
 0xd66   :  { %9877 = vmatprep.subr.bf16.mxu0 %v12315_v4  ;;  %9908 = vmatprep.subr.bf16.mxu1 %v11581_v1 }
 0xddb   :  { %v3440_v46 = vpop.xlane.xlu0 %3439 }
 0xddc   :  { %v3443_v58 = vmul.f32 0.015625, %v3440_v46 }
 0xdde   :  { %v3445_v20 = vsub.f32 %v3435_v18, %v3443_v58 }
 0xde0   :  { %v12676_v28 = vsel %vm187_vm1, %v3445_v20, 0.0 }
 0xde1   :  { %v3451_v59 = vmul.f32 %v12676_v28, %v12676_v28 }
 0xde3   :  { %3453 = vadd.xlane.f32.xlu1 %v3451_v59 }
 0xe1b   :  { %v2809_v49 = vpop.f32.mrb[30].mxu0  ;;  %v2880_v9 = vpop.f32.mrb[28].mxu1 }
 0xe1c   :  { %v2810_v33 = vadd.f32 %v2809_v49, %v12465_v57  ;;  %v2811_v6 = vpop.f32.mrb[31].mxu0  ;;  %v8201_v12 = vpop.f32.mrb[29].mxu1  ;;  %v2881_v3 = vadd.f32 %v2880_v9, %v12486_v32 }
 0xe1d   :  { %v2812_v21 = vadd.f32 %v2811_v6, %v12468_v14 }
 0xe1e   :  { %v2884_v53 = vadd.f32 %v2810_v33, %v12682_v0 }
 0xe1f   :  { %v2891_v42 = vadd.f32 %v2812_v21, %v12689_v10 }
 0xe20   :  { %v6999_v24 = vmul.f32 -1.442695, %v2884_v53 }
 0xe21   :  { %v7000_v47 = vmul.f32 -1.442695, %v2891_v42 }
 0xe22   :  { %11177 = vpow2.f32 %v6999_v24 }
 0xe23   :  { %11179 = vpow2.f32 %v7000_v47 }
 0xe2c   :  { %v11178_v54 = vpop.eup %11177 }
 0xe2d   :  { %v2888_v62 = vadd.f32 1.0, %v11178_v54  ;;  %v11180_v23 = vpop.eup %11179 }
 0xe2e   :  { %v2895_v17 = vadd.f32 1.0, %v11180_v23 }
 0xe2f   :  { %11181 = vrcp.f32 %v2888_v62 }
 0xe30   :  { %11183 = vrcp.f32 %v2895_v17 }
 0xe39   :  { %v11182_v13 = vpop.eup %11181 }
 0xe3a   :  { %v2898_v50 = vmul.f32 %v11182_v13, %v2881_v3  ;;  %v11184_v5 = vpop.eup %11183 }
 0xe3b   :  { %v2901_v19 = vsub.f32 1.0, %v11184_v5  ;;  %v2903_v46 = vmul.f32 %v11184_v5, %v12631_v44 }
 0xe3c   :  { %v2899_v27 = vadd.f32 %v2898_v50, %v12460_v43 }
 0xe3e   :  { %11185 = vtanh.f32 %v2899_v27 }
 0xe48   :  { %v11186_v35 = vpop.eup %11185 }
 0xe49   :  { %v2902_v18 = vmul.f32 %v11186_v35, %v2901_v19 }
 0xe4b   :  { %v12695_v58 = vadd.f32 %v2903_v46, %v2902_v18 }
 0xe4d   :  { %2905 = vst [vmem:[#allocation3 + $0x8] sm:$0x3] %v12695_v58  ;;  %2971 = vmatmul.mubr.f32.vlgmr.msra.gmra.mrb[32].mxu0 %v12695_v58  ;;  %8235 = vmatmul.mubr.f32.vlgmr.msra.gmra.mrb[30].mxu1 %v12695_v58  ;;  %v3076_v13 = vrot.slane %v12695_v58, 6 }
 0xe4e   :  { %9879 = vmatpush1.bf16.msra.mxu0 %v12317_v15  ;;  %9910 = vmatpush3.bf16.msra.mxu1 %v12376_v60 }
 0xe4f   :  { %9881 = vmatprep.subr.bf16.mxu0 %v12321_v8  ;;  %9911 = vmatprep.subr.bf16.mxu1 %v11581_v1 }
 0xe50   :  { %3148 = vmatprep.mubr.f32.mxu0 %v11582_v2  ;;  %8269 = vmatprep.mubr.msk.f32.mxu1 %vm11583_vm0, %v11582_v2 }
 0xe52   :  { %9883 = vmatpush1.bf16.msra.mxu0 %v12323_v34  ;;  %9913 = vmatpush3.bf16.msra.mxu1 %v12380_v22 }
 0xe53   :  { %9885 = vmatprep.subr.bf16.mxu0 %v12327_v48  ;;  %9914 = vmatprep.subr.bf16.mxu1 %v11581_v1 }
 0xe56   :  { %9887 = vmatpush1.bf16.msra.mxu0 %v12329_v55  ;;  %9916 = vmatpush3.bf16.msra.mxu1 %v12387_v16 }
 0xe57   :  { %9889 = vmatprep.subr.bf16.mxu0 %v12333_v36  ;;  %9917 = vmatprep.subr.bf16.mxu1 %v11581_v1 }
 0xe5a   :  { %9891 = vmatpush1.bf16.msra.mxu0 %v12335_v45  ;;  %9919 = vmatpush3.bf16.msra.mxu1 %v12394_v30 }
 0xe5b   :  { %9893 = vmatprep.subr.bf16.mxu0 %v12339_v63  ;;  %9920 = vmatprep.subr.bf16.mxu1 %v11581_v1 }
 0xe5e   :  { %9895 = vmatpush1.bf16.msra.mxu0 %v12341_v11  ;;  %9922 = vmatpush3.bf16.msra.mxu1 %v12400_v31 }
 0xe5f   :  { %9897 = vmatprep.subr.bf16.mxu0 %v12345_v56  ;;  %9923 = vmatprep.subr.bf16.mxu1 %v11581_v1 }
 0xe62   :  { %9899 = vmatpush1.bf16.msra.mxu0 %v12347_v61  ;;  %9925 = vmatpush3.bf16.msra.mxu1 %v12406_v52 }
 0xe63   :  { %9901 = vmatprep.subr.bf16.mxu0 %v12351_v25  ;;  %9926 = vmatprep.subr.bf16.mxu1 %v11581_v1 }
 0xe66   :  { %9903 = vmatpush1.bf16.msra.mxu0 %v12353_v29  ;;  %9928 = vmatpush3.bf16.msra.mxu1 %v12412_v26 }
 0xe67   :  { %9905 = vmatprep.subr.bf16.mxu0 %v12358_v39  ;;  %9929 = vmatprep.subr.bf16.mxu1 %v11581_v1 }
 0xe6a   :  { %9907 = vmatpush1.bf16.msra.mxu0 %v12360_v38  ;;  %9931 = vmatpush3.bf16.msra.mxu1 %v12418_v40 }
 0xe6b   :  { %9933 = vmatprep.subr.bf16.mxu0 %v12315_v4  ;;  %9964 = vmatprep.subr.bf16.mxu1 %v11581_v1 }
 0xf20   :  { %v2972_v44 = vpop.f32.mrb[32].mxu0  ;;  %v3043_v20 = vpop.f32.mrb[30].mxu1 }
 0xf21   :  { %v2973_v59 = vadd.f32 %v2972_v44, %v12465_v57  ;;  %v2974_v49 = vpop.f32.mrb[33].mxu0  ;;  %v8236_v9 = vpop.f32.mrb[31].mxu1  ;;  %v3044_v23 = vadd.f32 %v3043_v20, %v12486_v32 }
 0xf22   :  { %v2975_v33 = vadd.f32 %v2974_v49, %v12468_v14 }
 0xf23   :  { %v3048_v6 = vrot.slane %v2973_v59, 6  ;;  %v3068_v17 = vrot.slane %v3044_v23, 6 }
 0xf24   :  { %v3058_v12 = vrot.slane %v2975_v33, 6 }
 0xf25   :  { %v3050_v21 = vadd.f32 %v3048_v6, %v12682_v0 }
 0xf26   :  { %v3060_v53 = vadd.f32 %v3058_v12, %v12689_v10 }
 0xf27   :  { %v7001_v24 = vmul.f32 -1.442695, %v3050_v21 }
 0xf28   :  { %v7002_v42 = vmul.f32 -1.442695, %v3060_v53 }
 0xf29   :  { %11187 = vpow2.f32 %v7001_v24 }
 0xf2a   :  { %11189 = vpow2.f32 %v7002_v42  ;;  %v12790_v42 = vld [vmem:[%s13842_s17] ss:$0 sm:$0xff] }
 0xf33   :  { %v11188_v4 = vpop.eup %11187 }
 0xf34   :  { %v11190_v47 = vpop.eup %11189  ;;  %v3054_v54 = vadd.f32 1.0, %v11188_v4 }
 0xf35   :  { %v3064_v62 = vadd.f32 1.0, %v11190_v47 }
 0xf36   :  { %11191 = vrcp.f32 %v3054_v54  ;;  %v3481_v54 = vld [vmem:[#allocation12] sm:$0xff] }
 0xf37   :  { %11193 = vrcp.f32 %v3064_v62  ;;  %v3484_v62 = vld [vmem:[#allocation12 + $0x18] sm:$0xff] }
 0xf40   :  { %v11192_v3 = vpop.eup %11191 }
 0xf41   :  { %v11194_v50 = vpop.eup %11193  ;;  %v3070_v27 = vmul.f32 %v11192_v3, %v3068_v17  ;;  %v3488_v17 = vld [vmem:[#allocation12 + $0x38] sm:$0xff]  ;;  %v3491_v3 = vld [vmem:[#allocation12 + $0x50] sm:$0xff] }
 0xf42   :  { %v3078_v5 = vmul.f32 %v11194_v50, %v3076_v13  ;;  %v3073_v35 = vsub.f32 1.0, %v11194_v50  ;;  %v9990_v50 = vpack.c.bf16 %v3484_v62, %v3481_v54 }
 0xf43   :  { %v3071_v19 = vadd.f32 %v3070_v27, %v12460_v43 }
 0xf45   :  { %11195 = vtanh.f32 %v3071_v19  ;;  %v3487_v19 = vld [vmem:[#allocation12 + $0x30] sm:$0xff] }
 0xf4f   :  { %v11196_v18 = vpop.eup %11195 }
 0xf50   :  { %v3074_v46 = vmul.f32 %v11196_v18, %v3073_v35  ;;  %v3490_v35 = vld [vmem:[#allocation12 + $0x48] sm:$0xff] }
 0xf52   :  { %v12742_v44 = vadd.f32 %v3078_v5, %v3074_v46  ;;  %v9992_v5 = vpack.c.bf16 %v3491_v3, %v3488_v17  ;;  %v3494_v46 = vld [vmem:[#allocation12 + $0x68] sm:$0xff] }
 0xf54   :  { %3080 = vst [vmem:[#allocation3 + $0x8] sm:$0xc] %v12742_v44  ;;  %v3082_v59 = vrot.slane %v12742_v44, 2  ;;  %v3253_v49 = vrot.slane %v12742_v44, 6  ;;  %v3497_v44 = vld [vmem:[#allocation12 + $0x80] sm:$0xff] }
 0xf56   :  { %3149 = vmatmul.mubr.f32.vlgmr.msra.gmra.mrb[34].mxu0 %v3082_v59  ;;  %8270 = vmatmul.mubr.f32.vlgmr.msra.gmra.mrb[32].mxu1 %v3082_v59  ;;  %v9994_v59 = vpack.c.bf16 %v3490_v35, %v3487_v19 }
 0xf57   :  { %9935 = vmatpush1.bf16.msra.mxu0 %v12317_v15  ;;  %9966 = vmatpush3.bf16.msra.mxu1 %v12376_v60  ;;  %v3482_v15 = vld [vmem:[#allocation12 + $0x8] sm:$0xff] }
 0xf58   :  { %9937 = vmatprep.subr.bf16.mxu0 %v12321_v8  ;;  %9967 = vmatprep.subr.bf16.mxu1 %v11581_v1  ;;  %v3485_v8 = vld [vmem:[#allocation12 + $0x20] sm:$0xff] }
 0xf59   :  { %3325 = vmatprep.mubr.f32.mxu0 %v11582_v2  ;;  %8304 = vmatprep.mubr.msk.f32.mxu1 %vm11583_vm0, %v11582_v2 }
 0xf5b   :  { %9939 = vmatpush1.bf16.msra.mxu0 %v12323_v34  ;;  %9969 = vmatpush3.bf16.msra.mxu1 %v12380_v22  ;;  %v9988_v34 = vpack.c.bf16 %v3485_v8, %v3482_v15  ;;  %v9996_v15 = vpack.c.bf16 %v3497_v44, %v3494_v46  ;;  %v3493_v8 = vld [vmem:[#allocation12 + $0x60] sm:$0xff] }
 0xf5c   :  { %9941 = vmatprep.subr.bf16.mxu0 %v12327_v48  ;;  %9970 = vmatprep.subr.bf16.mxu1 %v11581_v1 }
 0xf5f   :  { %9943 = vmatpush1.bf16.msra.mxu0 %v12329_v55  ;;  %9972 = vmatpush3.bf16.msra.mxu1 %v12387_v16 }
 0xf60   :  { %9945 = vmatprep.subr.bf16.mxu0 %v12333_v36  ;;  %9973 = vmatprep.subr.bf16.mxu1 %v11581_v1 }
 0xf63   :  { %9947 = vmatpush1.bf16.msra.mxu0 %v12335_v45  ;;  %9975 = vmatpush3.bf16.msra.mxu1 %v12394_v30  ;;  %v3454_v30 = vpop.xlane.xlu1 %3453 }
 0xf64   :  { %9949 = vmatprep.subr.bf16.mxu0 %v12339_v63  ;;  %9976 = vmatprep.subr.bf16.mxu1 %v11581_v1 }
 0xf67   :  { %9951 = vmatpush1.bf16.msra.mxu0 %v12341_v11  ;;  %9978 = vmatpush3.bf16.msra.mxu1 %v12400_v31 }
 0xf68   :  { %9953 = vmatprep.subr.bf16.mxu0 %v12345_v56  ;;  %9979 = vmatprep.subr.bf16.mxu1 %v11581_v1 }
 0xf6b   :  { %9955 = vmatpush1.bf16.msra.mxu0 %v12347_v61  ;;  %9981 = vmatpush3.bf16.msra.mxu1 %v12406_v52  ;;  %v3457_v52 = vmul.f32 0.015625, %v3454_v30 }
 0xf6c   :  { %9957 = vmatprep.subr.bf16.mxu0 %v12351_v25  ;;  %9982 = vmatprep.subr.bf16.mxu1 %v11581_v1 }
 0xf6f   :  { %9959 = vmatpush1.bf16.msra.mxu0 %v12353_v29  ;;  %9984 = vmatpush3.bf16.msra.mxu1 %v12412_v26 }
 0xf70   :  { %9961 = vmatprep.subr.bf16.mxu0 %v12358_v39  ;;  %9985 = vmatprep.subr.bf16.mxu1 %v11581_v1 }
 0xf73   :  { %9963 = vmatpush1.bf16.msra.mxu0 %v12360_v38  ;;  %9987 = vmatpush3.bf16.msra.mxu1 %v12418_v40  ;;  %v3459_v40 = vadd.f32 1e-05, %v3457_v52  ;;  %v3514_v52 = vld [vmem:[#allocation12 + $0x108] sm:$0xff] }
 0xf74   :  { %9989 = vmatprep.subr.bf16.mxu0 %v9988_v34  ;;  %v3496_v34 = vld [vmem:[#allocation12 + $0x78] sm:$0xff] }
0x1029   :  { %v3150_v48 = vpop.f32.mrb[34].mxu0  ;;  %v3221_v55 = vpop.f32.mrb[32].mxu1 }
0x102a   :  { %v3151_v36 = vadd.f32 %v3150_v48, %v12465_v57  ;;  %v3152_v45 = vpop.f32.mrb[35].mxu0  ;;  %v8271_v63 = vpop.f32.mrb[33].mxu1  ;;  %v3222_v26 = vadd.f32 %v3221_v55, %v12486_v32  ;;  %v3500_v48 = vld [vmem:[#allocation12 + $0x98] sm:$0xff]  ;;  %v3503_v55 = vld [vmem:[#allocation12 + $0xb0] sm:$0xff] }
0x102b   :  { %v3153_v11 = vadd.f32 %v3152_v45, %v12468_v14  ;;  %v10000_v45 = vpack.c.bf16 %v3503_v55, %v3500_v48  ;;  %v3499_v63 = vld [vmem:[#allocation12 + $0x90] sm:$0xff] }
0x102c   :  { %v3226_v56 = vrot.slane %v3151_v36, 4  ;;  %v3246_v58 = vrot.slane %v3222_v26, 4  ;;  %v9998_v36 = vpack.c.bf16 %v3496_v34, %v3493_v8  ;;  %v3518_v26 = vld [vmem:[#allocation12 + $0x128] sm:$0xff] }
0x102d   :  { %v3236_v61 = vrot.slane %v3153_v11, 4  ;;  %v3502_v11 = vld [vmem:[#allocation12 + $0xa8] sm:$0xff] }
0x102e   :  { %v3228_v25 = vadd.f32 %v3226_v56, %v12682_v0  ;;  %v3506_v56 = vld [vmem:[#allocation12 + $0xc8] sm:$0xff] }
0x102f   :  { %v3238_v29 = vadd.f32 %v3236_v61, %v12689_v10  ;;  %v3509_v61 = vld [vmem:[#allocation12 + $0xe0] sm:$0xff] }
0x1030   :  { %v7003_v39 = vmul.f32 -1.442695, %v3228_v25  ;;  %v10002_v25 = vpack.c.bf16 %v3502_v11, %v3499_v63 }
0x1031   :  { %v7004_v38 = vmul.f32 -1.442695, %v3238_v29  ;;  %v10004_v29 = vpack.c.bf16 %v3509_v61, %v3506_v56 }
0x1032   :  { %11197 = vpow2.f32 %v7003_v39  ;;  %v3505_v39 = vld [vmem:[#allocation12 + $0xc0] sm:$0xff] }
0x1033   :  { %11199 = vpow2.f32 %v7004_v38  ;;  %v3508_v38 = vld [vmem:[#allocation12 + $0xd8] sm:$0xff] }
0x103c   :  { %v11198_v60 = vpop.eup %11197 }
0x103d   :  { %v11200_v22 = vpop.eup %11199  ;;  %v3232_v16 = vadd.f32 1.0, %v11198_v60  ;;  %v3512_v60 = vld [vmem:[#allocation12 + $0xf8] sm:$0xff] }
0x103e   :  { %v3242_v31 = vadd.f32 1.0, %v11200_v22  ;;  %v3515_v22 = vld [vmem:[#allocation12 + $0x110] sm:$0xff] }
0x103f   :  { %11201 = vrcp.f32 %v3232_v16  ;;  %v10006_v16 = vpack.c.bf16 %v3508_v38, %v3505_v39  ;;  %v10008_v30 = vpack.c.bf16 %v3515_v22, %v3512_v60  ;;  %v3492_v38 = vld [vmem:[#allocation12 + $0x58] sm:$0xff]  ;;  %v3699_v60 = vld [vmem:[#allocation13 + $0x8] sm:$0xff]  ;;  %v3702_v22 = vld [vmem:[#allocation13 + $0x20] sm:$0xff] }
0x1040   :  { %11203 = vrcp.f32 %v3242_v31  ;;  %v3511_v31 = vld [vmem:[#allocation12 + $0xf0] sm:$0xff] }
0x1041   :  { %11205 = vrsqrt.f32 %v3459_v40  ;;  %v3521_v40 = vld [vmem:[#allocation12 + $0x140] sm:$0xff] }
0x1049   :  { %v11202_v20 = vpop.eup %11201 }
0x104a   :  { %v11204_v9 = vpop.eup %11203  ;;  %v3248_v33 = vmul.f32 %v11202_v20, %v3246_v58  ;;  %v10010_v58 = vpack.c.bf16 %v3514_v52, %v3511_v31  ;;  %v10012_v20 = vpack.c.bf16 %v3521_v40, %v3518_v26  ;;  %v3698_v31 = vld [vmem:[#allocation13] sm:$0xff]  ;;  %v3495_v52 = vld [vmem:[#allocation12 + $0x70] sm:$0xff]  ;;  %v3498_v40 = vld [vmem:[#allocation12 + $0x88] sm:$0xff] }
0x104b   :  { %v3255_v6 = vmul.f32 %v11204_v9, %v3253_v49  ;;  %v11206_v21 = vpop.eup %11205  ;;  %v3251_v24 = vsub.f32 1.0, %v11204_v9  ;;  %v3517_v49 = vld [vmem:[#allocation12 + $0x120] sm:$0xff]  ;;  %v3520_v9 = vld [vmem:[#allocation12 + $0x138] sm:$0xff] }
0x104c   :  { %v3249_v12 = vadd.f32 %v3248_v33, %v12460_v43  ;;  %v3463_v53 = vmul.f32 %v11206_v21, %v12676_v28  ;;  %v12798_v28 = vld [vmem:[%s13843_s18] ss:$0 sm:$0xff] }
0x104d   :  { %v3524_v33 = vld [vmem:[#allocation12 + $0x158] sm:$0xff] }
0x104e   :  { %11207 = vtanh.f32 %v3249_v12  ;;  %v3471_v23 = vmul.f32 %v12790_v42, %v3463_v53  ;;  %v10014_v12 = vpack.c.bf16 %v3520_v9, %v3517_v49  ;;  %v3523_v53 = vld [vmem:[#allocation12 + $0x150] sm:$0xff] }
0x104f   :  { %v3704_v9 = vld [vmem:[#allocation13 + $0x30] sm:$0xff] }
0x1050   :  { %v3479_v18 = vadd.f32 %v12798_v28, %v3471_v23 }
0x1058   :  { %v11208_v4 = vpop.eup %11207 }
0x1059   :  { %v3252_v47 = vmul.f32 %v11208_v4, %v3251_v24  ;;  %v3526_v24 = vld [vmem:[#allocation12 + $0x168] sm:$0xff] }
0x105a   :  { %v10018_v4 = vpack.c.bf16 %v3526_v24, %v3523_v53 }
0x105b   :  { %v12793_v13 = vadd.f32 %v3255_v6, %v3252_v47  ;;  %v3527_v6 = vld [vmem:[#allocation12 + $0x170] sm:$0xff] }
0x105c   :  { %v10016_v21 = vpack.c.bf16 %v3527_v6, %v3524_v33  ;;  %v3707_v33 = vld [vmem:[#allocation13 + $0x48] sm:$0xff]  ;;  %v10028_v6 = vpack.c.bf16 %v3498_v40, %v3495_v52  ;;  %v3738_v52 = vld [vmem:[#allocation13 + $0x140] sm:$0xff] }
0x105d   :  { %3257 = vst [vmem:[#allocation3 + $0x8] sm:$0x30] %v12793_v13  ;;  %v3259_v27 = vrot.slane %v12793_v13, 4  ;;  %v3430_v34 = vrot.slane %v12793_v13, 6  ;;  %v3489_v13 = vld [vmem:[#allocation12 + $0x40] sm:$0xff] }
0x105f   :  { %3326 = vmatmul.mubr.f32.vlgmr.msra.gmra.mrb[36].mxu0 %v3259_v27  ;;  %8305 = vmatmul.mubr.f32.vlgmr.msra.gmra.mrb[34].mxu1 %v3259_v27 }
0x1060   :  { %9991 = vmatpush1.bf16.msra.mxu0 %v9990_v50  ;;  %8339 = vmatprep.mubr.f32.mxu1 %v3479_v18 }
0x1061   :  { %9993 = vmatprep.subr.bf16.mxu0 %v9992_v5  ;;  %3610 = vmatprep.mubr.f32.mxu0 %v11582_v2 }
0x1064   :  { %9995 = vmatpush1.bf16.msra.mxu0 %v9994_v59 }
0x1065   :  { %9997 = vmatprep.subr.bf16.mxu0 %v9996_v15 }
0x1068   :  { %9999 = vmatpush1.bf16.msra.mxu0 %v9998_v36 }
0x1069   :  { %10001 = vmatprep.subr.bf16.mxu0 %v10000_v45 }
0x106c   :  { %10003 = vmatpush1.bf16.msra.mxu0 %v10002_v25  ;;  %v3483_v25 = vld [vmem:[#allocation12 + $0x10] sm:$0xff] }
0x106d   :  { %10005 = vmatprep.subr.bf16.mxu0 %v10004_v29  ;;  %v3486_v29 = vld [vmem:[#allocation12 + $0x28] sm:$0xff] }
0x106e   :  { %v10020_v39 = vpack.c.bf16 %v3486_v29, %v3483_v25  ;;  %v3522_v25 = vld [vmem:[#allocation12 + $0x148] sm:$0xff]  ;;  %v3729_v29 = vld [vmem:[#allocation13 + $0xf8] sm:$0xff] }
0x1070   :  { %10007 = vmatpush1.bf16.msra.mxu0 %v10006_v16  ;;  %v10024_v16 = vpack.c.bf16 %v3492_v38, %v3489_v13  ;;  %10021 = vmatprep.subr.bf16.mxu1 %v10020_v39  ;;  %v3732_v13 = vld [vmem:[#allocation13 + $0x110] sm:$0xff] }
0x1071   :  { %10009 = vmatprep.subr.bf16.mxu0 %v10008_v30  ;;  %v12816_v30 = vpack.c.bf16 %v3702_v22, %v3699_v60  ;;  %10023 = vmatpush3.bf16.msra.mxu1 %v10020_v39  ;;  %v12851_v38 = vpack.c.bf16 %v3732_v13, %v3729_v29  ;;  %v3728_v60 = vld [vmem:[#allocation13 + $0xf0] sm:$0xff]  ;;  %v3731_v22 = vld [vmem:[#allocation13 + $0x108] sm:$0xff] }
0x1072   :  { %10025 = vmatprep.subr.bf16.mxu1 %v10024_v16  ;;  %v12854_v40 = vpack.c.bf16 %v3731_v22, %v3728_v60  ;;  %v3736_v13 = vld [vmem:[#allocation13 + $0x130] sm:$0xff]  ;;  %v3742_v22 = vld [vmem:[#allocation13 + $0x160] sm:$0xff] }
0x1074   :  { %10011 = vmatpush1.bf16.msra.mxu0 %v10010_v58  ;;  %v3705_v58 = vld [vmem:[#allocation13 + $0x38] sm:$0xff] }
0x1075   :  { %10013 = vmatprep.subr.bf16.mxu0 %v10012_v20  ;;  %v3708_v20 = vld [vmem:[#allocation13 + $0x50] sm:$0xff]  ;;  %10027 = vmatpush3.bf16.msra.mxu1 %v10024_v16  ;;  %v3525_v16 = vld [vmem:[#allocation12 + $0x160] sm:$0xff] }
0x1076   :  { %v12821_v49 = vpack.c.bf16 %v3708_v20, %v3705_v58  ;;  %10029 = vmatprep.subr.bf16.mxu1 %v10028_v6 }
0x1078   :  { %10015 = vmatpush1.bf16.msra.mxu0 %v10014_v12  ;;  %v12824_v12 = vpack.c.bf16 %v3707_v33, %v3704_v9  ;;  %v3734_v9 = vld [vmem:[#allocation13 + $0x120] sm:$0xff]  ;;  %v3737_v33 = vld [vmem:[#allocation13 + $0x138] sm:$0xff] }
0x1079   :  { %10017 = vmatprep.subr.bf16.mxu0 %v10016_v21  ;;  %10031 = vmatpush3.bf16.msra.mxu1 %v10028_v6  ;;  %v12860_v6 = vpack.c.bf16 %v3737_v33, %v3734_v9 }
0x107c   :  { %10019 = vmatpush1.bf16.msra.mxu0 %v10018_v4 }
0x107d   :  { %10053 = vmatprep.subr.bf16.mxu0 %v12816_v30 }
0x107f   :  { %3611 = vmatmul.mubr.f32.vlgmr.msra.gmra.mrb[38].mxu0 %v3479_v18 }
0x1080   :  { %3616 = vmatprep.mubr.f32.mxu0 %v11582_v2 }
0x1132   :  { %v3327_v47 = vpop.f32.mrb[36].mxu0  ;;  %v3398_v54 = vpop.f32.mrb[34].mxu1 }
0x1133   :  { %v3328_v62 = vadd.f32 %v3327_v47, %v12465_v57  ;;  %v3329_v23 = vpop.f32.mrb[37].mxu0  ;;  %v8306_v17 = vpop.f32.mrb[35].mxu1  ;;  %v3399_v57 = vadd.f32 %v3398_v54, %v12486_v32  ;;  %v3501_v54 = vld [vmem:[#allocation12 + $0xa0] sm:$0xff] }
0x1134   :  { %v3330_v3 = vadd.f32 %v3329_v23, %v12468_v14  ;;  %v3711_v17 = vld [vmem:[#allocation13 + $0x68] sm:$0xff] }
0x1135   :  { %v3403_v50 = vrot.slane %v3328_v62, 2  ;;  %v3423_v8 = vrot.slane %v3399_v57, 2  ;;  %v3504_v62 = vld [vmem:[#allocation12 + $0xb8] sm:$0xff]  ;;  %v3716_v57 = vld [vmem:[#allocation13 + $0x90] sm:$0xff] }
0x1136   :  { %v3413_v27 = vrot.slane %v3330_v3, 2  ;;  %v10032_v23 = vpack.c.bf16 %v3504_v62, %v3501_v54  ;;  %v3714_v3 = vld [vmem:[#allocation13 + $0x80] sm:$0xff]  ;;  %v3743_v54 = vld [vmem:[#allocation13 + $0x168] sm:$0xff] }
0x1137   :  { %v3405_v5 = vadd.f32 %v3403_v50, %v12682_v0  ;;  %v12834_v50 = vpack.c.bf16 %v3714_v3, %v3711_v17 }
0x1138   :  { %v3415_v19 = vadd.f32 %v3413_v27, %v12689_v10  ;;  %v3710_v27 = vld [vmem:[#allocation13 + $0x60] sm:$0xff]  ;;  %10033 = vmatprep.subr.bf16.mxu1 %v10032_v23 }
0x1139   :  { %v7005_v35 = vmul.f32 -1.442695, %v3405_v5  ;;  %v3713_v5 = vld [vmem:[#allocation13 + $0x78] sm:$0xff]  ;;  %10035 = vmatpush3.bf16.msra.mxu1 %v10032_v23 }
0x113a   :  { %v7006_v46 = vmul.f32 -1.442695, %v3415_v19  ;;  %v12836_v19 = vpack.c.bf16 %v3713_v5, %v3710_v27 }
0x113b   :  { %11209 = vpow2.f32 %v7005_v35  ;;  %v3507_v35 = vld [vmem:[#allocation12 + $0xd0] sm:$0xff] }
0x113c   :  { %11211 = vpow2.f32 %v7006_v46  ;;  %v3510_v46 = vld [vmem:[#allocation12 + $0xe8] sm:$0xff] }
0x1145   :  { %v11210_v18 = vpop.eup %11209 }
0x1146   :  { %v11212_v44 = vpop.eup %11211  ;;  %v3409_v59 = vadd.f32 1.0, %v11210_v18  ;;  %v10036_v18 = vpack.c.bf16 %v3510_v46, %v3507_v35  ;;  %v3700_v35 = vld [vmem:[#allocation13 + $0x10] sm:$0xff]  ;;  %v3703_v46 = vld [vmem:[#allocation13 + $0x28] sm:$0xff] }
0x1147   :  { %v3419_v15 = vadd.f32 1.0, %v11212_v44  ;;  %v3717_v44 = vld [vmem:[#allocation13 + $0x98] sm:$0xff] }
0x1148   :  { %11213 = vrcp.f32 %v3409_v59  ;;  %v3720_v59 = vld [vmem:[#allocation13 + $0xb0] sm:$0xff]  ;;  %10037 = vmatprep.subr.bf16.mxu1 %v10036_v18 }
0x1149   :  { %11215 = vrcp.f32 %v3419_v15  ;;  %v12840_v15 = vpack.c.bf16 %v3720_v59, %v3717_v44  ;;  %10039 = vmatpush3.bf16.msra.mxu1 %v10036_v18  ;;  %v12874_v44 = vpack.c.bf16 %v3703_v46, %v3700_v35 }
0x1152   :  { %v11214_v14 = vpop.eup %11213  ;;  %v12811_v48 = vpop.f32.mrb[38].mxu0 }
0x1153   :  { %v11216_v0 = vpop.eup %11215  ;;  %v3425_v10 = vmul.f32 %v11214_v14, %v3423_v8  ;;  %v12813_v55 = vpop.f32.mrb[39].mxu0  ;;  %v3719_v8 = vld [vmem:[#allocation13 + $0xa8] sm:$0xff]  ;;  %v3513_v14 = vld [vmem:[#allocation12 + $0x100] sm:$0xff] }
0x1154   :  { %v3432_v36 = vmul.f32 %v11216_v0, %v3430_v34  ;;  %v3428_v63 = vsub.f32 1.0, %v11216_v0  ;;  %v12842_v34 = vpack.c.bf16 %v3719_v8, %v3716_v57  ;;  %v3516_v0 = vld [vmem:[#allocation12 + $0x118] sm:$0xff]  ;;  %v3706_v57 = vld [vmem:[#allocation13 + $0x40] sm:$0xff] }
0x1155   :  { %v3426_v45 = vadd.f32 %v3425_v10, %v12460_v43  ;;  %v3701_v43 = vld [vmem:[#allocation13 + $0x18] sm:$0xff]  ;;  %v3723_v10 = vld [vmem:[#allocation13 + $0xc8] sm:$0xff] }
0x1156   :  { %v12818_v26 = vpack.c.bf16 %v3701_v43, %v3698_v31  ;;  %v3528_v31 = vld [vmem:[#allocation12 + $0x178] sm:$0xff]  ;;  %v3735_v43 = vld [vmem:[#allocation13 + $0x128] sm:$0xff] }
0x1157   :  { %11217 = vtanh.f32 %v3426_v45  ;;  %v10040_v45 = vpack.c.bf16 %v3516_v0, %v3513_v14  ;;  %v10048_v58 = vpack.c.bf16 %v3528_v31, %v3525_v16  ;;  %v12857_v20 = vpack.c.bf16 %v3738_v52, %v3735_v43  ;;  %v3709_v8 = vld [vmem:[#allocation13 + $0x58] sm:$0xff]  ;;  %v3715_v0 = vld [vmem:[#allocation13 + $0x88] sm:$0xff] }
0x1158   :  { %10055 = vmatpush1.bf16.msra.mxu0 %v12818_v26  ;;  %v12879_v14 = vpack.c.bf16 %v3709_v8, %v3706_v57  ;;  %v3745_v16 = vld [vmem:[#allocation13 + $0x178] sm:$0xff] }
0x1159   :  { %10057 = vmatprep.subr.bf16.mxu0 %v12821_v49  ;;  %10041 = vmatprep.subr.bf16.mxu1 %v10040_v45  ;;  %v12917_v31 = vpack.c.bf16 %v3745_v16, %v3742_v22  ;;  %v3529_v43 = vld [vmem:[%s13836_s11] sm:$0x7] }
0x115a   :  { %10043 = vmatpush3.bf16.msra.mxu1 %v10040_v45  ;;  %v3724_v45 = vld [vmem:[#allocation13 + $0xd0] sm:$0xff]  ;;  %v3542_v52 = vrot.slane %v3529_v43, %v12018_v7 }
0x115c   :  { %10059 = vmatpush1.bf16.msra.mxu0 %v12824_v12 }
0x115d   :  { %10061 = vmatprep.subr.bf16.mxu0 %v12834_v50 }
0x1160   :  { %10063 = vmatpush1.bf16.msra.mxu0 %v12836_v19 }
0x1161   :  { %v11218_v11 = vpop.eup %11217  ;;  %10065 = vmatprep.subr.bf16.mxu0 %v12840_v15 }
0x1162   :  { %v3429_v56 = vmul.f32 %v11218_v11, %v3428_v63  ;;  %v3722_v11 = vld [vmem:[#allocation13 + $0xc0] sm:$0xff] }
0x1164   :  { %v3433_v61 = vadd.f32 %v3432_v36, %v3429_v56  ;;  %v3726_v36 = vld [vmem:[#allocation13 + $0xe0] sm:$0xff]  ;;  %v3725_v56 = vld [vmem:[#allocation13 + $0xd8] sm:$0xff]  ;;  %10067 = vmatpush1.bf16.msra.mxu0 %v12842_v34 }
0x1165   :  { %v12845_v63 = vpack.c.bf16 %v3726_v36, %v3723_v10  ;;  %v3721_v10 = vld [vmem:[#allocation13 + $0xb8] sm:$0xff] }
0x1166   :  { %3434 = vst [vmem:[#allocation3 + $0x8] sm:$0xc0] %v3433_v61  ;;  %v3519_v61 = vld [vmem:[#allocation12 + $0x130] sm:$0xff] }
0x1167   :  { %10069 = vmatprep.subr.bf16.mxu0 %v12845_v63  ;;  %v10044_v39 = vpack.c.bf16 %v3522_v25, %v3519_v61  ;;  %v3730_v61 = vld [vmem:[#allocation13 + $0x100] sm:$0xff]  ;;  %v3733_v25 = vld [vmem:[#allocation13 + $0x118] sm:$0xff] }
0x1168   :  { %v12905_v29 = vpack.c.bf16 %v3733_v25, %v3730_v61 }
0x1169   :  { %10045 = vmatprep.subr.bf16.mxu1 %v10044_v39 }
0x116a   :  { %10047 = vmatpush3.bf16.msra.mxu1 %v10044_v39  ;;  %v3739_v39 = vld [vmem:[#allocation13 + $0x148] sm:$0xff] }
0x116b   :  { %10049 = vmatprep.subr.bf16.mxu1 %v10048_v58  ;;  %v12911_v60 = vpack.c.bf16 %v3739_v39, %v3736_v13 }
0x116d   :  { %v3436_v32 = vld [vmem:[#allocation3 + $0x8] sm:$0xff] }
0x116e   :  { %3441 = vadd.xlane.f32.xlu0 %v3436_v32  ;;  %10051 = vmatpush3.bf16.msra.mxu1 %v10048_v58  ;;  %v3746_v58 = vld [vmem:[%s13837_s12] sm:$0x7] }
0x116f   :  { %10084 = vmatprep.subr.bf16.mxu1 %v11581_v1 }
0x11fb   :  { %v3442_v21 = vpop.xlane.xlu0 %3441 }
0x11fc   :  { %v3444_v53 = vmul.f32 0.015625, %v3442_v21  ;;  %v3741_v21 = vld [vmem:[#allocation13 + $0x158] sm:$0xff] }
0x11fe   :  { %v3446_v24 = vsub.f32 %v3436_v32, %v3444_v53  ;;  %v12848_v32 = vpack.c.bf16 %v3725_v56, %v3722_v11  ;;  %v3744_v53 = vld [vmem:[#allocation13 + $0x170] sm:$0xff]  ;;  %v3727_v11 = vld [vmem:[#allocation13 + $0xe8] sm:$0xff] }
0x11ff   :  { %v12899_v56 = vpack.c.bf16 %v3727_v11, %v3724_v45  ;;  %v12985_v45 = vrot.slane %v3746_v58, %v12018_v7 }
0x1200   :  { %v12830_v4 = vsel %vm187_vm1, %v3446_v24, 0.0  ;;  %10071 = vmatpush1.bf16.msra.mxu0 %v12848_v32  ;;  %v12865_v24 = vpack.c.bf16 %v3744_v53, %v3741_v21  ;;  %v12957_v21 = vrot.slane %v3529_v43, %v11992_v37 }
0x1201   :  { %v3452_v47 = vmul.f32 %v12830_v4, %v12830_v4  ;;  %10073 = vmatprep.subr.bf16.mxu0 %v12851_v38 }
0x1203   :  { %3455 = vadd.xlane.f32.xlu1 %v3452_v47  ;;  %v3740_v47 = vld [vmem:[#allocation13 + $0x150] sm:$0xff] }
0x1204   :  { %10075 = vmatpush1.bf16.msra.mxu0 %v12854_v40  ;;  %v12867_v62 = vpack.c.bf16 %v3743_v54, %v3740_v47 }
0x1205   :  { %10077 = vmatprep.subr.bf16.mxu0 %v12857_v20 }
0x1208   :  { %10079 = vmatpush1.bf16.msra.mxu0 %v12860_v6 }
0x1209   :  { %10081 = vmatprep.subr.bf16.mxu0 %v12865_v24 }
0x120c   :  { %10083 = vmatpush1.bf16.msra.mxu0 %v12867_v62 }
0x120d   :  { %10109 = vmatprep.subr.bf16.mxu0 %v12816_v30 }
0x1290   :  { %v3456_v23 = vpop.xlane.xlu1 %3455 }
0x1291   :  { %v3458_v17 = vmul.f32 0.015625, %v3456_v23  ;;  %v12964_v23 = vrot.slane %v3746_v58, %v11992_v37 }
0x1293   :  { %v3460_v3 = vadd.f32 1e-05, %v3458_v17  ;;  %v12967_v17 = vrot.slane %v3746_v58, %v12000_v41 }
0x1295   :  { %11219 = vrsqrt.f32 %v3460_v3  ;;  %v12970_v3 = vrot.slane %v3529_v43, %v12000_v41 }
0x1297   :  { %v12981_v57 = vadd.f32 %v12813_v55, %v12970_v3 }
0x129f   :  { %v11220_v27 = vpop.eup %11219 }
0x12a0   :  { %v3464_v5 = vmul.f32 %v11220_v27, %v12830_v4  ;;  %v3712_v4 = vld [vmem:[#allocation13 + $0x70] sm:$0xff] }
0x12a2   :  { %v3472_v18 = vmul.f32 %v12790_v42, %v3464_v5  ;;  %v12886_v42 = vpack.c.bf16 %v3715_v0, %v3712_v4  ;;  %v12974_v5 = vadd.f32 %v12811_v48, %v12957_v21 }
0x12a4   :  { %v3480_v59 = vadd.f32 %v12798_v28, %v3472_v18  ;;  %v3718_v28 = vld [vmem:[#allocation13 + $0xa0] sm:$0xff] }
0x12a5   :  { %v12893_v36 = vpack.c.bf16 %v3721_v10, %v3718_v28 }
0x12a6   :  { %3617 = vmatmul.mubr.f32.gmra.mrb[40].mxu0 %v3480_v59  ;;  %8340 = vmatmul.mubr.f32.vlgmr.msra.gmra.mrb[36].mxu1 %v3480_v59 }
0x12a7   :  { %10086 = vmatpush3.bf16.msra.mxu1 %v12874_v44  ;;  %3827 = vmatprep.mubr.f32.mxu0 %v11582_v2 }
0x12a8   :  { %10087 = vmatprep.subr.bf16.mxu1 %v11581_v1  ;;  %8374 = vmatprep.mubr.msk.f32.mxu1 %vm11583_vm0, %v11582_v2 }
0x12aa   :  { %3828 = vmatmul.mubr.f32.vlgmr.msra.gmra.mrb[42].mxu0 %v11582_v2 }
0x12ab   :  { %10089 = vmatpush3.bf16.msra.mxu1 %v12879_v14  ;;  %10111 = vmatpush1.bf16.msra.mxu0 %v12818_v26 }
0x12ac   :  { %10090 = vmatprep.subr.bf16.mxu1 %v11581_v1  ;;  %10113 = vmatprep.subr.bf16.mxu0 %v12821_v49 }
0x12ad   :  { %3990 = vmatprep.mubr.f32.mxu0 %v11582_v2 }
0x12af   :  { %10092 = vmatpush3.bf16.msra.mxu1 %v12886_v42  ;;  %10115 = vmatpush1.bf16.msra.mxu0 %v12824_v12 }
0x12b0   :  { %10093 = vmatprep.subr.bf16.mxu1 %v11581_v1  ;;  %10117 = vmatprep.subr.bf16.mxu0 %v12834_v50 }
0x12b3   :  { %10095 = vmatpush3.bf16.msra.mxu1 %v12893_v36  ;;  %10119 = vmatpush1.bf16.msra.mxu0 %v12836_v19 }
0x12b4   :  { %10096 = vmatprep.subr.bf16.mxu1 %v11581_v1  ;;  %10121 = vmatprep.subr.bf16.mxu0 %v12840_v15 }
0x12b7   :  { %10098 = vmatpush3.bf16.msra.mxu1 %v12899_v56  ;;  %10123 = vmatpush1.bf16.msra.mxu0 %v12842_v34 }
0x12b8   :  { %10099 = vmatprep.subr.bf16.mxu1 %v11581_v1  ;;  %10125 = vmatprep.subr.bf16.mxu0 %v12845_v63 }
0x12bb   :  { %10101 = vmatpush3.bf16.msra.mxu1 %v12905_v29  ;;  %10127 = vmatpush1.bf16.msra.mxu0 %v12848_v32 }
0x12bc   :  { %10102 = vmatprep.subr.bf16.mxu1 %v11581_v1  ;;  %10129 = vmatprep.subr.bf16.mxu0 %v12851_v38 }
0x12bf   :  { %10104 = vmatpush3.bf16.msra.mxu1 %v12911_v60  ;;  %10131 = vmatpush1.bf16.msra.mxu0 %v12854_v40 }
0x12c0   :  { %10105 = vmatprep.subr.bf16.mxu1 %v11581_v1  ;;  %10133 = vmatprep.subr.bf16.mxu0 %v12857_v20 }
0x12c3   :  { %10107 = vmatpush3.bf16.msra.mxu1 %v12917_v31  ;;  %10135 = vmatpush1.bf16.msra.mxu0 %v12860_v6 }
0x12c4   :  { %10140 = vmatprep.subr.bf16.mxu1 %v11581_v1  ;;  %10137 = vmatprep.subr.bf16.mxu0 %v12865_v24 }
0x12c6   :  { %8375 = vmatmul.mubr.f32.vlgmr.msra.gmra.mrb[38].mxu1 %v11582_v2 }
0x12c7   :  { %10142 = vmatpush3.bf16.msra.mxu1 %v12874_v44  ;;  %10139 = vmatpush1.bf16.msra.mxu0 %v12867_v62 }
0x12c8   :  { %10143 = vmatprep.subr.bf16.mxu1 %v11581_v1  ;;  %8409 = vmatprep.mubr.msk.f32.mxu1 %vm11583_vm0, %v11582_v2 }
0x12c9   :  { %10165 = vmatprep.subr.bf16.mxu0 %v12816_v30 }
0x12cb   :  { %10145 = vmatpush3.bf16.msra.mxu1 %v12879_v14 }
0x12cc   :  { %10146 = vmatprep.subr.bf16.mxu1 %v11581_v1 }
0x12cf   :  { %10148 = vmatpush3.bf16.msra.mxu1 %v12886_v42 }
0x12d0   :  { %10149 = vmatprep.subr.bf16.mxu1 %v11581_v1 }
0x12d3   :  { %10151 = vmatpush3.bf16.msra.mxu1 %v12893_v36 }
0x12d4   :  { %10152 = vmatprep.subr.bf16.mxu1 %v11581_v1 }
0x12d7   :  { %10154 = vmatpush3.bf16.msra.mxu1 %v12899_v56 }
0x12d8   :  { %10155 = vmatprep.subr.bf16.mxu1 %v11581_v1 }
0x12db   :  { %10157 = vmatpush3.bf16.msra.mxu1 %v12905_v29 }
0x12dc   :  { %10158 = vmatprep.subr.bf16.mxu1 %v11581_v1 }
0x12df   :  { %10160 = vmatpush3.bf16.msra.mxu1 %v12911_v60 }
0x12e0   :  { %10161 = vmatprep.subr.bf16.mxu1 %v11581_v1 }
0x12e3   :  { %10163 = vmatpush3.bf16.msra.mxu1 %v12917_v31 }
0x12e4   :  { %10196 = vmatprep.subr.bf16.mxu1 %v11581_v1 }
0x1379   :  { %v12954_v9 = vpop.f32.mrb[40].mxu0  ;;  %v8341_v33 = vpop.f32.mrb[36].mxu1 }
0x137a   :  { %v12959_v53 = vadd.f32 %v8341_v33, %v3542_v52  ;;  %v12961_v47 = vpop.f32.mrb[41].mxu0  ;;  %v3689_v54 = vpop.f32.mrb[37].mxu1 }
0x137b   :  { %v12988_v39 = vadd.f32 %v3689_v54, %v3542_v52 }
0x137d   :  { %v3829_v27 = vpop.f32.mrb[42].mxu0 }
0x137e   :  { %v3830_v35 = vadd.f32 %v3829_v27, %v12964_v23  ;;  %v3831_v46 = vpop.f32.mrb[43].mxu0 }
0x137f   :  { %v3832_v18 = vadd.f32 %v3831_v46, %v12967_v17 }
0x1380   :  { %v3904_v59 = vadd.f32 %v3830_v35, %v12974_v5 }
0x1381   :  { %v3911_v4 = vadd.f32 %v3832_v18, %v12981_v57 }
0x1382   :  { %v7009_v8 = vmul.f32 -1.442695, %v3904_v59 }
0x1383   :  { %v7010_v0 = vmul.f32 -1.442695, %v3911_v4 }
0x1384   :  { %11221 = vpow2.f32 %v7009_v8 }
0x1385   :  { %11223 = vpow2.f32 %v7010_v0 }
0x138e   :  { %v11222_v28 = vpop.eup %11221 }
0x138f   :  { %v3908_v48 = vadd.f32 1.0, %v11222_v28  ;;  %v11224_v10 = vpop.eup %11223 }
0x1390   :  { %v3915_v11 = vadd.f32 1.0, %v11224_v10 }
0x1391   :  { %11225 = vrcp.f32 %v3908_v48 }
0x1392   :  { %11227 = vrcp.f32 %v3915_v11 }
0x1399   :  { %v3900_v61 = vpop.f32.mrb[38].mxu1 }
0x139a   :  { %v3901_v25 = vadd.f32 %v3900_v61, %v12985_v45  ;;  %v8376_v13 = vpop.f32.mrb[39].mxu1 }
0x139b   :  { %v11226_v55 = vpop.eup %11225 }
0x139c   :  { %v3918_v22 = vmul.f32 %v11226_v55, %v3901_v25  ;;  %v11228_v43 = vpop.eup %11227 }
0x139d   :  { %v3921_v33 = vsub.f32 1.0, %v11228_v43  ;;  %v3923_v46 = vmul.f32 0.0, %v11228_v43 }
0x139e   :  { %v3919_v16 = vadd.f32 %v3918_v22, %v12988_v39 }
0x13a0   :  { %11229 = vtanh.f32 %v3919_v16 }
0x13aa   :  { %v11230_v27 = vpop.eup %11229 }
0x13ab   :  { %v3922_v35 = vmul.f32 %v11230_v27, %v3921_v33 }
0x13ad   :  { %v12991_v58 = vadd.f32 %v3923_v46, %v3922_v35 }
0x13af   :  { %3925 = vst [vmem:[#allocation2] sm:$0x3] %v12991_v58  ;;  %3991 = vmatmul.mubr.f32.vlgmr.msra.gmra.mrb[44].mxu0 %v12991_v58  ;;  %8410 = vmatmul.mubr.f32.vlgmr.msra.gmra.mrb[40].mxu1 %v12991_v58  ;;  %v4096_v27 = vrot.slane %v12991_v58, 6 }
0x13b0   :  { %10167 = vmatpush1.bf16.msra.mxu0 %v12818_v26  ;;  %10198 = vmatpush3.bf16.msra.mxu1 %v12874_v44 }
0x13b1   :  { %10169 = vmatprep.subr.bf16.mxu0 %v12821_v49  ;;  %10199 = vmatprep.subr.bf16.mxu1 %v11581_v1 }
0x13b2   :  { %4168 = vmatprep.mubr.f32.mxu0 %v11582_v2  ;;  %8444 = vmatprep.mubr.msk.f32.mxu1 %vm11583_vm0, %v11582_v2 }
0x13b4   :  { %10171 = vmatpush1.bf16.msra.mxu0 %v12824_v12  ;;  %10201 = vmatpush3.bf16.msra.mxu1 %v12879_v14 }
0x13b5   :  { %10173 = vmatprep.subr.bf16.mxu0 %v12834_v50  ;;  %10202 = vmatprep.subr.bf16.mxu1 %v11581_v1 }
0x13b8   :  { %10175 = vmatpush1.bf16.msra.mxu0 %v12836_v19  ;;  %10204 = vmatpush3.bf16.msra.mxu1 %v12886_v42 }
0x13b9   :  { %10177 = vmatprep.subr.bf16.mxu0 %v12840_v15  ;;  %10205 = vmatprep.subr.bf16.mxu1 %v11581_v1 }
0x13bc   :  { %10179 = vmatpush1.bf16.msra.mxu0 %v12842_v34  ;;  %10207 = vmatpush3.bf16.msra.mxu1 %v12893_v36 }
0x13bd   :  { %10181 = vmatprep.subr.bf16.mxu0 %v12845_v63  ;;  %10208 = vmatprep.subr.bf16.mxu1 %v11581_v1 }
0x13c0   :  { %10183 = vmatpush1.bf16.msra.mxu0 %v12848_v32  ;;  %10210 = vmatpush3.bf16.msra.mxu1 %v12899_v56 }
0x13c1   :  { %10185 = vmatprep.subr.bf16.mxu0 %v12851_v38  ;;  %10211 = vmatprep.subr.bf16.mxu1 %v11581_v1 }
0x13c4   :  { %10187 = vmatpush1.bf16.msra.mxu0 %v12854_v40  ;;  %10213 = vmatpush3.bf16.msra.mxu1 %v12905_v29 }
0x13c5   :  { %10189 = vmatprep.subr.bf16.mxu0 %v12857_v20  ;;  %10214 = vmatprep.subr.bf16.mxu1 %v11581_v1 }
0x13c8   :  { %10191 = vmatpush1.bf16.msra.mxu0 %v12860_v6  ;;  %10216 = vmatpush3.bf16.msra.mxu1 %v12911_v60 }
0x13c9   :  { %10193 = vmatprep.subr.bf16.mxu0 %v12865_v24  ;;  %10217 = vmatprep.subr.bf16.mxu1 %v11581_v1 }
0x13cc   :  { %10195 = vmatpush1.bf16.msra.mxu0 %v12867_v62  ;;  %10219 = vmatpush3.bf16.msra.mxu1 %v12917_v31 }
0x13cd   :  { %10221 = vmatprep.subr.bf16.mxu0 %v12816_v30  ;;  %10252 = vmatprep.subr.bf16.mxu1 %v11581_v1 }
0x1482   :  { %v3992_v52 = vpop.f32.mrb[44].mxu0  ;;  %v4063_v54 = vpop.f32.mrb[40].mxu1 }
0x1483   :  { %v3993_v18 = vadd.f32 %v3992_v52, %v12964_v23  ;;  %v3994_v59 = vpop.f32.mrb[45].mxu0  ;;  %v8411_v8 = vpop.f32.mrb[41].mxu1  ;;  %v4064_v16 = vadd.f32 %v4063_v54, %v12985_v45 }
0x1484   :  { %v3995_v4 = vadd.f32 %v3994_v59, %v12967_v17 }
0x1485   :  { %v4068_v0 = vrot.slane %v3993_v18, 6  ;;  %v4088_v43 = vrot.slane %v4064_v16, 6 }
0x1486   :  { %v4078_v28 = vrot.slane %v3995_v4, 6 }
0x1487   :  { %v4070_v48 = vadd.f32 %v4068_v0, %v12974_v5 }
0x1488   :  { %v4080_v10 = vadd.f32 %v4078_v28, %v12981_v57 }
0x1489   :  { %v7011_v11 = vmul.f32 -1.442695, %v4070_v48 }
0x148a   :  { %v7012_v61 = vmul.f32 -1.442695, %v4080_v10 }
0x148b   :  { %11231 = vpow2.f32 %v7011_v11 }
0x148c   :  { %11233 = vpow2.f32 %v7012_v61 }
0x1495   :  { %v11232_v25 = vpop.eup %11231 }
0x1496   :  { %v11234_v13 = vpop.eup %11233  ;;  %v4074_v55 = vadd.f32 1.0, %v11232_v25 }
0x1497   :  { %v4084_v22 = vadd.f32 1.0, %v11234_v13 }
0x1498   :  { %11235 = vrcp.f32 %v4074_v55 }
0x1499   :  { %11237 = vrcp.f32 %v4084_v22 }
0x14a2   :  { %v11236_v33 = vpop.eup %11235 }
0x14a3   :  { %v11238_v35 = vpop.eup %11237  ;;  %v4090_v46 = vmul.f32 %v11236_v33, %v4088_v43 }
0x14a4   :  { %v4098_v52 = vmul.f32 %v11238_v35, %v4096_v27  ;;  %v4093_v59 = vsub.f32 1.0, %v11238_v35 }
0x14a5   :  { %v4091_v18 = vadd.f32 %v4090_v46, %v12988_v39 }
0x14a7   :  { %11239 = vtanh.f32 %v4091_v18 }
0x14b1   :  { %v11240_v8 = vpop.eup %11239 }
0x14b2   :  { %v4094_v4 = vmul.f32 %v11240_v8, %v4093_v59 }
0x14b4   :  { %v13038_v0 = vadd.f32 %v4098_v52, %v4094_v4 }
0x14b6   :  { %4100 = vst [vmem:[#allocation2] sm:$0xc] %v13038_v0  ;;  %v4102_v28 = vrot.slane %v13038_v0, 2  ;;  %v4273_v8 = vrot.slane %v13038_v0, 6 }
0x14b8   :  { %4169 = vmatmul.mubr.f32.vlgmr.msra.gmra.mrb[46].mxu0 %v4102_v28  ;;  %8445 = vmatmul.mubr.f32.vlgmr.msra.gmra.mrb[42].mxu1 %v4102_v28 }
0x14b9   :  { %10223 = vmatpush1.bf16.msra.mxu0 %v12818_v26  ;;  %10254 = vmatpush3.bf16.msra.mxu1 %v12874_v44 }
0x14ba   :  { %10225 = vmatprep.subr.bf16.mxu0 %v12821_v49  ;;  %10255 = vmatprep.subr.bf16.mxu1 %v11581_v1 }
0x14bb   :  { %4345 = vmatprep.mubr.f32.mxu0 %v11582_v2  ;;  %8479 = vmatprep.mubr.msk.f32.mxu1 %vm11583_vm0, %v11582_v2 }
0x14bd   :  { %10227 = vmatpush1.bf16.msra.mxu0 %v12824_v12  ;;  %10257 = vmatpush3.bf16.msra.mxu1 %v12879_v14 }
0x14be   :  { %10229 = vmatprep.subr.bf16.mxu0 %v12834_v50  ;;  %10258 = vmatprep.subr.bf16.mxu1 %v11581_v1 }
0x14c1   :  { %10231 = vmatpush1.bf16.msra.mxu0 %v12836_v19  ;;  %10260 = vmatpush3.bf16.msra.mxu1 %v12886_v42 }
0x14c2   :  { %10233 = vmatprep.subr.bf16.mxu0 %v12840_v15  ;;  %10261 = vmatprep.subr.bf16.mxu1 %v11581_v1 }
0x14c5   :  { %10235 = vmatpush1.bf16.msra.mxu0 %v12842_v34  ;;  %10263 = vmatpush3.bf16.msra.mxu1 %v12893_v36 }
0x14c6   :  { %10237 = vmatprep.subr.bf16.mxu0 %v12845_v63  ;;  %10264 = vmatprep.subr.bf16.mxu1 %v11581_v1 }
0x14c9   :  { %10239 = vmatpush1.bf16.msra.mxu0 %v12848_v32  ;;  %10266 = vmatpush3.bf16.msra.mxu1 %v12899_v56 }
0x14ca   :  { %10241 = vmatprep.subr.bf16.mxu0 %v12851_v38  ;;  %10267 = vmatprep.subr.bf16.mxu1 %v11581_v1 }
0x14cd   :  { %10243 = vmatpush1.bf16.msra.mxu0 %v12854_v40  ;;  %10269 = vmatpush3.bf16.msra.mxu1 %v12905_v29 }
0x14ce   :  { %10245 = vmatprep.subr.bf16.mxu0 %v12857_v20  ;;  %10270 = vmatprep.subr.bf16.mxu1 %v11581_v1 }
0x14d1   :  { %10247 = vmatpush1.bf16.msra.mxu0 %v12860_v6  ;;  %10272 = vmatpush3.bf16.msra.mxu1 %v12911_v60 }
0x14d2   :  { %10249 = vmatprep.subr.bf16.mxu0 %v12865_v24  ;;  %10273 = vmatprep.subr.bf16.mxu1 %v11581_v1 }
0x14d5   :  { %10251 = vmatpush1.bf16.msra.mxu0 %v12867_v62  ;;  %10275 = vmatpush3.bf16.msra.mxu1 %v12917_v31 }
0x14d6   :  { %10277 = vmatprep.subr.bf16.mxu0 %v12816_v30  ;;  %10308 = vmatprep.subr.bf16.mxu1 %v11581_v1 }
0x158b   :  { %v4170_v58 = vpop.f32.mrb[46].mxu0  ;;  %v4241_v54 = vpop.f32.mrb[42].mxu1 }
0x158c   :  { %v4171_v48 = vadd.f32 %v4170_v58, %v12964_v23  ;;  %v4172_v10 = vpop.f32.mrb[47].mxu0  ;;  %v8446_v11 = vpop.f32.mrb[43].mxu1  ;;  %v4242_v52 = vadd.f32 %v4241_v54, %v12985_v45 }
0x158d   :  { %v4173_v61 = vadd.f32 %v4172_v10, %v12967_v17 }
0x158e   :  { %v4246_v25 = vrot.slane %v4171_v48, 4  ;;  %v4266_v18 = vrot.slane %v4242_v52, 4 }
0x158f   :  { %v4256_v13 = vrot.slane %v4173_v61, 4 }
0x1590   :  { %v4248_v55 = vadd.f32 %v4246_v25, %v12974_v5 }
0x1591   :  { %v4258_v22 = vadd.f32 %v4256_v13, %v12981_v57 }
0x1592   :  { %v7013_v16 = vmul.f32 -1.442695, %v4248_v55 }
0x1593   :  { %v7014_v43 = vmul.f32 -1.442695, %v4258_v22 }
0x1594   :  { %11241 = vpow2.f32 %v7013_v16 }
0x1595   :  { %11243 = vpow2.f32 %v7014_v43 }
0x159e   :  { %v11242_v33 = vpop.eup %11241 }
0x159f   :  { %v11244_v27 = vpop.eup %11243  ;;  %v4252_v35 = vadd.f32 1.0, %v11242_v33 }
0x15a0   :  { %v4262_v46 = vadd.f32 1.0, %v11244_v27 }
0x15a1   :  { %11245 = vrcp.f32 %v4252_v35 }
0x15a2   :  { %11247 = vrcp.f32 %v4262_v46 }
0x15ab   :  { %v11246_v59 = vpop.eup %11245 }
0x15ac   :  { %v11248_v4 = vpop.eup %11247  ;;  %v4268_v28 = vmul.f32 %v11246_v59, %v4266_v18 }
0x15ad   :  { %v4275_v58 = vmul.f32 %v11248_v4, %v4273_v8  ;;  %v4271_v10 = vsub.f32 1.0, %v11248_v4 }
0x15ae   :  { %v4269_v48 = vadd.f32 %v4268_v28, %v12988_v39 }
0x15b0   :  { %11249 = vtanh.f32 %v4269_v48 }
0x15ba   :  { %v11250_v11 = vpop.eup %11249 }
0x15bb   :  { %v4272_v61 = vmul.f32 %v11250_v11, %v4271_v10 }
0x15bd   :  { %v13084_v25 = vadd.f32 %v4275_v58, %v4272_v61 }
0x15bf   :  { %4277 = vst [vmem:[#allocation2] sm:$0x30] %v13084_v25  ;;  %v4279_v13 = vrot.slane %v13084_v25, 4  ;;  %v4450_v11 = vrot.slane %v13084_v25, 6 }
0x15c1   :  { %4346 = vmatmul.mubr.f32.vlgmr.msra.gmra.mrb[48].mxu0 %v4279_v13  ;;  %8480 = vmatmul.mubr.f32.vlgmr.msra.gmra.mrb[44].mxu1 %v4279_v13 }
0x15c2   :  { %10279 = vmatpush1.bf16.msra.mxu0 %v12818_v26  ;;  %10310 = vmatpush3.bf16.msra.mxu1 %v12874_v44 }
0x15c3   :  { %10281 = vmatprep.subr.bf16.mxu0 %v12821_v49  ;;  %10311 = vmatprep.subr.bf16.mxu1 %v11581_v1 }
0x15c4   :  { %4522 = vmatprep.mubr.f32.mxu0 %v11582_v2  ;;  %8514 = vmatprep.mubr.msk.f32.mxu1 %vm11583_vm0, %v11582_v2 }
0x15c6   :  { %10283 = vmatpush1.bf16.msra.mxu0 %v12824_v12  ;;  %10313 = vmatpush3.bf16.msra.mxu1 %v12879_v14 }
0x15c7   :  { %10285 = vmatprep.subr.bf16.mxu0 %v12834_v50  ;;  %10314 = vmatprep.subr.bf16.mxu1 %v11581_v1 }
0x15ca   :  { %10287 = vmatpush1.bf16.msra.mxu0 %v12836_v19  ;;  %10316 = vmatpush3.bf16.msra.mxu1 %v12886_v42 }
0x15cb   :  { %10289 = vmatprep.subr.bf16.mxu0 %v12840_v15  ;;  %10317 = vmatprep.subr.bf16.mxu1 %v11581_v1 }
0x15ce   :  { %10291 = vmatpush1.bf16.msra.mxu0 %v12842_v34  ;;  %10319 = vmatpush3.bf16.msra.mxu1 %v12893_v36 }
0x15cf   :  { %10293 = vmatprep.subr.bf16.mxu0 %v12845_v63  ;;  %10320 = vmatprep.subr.bf16.mxu1 %v11581_v1 }
0x15d2   :  { %10295 = vmatpush1.bf16.msra.mxu0 %v12848_v32  ;;  %10322 = vmatpush3.bf16.msra.mxu1 %v12899_v56 }
0x15d3   :  { %10297 = vmatprep.subr.bf16.mxu0 %v12851_v38  ;;  %10323 = vmatprep.subr.bf16.mxu1 %v11581_v1 }
0x15d6   :  { %10299 = vmatpush1.bf16.msra.mxu0 %v12854_v40  ;;  %10325 = vmatpush3.bf16.msra.mxu1 %v12905_v29 }
0x15d7   :  { %10301 = vmatprep.subr.bf16.mxu0 %v12857_v20  ;;  %10326 = vmatprep.subr.bf16.mxu1 %v11581_v1 }
0x15da   :  { %10303 = vmatpush1.bf16.msra.mxu0 %v12860_v6  ;;  %10328 = vmatpush3.bf16.msra.mxu1 %v12911_v60 }
0x15db   :  { %10305 = vmatprep.subr.bf16.mxu0 %v12865_v24  ;;  %10329 = vmatprep.subr.bf16.mxu1 %v11581_v1 }
0x15de   :  { %10307 = vmatpush1.bf16.msra.mxu0 %v12867_v62  ;;  %10331 = vmatpush3.bf16.msra.mxu1 %v12917_v31 }
0x15df   :  { %10333 = vmatprep.subr.bf16.mxu0 %v12816_v30  ;;  %10364 = vmatprep.subr.bf16.mxu1 %v11581_v1 }
0x1694   :  { %v4347_v0 = vpop.f32.mrb[48].mxu0  ;;  %v4418_v54 = vpop.f32.mrb[44].mxu1 }
0x1695   :  { %v4348_v55 = vadd.f32 %v4347_v0, %v12964_v23  ;;  %v4349_v22 = vpop.f32.mrb[49].mxu0  ;;  %v8481_v16 = vpop.f32.mrb[45].mxu1  ;;  %v4419_v58 = vadd.f32 %v4418_v54, %v12985_v45  ;;  %v13171_v54 = vadd.f32 %v12954_v9, %v12957_v21 }
0x1696   :  { %v4350_v43 = vadd.f32 %v4349_v22, %v12967_v17 }
0x1697   :  { %v4423_v33 = vrot.slane %v4348_v55, 2  ;;  %v4443_v48 = vrot.slane %v4419_v58, 2 }
0x1698   :  { %v4433_v27 = vrot.slane %v4350_v43, 2 }
0x1699   :  { %v4425_v35 = vadd.f32 %v4423_v33, %v12974_v5 }
0x169a   :  { %v4435_v46 = vadd.f32 %v4433_v27, %v12981_v57 }
0x169b   :  { %v7015_v52 = vmul.f32 -1.442695, %v4425_v35 }
0x169c   :  { %v7016_v18 = vmul.f32 -1.442695, %v4435_v46 }
0x169d   :  { %11251 = vpow2.f32 %v7015_v52 }
0x169e   :  { %11253 = vpow2.f32 %v7016_v18  ;;  %v13178_v18 = vadd.f32 %v12961_v47, %v12970_v3 }
0x16a7   :  { %v11252_v59 = vpop.eup %11251 }
0x16a8   :  { %v11254_v8 = vpop.eup %11253  ;;  %v4429_v4 = vadd.f32 1.0, %v11252_v59 }
0x16a9   :  { %v4439_v28 = vadd.f32 1.0, %v11254_v8 }
0x16aa   :  { %11255 = vrcp.f32 %v4429_v4 }
0x16ab   :  { %11257 = vrcp.f32 %v4439_v28 }
0x16b4   :  { %v11256_v10 = vpop.eup %11255 }
0x16b5   :  { %v11258_v61 = vpop.eup %11257  ;;  %v4445_v5 = vmul.f32 %v11256_v10, %v4443_v48 }
0x16b6   :  { %v4452_v13 = vmul.f32 %v11258_v61, %v4450_v11  ;;  %v4448_v0 = vsub.f32 1.0, %v11258_v61 }
0x16b7   :  { %v4446_v57 = vadd.f32 %v4445_v5, %v12988_v39 }
0x16b9   :  { %11259 = vtanh.f32 %v4446_v57 }
0x16c3   :  { %v11260_v55 = vpop.eup %11259 }
0x16c4   :  { %v4449_v22 = vmul.f32 %v11260_v55, %v4448_v0 }
0x16c6   :  { %v4453_v16 = vadd.f32 %v4452_v13, %v4449_v22 }
0x16c8   :  { %4454 = vst [vmem:[#allocation2] sm:$0xc0] %v4453_v16  ;;  %v13130_v43 = vrot.slane %v4453_v16, 6 }
0x16ca   :  { %4523 = vmatmul.mubr.f32.vlgmr.msra.gmra.mrb[50].mxu0 %v13130_v43  ;;  %8515 = vmatmul.mubr.f32.vlgmr.msra.gmra.mrb[46].mxu1 %v13130_v43 }
0x16cb   :  { %10335 = vmatpush1.bf16.msra.mxu0 %v12818_v26  ;;  %10366 = vmatpush3.bf16.msra.mxu1 %v12874_v44 }
0x16cc   :  { %10337 = vmatprep.subr.bf16.mxu0 %v12821_v49  ;;  %10367 = vmatprep.subr.bf16.mxu1 %v11581_v1 }
0x16cd   :  { %4685 = vmatprep.mubr.f32.mxu0 %v11582_v2  ;;  %8549 = vmatprep.mubr.msk.f32.mxu1 %vm11583_vm0, %v11582_v2 }
0x16cf   :  { %10339 = vmatpush1.bf16.msra.mxu0 %v12824_v12  ;;  %10369 = vmatpush3.bf16.msra.mxu1 %v12879_v14 }
0x16d0   :  { %10341 = vmatprep.subr.bf16.mxu0 %v12834_v50  ;;  %10370 = vmatprep.subr.bf16.mxu1 %v11581_v1 }
0x16d3   :  { %10343 = vmatpush1.bf16.msra.mxu0 %v12836_v19  ;;  %10372 = vmatpush3.bf16.msra.mxu1 %v12886_v42 }
0x16d4   :  { %10345 = vmatprep.subr.bf16.mxu0 %v12840_v15  ;;  %10373 = vmatprep.subr.bf16.mxu1 %v11581_v1 }
0x16d7   :  { %10347 = vmatpush1.bf16.msra.mxu0 %v12842_v34  ;;  %10375 = vmatpush3.bf16.msra.mxu1 %v12893_v36 }
0x16d8   :  { %10349 = vmatprep.subr.bf16.mxu0 %v12845_v63  ;;  %10376 = vmatprep.subr.bf16.mxu1 %v11581_v1 }
0x16db   :  { %10351 = vmatpush1.bf16.msra.mxu0 %v12848_v32  ;;  %10378 = vmatpush3.bf16.msra.mxu1 %v12899_v56 }
0x16dc   :  { %10353 = vmatprep.subr.bf16.mxu0 %v12851_v38  ;;  %10379 = vmatprep.subr.bf16.mxu1 %v11581_v1 }
0x16df   :  { %10355 = vmatpush1.bf16.msra.mxu0 %v12854_v40  ;;  %10381 = vmatpush3.bf16.msra.mxu1 %v12905_v29 }
0x16e0   :  { %10357 = vmatprep.subr.bf16.mxu0 %v12857_v20  ;;  %10382 = vmatprep.subr.bf16.mxu1 %v11581_v1 }
0x16e3   :  { %10359 = vmatpush1.bf16.msra.mxu0 %v12860_v6  ;;  %10384 = vmatpush3.bf16.msra.mxu1 %v12911_v60 }
0x16e4   :  { %10361 = vmatprep.subr.bf16.mxu0 %v12865_v24  ;;  %10385 = vmatprep.subr.bf16.mxu1 %v11581_v1 }
0x16e7   :  { %10363 = vmatpush1.bf16.msra.mxu0 %v12867_v62  ;;  %10387 = vmatpush3.bf16.msra.mxu1 %v12917_v31 }
0x16e8   :  { %10389 = vmatprep.subr.bf16.mxu0 %v12816_v30  ;;  %10420 = vmatprep.subr.bf16.mxu1 %v11581_v1 }
0x179d   :  { %v4524_v39 = vpop.f32.mrb[50].mxu0  ;;  %v4595_v25 = vpop.f32.mrb[46].mxu1 }
0x179e   :  { %v4525_v33 = vadd.f32 %v4524_v39, %v12964_v23  ;;  %v4526_v27 = vpop.f32.mrb[51].mxu0  ;;  %v8516_v35 = vpop.f32.mrb[47].mxu1  ;;  %v4596_v48 = vadd.f32 %v4595_v25, %v12985_v45 }
0x179f   :  { %v4527_v46 = vadd.f32 %v4526_v27, %v12967_v17 }
0x17a0   :  { %v4599_v52 = vadd.f32 %v4525_v33, %v13171_v54 }
0x17a1   :  { %v4606_v8 = vadd.f32 %v4527_v46, %v13178_v18 }
0x17a2   :  { %v7017_v59 = vmul.f32 -1.442695, %v4599_v52 }
0x17a3   :  { %v7018_v4 = vmul.f32 -1.442695, %v4606_v8 }
0x17a4   :  { %11261 = vpow2.f32 %v7017_v59 }
0x17a5   :  { %11263 = vpow2.f32 %v7018_v4 }
0x17ae   :  { %v11262_v9 = vpop.eup %11261 }
0x17af   :  { %v4603_v21 = vadd.f32 1.0, %v11262_v9  ;;  %v11264_v28 = vpop.eup %11263 }
0x17b0   :  { %v4610_v58 = vadd.f32 1.0, %v11264_v28 }
0x17b1   :  { %11265 = vrcp.f32 %v4603_v21 }
0x17b2   :  { %11267 = vrcp.f32 %v4610_v58 }
0x17bb   :  { %v11266_v10 = vpop.eup %11265 }
0x17bc   :  { %v4613_v11 = vmul.f32 %v11266_v10, %v4596_v48  ;;  %v11268_v47 = vpop.eup %11267 }
0x17bd   :  { %v4616_v3 = vsub.f32 1.0, %v11268_v47  ;;  %v4618_v57 = vmul.f32 %v11268_v47, %v13130_v43 }
0x17be   :  { %v4614_v61 = vadd.f32 %v4613_v11, %v12959_v53 }
0x17c0   :  { %11269 = vtanh.f32 %v4614_v61 }
0x17ca   :  { %v11270_v5 = vpop.eup %11269 }
0x17cb   :  { %v4617_v13 = vmul.f32 %v11270_v5, %v4616_v3 }
0x17cd   :  { %v13184_v0 = vadd.f32 %v4618_v57, %v4617_v13 }
0x17cf   :  { %4620 = vst [vmem:[#allocation2 + $0x8] sm:$0x3] %v13184_v0  ;;  %4686 = vmatmul.mubr.f32.vlgmr.msra.gmra.mrb[52].mxu0 %v13184_v0  ;;  %8550 = vmatmul.mubr.f32.vlgmr.msra.gmra.mrb[48].mxu1 %v13184_v0  ;;  %v4791_v48 = vrot.slane %v13184_v0, 6 }
0x17d0   :  { %10391 = vmatpush1.bf16.msra.mxu0 %v12818_v26  ;;  %10422 = vmatpush3.bf16.msra.mxu1 %v12874_v44 }
0x17d1   :  { %10393 = vmatprep.subr.bf16.mxu0 %v12821_v49  ;;  %10423 = vmatprep.subr.bf16.mxu1 %v11581_v1 }
0x17d2   :  { %4863 = vmatprep.mubr.f32.mxu0 %v11582_v2  ;;  %8584 = vmatprep.mubr.msk.f32.mxu1 %vm11583_vm0, %v11582_v2 }
0x17d4   :  { %10395 = vmatpush1.bf16.msra.mxu0 %v12824_v12  ;;  %10425 = vmatpush3.bf16.msra.mxu1 %v12879_v14 }
0x17d5   :  { %10397 = vmatprep.subr.bf16.mxu0 %v12834_v50  ;;  %10426 = vmatprep.subr.bf16.mxu1 %v11581_v1 }
0x17d8   :  { %10399 = vmatpush1.bf16.msra.mxu0 %v12836_v19  ;;  %10428 = vmatpush3.bf16.msra.mxu1 %v12886_v42 }
0x17d9   :  { %10401 = vmatprep.subr.bf16.mxu0 %v12840_v15  ;;  %10429 = vmatprep.subr.bf16.mxu1 %v11581_v1 }
0x17dc   :  { %10403 = vmatpush1.bf16.msra.mxu0 %v12842_v34  ;;  %10431 = vmatpush3.bf16.msra.mxu1 %v12893_v36 }
0x17dd   :  { %10405 = vmatprep.subr.bf16.mxu0 %v12845_v63  ;;  %10432 = vmatprep.subr.bf16.mxu1 %v11581_v1 }
0x17e0   :  { %10407 = vmatpush1.bf16.msra.mxu0 %v12848_v32  ;;  %10434 = vmatpush3.bf16.msra.mxu1 %v12899_v56 }
0x17e1   :  { %10409 = vmatprep.subr.bf16.mxu0 %v12851_v38  ;;  %10435 = vmatprep.subr.bf16.mxu1 %v11581_v1 }
0x17e4   :  { %10411 = vmatpush1.bf16.msra.mxu0 %v12854_v40  ;;  %10437 = vmatpush3.bf16.msra.mxu1 %v12905_v29 }
0x17e5   :  { %10413 = vmatprep.subr.bf16.mxu0 %v12857_v20  ;;  %10438 = vmatprep.subr.bf16.mxu1 %v11581_v1 }
0x17e8   :  { %10415 = vmatpush1.bf16.msra.mxu0 %v12860_v6  ;;  %10440 = vmatpush3.bf16.msra.mxu1 %v12911_v60 }
0x17e9   :  { %10417 = vmatprep.subr.bf16.mxu0 %v12865_v24  ;;  %10441 = vmatprep.subr.bf16.mxu1 %v11581_v1 }
0x17ec   :  { %10419 = vmatpush1.bf16.msra.mxu0 %v12867_v62  ;;  %10443 = vmatpush3.bf16.msra.mxu1 %v12917_v31 }
0x17ed   :  { %10445 = vmatprep.subr.bf16.mxu0 %v12816_v30  ;;  %10476 = vmatprep.subr.bf16.mxu1 %v11581_v1 }
0x18a2   :  { %v4687_v55 = vpop.f32.mrb[52].mxu0  ;;  %v4758_v22 = vpop.f32.mrb[48].mxu1 }
0x18a3   :  { %v4688_v16 = vadd.f32 %v4687_v55, %v12964_v23  ;;  %v4689_v43 = vpop.f32.mrb[53].mxu0  ;;  %v8551_v39 = vpop.f32.mrb[49].mxu1  ;;  %v4759_v21 = vadd.f32 %v4758_v22, %v12985_v45 }
0x18a4   :  { %v4690_v25 = vadd.f32 %v4689_v43, %v12967_v17 }
0x18a5   :  { %v4763_v33 = vrot.slane %v4688_v16, 6  ;;  %v4783_v28 = vrot.slane %v4759_v21, 6  ;;  %v5161_v21 = vld [vmem:[#allocation15 + $0x48] sm:$0xff] }
0x18a6   :  { %v4773_v27 = vrot.slane %v4690_v25, 6 }
0x18a7   :  { %v4765_v35 = vadd.f32 %v4763_v33, %v13171_v54 }
0x18a8   :  { %v4775_v46 = vadd.f32 %v4773_v27, %v13178_v18  ;;  %v5152_v27 = vld [vmem:[#allocation15] sm:$0xff] }
0x18a9   :  { %v7019_v52 = vmul.f32 -1.442695, %v4765_v35  ;;  %v5155_v35 = vld [vmem:[#allocation15 + $0x18] sm:$0xff] }
0x18aa   :  { %v7020_v59 = vmul.f32 -1.442695, %v4775_v46  ;;  %v5159_v46 = vld [vmem:[#allocation15 + $0x38] sm:$0xff] }
0x18ab   :  { %11271 = vpow2.f32 %v7019_v52  ;;  %v5162_v52 = vld [vmem:[#allocation15 + $0x50] sm:$0xff] }
0x18ac   :  { %11273 = vpow2.f32 %v7020_v59 }
0x18b5   :  { %v11272_v30 = vpop.eup %11271 }
0x18b6   :  { %v11274_v8 = vpop.eup %11273  ;;  %v4769_v4 = vadd.f32 1.0, %v11272_v30  ;;  %v10502_v30 = vpack.c.bf16 %v5155_v35, %v5152_v27  ;;  %v5163_v27 = vld [vmem:[#allocation15 + $0x58] sm:$0xff] }
0x18b7   :  { %v4779_v9 = vadd.f32 1.0, %v11274_v8 }
0x18b8   :  { %11275 = vrcp.f32 %v4769_v4  ;;  %v10504_v4 = vpack.c.bf16 %v5162_v52, %v5159_v46  ;;  %v5370_v46 = vld [vmem:[#allocation16 + $0x8] sm:$0xff]  ;;  %v5373_v52 = vld [vmem:[#allocation16 + $0x20] sm:$0xff] }
0x18b9   :  { %11277 = vrcp.f32 %v4779_v9  ;;  %v5158_v9 = vld [vmem:[#allocation15 + $0x30] sm:$0xff] }
0x18c2   :  { %v11276_v58 = vpop.eup %11275 }
0x18c3   :  { %v11278_v10 = vpop.eup %11277  ;;  %v4785_v11 = vmul.f32 %v11276_v58, %v4783_v28  ;;  %v5165_v28 = vld [vmem:[#allocation15 + $0x68] sm:$0xff]  ;;  %v5168_v58 = vld [vmem:[#allocation15 + $0x80] sm:$0xff] }
0x18c4   :  { %v4793_v61 = vmul.f32 %v11278_v10, %v4791_v48  ;;  %v4788_v3 = vsub.f32 1.0, %v11278_v10  ;;  %v5150_v48 = vld [vmem:[#allocation2] sm:$0xff]  ;;  %v10506_v10 = vpack.c.bf16 %v5161_v21, %v5158_v9  ;;  %v5166_v21 = vld [vmem:[#allocation15 + $0x70] sm:$0xff] }
0x18c5   :  { %v4786_v47 = vadd.f32 %v4785_v11, %v12959_v53  ;;  %v10508_v11 = vpack.c.bf16 %v5168_v58, %v5165_v28  ;;  %v5169_v28 = vld [vmem:[#allocation15 + $0x88] sm:$0xff] }
0x18c6   :  { %v10540_v58 = vpack.c.bf16 %v5169_v28, %v5166_v21  ;;  %v5409_v21 = vld [vmem:[#allocation16 + $0x140] sm:$0xff] }
0x18c7   :  { %11279 = vtanh.f32 %v4786_v47  ;;  %v5167_v47 = vld [vmem:[#allocation15 + $0x78] sm:$0xff]  ;;  %v5405_v28 = vld [vmem:[#allocation16 + $0x120] sm:$0xff] }
0x18d1   :  { %v11280_v5 = vpop.eup %11279 }
0x18d2   :  { %v4789_v13 = vmul.f32 %v11280_v5, %v4788_v3  ;;  %v5171_v3 = vld [vmem:[#allocation15 + $0x98] sm:$0xff]  ;;  %v5174_v5 = vld [vmem:[#allocation15 + $0xb0] sm:$0xff] }
0x18d4   :  { %v13231_v57 = vadd.f32 %v4793_v61, %v4789_v13  ;;  %v5164_v61 = vld [vmem:[#allocation15 + $0x60] sm:$0xff] }
0x18d5   :  { %v10510_v13 = vpack.c.bf16 %v5167_v47, %v5164_v61  ;;  %v5375_v61 = vld [vmem:[#allocation16 + $0x30] sm:$0xff]  ;;  %v5378_v47 = vld [vmem:[#allocation16 + $0x48] sm:$0xff] }
0x18d6   :  { %4795 = vst [vmem:[#allocation2 + $0x8] sm:$0xc] %v13231_v57  ;;  %v4797_v55 = vrot.slane %v13231_v57, 2 }
0x18d8   :  { %4864 = vmatmul.mubr.f32.vlgmr.msra.gmra.mrb[54].mxu0 %v4797_v55  ;;  %8585 = vmatmul.mubr.f32.vlgmr.msra.gmra.mrb[50].mxu1 %v4797_v55  ;;  %v5170_v55 = vld [vmem:[#allocation15 + $0x90] sm:$0xff] }
0x18d9   :  { %10447 = vmatpush1.bf16.msra.mxu0 %v12818_v26  ;;  %10478 = vmatpush3.bf16.msra.mxu1 %v12874_v44  ;;  %v5153_v26 = vld [vmem:[#allocation15 + $0x8] sm:$0xff] }
0x18da   :  { %10449 = vmatprep.subr.bf16.mxu0 %v12821_v49  ;;  %10479 = vmatprep.subr.bf16.mxu1 %v11581_v1  ;;  %v5156_v49 = vld [vmem:[#allocation15 + $0x20] sm:$0xff] }
0x18db   :  { %5040 = vmatprep.mubr.f32.mxu0 %v11582_v2  ;;  %8619 = vmatprep.mubr.msk.f32.mxu1 %vm11583_vm0, %v11582_v2 }
0x18dd   :  { %10451 = vmatpush1.bf16.msra.mxu0 %v12824_v12  ;;  %10481 = vmatpush3.bf16.msra.mxu1 %v12879_v14  ;;  %v10500_v12 = vpack.c.bf16 %v5156_v49, %v5153_v26  ;;  %v5173_v26 = vld [vmem:[#allocation15 + $0xa8] sm:$0xff] }
0x18de   :  { %10453 = vmatprep.subr.bf16.mxu0 %v12834_v50  ;;  %10482 = vmatprep.subr.bf16.mxu1 %v11581_v1  ;;  %v5177_v49 = vld [vmem:[#allocation15 + $0xc8] sm:$0xff] }
0x18e1   :  { %10455 = vmatpush1.bf16.msra.mxu0 %v12836_v19  ;;  %10484 = vmatpush3.bf16.msra.mxu1 %v12886_v42 }
0x18e2   :  { %10457 = vmatprep.subr.bf16.mxu0 %v12840_v15  ;;  %10485 = vmatprep.subr.bf16.mxu1 %v11581_v1 }
0x18e5   :  { %10459 = vmatpush1.bf16.msra.mxu0 %v12842_v34  ;;  %10487 = vmatpush3.bf16.msra.mxu1 %v12893_v36 }
0x18e6   :  { %10461 = vmatprep.subr.bf16.mxu0 %v12845_v63  ;;  %10488 = vmatprep.subr.bf16.mxu1 %v11581_v1 }
0x18e9   :  { %10463 = vmatpush1.bf16.msra.mxu0 %v12848_v32  ;;  %10490 = vmatpush3.bf16.msra.mxu1 %v12899_v56 }
0x18ea   :  { %10465 = vmatprep.subr.bf16.mxu0 %v12851_v38  ;;  %10491 = vmatprep.subr.bf16.mxu1 %v11581_v1 }
0x18ed   :  { %10467 = vmatpush1.bf16.msra.mxu0 %v12854_v40  ;;  %10493 = vmatpush3.bf16.msra.mxu1 %v12905_v29 }
0x18ee   :  { %10469 = vmatprep.subr.bf16.mxu0 %v12857_v20  ;;  %10494 = vmatprep.subr.bf16.mxu1 %v11581_v1 }
0x18f1   :  { %10471 = vmatpush1.bf16.msra.mxu0 %v12860_v6  ;;  %10496 = vmatpush3.bf16.msra.mxu1 %v12911_v60 }
0x18f2   :  { %10473 = vmatprep.subr.bf16.mxu0 %v12865_v24  ;;  %10497 = vmatprep.subr.bf16.mxu1 %v11581_v1 }
0x18f5   :  { %10475 = vmatpush1.bf16.msra.mxu0 %v12867_v62  ;;  %10499 = vmatpush3.bf16.msra.mxu1 %v12917_v31  ;;  %v4968_v31 = vrot.slane %v13231_v57, 6  ;;  %v10512_v57 = vpack.c.bf16 %v5174_v5, %v5171_v3  ;;  %v13289_v3 = vpack.c.bf16 %v5378_v47, %v5375_v61  ;;  %v5172_v5 = vld [vmem:[#allocation15 + $0xa0] sm:$0xff]  ;;  %v5412_v61 = vld [vmem:[#allocation16 + $0x158] sm:$0xff]  ;;  %v5415_v47 = vld [vmem:[#allocation16 + $0x170] sm:$0xff] }
0x18f6   :  { %10501 = vmatprep.subr.bf16.mxu0 %v10500_v12  ;;  %v5180_v12 = vld [vmem:[#allocation15 + $0xe0] sm:$0xff] }
0x19ab   :  { %v4865_v50 = vpop.f32.mrb[54].mxu0  ;;  %v4936_v19 = vpop.f32.mrb[50].mxu1 }
0x19ac   :  { %v4866_v15 = vadd.f32 %v4865_v50, %v12964_v23  ;;  %v4867_v34 = vpop.f32.mrb[55].mxu0  ;;  %v8586_v63 = vpop.f32.mrb[51].mxu1  ;;  %v4937_v56 = vadd.f32 %v4936_v19, %v12985_v45  ;;  %v10514_v50 = vpack.c.bf16 %v5173_v26, %v5170_v55  ;;  %v10516_v19 = vpack.c.bf16 %v5180_v12, %v5177_v49  ;;  %v5382_v55 = vld [vmem:[#allocation16 + $0x68] sm:$0xff]  ;;  %v5385_v26 = vld [vmem:[#allocation16 + $0x80] sm:$0xff] }
0x19ad   :  { %v4868_v32 = vadd.f32 %v4867_v34, %v12967_v17  ;;  %v5179_v34 = vld [vmem:[#allocation15 + $0xd8] sm:$0xff]  ;;  %v13293_v49 = vpack.c.bf16 %v5385_v26, %v5382_v55  ;;  %v5381_v12 = vld [vmem:[#allocation16 + $0x60] sm:$0xff] }
0x19ae   :  { %v4941_v38 = vrot.slane %v4866_v15, 4  ;;  %v4961_v29 = vrot.slane %v4937_v56, 4  ;;  %v5176_v15 = vld [vmem:[#allocation15 + $0xc0] sm:$0xff]  ;;  %v5183_v63 = vld [vmem:[#allocation15 + $0xf8] sm:$0xff] }
0x19af   :  { %v4951_v40 = vrot.slane %v4868_v32, 4  ;;  %v5186_v32 = vld [vmem:[#allocation15 + $0x110] sm:$0xff]  ;;  %v5195_v56 = vld [vmem:[#allocation15 + $0x158] sm:$0xff] }
0x19b0   :  { %v4943_v20 = vadd.f32 %v4941_v38, %v13171_v54  ;;  %v10518_v38 = vpack.c.bf16 %v5179_v34, %v5176_v15  ;;  %v5178_v15 = vld [vmem:[#allocation15 + $0xd0] sm:$0xff]  ;;  %v5181_v34 = vld [vmem:[#allocation15 + $0xe8] sm:$0xff] }
0x19b1   :  { %v4953_v6 = vadd.f32 %v4951_v40, %v13178_v18  ;;  %v10520_v40 = vpack.c.bf16 %v5186_v32, %v5183_v63  ;;  %v10548_v63 = vpack.c.bf16 %v5181_v34, %v5178_v15  ;;  %v5388_v32 = vld [vmem:[#allocation16 + $0x98] sm:$0xff] }
0x19b2   :  { %v7021_v24 = vmul.f32 -1.442695, %v4943_v20  ;;  %v5182_v20 = vld [vmem:[#allocation15 + $0xf0] sm:$0xff] }
0x19b3   :  { %v7022_v62 = vmul.f32 -1.442695, %v4953_v6  ;;  %v5185_v6 = vld [vmem:[#allocation15 + $0x108] sm:$0xff] }
0x19b4   :  { %11281 = vpow2.f32 %v7021_v24  ;;  %v5189_v24 = vld [vmem:[#allocation15 + $0x128] sm:$0xff] }
0x19b5   :  { %11283 = vpow2.f32 %v7022_v62  ;;  %v5192_v62 = vld [vmem:[#allocation15 + $0x140] sm:$0xff] }
0x19be   :  { %v11282_v44 = vpop.eup %11281 }
0x19bf   :  { %v11284_v14 = vpop.eup %11283  ;;  %v4947_v42 = vadd.f32 1.0, %v11282_v44  ;;  %v10522_v44 = vpack.c.bf16 %v5185_v6, %v5182_v20  ;;  %v5387_v20 = vld [vmem:[#allocation16 + $0x90] sm:$0xff]  ;;  %v5390_v6 = vld [vmem:[#allocation16 + $0xa8] sm:$0xff] }
0x19c0   :  { %v4957_v36 = vadd.f32 1.0, %v11284_v14  ;;  %v10524_v14 = vpack.c.bf16 %v5192_v62, %v5189_v24  ;;  %v13301_v24 = vpack.c.bf16 %v5390_v6, %v5387_v20  ;;  %v5184_v62 = vld [vmem:[#allocation15 + $0x100] sm:$0xff] }
0x19c1   :  { %11285 = vrcp.f32 %v4947_v42  ;;  %v5188_v42 = vld [vmem:[#allocation15 + $0x120] sm:$0xff] }
0x19c2   :  { %11287 = vrcp.f32 %v4957_v36  ;;  %v5191_v36 = vld [vmem:[#allocation15 + $0x138] sm:$0xff] }
0x19cb   :  { %v11286_v60 = vpop.eup %11285 }
0x19cc   :  { %v11288_v0 = vpop.eup %11287  ;;  %v4963_v22 = vmul.f32 %v11286_v60, %v4961_v29  ;;  %v5198_v29 = vld [vmem:[#allocation15 + $0x170] sm:$0xff]  ;;  %v10526_v60 = vpack.c.bf16 %v5191_v36, %v5188_v42  ;;  %v5394_v42 = vld [vmem:[#allocation16 + $0xc8] sm:$0xff]  ;;  %v5397_v36 = vld [vmem:[#allocation16 + $0xe0] sm:$0xff] }
0x19cd   :  { %v4970_v16 = vmul.f32 %v11288_v0, %v4968_v31  ;;  %v4966_v39 = vsub.f32 1.0, %v11288_v0  ;;  %v10528_v31 = vpack.c.bf16 %v5198_v29, %v5195_v56  ;;  %v5194_v0 = vld [vmem:[#allocation15 + $0x150] sm:$0xff]  ;;  %v13305_v56 = vpack.c.bf16 %v5397_v36, %v5394_v42  ;;  %v5393_v29 = vld [vmem:[#allocation16 + $0xc0] sm:$0xff] }
0x19ce   :  { %v4964_v43 = vadd.f32 %v4963_v22, %v12959_v53  ;;  %v5197_v22 = vld [vmem:[#allocation15 + $0x168] sm:$0xff] }
0x19d0   :  { %11289 = vtanh.f32 %v4964_v43  ;;  %v5154_v43 = vld [vmem:[#allocation15 + $0x10] sm:$0xff] }
0x19da   :  { %v11290_v25 = vpop.eup %11289 }
0x19db   :  { %v4967_v33 = vmul.f32 %v11290_v25, %v4966_v39  ;;  %v5157_v39 = vld [vmem:[#allocation15 + $0x28] sm:$0xff] }
0x19dc   :  { %v10532_v25 = vpack.c.bf16 %v5157_v39, %v5154_v43  ;;  %v5400_v43 = vld [vmem:[#allocation16 + $0xf8] sm:$0xff]  ;;  %v5403_v39 = vld [vmem:[#allocation16 + $0x110] sm:$0xff] }
0x19dd   :  { %v13275_v59 = vadd.f32 %v4970_v16, %v4967_v33  ;;  %v10530_v16 = vpack.c.bf16 %v5197_v22, %v5194_v0  ;;  %v5160_v33 = vld [vmem:[#allocation15 + $0x40] sm:$0xff]  ;;  %v5190_v0 = vld [vmem:[#allocation15 + $0x130] sm:$0xff]  ;;  %v5193_v22 = vld [vmem:[#allocation15 + $0x148] sm:$0xff] }
0x19de   :  { %10533 = vmatprep.subr.bf16.mxu1 %v10532_v25  ;;  %v10536_v35 = vpack.c.bf16 %v5163_v27, %v5160_v33  ;;  %v5399_v33 = vld [vmem:[#allocation16 + $0xf0] sm:$0xff]  ;;  %v5402_v27 = vld [vmem:[#allocation16 + $0x108] sm:$0xff] }
0x19df   :  { %4972 = vst [vmem:[#allocation2 + $0x8] sm:$0x30] %v13275_v59  ;;  %v4974_v8 = vrot.slane %v13275_v59, 4 }
0x19e1   :  { %5041 = vmatmul.mubr.f32.vlgmr.msra.gmra.mrb[56].mxu0 %v4974_v8  ;;  %8620 = vmatmul.mubr.f32.vlgmr.msra.gmra.mrb[52].mxu1 %v4974_v8  ;;  %v5369_v8 = vld [vmem:[#allocation16] sm:$0xff] }
0x19e2   :  { %10503 = vmatpush1.bf16.msra.mxu0 %v10502_v30  ;;  %8654 = vmatprep.mubr.f32.mxu1 %v5150_v48  ;;  %v13281_v30 = vpack.c.bf16 %v5373_v52, %v5370_v46  ;;  %v5196_v46 = vld [vmem:[#allocation15 + $0x160] sm:$0xff]  ;;  %v5199_v52 = vld [vmem:[#allocation15 + $0x178] sm:$0xff] }
0x19e3   :  { %10505 = vmatprep.subr.bf16.mxu0 %v10504_v4  ;;  %5281 = vmatprep.mubr.f32.mxu0 %v11582_v2  ;;  %v5372_v4 = vld [vmem:[#allocation16 + $0x18] sm:$0xff] }
0x19e4   :  { %10535 = vmatpush3.bf16.msra.mxu1 %v10532_v25  ;;  %v13283_v9 = vpack.c.bf16 %v5372_v4, %v5369_v8  ;;  %v13311_v25 = vpack.c.bf16 %v5403_v39, %v5400_v43  ;;  %v5406_v8 = vld [vmem:[#allocation16 + $0x128] sm:$0xff]  ;;  %v10560_v4 = vpack.c.bf16 %v5199_v52, %v5196_v46 }
0x19e5   :  { %10537 = vmatprep.subr.bf16.mxu1 %v10536_v35 }
0x19e6   :  { %10507 = vmatpush1.bf16.msra.mxu0 %v10506_v10  ;;  %v5379_v10 = vld [vmem:[#allocation16 + $0x50] sm:$0xff] }
0x19e7   :  { %10509 = vmatprep.subr.bf16.mxu0 %v10508_v11 }
0x19e8   :  { %10539 = vmatpush3.bf16.msra.mxu1 %v10536_v35  ;;  %v13313_v35 = vpack.c.bf16 %v5402_v27, %v5399_v33 }
0x19e9   :  { %10541 = vmatprep.subr.bf16.mxu1 %v10540_v58 }
0x19ea   :  { %10511 = vmatpush1.bf16.msra.mxu0 %v10510_v13  ;;  %v5175_v13 = vld [vmem:[#allocation15 + $0xb8] sm:$0xff] }
0x19eb   :  { %10513 = vmatprep.subr.bf16.mxu0 %v10512_v57  ;;  %v10544_v57 = vpack.c.bf16 %v5175_v13, %v5172_v5  ;;  %v13324_v5 = vpack.c.bf16 %v5415_v47, %v5412_v61  ;;  %v5411_v13 = vld [vmem:[#allocation16 + $0x150] sm:$0xff]  ;;  %v5386_v61 = vld [vmem:[#allocation16 + $0x88] sm:$0xff] }
0x19ec   :  { %10543 = vmatpush3.bf16.msra.mxu1 %v10540_v58  ;;  %v5408_v58 = vld [vmem:[#allocation16 + $0x138] sm:$0xff] }
0x19ed   :  { %10545 = vmatprep.subr.bf16.mxu1 %v10544_v57 }
0x19ee   :  { %10515 = vmatpush1.bf16.msra.mxu0 %v10514_v50  ;;  %v5384_v50 = vld [vmem:[#allocation16 + $0x78] sm:$0xff] }
0x19ef   :  { %10517 = vmatprep.subr.bf16.mxu0 %v10516_v19  ;;  %v13295_v19 = vpack.c.bf16 %v5384_v50, %v5381_v12 }
0x19f0   :  { %10547 = vmatpush3.bf16.msra.mxu1 %v10544_v57  ;;  %v5414_v57 = vld [vmem:[#allocation16 + $0x168] sm:$0xff] }
0x19f1   :  { %10549 = vmatprep.subr.bf16.mxu1 %v10548_v63  ;;  %v13326_v55 = vpack.c.bf16 %v5414_v57, %v5411_v13  ;;  %v5389_v13 = vld [vmem:[#allocation16 + $0xa0] sm:$0xff]  ;;  %v5392_v57 = vld [vmem:[#allocation16 + $0xb8] sm:$0xff] }
0x19f2   :  { %10519 = vmatpush1.bf16.msra.mxu0 %v10518_v38  ;;  %v5391_v38 = vld [vmem:[#allocation16 + $0xb0] sm:$0xff] }
0x19f3   :  { %10521 = vmatprep.subr.bf16.mxu0 %v10520_v40  ;;  %v13299_v40 = vpack.c.bf16 %v5391_v38, %v5388_v32 }
0x19f4   :  { %10551 = vmatpush3.bf16.msra.mxu1 %v10548_v63 }
0x19f6   :  { %10523 = vmatpush1.bf16.msra.mxu0 %v10522_v44  ;;  %v5187_v44 = vld [vmem:[#allocation15 + $0x118] sm:$0xff] }
0x19f7   :  { %10525 = vmatprep.subr.bf16.mxu0 %v10524_v14  ;;  %v10552_v14 = vpack.c.bf16 %v5187_v44, %v5184_v62 }
0x19f9   :  { %10553 = vmatprep.subr.bf16.mxu1 %v10552_v14 }
0x19fa   :  { %10527 = vmatpush1.bf16.msra.mxu0 %v10526_v60  ;;  %v5396_v60 = vld [vmem:[#allocation16 + $0xd8] sm:$0xff]  ;;  %10555 = vmatpush3.bf16.msra.mxu1 %v10552_v14 }
0x19fb   :  { %10529 = vmatprep.subr.bf16.mxu0 %v10528_v31  ;;  %v13307_v31 = vpack.c.bf16 %v5396_v60, %v5393_v29 }
0x19fe   :  { %10531 = vmatpush1.bf16.msra.mxu0 %v10530_v16  ;;  %v10556_v16 = vpack.c.bf16 %v5193_v22, %v5190_v0  ;;  %v5145_v0 = vrot.slane %v13275_v59, 6  ;;  %v5377_v59 = vld [vmem:[#allocation16 + $0x40] sm:$0xff] }
0x19ff   :  { %10565 = vmatprep.subr.bf16.mxu0 %v13281_v30 }
0x1a00   :  { %10557 = vmatprep.subr.bf16.mxu1 %v10556_v16 }
0x1a01   :  { %5282 = vmatmul.mubr.f32.vlgmr.msra.gmra.mrb[58].mxu0 %v5150_v48  ;;  %v5376_v48 = vld [vmem:[#allocation16 + $0x38] sm:$0xff]  ;;  %10559 = vmatpush3.bf16.msra.mxu1 %v10556_v16 }
0x1a02   :  { %5287 = vmatprep.mubr.f32.mxu0 %v11582_v2  ;;  %10567 = vmatpush1.bf16.msra.mxu0 %v13283_v9  ;;  %v13287_v11 = vpack.c.bf16 %v5379_v10, %v5376_v48  ;;  %v13317_v48 = vpack.c.bf16 %v5409_v21, %v5406_v8  ;;  %v13319_v10 = vpack.c.bf16 %v5408_v58, %v5405_v28  ;;  %v5374_v8 = vld [vmem:[#allocation16 + $0x28] sm:$0xff]  ;;  %v5380_v21 = vld [vmem:[#allocation16 + $0x58] sm:$0xff]  ;;  %v5383_v58 = vld [vmem:[#allocation16 + $0x70] sm:$0xff] }
0x1a03   :  { %10561 = vmatprep.subr.bf16.mxu1 %v10560_v4  ;;  %v13353_v47 = vpack.c.bf16 %v5386_v61, %v5383_v58 }
0x1a04   :  { %10569 = vmatprep.subr.bf16.mxu0 %v13287_v11 }
0x1a05   :  { %10563 = vmatpush3.bf16.msra.mxu1 %v10560_v4 }
0x1a06   :  { %10571 = vmatpush1.bf16.msra.mxu0 %v13289_v3  ;;  %10596 = vmatprep.subr.bf16.mxu1 %v11581_v1 }
0x1a07   :  { %10573 = vmatprep.subr.bf16.mxu0 %v13293_v49 }
0x1a0a   :  { %10575 = vmatpush1.bf16.msra.mxu0 %v13295_v19 }
0x1a0b   :  { %10577 = vmatprep.subr.bf16.mxu0 %v13299_v40 }
0x1a0e   :  { %10579 = vmatpush1.bf16.msra.mxu0 %v13301_v24 }
0x1a0f   :  { %10581 = vmatprep.subr.bf16.mxu0 %v13305_v56 }
0x1a12   :  { %10583 = vmatpush1.bf16.msra.mxu0 %v13307_v31 }
0x1a13   :  { %10585 = vmatprep.subr.bf16.mxu0 %v13311_v25 }
0x1a16   :  { %10587 = vmatpush1.bf16.msra.mxu0 %v13313_v35 }
0x1a17   :  { %10589 = vmatprep.subr.bf16.mxu0 %v13317_v48 }
0x1a1a   :  { %10591 = vmatpush1.bf16.msra.mxu0 %v13319_v10 }
0x1a1b   :  { %10593 = vmatprep.subr.bf16.mxu0 %v13324_v5 }
0x1a1e   :  { %10595 = vmatpush1.bf16.msra.mxu0 %v13326_v55 }
0x1a1f   :  { %10621 = vmatprep.subr.bf16.mxu0 %v13281_v30 }
0x1ab4   :  { %v5042_v26 = vpop.f32.mrb[56].mxu0  ;;  %v5113_v12 = vpop.f32.mrb[52].mxu1 }
0x1ab5   :  { %v5043_v50 = vadd.f32 %v5042_v26, %v12964_v23  ;;  %v5044_v15 = vpop.f32.mrb[57].mxu0  ;;  %v8621_v34 = vpop.f32.mrb[53].mxu1  ;;  %v5114_v23 = vadd.f32 %v5113_v12, %v12985_v45  ;;  %v5371_v45 = vld [vmem:[#allocation16 + $0x10] sm:$0xff]  ;;  %v13360_v26 = vpack.c.bf16 %v5392_v57, %v5389_v13 }
0x1ab6   :  { %v5045_v63 = vadd.f32 %v5044_v15, %v12967_v17  ;;  %v13342_v4 = vpack.c.bf16 %v5374_v8, %v5371_v45  ;;  %v5395_v12 = vld [vmem:[#allocation16 + $0xd0] sm:$0xff]  ;;  %v5401_v34 = vld [vmem:[#allocation16 + $0x100] sm:$0xff] }
0x1ab7   :  { %v5118_v32 = vrot.slane %v5043_v50, 2  ;;  %v5138_v60 = vrot.slane %v5114_v23, 2  ;;  %v5398_v50 = vld [vmem:[#allocation16 + $0xe8] sm:$0xff] }
0x1ab8   :  { %v5128_v38 = vrot.slane %v5045_v63, 2  ;;  %v13366_v15 = vpack.c.bf16 %v5398_v50, %v5395_v12  ;;  %v5404_v63 = vld [vmem:[#allocation16 + $0x118] sm:$0xff] }
0x1ab9   :  { %v5120_v20 = vadd.f32 %v5118_v32, %v13171_v54  ;;  %v13372_v32 = vpack.c.bf16 %v5404_v63, %v5401_v34 }
0x1aba   :  { %v5130_v6 = vadd.f32 %v5128_v38, %v13178_v18  ;;  %v5407_v38 = vld [vmem:[#allocation16 + $0x130] sm:$0xff] }
0x1abb   :  { %v7023_v62 = vmul.f32 -1.442695, %v5120_v20  ;;  %v5410_v20 = vld [vmem:[#allocation16 + $0x148] sm:$0xff] }
0x1abc   :  { %v7024_v44 = vmul.f32 -1.442695, %v5130_v6  ;;  %v13378_v6 = vpack.c.bf16 %v5410_v20, %v5407_v38 }
0x1abd   :  { %11291 = vpow2.f32 %v7023_v62  ;;  %v5413_v62 = vld [vmem:[#allocation16 + $0x160] sm:$0xff] }
0x1abe   :  { %11293 = vpow2.f32 %v7024_v44  ;;  %v5416_v44 = vld [vmem:[#allocation16 + $0x178] sm:$0xff] }
0x1ac7   :  { %v11292_v14 = vpop.eup %11291 }
0x1ac8   :  { %v11294_v42 = vpop.eup %11293  ;;  %v5124_v36 = vadd.f32 1.0, %v11292_v14  ;;  %v13384_v14 = vpack.c.bf16 %v5416_v44, %v5413_v62 }
0x1ac9   :  { %v5134_v29 = vadd.f32 1.0, %v11294_v42  ;;  %v5200_v42 = vld [vmem:[%s13840_s15] sm:$0x7] }
0x1aca   :  { %11295 = vrcp.f32 %v5124_v36  ;;  %v5213_v36 = vrot.slane %v5200_v42, %v12018_v7 }
0x1acb   :  { %11297 = vrcp.f32 %v5134_v29  ;;  %v5417_v29 = vld [vmem:[%s13841_s16] sm:$0x7] }
0x1acc   :  { %v13452_v13 = vrot.slane %v5417_v29, %v12018_v7 }
0x1ad4   :  { %v11296_v17 = vpop.eup %11295  ;;  %v13337_v22 = vpop.f32.mrb[58].mxu0 }
0x1ad5   :  { %v11298_v54 = vpop.eup %11297  ;;  %v5140_v18 = vmul.f32 %v11296_v17, %v5138_v60  ;;  %v13339_v16 = vpop.f32.mrb[59].mxu0  ;;  %v13424_v17 = vrot.slane %v5200_v42, %v11992_v37 }
0x1ad6   :  { %v5147_v43 = vmul.f32 %v11298_v54, %v5145_v0  ;;  %v5143_v33 = vsub.f32 1.0, %v11298_v54 }
0x1ad7   :  { %v5141_v39 = vadd.f32 %v5140_v18, %v12959_v53  ;;  %v13346_v53 = vpack.c.bf16 %v5380_v21, %v5377_v59 }
0x1ad9   :  { %11299 = vtanh.f32 %v5141_v39  ;;  %v13434_v39 = vrot.slane %v5417_v29, %v12000_v41 }
0x1ae3   :  { %v11300_v27 = vpop.eup %11299 }
0x1ae4   :  { %v5144_v46 = vmul.f32 %v11300_v27, %v5143_v33  ;;  %v13437_v33 = vrot.slane %v5200_v42, %v12000_v41 }
0x1ae6   :  { %v5148_v52 = vadd.f32 %v5147_v43, %v5144_v46  ;;  %v13431_v43 = vrot.slane %v5417_v29, %v11992_v37  ;;  %v13441_v46 = vadd.f32 %v13337_v22, %v13424_v17  ;;  %v13448_v37 = vadd.f32 %v13339_v16, %v13437_v33 }
0x1ae8   :  { %5149 = vst [vmem:[#allocation2 + $0x8] sm:$0xc0] %v5148_v52 }
0x1aef   :  { %v5151_v28 = vld [vmem:[#allocation2 + $0x8] sm:$0xff] }
0x1af0   :  { %5288 = vmatmul.mubr.f32.gmra.mrb[60].mxu0 %v5151_v28  ;;  %8655 = vmatmul.mubr.f32.vlgmr.msra.gmra.mrb[54].mxu1 %v5151_v28 }
0x1af1   :  { %10598 = vmatpush3.bf16.msra.mxu1 %v13342_v4  ;;  %5498 = vmatprep.mubr.f32.mxu0 %v11582_v2 }
0x1af2   :  { %10599 = vmatprep.subr.bf16.mxu1 %v11581_v1  ;;  %8689 = vmatprep.mubr.msk.f32.mxu1 %vm11583_vm0, %v11582_v2 }
0x1af4   :  { %5499 = vmatmul.mubr.f32.vlgmr.msra.gmra.mrb[62].mxu0 %v11582_v2 }
0x1af5   :  { %10601 = vmatpush3.bf16.msra.mxu1 %v13346_v53  ;;  %10623 = vmatpush1.bf16.msra.mxu0 %v13283_v9 }
0x1af6   :  { %10602 = vmatprep.subr.bf16.mxu1 %v11581_v1  ;;  %10625 = vmatprep.subr.bf16.mxu0 %v13287_v11 }
0x1af7   :  { %5661 = vmatprep.mubr.f32.mxu0 %v11582_v2 }
0x1af9   :  { %10604 = vmatpush3.bf16.msra.mxu1 %v13353_v47  ;;  %10627 = vmatpush1.bf16.msra.mxu0 %v13289_v3 }
0x1afa   :  { %10605 = vmatprep.subr.bf16.mxu1 %v11581_v1  ;;  %10629 = vmatprep.subr.bf16.mxu0 %v13293_v49 }
0x1afd   :  { %10607 = vmatpush3.bf16.msra.mxu1 %v13360_v26  ;;  %10631 = vmatpush1.bf16.msra.mxu0 %v13295_v19 }
0x1afe   :  { %10608 = vmatprep.subr.bf16.mxu1 %v11581_v1  ;;  %10633 = vmatprep.subr.bf16.mxu0 %v13299_v40 }
0x1b01   :  { %10610 = vmatpush3.bf16.msra.mxu1 %v13366_v15  ;;  %10635 = vmatpush1.bf16.msra.mxu0 %v13301_v24 }
0x1b02   :  { %10611 = vmatprep.subr.bf16.mxu1 %v11581_v1  ;;  %10637 = vmatprep.subr.bf16.mxu0 %v13305_v56 }
0x1b05   :  { %10613 = vmatpush3.bf16.msra.mxu1 %v13372_v32  ;;  %10639 = vmatpush1.bf16.msra.mxu0 %v13307_v31 }
0x1b06   :  { %10614 = vmatprep.subr.bf16.mxu1 %v11581_v1  ;;  %10641 = vmatprep.subr.bf16.mxu0 %v13311_v25 }
0x1b09   :  { %10616 = vmatpush3.bf16.msra.mxu1 %v13378_v6  ;;  %10643 = vmatpush1.bf16.msra.mxu0 %v13313_v35 }
0x1b0a   :  { %10617 = vmatprep.subr.bf16.mxu1 %v11581_v1  ;;  %10645 = vmatprep.subr.bf16.mxu0 %v13317_v48 }
0x1b0d   :  { %10619 = vmatpush3.bf16.msra.mxu1 %v13384_v14  ;;  %10647 = vmatpush1.bf16.msra.mxu0 %v13319_v10 }
0x1b0e   :  { %10652 = vmatprep.subr.bf16.mxu1 %v11581_v1  ;;  %10649 = vmatprep.subr.bf16.mxu0 %v13324_v5 }
0x1b10   :  { %8690 = vmatmul.mubr.f32.vlgmr.msra.gmra.mrb[56].mxu1 %v11582_v2 }
0x1b11   :  { %10654 = vmatpush3.bf16.msra.mxu1 %v13342_v4  ;;  %10651 = vmatpush1.bf16.msra.mxu0 %v13326_v55 }
0x1b12   :  { %10655 = vmatprep.subr.bf16.mxu1 %v11581_v1  ;;  %8724 = vmatprep.mubr.msk.f32.mxu1 %vm11583_vm0, %v11582_v2 }
0x1b13   :  { %10677 = vmatprep.subr.bf16.mxu0 %v13281_v30 }
0x1b15   :  { %10657 = vmatpush3.bf16.msra.mxu1 %v13346_v53 }
0x1b16   :  { %10658 = vmatprep.subr.bf16.mxu1 %v11581_v1 }
0x1b19   :  { %10660 = vmatpush3.bf16.msra.mxu1 %v13353_v47 }
0x1b1a   :  { %10661 = vmatprep.subr.bf16.mxu1 %v11581_v1 }
0x1b1d   :  { %10663 = vmatpush3.bf16.msra.mxu1 %v13360_v26 }
0x1b1e   :  { %10664 = vmatprep.subr.bf16.mxu1 %v11581_v1 }
0x1b21   :  { %10666 = vmatpush3.bf16.msra.mxu1 %v13366_v15 }
0x1b22   :  { %10667 = vmatprep.subr.bf16.mxu1 %v11581_v1 }
0x1b25   :  { %10669 = vmatpush3.bf16.msra.mxu1 %v13372_v32 }
0x1b26   :  { %10670 = vmatprep.subr.bf16.mxu1 %v11581_v1 }
0x1b29   :  { %10672 = vmatpush3.bf16.msra.mxu1 %v13378_v6 }
0x1b2a   :  { %10673 = vmatprep.subr.bf16.mxu1 %v11581_v1 }
0x1b2d   :  { %10675 = vmatpush3.bf16.msra.mxu1 %v13384_v14 }
0x1b2e   :  { %10708 = vmatprep.subr.bf16.mxu1 %v11581_v1 }
0x1bc3   :  { %v13421_v23 = vpop.f32.mrb[60].mxu0  ;;  %v8656_v60 = vpop.f32.mrb[54].mxu1 }
0x1bc4   :  { %v13426_v0 = vadd.f32 %v8656_v60, %v5213_v36  ;;  %v13428_v54 = vpop.f32.mrb[61].mxu0  ;;  %v5360_v18 = vpop.f32.mrb[55].mxu1 }
0x1bc5   :  { %v13455_v63 = vadd.f32 %v5360_v18, %v5213_v36 }
0x1bc7   :  { %v5500_v27 = vpop.f32.mrb[62].mxu0 }
0x1bc8   :  { %v5501_v52 = vadd.f32 %v5500_v27, %v13431_v43  ;;  %v5502_v45 = vpop.f32.mrb[63].mxu0 }
0x1bc9   :  { %v5503_v8 = vadd.f32 %v5502_v45, %v13434_v39 }
0x1bca   :  { %v5575_v59 = vadd.f32 %v5501_v52, %v13441_v46 }
0x1bcb   :  { %v5582_v41 = vadd.f32 %v5503_v8, %v13448_v37 }
0x1bcc   :  { %v7025_v21 = vmul.f32 -1.442695, %v5575_v59 }
0x1bcd   :  { %v7026_v28 = vmul.f32 -1.442695, %v5582_v41 }
0x1bce   :  { %11301 = vpow2.f32 %v7025_v21 }
0x1bcf   :  { %11303 = vpow2.f32 %v7026_v28 }
0x1bd8   :  { %v11302_v58 = vpop.eup %11301 }
0x1bd9   :  { %v5579_v22 = vadd.f32 1.0, %v11302_v58  ;;  %v11304_v61 = vpop.eup %11303 }
0x1bda   :  { %v5586_v57 = vadd.f32 1.0, %v11304_v61 }
0x1bdb   :  { %11305 = vrcp.f32 %v5579_v22 }
0x1bdc   :  { %11307 = vrcp.f32 %v5586_v57 }
0x1be3   :  { %v5571_v12 = vpop.f32.mrb[56].mxu1 }
0x1be4   :  { %v5572_v50 = vadd.f32 %v5571_v12, %v13452_v13  ;;  %v8691_v34 = vpop.f32.mrb[57].mxu1 }
0x1be5   :  { %v11306_v16 = vpop.eup %11305 }
0x1be6   :  { %v5589_v38 = vmul.f32 %v11306_v16, %v5572_v50  ;;  %v11308_v62 = vpop.eup %11307 }
0x1be7   :  { %v5592_v44 = vsub.f32 1.0, %v11308_v62  ;;  %v5594_v27 = vmul.f32 0.0, %v11308_v62 }
0x1be8   :  { %v5590_v20 = vadd.f32 %v5589_v38, %v13455_v63 }
0x1bea   :  { %11309 = vtanh.f32 %v5590_v20 }
0x1bf4   :  { %v11310_v42 = vpop.eup %11309 }
0x1bf5   :  { %v5593_v60 = vmul.f32 %v11310_v42, %v5592_v44 }
0x1bf7   :  { %v13458_v7 = vadd.f32 %v5594_v27, %v5593_v60 }
0x1bf9   :  { %5596 = vst [vmem:[#allocation3] sm:$0x3] %v13458_v7  ;;  %5662 = vmatmul.mubr.f32.vlgmr.msra.gmra.mrb[64].mxu0 %v13458_v7  ;;  %8725 = vmatmul.mubr.f32.vlgmr.msra.gmra.mrb[58].mxu1 %v13458_v7  ;;  %v5767_v20 = vrot.slane %v13458_v7, 6 }
0x1bfa   :  { %10679 = vmatpush1.bf16.msra.mxu0 %v13283_v9  ;;  %10710 = vmatpush3.bf16.msra.mxu1 %v13342_v4 }
0x1bfb   :  { %10681 = vmatprep.subr.bf16.mxu0 %v13287_v11  ;;  %10711 = vmatprep.subr.bf16.mxu1 %v11581_v1 }
0x1bfc   :  { %5839 = vmatprep.mubr.f32.mxu0 %v11582_v2  ;;  %8759 = vmatprep.mubr.msk.f32.mxu1 %vm11583_vm0, %v11582_v2 }
0x1bfe   :  { %10683 = vmatpush1.bf16.msra.mxu0 %v13289_v3  ;;  %10713 = vmatpush3.bf16.msra.mxu1 %v13346_v53 }
0x1bff   :  { %10685 = vmatprep.subr.bf16.mxu0 %v13293_v49  ;;  %10714 = vmatprep.subr.bf16.mxu1 %v11581_v1 }
0x1c02   :  { %10687 = vmatpush1.bf16.msra.mxu0 %v13295_v19  ;;  %10716 = vmatpush3.bf16.msra.mxu1 %v13353_v47 }
0x1c03   :  { %10689 = vmatprep.subr.bf16.mxu0 %v13299_v40  ;;  %10717 = vmatprep.subr.bf16.mxu1 %v11581_v1 }
0x1c06   :  { %10691 = vmatpush1.bf16.msra.mxu0 %v13301_v24  ;;  %10719 = vmatpush3.bf16.msra.mxu1 %v13360_v26 }
0x1c07   :  { %10693 = vmatprep.subr.bf16.mxu0 %v13305_v56  ;;  %10720 = vmatprep.subr.bf16.mxu1 %v11581_v1 }
0x1c0a   :  { %10695 = vmatpush1.bf16.msra.mxu0 %v13307_v31  ;;  %10722 = vmatpush3.bf16.msra.mxu1 %v13366_v15 }
0x1c0b   :  { %10697 = vmatprep.subr.bf16.mxu0 %v13311_v25  ;;  %10723 = vmatprep.subr.bf16.mxu1 %v11581_v1 }
0x1c0e   :  { %10699 = vmatpush1.bf16.msra.mxu0 %v13313_v35  ;;  %10725 = vmatpush3.bf16.msra.mxu1 %v13372_v32 }
0x1c0f   :  { %10701 = vmatprep.subr.bf16.mxu0 %v13317_v48  ;;  %10726 = vmatprep.subr.bf16.mxu1 %v11581_v1 }
0x1c12   :  { %10703 = vmatpush1.bf16.msra.mxu0 %v13319_v10  ;;  %10728 = vmatpush3.bf16.msra.mxu1 %v13378_v6 }
0x1c13   :  { %10705 = vmatprep.subr.bf16.mxu0 %v13324_v5  ;;  %10729 = vmatprep.subr.bf16.mxu1 %v11581_v1 }
0x1c16   :  { %10707 = vmatpush1.bf16.msra.mxu0 %v13326_v55  ;;  %10731 = vmatpush3.bf16.msra.mxu1 %v13384_v14 }
0x1c17   :  { %10733 = vmatprep.subr.bf16.mxu0 %v13281_v30  ;;  %10764 = vmatprep.subr.bf16.mxu1 %v11581_v1 }
0x1ccc   :  { %v5663_v36 = vpop.f32.mrb[64].mxu0  ;;  %v5734_v29 = vpop.f32.mrb[58].mxu1 }
0x1ccd   :  { %v5664_v18 = vadd.f32 %v5663_v36, %v13431_v43  ;;  %v5665_v52 = vpop.f32.mrb[65].mxu0  ;;  %v8726_v45 = vpop.f32.mrb[59].mxu1  ;;  %v5735_v34 = vadd.f32 %v5734_v29, %v13452_v13 }
0x1cce   :  { %v5666_v8 = vadd.f32 %v5665_v52, %v13434_v39 }
0x1ccf   :  { %v5739_v59 = vrot.slane %v5664_v18, 6  ;;  %v5759_v16 = vrot.slane %v5735_v34, 6 }
0x1cd0   :  { %v5749_v21 = vrot.slane %v5666_v8, 6 }
0x1cd1   :  { %v5741_v41 = vadd.f32 %v5739_v59, %v13441_v46 }
0x1cd2   :  { %v5751_v28 = vadd.f32 %v5749_v21, %v13448_v37 }
0x1cd3   :  { %v7027_v58 = vmul.f32 -1.442695, %v5741_v41 }
0x1cd4   :  { %v7028_v22 = vmul.f32 -1.442695, %v5751_v28 }
0x1cd5   :  { %11311 = vpow2.f32 %v7027_v58 }
0x1cd6   :  { %11313 = vpow2.f32 %v7028_v22 }
0x1cdf   :  { %v11312_v61 = vpop.eup %11311 }
0x1ce0   :  { %v11314_v57 = vpop.eup %11313  ;;  %v5745_v12 = vadd.f32 1.0, %v11312_v61 }
0x1ce1   :  { %v5755_v50 = vadd.f32 1.0, %v11314_v57 }
0x1ce2   :  { %11315 = vrcp.f32 %v5745_v12 }
0x1ce3   :  { %11317 = vrcp.f32 %v5755_v50 }
0x1cec   :  { %v11316_v38 = vpop.eup %11315 }
0x1ced   :  { %v11318_v62 = vpop.eup %11317  ;;  %v5761_v44 = vmul.f32 %v11316_v38, %v5759_v16 }
0x1cee   :  { %v5769_v42 = vmul.f32 %v11318_v62, %v5767_v20  ;;  %v5764_v27 = vsub.f32 1.0, %v11318_v62 }
0x1cef   :  { %v5762_v60 = vadd.f32 %v5761_v44, %v13455_v63 }
0x1cf1   :  { %11319 = vtanh.f32 %v5762_v60 }
0x1cfb   :  { %v11320_v36 = vpop.eup %11319 }
0x1cfc   :  { %v5765_v18 = vmul.f32 %v11320_v36, %v5764_v27 }
0x1cfe   :  { %v13505_v52 = vadd.f32 %v5769_v42, %v5765_v18 }
0x1d00   :  { %5771 = vst [vmem:[#allocation3] sm:$0xc] %v13505_v52  ;;  %v5773_v45 = vrot.slane %v13505_v52, 2  ;;  %v5944_v42 = vrot.slane %v13505_v52, 6 }
0x1d02   :  { %5840 = vmatmul.mubr.f32.vlgmr.msra.gmra.mrb[66].mxu0 %v5773_v45  ;;  %8760 = vmatmul.mubr.f32.vlgmr.msra.gmra.mrb[60].mxu1 %v5773_v45 }
0x1d03   :  { %10735 = vmatpush1.bf16.msra.mxu0 %v13283_v9  ;;  %10766 = vmatpush3.bf16.msra.mxu1 %v13342_v4 }
0x1d04   :  { %10737 = vmatprep.subr.bf16.mxu0 %v13287_v11  ;;  %10767 = vmatprep.subr.bf16.mxu1 %v11581_v1 }
0x1d05   :  { %6016 = vmatprep.mubr.f32.mxu0 %v11582_v2  ;;  %8794 = vmatprep.mubr.msk.f32.mxu1 %vm11583_vm0, %v11582_v2 }
0x1d07   :  { %10739 = vmatpush1.bf16.msra.mxu0 %v13289_v3  ;;  %10769 = vmatpush3.bf16.msra.mxu1 %v13346_v53 }
0x1d08   :  { %10741 = vmatprep.subr.bf16.mxu0 %v13293_v49  ;;  %10770 = vmatprep.subr.bf16.mxu1 %v11581_v1 }
0x1d0b   :  { %10743 = vmatpush1.bf16.msra.mxu0 %v13295_v19  ;;  %10772 = vmatpush3.bf16.msra.mxu1 %v13353_v47 }
0x1d0c   :  { %10745 = vmatprep.subr.bf16.mxu0 %v13299_v40  ;;  %10773 = vmatprep.subr.bf16.mxu1 %v11581_v1 }
0x1d0f   :  { %10747 = vmatpush1.bf16.msra.mxu0 %v13301_v24  ;;  %10775 = vmatpush3.bf16.msra.mxu1 %v13360_v26 }
0x1d10   :  { %10749 = vmatprep.subr.bf16.mxu0 %v13305_v56  ;;  %10776 = vmatprep.subr.bf16.mxu1 %v11581_v1 }
0x1d13   :  { %10751 = vmatpush1.bf16.msra.mxu0 %v13307_v31  ;;  %10778 = vmatpush3.bf16.msra.mxu1 %v13366_v15 }
0x1d14   :  { %10753 = vmatprep.subr.bf16.mxu0 %v13311_v25  ;;  %10779 = vmatprep.subr.bf16.mxu1 %v11581_v1 }
0x1d17   :  { %10755 = vmatpush1.bf16.msra.mxu0 %v13313_v35  ;;  %10781 = vmatpush3.bf16.msra.mxu1 %v13372_v32 }
0x1d18   :  { %10757 = vmatprep.subr.bf16.mxu0 %v13317_v48  ;;  %10782 = vmatprep.subr.bf16.mxu1 %v11581_v1 }
0x1d1b   :  { %10759 = vmatpush1.bf16.msra.mxu0 %v13319_v10  ;;  %10784 = vmatpush3.bf16.msra.mxu1 %v13378_v6 }
0x1d1c   :  { %10761 = vmatprep.subr.bf16.mxu0 %v13324_v5  ;;  %10785 = vmatprep.subr.bf16.mxu1 %v11581_v1 }
0x1d1f   :  { %10763 = vmatpush1.bf16.msra.mxu0 %v13326_v55  ;;  %10787 = vmatpush3.bf16.msra.mxu1 %v13384_v14 }
0x1d20   :  { %10789 = vmatprep.subr.bf16.mxu0 %v13281_v30  ;;  %10820 = vmatprep.subr.bf16.mxu1 %v11581_v1 }
0x1dd5   :  { %v5841_v7 = vpop.f32.mrb[66].mxu0  ;;  %v5912_v29 = vpop.f32.mrb[60].mxu1 }
0x1dd6   :  { %v5842_v8 = vadd.f32 %v5841_v7, %v13431_v43  ;;  %v5843_v59 = vpop.f32.mrb[67].mxu0  ;;  %v8761_v21 = vpop.f32.mrb[61].mxu1  ;;  %v5913_v20 = vadd.f32 %v5912_v29, %v13452_v13 }
0x1dd7   :  { %v5844_v41 = vadd.f32 %v5843_v59, %v13434_v39 }
0x1dd8   :  { %v5917_v28 = vrot.slane %v5842_v8, 4  ;;  %v5937_v62 = vrot.slane %v5913_v20, 4 }
0x1dd9   :  { %v5927_v58 = vrot.slane %v5844_v41, 4 }
0x1dda   :  { %v5919_v22 = vadd.f32 %v5917_v28, %v13441_v46 }
0x1ddb   :  { %v5929_v61 = vadd.f32 %v5927_v58, %v13448_v37 }
0x1ddc   :  { %v7029_v57 = vmul.f32 -1.442695, %v5919_v22 }
0x1ddd   :  { %v7030_v12 = vmul.f32 -1.442695, %v5929_v61 }
0x1dde   :  { %11321 = vpow2.f32 %v7029_v57 }
0x1ddf   :  { %11323 = vpow2.f32 %v7030_v12 }
0x1de8   :  { %v11322_v50 = vpop.eup %11321 }
0x1de9   :  { %v11324_v34 = vpop.eup %11323  ;;  %v5923_v16 = vadd.f32 1.0, %v11322_v50 }
0x1dea   :  { %v5933_v38 = vadd.f32 1.0, %v11324_v34 }
0x1deb   :  { %11325 = vrcp.f32 %v5923_v16 }
0x1dec   :  { %11327 = vrcp.f32 %v5933_v38 }
0x1df5   :  { %v11326_v44 = vpop.eup %11325 }
0x1df6   :  { %v11328_v60 = vpop.eup %11327  ;;  %v5939_v27 = vmul.f32 %v11326_v44, %v5937_v62 }
0x1df7   :  { %v5946_v36 = vmul.f32 %v11328_v60, %v5944_v42  ;;  %v5942_v45 = vsub.f32 1.0, %v11328_v60 }
0x1df8   :  { %v5940_v18 = vadd.f32 %v5939_v27, %v13455_v63 }
0x1dfa   :  { %11329 = vtanh.f32 %v5940_v18 }
0x1e04   :  { %v11330_v7 = vpop.eup %11329 }
0x1e05   :  { %v5943_v8 = vmul.f32 %v11330_v7, %v5942_v45 }
0x1e07   :  { %v13551_v59 = vadd.f32 %v5946_v36, %v5943_v8 }
0x1e09   :  { %5948 = vst [vmem:[#allocation3] sm:$0x30] %v13551_v59  ;;  %v5950_v21 = vrot.slane %v13551_v59, 4  ;;  %v6121_v36 = vrot.slane %v13551_v59, 6 }
0x1e0b   :  { %6017 = vmatmul.mubr.f32.vlgmr.msra.gmra.mrb[68].mxu0 %v5950_v21  ;;  %8795 = vmatmul.mubr.f32.vlgmr.msra.gmra.mrb[62].mxu1 %v5950_v21 }
0x1e0c   :  { %10791 = vmatpush1.bf16.msra.mxu0 %v13283_v9  ;;  %10822 = vmatpush3.bf16.msra.mxu1 %v13342_v4 }
0x1e0d   :  { %10793 = vmatprep.subr.bf16.mxu0 %v13287_v11  ;;  %10823 = vmatprep.subr.bf16.mxu1 %v11581_v1 }
0x1e0e   :  { %6193 = vmatprep.mubr.f32.mxu0 %v11582_v2  ;;  %8829 = vmatprep.mubr.msk.f32.mxu1 %vm11583_vm0, %v11582_v2 }
0x1e10   :  { %10795 = vmatpush1.bf16.msra.mxu0 %v13289_v3  ;;  %10825 = vmatpush3.bf16.msra.mxu1 %v13346_v53 }
0x1e11   :  { %10797 = vmatprep.subr.bf16.mxu0 %v13293_v49  ;;  %10826 = vmatprep.subr.bf16.mxu1 %v11581_v1 }
0x1e14   :  { %10799 = vmatpush1.bf16.msra.mxu0 %v13295_v19  ;;  %10828 = vmatpush3.bf16.msra.mxu1 %v13353_v47 }
0x1e15   :  { %10801 = vmatprep.subr.bf16.mxu0 %v13299_v40  ;;  %10829 = vmatprep.subr.bf16.mxu1 %v11581_v1 }
0x1e18   :  { %10803 = vmatpush1.bf16.msra.mxu0 %v13301_v24  ;;  %10831 = vmatpush3.bf16.msra.mxu1 %v13360_v26 }
0x1e19   :  { %10805 = vmatprep.subr.bf16.mxu0 %v13305_v56  ;;  %10832 = vmatprep.subr.bf16.mxu1 %v11581_v1 }
0x1e1c   :  { %10807 = vmatpush1.bf16.msra.mxu0 %v13307_v31  ;;  %10834 = vmatpush3.bf16.msra.mxu1 %v13366_v15 }
0x1e1d   :  { %10809 = vmatprep.subr.bf16.mxu0 %v13311_v25  ;;  %10835 = vmatprep.subr.bf16.mxu1 %v11581_v1 }
0x1e20   :  { %10811 = vmatpush1.bf16.msra.mxu0 %v13313_v35  ;;  %10837 = vmatpush3.bf16.msra.mxu1 %v13372_v32 }
0x1e21   :  { %10813 = vmatprep.subr.bf16.mxu0 %v13317_v48  ;;  %10838 = vmatprep.subr.bf16.mxu1 %v11581_v1 }
0x1e24   :  { %10815 = vmatpush1.bf16.msra.mxu0 %v13319_v10  ;;  %10840 = vmatpush3.bf16.msra.mxu1 %v13378_v6 }
0x1e25   :  { %10817 = vmatprep.subr.bf16.mxu0 %v13324_v5  ;;  %10841 = vmatprep.subr.bf16.mxu1 %v11581_v1 }
0x1e28   :  { %10819 = vmatpush1.bf16.msra.mxu0 %v13326_v55  ;;  %10843 = vmatpush3.bf16.msra.mxu1 %v13384_v14 }
0x1e29   :  { %10845 = vmatprep.subr.bf16.mxu0 %v13281_v30  ;;  %10876 = vmatprep.subr.bf16.mxu1 %v11581_v1 }
0x1ede   :  { %v6018_v52 = vpop.f32.mrb[68].mxu0  ;;  %v6089_v29 = vpop.f32.mrb[62].mxu1 }
0x1edf   :  { %v6019_v41 = vadd.f32 %v6018_v52, %v13431_v43  ;;  %v6020_v28 = vpop.f32.mrb[69].mxu0  ;;  %v8796_v58 = vpop.f32.mrb[63].mxu1  ;;  %v6090_v42 = vadd.f32 %v6089_v29, %v13452_v13 }
0x1ee0   :  { %v6021_v22 = vadd.f32 %v6020_v28, %v13434_v39 }
0x1ee1   :  { %v6094_v61 = vrot.slane %v6019_v41, 2  ;;  %v6114_v60 = vrot.slane %v6090_v42, 2 }
0x1ee2   :  { %v6104_v57 = vrot.slane %v6021_v22, 2 }
0x1ee3   :  { %v6096_v12 = vadd.f32 %v6094_v61, %v13441_v46 }
0x1ee4   :  { %v6106_v50 = vadd.f32 %v6104_v57, %v13448_v37 }
0x1ee5   :  { %v7031_v34 = vmul.f32 -1.442695, %v6096_v12  ;;  %v13644_v12 = vadd.f32 %v13421_v23, %v13424_v17 }
0x1ee6   :  { %v7032_v16 = vmul.f32 -1.442695, %v6106_v50 }
0x1ee7   :  { %11331 = vpow2.f32 %v7031_v34 }
0x1ee8   :  { %11333 = vpow2.f32 %v7032_v16 }
0x1ef1   :  { %v11332_v38 = vpop.eup %11331 }
0x1ef2   :  { %v11334_v20 = vpop.eup %11333  ;;  %v6100_v62 = vadd.f32 1.0, %v11332_v38 }
0x1ef3   :  { %v6110_v44 = vadd.f32 1.0, %v11334_v20 }
0x1ef4   :  { %11335 = vrcp.f32 %v6100_v62  ;;  %v13651_v62 = vadd.f32 %v13428_v54, %v13437_v33 }
0x1ef5   :  { %11337 = vrcp.f32 %v6110_v44 }
0x1efe   :  { %v11336_v27 = vpop.eup %11335 }
0x1eff   :  { %v11338_v18 = vpop.eup %11337  ;;  %v6116_v46 = vmul.f32 %v11336_v27, %v6114_v60 }
0x1f00   :  { %v6123_v45 = vmul.f32 %v11338_v18, %v6121_v36  ;;  %v6119_v7 = vsub.f32 1.0, %v11338_v18 }
0x1f01   :  { %v6117_v37 = vadd.f32 %v6116_v46, %v13455_v63 }
0x1f03   :  { %11339 = vtanh.f32 %v6117_v37 }
0x1f0d   :  { %v11340_v8 = vpop.eup %11339 }
0x1f0e   :  { %v6120_v21 = vmul.f32 %v11340_v8, %v6119_v7 }
0x1f10   :  { %v6124_v52 = vadd.f32 %v6123_v45, %v6120_v21 }
0x1f12   :  { %6125 = vst [vmem:[#allocation3] sm:$0xc0] %v6124_v52  ;;  %v13597_v41 = vrot.slane %v6124_v52, 6 }
0x1f14   :  { %6194 = vmatmul.mubr.f32.vlgmr.msra.gmra.mrb[70].mxu0 %v13597_v41  ;;  %8830 = vmatmul.mubr.f32.vlgmr.msra.gmra.mrb[64].mxu1 %v13597_v41 }
0x1f15   :  { %10847 = vmatpush1.bf16.msra.mxu0 %v13283_v9  ;;  %10878 = vmatpush3.bf16.msra.mxu1 %v13342_v4 }
0x1f16   :  { %10849 = vmatprep.subr.bf16.mxu0 %v13287_v11  ;;  %10879 = vmatprep.subr.bf16.mxu1 %v11581_v1 }
0x1f17   :  { %6356 = vmatprep.mubr.f32.mxu0 %v11582_v2  ;;  %8864 = vmatprep.mubr.msk.f32.mxu1 %vm11583_vm0, %v11582_v2 }
0x1f19   :  { %v6821_v63 = vld [vmem:[#allocation3] sm:$0xff]  ;;  %10851 = vmatpush1.bf16.msra.mxu0 %v13289_v3  ;;  %10881 = vmatpush3.bf16.msra.mxu1 %v13346_v53 }
0x1f1a   :  { %6825 = vadd.xlane.f32.xlu0 %v6821_v63  ;;  %10853 = vmatprep.subr.bf16.mxu0 %v13293_v49 }
0x1f1b   :  { %10882 = vmatprep.subr.bf16.mxu1 %v11581_v1 }
0x1f1d   :  { %10855 = vmatpush1.bf16.msra.mxu0 %v13295_v19  ;;  %10884 = vmatpush3.bf16.msra.mxu1 %v13353_v47 }
0x1f1e   :  { %10857 = vmatprep.subr.bf16.mxu0 %v13299_v40  ;;  %10885 = vmatprep.subr.bf16.mxu1 %v11581_v1 }
0x1f21   :  { %10859 = vmatpush1.bf16.msra.mxu0 %v13301_v24  ;;  %10887 = vmatpush3.bf16.msra.mxu1 %v13360_v26 }
0x1f22   :  { %10861 = vmatprep.subr.bf16.mxu0 %v13305_v56  ;;  %10888 = vmatprep.subr.bf16.mxu1 %v11581_v1 }
0x1f25   :  { %10863 = vmatpush1.bf16.msra.mxu0 %v13307_v31  ;;  %10890 = vmatpush3.bf16.msra.mxu1 %v13366_v15 }
0x1f26   :  { %10865 = vmatprep.subr.bf16.mxu0 %v13311_v25  ;;  %10891 = vmatprep.subr.bf16.mxu1 %v11581_v1 }
0x1f29   :  { %10867 = vmatpush1.bf16.msra.mxu0 %v13313_v35  ;;  %10893 = vmatpush3.bf16.msra.mxu1 %v13372_v32 }
0x1f2a   :  { %10869 = vmatprep.subr.bf16.mxu0 %v13317_v48  ;;  %10894 = vmatprep.subr.bf16.mxu1 %v11581_v1 }
0x1f2d   :  { %10871 = vmatpush1.bf16.msra.mxu0 %v13319_v10  ;;  %10896 = vmatpush3.bf16.msra.mxu1 %v13378_v6 }
0x1f2e   :  { %10873 = vmatprep.subr.bf16.mxu0 %v13324_v5  ;;  %10897 = vmatprep.subr.bf16.mxu1 %v11581_v1 }
0x1f31   :  { %10875 = vmatpush1.bf16.msra.mxu0 %v13326_v55  ;;  %10899 = vmatpush3.bf16.msra.mxu1 %v13384_v14 }
0x1f32   :  { %10901 = vmatprep.subr.bf16.mxu0 %v13281_v30  ;;  %10932 = vmatprep.subr.bf16.mxu1 %v11581_v1 }
0x1fa7   :  { %v6826_v59 = vpop.xlane.xlu0 %6825 }
0x1fa8   :  { %v6829_v29 = vmul.f32 0.015625, %v6826_v59 }
0x1faa   :  { %v6831_v28 = vsub.f32 %v6821_v63, %v6829_v29 }
0x1fac   :  { %v13638_v58 = vsel %vm187_vm1, %v6831_v28, 0.0 }
0x1fad   :  { %v6835_v22 = vmul.f32 %v13638_v58, %v13638_v58 }
0x1faf   :  { %6837 = vadd.xlane.f32.xlu0 %v6835_v22 }
0x1fe7   :  { %v6195_v61 = vpop.f32.mrb[70].mxu0  ;;  %v6266_v57 = vpop.f32.mrb[64].mxu1 }
0x1fe8   :  { %v6196_v50 = vadd.f32 %v6195_v61, %v13431_v43  ;;  %v6197_v34 = vpop.f32.mrb[71].mxu0  ;;  %v8831_v16 = vpop.f32.mrb[65].mxu1  ;;  %v6267_v18 = vadd.f32 %v6266_v57, %v13452_v13 }
0x1fe9   :  { %v6198_v38 = vadd.f32 %v6197_v34, %v13434_v39 }
0x1fea   :  { %v6270_v20 = vadd.f32 %v6196_v50, %v13644_v12 }
0x1feb   :  { %v6277_v42 = vadd.f32 %v6198_v38, %v13651_v62 }
0x1fec   :  { %v7033_v44 = vmul.f32 -1.442695, %v6270_v20 }
0x1fed   :  { %v7034_v60 = vmul.f32 -1.442695, %v6277_v42 }
0x1fee   :  { %11341 = vpow2.f32 %v7033_v44 }
0x1fef   :  { %11343 = vpow2.f32 %v7034_v60 }
0x1ff8   :  { %v11342_v23 = vpop.eup %11341 }
0x1ff9   :  { %v6274_v17 = vadd.f32 1.0, %v11342_v23  ;;  %v11344_v27 = vpop.eup %11343 }
0x1ffa   :  { %v6281_v36 = vadd.f32 1.0, %v11344_v27 }
0x1ffb   :  { %11345 = vrcp.f32 %v6274_v17 }
0x1ffc   :  { %11347 = vrcp.f32 %v6281_v36 }
0x2005   :  { %v11346_v46 = vpop.eup %11345 }
0x2006   :  { %v6284_v45 = vmul.f32 %v11346_v46, %v6267_v18  ;;  %v11348_v54 = vpop.eup %11347 }
0x2007   :  { %v6287_v33 = vsub.f32 1.0, %v11348_v54  ;;  %v6289_v21 = vmul.f32 %v11348_v54, %v13597_v41 }
0x2008   :  { %v6285_v37 = vadd.f32 %v6284_v45, %v13426_v0 }
0x200a   :  { %11349 = vtanh.f32 %v6285_v37 }
0x2014   :  { %v11350_v7 = vpop.eup %11349 }
0x2015   :  { %v6288_v8 = vmul.f32 %v11350_v7, %v6287_v33 }
0x2017   :  { %v13657_v52 = vadd.f32 %v6289_v21, %v6288_v8 }
0x2019   :  { %6291 = vst [vmem:[#allocation3 + $0x8] sm:$0x3] %v13657_v52  ;;  %6357 = vmatmul.mubr.f32.vlgmr.msra.gmra.mrb[72].mxu0 %v13657_v52  ;;  %8865 = vmatmul.mubr.f32.vlgmr.msra.gmra.mrb[66].mxu1 %v13657_v52  ;;  %v6462_v27 = vrot.slane %v13657_v52, 6 }
0x201a   :  { %10903 = vmatpush1.bf16.msra.mxu0 %v13283_v9  ;;  %10934 = vmatpush3.bf16.msra.mxu1 %v13342_v4 }
0x201b   :  { %10905 = vmatprep.subr.bf16.mxu0 %v13287_v11  ;;  %10935 = vmatprep.subr.bf16.mxu1 %v11581_v1 }
0x201c   :  { %6534 = vmatprep.mubr.f32.mxu0 %v11582_v2  ;;  %8899 = vmatprep.mubr.msk.f32.mxu1 %vm11583_vm0, %v11582_v2 }
0x201e   :  { %10907 = vmatpush1.bf16.msra.mxu0 %v13289_v3  ;;  %10937 = vmatpush3.bf16.msra.mxu1 %v13346_v53 }
0x201f   :  { %10909 = vmatprep.subr.bf16.mxu0 %v13293_v49  ;;  %10938 = vmatprep.subr.bf16.mxu1 %v11581_v1 }
0x2022   :  { %10911 = vmatpush1.bf16.msra.mxu0 %v13295_v19  ;;  %10940 = vmatpush3.bf16.msra.mxu1 %v13353_v47 }
0x2023   :  { %10913 = vmatprep.subr.bf16.mxu0 %v13299_v40  ;;  %10941 = vmatprep.subr.bf16.mxu1 %v11581_v1 }
0x2026   :  { %10915 = vmatpush1.bf16.msra.mxu0 %v13301_v24  ;;  %10943 = vmatpush3.bf16.msra.mxu1 %v13360_v26 }
0x2027   :  { %10917 = vmatprep.subr.bf16.mxu0 %v13305_v56  ;;  %10944 = vmatprep.subr.bf16.mxu1 %v11581_v1 }
0x202a   :  { %10919 = vmatpush1.bf16.msra.mxu0 %v13307_v31  ;;  %10946 = vmatpush3.bf16.msra.mxu1 %v13366_v15 }
0x202b   :  { %10921 = vmatprep.subr.bf16.mxu0 %v13311_v25  ;;  %10947 = vmatprep.subr.bf16.mxu1 %v11581_v1 }
0x202e   :  { %10923 = vmatpush1.bf16.msra.mxu0 %v13313_v35  ;;  %10949 = vmatpush3.bf16.msra.mxu1 %v13372_v32 }
0x202f   :  { %10925 = vmatprep.subr.bf16.mxu0 %v13317_v48  ;;  %10950 = vmatprep.subr.bf16.mxu1 %v11581_v1 }
0x2032   :  { %10927 = vmatpush1.bf16.msra.mxu0 %v13319_v10  ;;  %10952 = vmatpush3.bf16.msra.mxu1 %v13378_v6 }
0x2033   :  { %10929 = vmatprep.subr.bf16.mxu0 %v13324_v5  ;;  %10953 = vmatprep.subr.bf16.mxu1 %v11581_v1 }
0x2036   :  { %10931 = vmatpush1.bf16.msra.mxu0 %v13326_v55  ;;  %10955 = vmatpush3.bf16.msra.mxu1 %v13384_v14 }
0x2037   :  { %10957 = vmatprep.subr.bf16.mxu0 %v13281_v30  ;;  %10988 = vmatprep.subr.bf16.mxu1 %v11581_v1 }
0x20ec   :  { %v6358_v41 = vpop.f32.mrb[72].mxu0  ;;  %v6429_v63 = vpop.f32.mrb[66].mxu1 }
0x20ed   :  { %v6359_v59 = vadd.f32 %v6358_v41, %v13431_v43  ;;  %v6360_v29 = vpop.f32.mrb[73].mxu0  ;;  %v8866_v28 = vpop.f32.mrb[67].mxu1  ;;  %v6430_v60 = vadd.f32 %v6429_v63, %v13452_v13 }
0x20ee   :  { %v6361_v22 = vadd.f32 %v6360_v29, %v13434_v39  ;;  %v13752_v29 = vld [vmem:[%s13844_s19] ss:$0 sm:$0xff] }
0x20ef   :  { %v6434_v61 = vrot.slane %v6359_v59, 6  ;;  %v6454_v23 = vrot.slane %v6430_v60, 6 }
0x20f0   :  { %v6444_v57 = vrot.slane %v6361_v22, 6 }
0x20f1   :  { %v6436_v50 = vadd.f32 %v6434_v61, %v13644_v12 }
0x20f2   :  { %v6446_v34 = vadd.f32 %v6444_v57, %v13651_v62 }
0x20f3   :  { %v7035_v16 = vmul.f32 -1.442695, %v6436_v50  ;;  %v13758_v50 = vld [vmem:[%s13845_s20] ss:$0 sm:$0xff] }
0x20f4   :  { %v7036_v38 = vmul.f32 -1.442695, %v6446_v34 }
0x20f5   :  { %11351 = vpow2.f32 %v7035_v16 }
0x20f6   :  { %11353 = vpow2.f32 %v7036_v38 }
0x20ff   :  { %v11352_v30 = vpop.eup %11351 }
0x2100   :  { %v11354_v20 = vpop.eup %11353  ;;  %v6440_v44 = vadd.f32 1.0, %v11352_v30 }
0x2101   :  { %v6450_v42 = vadd.f32 1.0, %v11354_v20 }
0x2102   :  { %11355 = vrcp.f32 %v6440_v44 }
0x2103   :  { %11357 = vrcp.f32 %v6450_v42 }
0x210c   :  { %v11356_v17 = vpop.eup %11355 }
0x210d   :  { %v11358_v36 = vpop.eup %11357  ;;  %v6456_v18 = vmul.f32 %v11356_v17, %v6454_v23 }
0x210e   :  { %v6464_v46 = vmul.f32 %v11358_v36, %v6462_v27  ;;  %v6459_v37 = vsub.f32 1.0, %v11358_v36 }
0x210f   :  { %v6457_v45 = vadd.f32 %v6456_v18, %v13426_v0 }
0x2111   :  { %11359 = vtanh.f32 %v6457_v45 }
0x211b   :  { %v11360_v54 = vpop.eup %11359 }
0x211c   :  { %v6460_v33 = vmul.f32 %v11360_v54, %v6459_v37 }
0x211e   :  { %v13704_v7 = vadd.f32 %v6464_v46, %v6460_v33 }
0x2120   :  { %6466 = vst [vmem:[#allocation3 + $0x8] sm:$0xc] %v13704_v7  ;;  %v6468_v8 = vrot.slane %v13704_v7, 2 }
0x2122   :  { %6535 = vmatmul.mubr.f32.vlgmr.msra.gmra.mrb[74].mxu0 %v6468_v8  ;;  %8900 = vmatmul.mubr.f32.vlgmr.msra.gmra.mrb[68].mxu1 %v6468_v8 }
0x2123   :  { %10959 = vmatpush1.bf16.msra.mxu0 %v13283_v9  ;;  %10990 = vmatpush3.bf16.msra.mxu1 %v13342_v4 }
0x2124   :  { %10961 = vmatprep.subr.bf16.mxu0 %v13287_v11  ;;  %10991 = vmatprep.subr.bf16.mxu1 %v11581_v1 }
0x2125   :  { %6711 = vmatprep.mubr.f32.mxu0 %v11582_v2  ;;  %8934 = vmatprep.mubr.msk.f32.mxu1 %vm11583_vm0, %v11582_v2 }
0x2127   :  { %10963 = vmatpush1.bf16.msra.mxu0 %v13289_v3  ;;  %10993 = vmatpush3.bf16.msra.mxu1 %v13346_v53 }
0x2128   :  { %10965 = vmatprep.subr.bf16.mxu0 %v13293_v49  ;;  %10994 = vmatprep.subr.bf16.mxu1 %v11581_v1 }
0x212b   :  { %10967 = vmatpush1.bf16.msra.mxu0 %v13295_v19  ;;  %10996 = vmatpush3.bf16.msra.mxu1 %v13353_v47 }
0x212c   :  { %10969 = vmatprep.subr.bf16.mxu0 %v13299_v40  ;;  %10997 = vmatprep.subr.bf16.mxu1 %v11581_v1 }
0x212f   :  { %10971 = vmatpush1.bf16.msra.mxu0 %v13301_v24  ;;  %10999 = vmatpush3.bf16.msra.mxu1 %v13360_v26 }
0x2130   :  { %10973 = vmatprep.subr.bf16.mxu0 %v13305_v56  ;;  %11000 = vmatprep.subr.bf16.mxu1 %v11581_v1 }
0x2133   :  { %10975 = vmatpush1.bf16.msra.mxu0 %v13307_v31  ;;  %11002 = vmatpush3.bf16.msra.mxu1 %v13366_v15 }
0x2134   :  { %10977 = vmatprep.subr.bf16.mxu0 %v13311_v25  ;;  %11003 = vmatprep.subr.bf16.mxu1 %v11581_v1 }
0x2137   :  { %10979 = vmatpush1.bf16.msra.mxu0 %v13313_v35  ;;  %11005 = vmatpush3.bf16.msra.mxu1 %v13372_v32  ;;  %v6639_v32 = vrot.slane %v13704_v7, 6 }
0x2138   :  { %10981 = vmatprep.subr.bf16.mxu0 %v13317_v48  ;;  %11006 = vmatprep.subr.bf16.mxu1 %v11581_v1 }
0x213b   :  { %10983 = vmatpush1.bf16.msra.mxu0 %v13319_v10  ;;  %11008 = vmatpush3.bf16.msra.mxu1 %v13378_v6 }
0x213c   :  { %10985 = vmatprep.subr.bf16.mxu0 %v13324_v5  ;;  %11009 = vmatprep.subr.bf16.mxu1 %v11581_v1  ;;  %v6838_v5 = vpop.xlane.xlu0 %6837 }
0x213d   :  { %v6841_v4 = vmul.f32 0.015625, %v6838_v5 }
0x213f   :  { %10987 = vmatpush1.bf16.msra.mxu0 %v13326_v55  ;;  %11011 = vmatpush3.bf16.msra.mxu1 %v13384_v14  ;;  %v6843_v47 = vadd.f32 1e-05, %v6841_v4 }
0x21f5   :  { %v6536_v2 = vpop.f32.mrb[74].mxu0  ;;  %v6607_v9 = vpop.f32.mrb[68].mxu1 }
0x21f6   :  { %v6537_v11 = vadd.f32 %v6536_v2, %v13431_v43  ;;  %v6538_v3 = vpop.f32.mrb[75].mxu0  ;;  %v8901_v49 = vpop.f32.mrb[69].mxu1  ;;  %v6608_v53 = vadd.f32 %v6607_v9, %v13452_v13 }
0x21f7   :  { %v6539_v19 = vadd.f32 %v6538_v3, %v13434_v39 }
0x21f8   :  { %v6612_v40 = vrot.slane %v6537_v11, 4  ;;  %v6632_v26 = vrot.slane %v6608_v53, 4  ;;  %v6871_v53 = vld [vmem:[%s13846_s21 + $0x30] sm:$0xff] }
0x21f9   :  { %v6622_v24 = vrot.slane %v6539_v19, 4 }
0x21fa   :  { %v6614_v56 = vadd.f32 %v6612_v40, %v13644_v12  ;;  %v6866_v40 = vld [vmem:[%s13846_s21 + $0x8] sm:$0xff] }
0x21fb   :  { %v6624_v31 = vadd.f32 %v6622_v24, %v13651_v62 }
0x21fc   :  { %v7037_v25 = vmul.f32 -1.442695, %v6614_v56  ;;  %v6868_v56 = vld [vmem:[%s13846_s21 + $0x18] sm:$0xff] }
0x21fd   :  { %v7038_v1 = vmul.f32 -1.442695, %v6624_v31 }
0x21fe   :  { %11361 = vpow2.f32 %v7037_v25  ;;  %v6869_v25 = vld [vmem:[%s13846_s21 + $0x20] sm:$0xff] }
0x21ff   :  { %11363 = vpow2.f32 %v7038_v1  ;;  %v6870_v1 = vld [vmem:[%s13846_s21 + $0x28] sm:$0xff] }
0x2208   :  { %v11362_v35 = vpop.eup %11361 }
0x2209   :  { %v11364_v48 = vpop.eup %11363  ;;  %v6618_v10 = vadd.f32 1.0, %v11362_v35  ;;  %v11020_v35 = vpack.c.bf16 %v6870_v1, %v6869_v25 }
0x220a   :  { %v6628_v55 = vadd.f32 1.0, %v11364_v48 }
0x220b   :  { %11365 = vrcp.f32 %v6618_v10 }
0x220c   :  { %11367 = vrcp.f32 %v6628_v55 }
0x220d   :  { %11369 = vrsqrt.f32 %v6843_v47  ;;  %v6872_v47 = vld [vmem:[%s13846_s21 + $0x38] sm:$0xff] }
0x2215   :  { %v11366_v15 = vpop.eup %11365 }
0x2216   :  { %v11368_v6 = vpop.eup %11367  ;;  %v6634_v14 = vmul.f32 %v11366_v15, %v6632_v26  ;;  %v11024_v26 = vpack.c.bf16 %v6872_v47, %v6871_v53  ;;  %v6873_v15 = vld [vmem:[%s13846_s21 + $0x40] sm:$0xff] }
0x2217   :  { %v6641_v21 = vmul.f32 %v11368_v6, %v6639_v32  ;;  %v11370_v41 = vpop.eup %11369  ;;  %v6637_v59 = vsub.f32 1.0, %v11368_v6  ;;  %v11028_v32 = vpack.c.bf16 %v6874_v51, %v6873_v15  ;;  %v6875_v6 = vld [vmem:[%s13846_s21 + $0x50] sm:$0xff] }
0x2218   :  { %v6635_v52 = vadd.f32 %v6634_v14, %v13426_v0  ;;  %v6847_v63 = vmul.f32 %v11370_v41, %v13638_v58  ;;  %v6876_v14 = vld [vmem:[%s13846_s21 + $0x58] sm:$0xff]  ;;  %v6878_v41 = vld [vmem:[%s13846_s21 + $0x68] sm:$0xff] }
0x221a   :  { %11371 = vtanh.f32 %v6635_v52  ;;  %v6855_v61 = vmul.f32 %v13752_v29, %v6847_v63  ;;  %v6877_v52 = vld [vmem:[%s13846_s21 + $0x60] sm:$0xff] }
0x221b   :  { %v11036_v63 = vpack.c.bf16 %v6878_v41, %v6877_v52 }
0x221c   :  { %v6863_v58 = vadd.f32 %v13758_v50, %v6855_v61 }
0x2224   :  { %v11372_v28 = vpop.eup %11371 }
0x2225   :  { %v6638_v22 = vmul.f32 %v11372_v28, %v6637_v59  ;;  %v6879_v59 = vld [vmem:[%s13846_s21 + $0x70] sm:$0xff]  ;;  %v6880_v28 = vld [vmem:[%s13846_s21 + $0x78] sm:$0xff] }
0x2227   :  { %v6642_v57 = vadd.f32 %v6641_v21, %v6638_v22  ;;  %v11032_v21 = vpack.c.bf16 %v6876_v14, %v6875_v6  ;;  %v11040_v22 = vpack.c.bf16 %v6880_v28, %v6879_v59 }
0x2229   :  { %6643 = vst [vmem:[#allocation3 + $0x8] sm:$0x30] %v6642_v57  ;;  %v6645_v34 = vrot.slane %v6642_v57, 4  ;;  %v6816_v7 = vrot.slane %v6642_v57, 6 }
0x222b   :  { %6712 = vmatmul.mubr.f32.vlgmr.msra.gmra.mrb[76].mxu0 %v6645_v34  ;;  %8935 = vmatmul.mubr.f32.vlgmr.msra.gmra.mrb[70].mxu1 %v6645_v34 }
0x222c   :  { %8969 = vmatprep.mubr.f32.mxu0 %v6863_v58 }
0x22fe   :  { %v6713_v16 = vpop.f32.mrb[76].mxu0  ;;  %v6784_v38 = vpop.f32.mrb[70].mxu1 }
0x22ff   :  { %v6714_v30 = vadd.f32 %v6713_v16, %v13431_v43  ;;  %v6715_v20 = vpop.f32.mrb[77].mxu0  ;;  %v8936_v44 = vpop.f32.mrb[71].mxu1  ;;  %v6785_v43 = vadd.f32 %v6784_v38, %v13452_v13  ;;  %v6865_v13 = vld [vmem:[%s13846_s21] sm:$0xff] }
0x2300   :  { %v6716_v42 = vadd.f32 %v6715_v20, %v13434_v39  ;;  %v11012_v24 = vpack.c.bf16 %v6866_v40, %v6865_v13  ;;  %v7043_v20 = vld [vmem:[#allocation4] ss:$0 sm:$0xff] }
0x2301   :  { %v6789_v60 = vrot.slane %v6714_v30, 2  ;;  %v6809_v33 = vrot.slane %v6785_v43, 2 }
0x2302   :  { %v6799_v23 = vrot.slane %v6716_v42, 2  ;;  %11013 = vmatprep.subr.bf16.mxu0 %v11012_v24 }
0x2303   :  { %v6791_v17 = vadd.f32 %v6789_v60, %v13644_v12  ;;  %11015 = vmatpush3.bf16.msra.mxu0 %v11012_v24 }
0x2304   :  { %v6801_v27 = vadd.f32 %v6799_v23, %v13651_v62 }
0x2305   :  { %v7039_v36 = vmul.f32 -1.442695, %v6791_v17 }
0x2306   :  { %v7040_v18 = vmul.f32 -1.442695, %v6801_v27 }
0x2307   :  { %11373 = vpow2.f32 %v7039_v36 }
0x2308   :  { %11375 = vpow2.f32 %v7040_v18 }
0x2311   :  { %v11374_v46 = vpop.eup %11373 }
0x2312   :  { %v11376_v45 = vpop.eup %11375  ;;  %v6795_v37 = vadd.f32 1.0, %v11374_v46 }
0x2313   :  { %v6805_v54 = vadd.f32 1.0, %v11376_v45 }
0x2314   :  { %11377 = vrcp.f32 %v6795_v37 }
0x2315   :  { %11379 = vrcp.f32 %v6805_v54 }
0x231e   :  { %v11378_v39 = vpop.eup %11377 }
0x231f   :  { %v11380_v8 = vpop.eup %11379  ;;  %v6811_v2 = vmul.f32 %v11378_v39, %v6809_v33 }
0x2320   :  { %v6818_v12 = vmul.f32 %v11380_v8, %v6816_v7  ;;  %v6814_v9 = vsub.f32 1.0, %v11380_v8 }
0x2321   :  { %v6812_v62 = vadd.f32 %v6811_v2, %v13426_v0  ;;  %v6867_v0 = vld [vmem:[%s13846_s21 + $0x10] sm:$0xff] }
0x2322   :  { %v11016_v31 = vpack.c.bf16 %v6868_v56, %v6867_v0 }
0x2323   :  { %11381 = vtanh.f32 %v6812_v62 }
0x2324   :  { %11017 = vmatprep.subr.bf16.mxu0 %v11016_v31 }
0x2325   :  { %11019 = vmatpush3.bf16.msra.mxu0 %v11016_v31 }
0x2326   :  { %11021 = vmatprep.subr.bf16.mxu0 %v11020_v35 }
0x2329   :  { %11023 = vmatpush3.bf16.msra.mxu0 %v11020_v35 }
0x232a   :  { %11025 = vmatprep.subr.bf16.mxu0 %v11024_v26 }
0x232d   :  { %v11382_v11 = vpop.eup %11381  ;;  %11027 = vmatpush3.bf16.msra.mxu0 %v11024_v26 }
0x232e   :  { %v6815_v3 = vmul.f32 %v11382_v11, %v6814_v9  ;;  %11029 = vmatprep.subr.bf16.mxu0 %v11028_v32 }
0x2330   :  { %v6819_v49 = vadd.f32 %v6818_v12, %v6815_v3 }
0x2331   :  { %11031 = vmatpush3.bf16.msra.mxu0 %v11028_v32 }
0x2332   :  { %6820 = vst [vmem:[#allocation3 + $0x8] sm:$0xc0] %v6819_v49  ;;  %11033 = vmatprep.subr.bf16.mxu0 %v11032_v21 }
0x2335   :  { %11035 = vmatpush3.bf16.msra.mxu0 %v11032_v21 }
0x2336   :  { %11037 = vmatprep.subr.bf16.mxu0 %v11036_v63 }
0x2339   :  { %v6822_v19 = vld [vmem:[#allocation3 + $0x8] sm:$0xff]  ;;  %11039 = vmatpush3.bf16.msra.mxu0 %v11036_v63 }
0x233a   :  { %6827 = vadd.xlane.f32.xlu1 %v6822_v19  ;;  %11041 = vmatprep.subr.bf16.mxu0 %v11040_v22 }
0x233d   :  { %11043 = vmatpush3.bf16.msra.mxu0 %v11040_v22 }
0x23c7   :  { %v6828_v48 = vpop.xlane.xlu1 %6827 }
0x23c8   :  { %v6830_v10 = vmul.f32 0.015625, %v6828_v48 }
0x23ca   :  { %v6832_v5 = vsub.f32 %v6822_v19, %v6830_v10 }
0x23cc   :  { %v6834_v55 = vsel %vm187_vm1, %v6832_v5, 0.0 }
0x23cd   :  { %v6836_v4 = vmul.f32 %v6834_v55, %v6834_v55 }
0x23cf   :  { %6839 = vadd.xlane.f32.xlu1 %v6836_v4 }
0x245c   :  { %v6840_v61 = vpop.xlane.xlu1 %6839 }
0x245d   :  { %v6842_v57 = vmul.f32 0.015625, %v6840_v61 }
0x245f   :  { %v6844_v34 = vadd.f32 1e-05, %v6842_v57 }
0x2461   :  { %11383 = vrsqrt.f32 %v6844_v34 }
0x246b   :  { %v11384_v58 = vpop.eup %11383 }
0x246c   :  { %v6848_v16 = vmul.f32 %v11384_v58, %v6834_v55 }
0x246e   :  { %v6856_v38 = vmul.f32 %v13752_v29, %v6848_v16 }
0x2470   :  { %v6864_v30 = vadd.f32 %v13758_v50, %v6856_v38 }
0x2472   :  { %8970 = vmatmul.mubr.f32.vlgmr.msra.gmra.mrb[78].mxu0 %v6864_v30 }
0x2545   :  { %v8971_v44 = vpop.f32.mrb[78].mxu0 }
0x2546   :  { %v6960_v42 = vadd.f32 %v8971_v44, %v7043_v20  ;;  %v6954_v60 = vpop.f32.mrb[79].mxu0 }
0x2547   :  { %v6955_v23 = vadd.f32 %v7043_v20, %v6954_v60 }
0x2548   :  { %6965 = vst.msk [vmem:[%s13871_s23 + $0x8] sm:$0xff] %vm6963_vm2, %v6960_v42 }
0x2549   :  { %6964 = vst.msk [vmem:[%s13871_s23] sm:$0xff] %vm6963_vm2, %v6955_v23 }
0x254a   :  { %6970 = vsyncpa [#allocation6], 1 }
0x254b   :  { %6971 = vsyncpa [#allocation8], 1 }
0x254c   :  { %6972 = vsyncpa [#allocation11], 1 }
0x254d   :  { %6973 = vsyncpa [#allocation14], 1 }
0x254e   :  { %6974 = vsyncpa [#allocation17], 1 }

</bundles_post_ra>
